<compile_context>
chip_gen: v6e
topology: v6e:2x2x1
jax: 0.10.0
libtpu: 0.0.40
codegen_flags: <defaults>
</compile_context>

<pallas_src>
import functools

import jax
import jax.numpy as jnp
from jax.experimental import pallas as pl
from jax.experimental.pallas import tpu as pltpu

BF16 = jnp.bfloat16
F32 = jnp.float32

_VMEM_LIMIT = 64 * 1024 * 1024   # generous for these shapes; re-budget on v7x


# ----------------------------------------------------------------------------
# In-kernel helpers (traced inside Pallas kernel bodies)
# ----------------------------------------------------------------------------

def _f32_dot(a_bf16, w_bf16):
    """MXU matmul: bf16 operands, f32 accumulation."""
    return jnp.dot(a_bf16, w_bf16, preferred_element_type=jnp.float32)


def _add_ln(x, r, g, b):
    """Fused residual add + LayerNorm (f32 on the VPU)."""
    y = x + r
    mu = jnp.mean(y, axis=-1, keepdims=True)
    var = jnp.mean((y - mu) ** 2, axis=-1, keepdims=True)
    return (y - mu) * jax.lax.rsqrt(var + 1e-5) * g + b


def _attn_core(q, k, v, mask):
    """Dense single-head attention; bf16 MXU matmuls, f32 softmax."""
    # TODO(synk): real ELADecoder uses multi-head, multi-scale deformable
    # attention; replaced with dense single-head attention over flat memory.
    D = q.shape[-1]
    scale = 1.0 / jnp.sqrt(jnp.float32(D))
    s = jax.lax.dot_general(                       # q @ k^T without transposing k
        q.astype(BF16), k.astype(BF16),
        dimension_numbers=(((1,), (1,)), ((), ())),
        preferred_element_type=jnp.float32) * scale
    if mask is not None:
        s = jnp.where(mask > 0.5, s, -1e9)
    s = s - jnp.max(s, axis=-1, keepdims=True)
    p = jnp.exp(s)
    if mask is not None:
        p = p * mask
        denom = jnp.sum(p, axis=-1, keepdims=True) + 1e-6
    else:
        denom = jnp.sum(p, axis=-1, keepdims=True)
    p = p * pl.reciprocal(denom, approx=True)
    return _f32_dot(p.astype(BF16), v.astype(BF16))


def _self_attn(x, wqkv, bqkv, wo, bo):
    """Fused QKV projection (concatenated (D,3D) weight) + attention + out proj."""
    D = x.shape[-1]
    qkv = _f32_dot(x.astype(BF16), wqkv) + bqkv          # (L, 3D)
    q, k, v = qkv[:, :D], qkv[:, D:2 * D], qkv[:, 2 * D:]
    o = _attn_core(q, k, v, None)
    return _f32_dot(o.astype(BF16), wo) + bo


def _cross_attn(xq, xkv, wq, wkv, bq, bkv, wo, bo, mask):
    D = xq.shape[-1]
    q = _f32_dot(xq.astype(BF16), wq) + bq               # (Nq, D)
    kv = _f32_dot(xkv.astype(BF16), wkv) + bkv           # (Nk, 2D)
    k, v = kv[:, :D], kv[:, D:]
    o = _attn_core(q, k, v, mask)
    return _f32_dot(o.astype(BF16), wo) + bo


# ----------------------------------------------------------------------------
# Pallas kernels
# ----------------------------------------------------------------------------

def _matmul_bias_kernel(x_ref, w_ref, b_ref, o_ref, *, act):
    """Tiled (over M) matmul + bias + activation (conv-as-im2col & projections)."""
    acc = _f32_dot(x_ref[...], w_ref[...]) + b_ref[...]
    if act == "relu":
        acc = jnp.maximum(acc, 0.0)
    o_ref[...] = acc.astype(o_ref.dtype)


def _encoder_layer_kernel(x_ref, wqkv_ref, wo_ref, w1_ref, w2_ref, vec_ref, o_ref):
    """Full transformer-encoder layer for one batch element (weights in VMEM).

    vec_ref (8, 3D) f32 rows: [bqkv, bo, ffn_b1, ffn_b2, ln_g0, ln_b0, ln_g1, ln_b1]
    """
    D = x_ref.shape[-1]
    F = w1_ref.shape[-1]
    vec = vec_ref[...]
    x = x_ref[0].astype(jnp.float32)                          # (L, D)
    attn = _self_attn(x, wqkv_ref[...], vec[0:1, :], wo_ref[...], vec[1:2, :D])
    x = _add_ln(x, attn, vec[4:5, :D], vec[5:6, :D])
    h = jnp.maximum(_f32_dot(x.astype(BF16), w1_ref[...]) + vec[2:3, :F], 0.0)
    h = _f32_dot(h.astype(BF16), w2_ref[...]) + vec[3:4, :D]
    x = _add_ln(x, h, vec[6:7, :D], vec[7:8, :D])
    o_ref[0] = x.astype(o_ref.dtype)


def _decoder_layer_kernel(q_ref, mem_ref, task_ref, tmask_ref,
                          wqkv_ref, wo_ref, w1_ref, w2_ref, vec_ref, o_ref):
    """Full ELADecoder-style layer for one batch element:
    self-attn -> task cross-attn (masked) -> memory cross-attn -> FFN,
    each with fused residual+LayerNorm. All weights live in VMEM.

    vec_ref (16, 3D) f32 rows: [bqkv0..2, bo0..2, ffn_b1, ffn_b2, ln_g0..3, ln_b0..3]
    """
    D = q_ref.shape[-1]
    F = w1_ref.shape[-1]
    vec = vec_ref[...]
    q = q_ref[0].astype(jnp.float32)                          # (Nq, D)
    mem = mem_ref[0]                                          # (L, D) bf16
    task = task_ref[0]                                        # (T, D) bf16
    tmask = tmask_ref[0]                                      # (1, T) f32

    # 1) query self-attention
    a = _self_attn(q, wqkv_ref[0], vec[0:1, :], wo_ref[0], vec[3:4, :D])
    q = _add_ln(q, a, vec[8:9, :D], vec[12:13, :D])

    # 2) task cross-attention (key-padding mask); Ref-sliced, tile-aligned weights
    a = _cross_attn(q, task,
                    wqkv_ref[1, :, 0:D], wqkv_ref[1, :, D:3 * D],
                    vec[1:2, 0:D], vec[1:2, D:3 * D],
                    wo_ref[1], vec[4:5, :D], tmask)
    q = _add_ln(q, a, vec[9:10, :D], vec[13:14, :D])

    # 3) encoder-memory cross-attention
    a = _cross_attn(q, mem,
                    wqkv_ref[2, :, 0:D], wqkv_ref[2, :, D:3 * D],
                    vec[2:3, 0:D], vec[2:3, D:3 * D],
                    wo_ref[2], vec[5:6, :D], None)
    q = _add_ln(q, a, vec[10:11, :D], vec[14:15, :D])

    # 4) FFN
    h = jnp.maximum(_f32_dot(q.astype(BF16), w1_ref[...]) + vec[6:7, :F], 0.0)
    h = _f32_dot(h.astype(BF16), w2_ref[...]) + vec[7:8, :D]
    q = _add_ln(q, h, vec[11:12, :D], vec[15:16, :D])
    o_ref[0] = q.astype(o_ref.dtype)


def _heads_kernel(q_ref, w1_ref, w2_ref, w3_ref, clsw_ref, lbl_ref, vec_ref,
                  box_ref, cls_ref):
    """Fused heads: bbox sigmoid-MLP + label-embedding classification.

    Box / cls projection weights are zero-padded to 128 output lanes so both
    stores are full-width (no masked vst). vec rows: [b1, b2, b3(pad), cls_b].
    """
    D = q_ref.shape[-1]
    vec = vec_ref[...]
    xb = q_ref[...]                                           # (bm, D) bf16
    h = jnp.maximum(_f32_dot(xb, w1_ref[...]) + vec[0:1, :D], 0.0)
    h = jnp.maximum(_f32_dot(h.astype(BF16), w2_ref[...]) + vec[1:2, :D], 0.0)
    box_ref[...] = jax.nn.sigmoid(
        _f32_dot(h.astype(BF16), w3_ref[...]) + vec[2:3, :]).astype(box_ref.dtype)
    qc = _f32_dot(xb, clsw_ref[...]) + vec[3:4, :D]
    cls_ref[...] = _f32_dot(qc.astype(BF16), lbl_ref[...]).astype(cls_ref.dtype)


# ----------------------------------------------------------------------------
# Pallas wrappers
# ----------------------------------------------------------------------------

def _cparams():
    return pltpu.CompilerParams(dimension_semantics=("parallel",),
                                vmem_limit_bytes=_VMEM_LIMIT)


def matmul_bias(x, w, b, act="none", out_dtype=BF16, bm=512):
    """Matmul + bias + act, tiled over M rows (parallel grid axis).

    bm=512 is conservative for v7x; v5e/v6e can go to 1024.
    TODO(synk): add a K grid axis with an f32 accumulator for very large Cin*9.
    """
    M, K = x.shape
    N = w.shape[1]
    bm_eff = min(M, bm)
    grid = (pl.cdiv(M, bm_eff),)
    ce = pl.CostEstimate(
        flops=2 * M * K * N, transcendentals=0,
        bytes_accessed=int((M * K + K * N) * 2 + N * 4
                           + M * N * jnp.dtype(out_dtype).itemsize))
    return pl.pallas_call(
        functools.partial(_matmul_bias_kernel, act=act),
        out_shape=jax.ShapeDtypeStruct((M, N), out_dtype),
        grid=grid,
        in_specs=[pl.BlockSpec((bm_eff, K), lambda i: (i, 0)),
                  pl.BlockSpec((K, N), lambda i: (0, 0)),
                  pl.BlockSpec((1, N), lambda i: (0, 0))],
        out_specs=pl.BlockSpec((bm_eff, N), lambda i: (i, 0)),
        compiler_params=_cparams(),
        cost_estimate=ce,
    )(x, w, b)


def conv3x3(x_nhwc, w_flat, b, stride, act):
    """3x3 conv, SAME padding, via bf16 NHWC im2col + tiled Pallas matmul.

    TODO(synk): fuse the halo'd patch extraction into the kernel (9 shifted
    dots) to remove the XLA-side patch materialization entirely; with bf16 and
    stride-2 the patch tensor is already small (~2.25x input elements).
    TODO(synk): w_flat ordering must match conv_general_dilated_patches feature
    order when importing real PyTorch (Cout,Cin,3,3) weights.
    """
    patches = jax.lax.conv_general_dilated_patches(
        x_nhwc, filter_shape=(3, 3), window_strides=(stride, stride),
        padding="SAME", dimension_numbers=("NHWC", "HWIO", "NHWC"))
    B, Ho, Wo, CK = patches.shape
    y = matmul_bias(patches.reshape(B * Ho * Wo, CK), w_flat, b, act=act)
    return y.reshape(B, Ho, Wo, -1)


def encoder_layer(params, x):
    B, L, D = x.shape
    F = params["enc_ffn_w1"].shape[1]
    c2 = lambda b: (0, 0)
    ce = pl.CostEstimate(
        flops=2 * B * (L * D * 3 * D + 2 * L * L * D + L * D * D + 2 * L * D * F),
        transcendentals=B * L * L,
        bytes_accessed=int(2 * B * L * D * 2
                           + (D * 3 * D + D * D + 2 * D * F) * 2 + 8 * 3 * D * 4))
    return pl.pallas_call(
        _encoder_layer_kernel,
        out_shape=jax.ShapeDtypeStruct((B, L, D), BF16),
        grid=(B,),
        in_specs=[
            pl.BlockSpec((1, L, D), lambda b: (b, 0, 0)),
            pl.BlockSpec((D, 3 * D), c2),
            pl.BlockSpec((D, D), c2),
            pl.BlockSpec((D, F), c2),
            pl.BlockSpec((F, D), c2),
            pl.BlockSpec((8, 3 * D), c2),
        ],
        out_specs=pl.BlockSpec((1, L, D), lambda b: (b, 0, 0)),
        compiler_params=_cparams(),
        cost_estimate=ce,
    )(x, params["enc_wqkv"], params["enc_wo"],
      params["enc_ffn_w1"], params["enc_ffn_w2"], params["enc_vec"])


def decoder_layer(params, li, q, memory, task_feats, t_mask):
    p = f"dec{li}"
    B, Nq, D = q.shape
    L = memory.shape[1]
    T = task_feats.shape[1]
    F = params[p + "_ffn_w1"].shape[1]
    c2 = lambda b: (0, 0)
    c3 = lambda b: (0, 0, 0)
    ce = pl.CostEstimate(
        flops=2 * B * (Nq * D * 3 * D + (Nq + T + L) * D * 2 * D
                       + 2 * Nq * D * (Nq + T + L) + 2 * Nq * D * F),
        transcendentals=B * Nq * (Nq + T + L),
        bytes_accessed=int(B * (2 * Nq + L + T) * D * 2
                           + (3 * D * 3 * D + 3 * D * D + 2 * D * F) * 2
                           + 16 * 3 * D * 4))
    return pl.pallas_call(
        _decoder_layer_kernel,
        out_shape=jax.ShapeDtypeStruct((B, Nq, D), BF16),
        grid=(B,),
        in_specs=[
            pl.BlockSpec((1, Nq, D), lambda b: (b, 0, 0)),
            pl.BlockSpec((1, L, D), lambda b: (b, 0, 0)),
            pl.BlockSpec((1, T, D), lambda b: (b, 0, 0)),
            pl.BlockSpec((1, 1, T), lambda b: (b, 0, 0)),
            pl.BlockSpec((3, D, 3 * D), c3),
            pl.BlockSpec((3, D, D), c3),
            pl.BlockSpec((D, F), c2),
            pl.BlockSpec((F, D), c2),
            pl.BlockSpec((16, 3 * D), c2),
        ],
        out_specs=pl.BlockSpec((1, Nq, D), lambda b: (b, 0, 0)),
        compiler_params=_cparams(),
        cost_estimate=ce,
    )(q, memory, task_feats, t_mask,
      params[p + "_wqkv"], params[p + "_wo"],
      params[p + "_ffn_w1"], params[p + "_ffn_w2"], params[p + "_vec"])


def heads(params, qf, lbl_pad):
    M, D = qf.shape
    W = params["bbox_w3"].shape[1]               # padded lane width (>=128)
    bm = min(M, 256)
    grid = (pl.cdiv(M, bm),)
    c2 = lambda i: (0, 0)
    ce = pl.CostEstimate(
        flops=2 * M * D * (3 * D + 2 * W), transcendentals=M * W,
        bytes_accessed=int(M * D * 2 + (3 * D * D + 2 * D * W) * 2 + 2 * M * W * 4))
    return pl.pallas_call(
        _heads_kernel,
        out_shape=(jax.ShapeDtypeStruct((M, W), jnp.float32),
                   jax.ShapeDtypeStruct((M, W), jnp.float32)),
        grid=grid,
        in_specs=[pl.BlockSpec((bm, D), lambda i: (i, 0)),
                  pl.BlockSpec((D, D), c2),
                  pl.BlockSpec((D, D), c2),
                  pl.BlockSpec((D, W), c2),
                  pl.BlockSpec((D, D), c2),
                  pl.BlockSpec((D, W), c2),
                  pl.BlockSpec((4, W), c2)],
        out_specs=(pl.BlockSpec((bm, W), lambda i: (i, 0)),
                   pl.BlockSpec((bm, W), lambda i: (i, 0))),
        compiler_params=_cparams(),
        cost_estimate=ce,
    )(qf, params["bbox_w1"], params["bbox_w2"], params["bbox_w3"],
      params["cls_w"], lbl_pad, params["heads_vec"])


# ----------------------------------------------------------------------------
# Full forward: mirrors OmDetV2TurboInfer.forward(x, label_feats, task_feats, task_mask)
# ----------------------------------------------------------------------------

def omdet_v2_turbo_forward(params, x_nchw, label_feats, task_feats, task_mask):
    B = x_nchw.shape[0]
    D = params["query_embed"].shape[-1]

    # normalize (cfg.MODEL.PIXEL_MEAN / PIXEL_STD), fused by XLA with the single
    # NCHW (PyTorch) -> NHWC transpose; downcast activations to bf16 once.
    mean = params["pixel_mean"].reshape(1, 3, 1, 1)
    std = params["pixel_std"].reshape(1, 3, 1, 1)
    x = ((x_nchw - mean) / std)
    x = jnp.transpose(x, (0, 2, 3, 1)).astype(BF16)

    # --- backbone: small conv stack, 3 feature levels -----------------------
    s1 = conv3x3(x,  params["stem_w"], params["stem_b"], 2, "relu")   # /2
    c2 = conv3x3(s1, params["c2_w"],   params["c2_b"],   2, "relu")   # /4
    c3 = conv3x3(c2, params["c3_w"],   params["c3_b"],   2, "relu")   # /8
    c4 = conv3x3(c3, params["c4_w"],   params["c4_b"],   2, "relu")   # /16
    body_feats = [c2, c3, c4]

    # --- neck / encoder: 1x1 projections + transformer encoder on top level -
    projs = []
    for i, f in enumerate(body_feats):
        Bf, Hf, Wf, Cf = f.shape
        p = matmul_bias(f.reshape(Bf * Hf * Wf, Cf),
                        params[f"proj{i}_w"], params[f"proj{i}_b"])
        projs.append(p.reshape(Bf, Hf * Wf, D))
    projs[-1] = encoder_layer(params, projs[-1])
    # TODO(synk): at production L, write each projection directly into row
    # offsets of a single (B, L, D) buffer instead of concatenating in HBM.
    memory = jnp.concatenate(projs, axis=1)                  # (B, L, D) bf16

    # --- decoder: queries attend to task prompt (masked) & multi-scale memory
    q = jnp.broadcast_to(params["query_embed"][None],
                         (B,) + params["query_embed"].shape)
    task_b = task_feats.astype(BF16)
    t_mask = task_mask.astype(jnp.float32).reshape(B, 1, -1)
    for li in range(2):
        q = decoder_layer(params, li, q, memory, task_b, t_mask)

    # --- heads: box regression (sigmoid MLP) + label-embedding classification
    Nq = q.shape[1]
    NL = label_feats.shape[0]
    W = params["bbox_w3"].shape[1]
    lbl_pad = jnp.zeros((D, W), BF16).at[:, :NL].set(
        jnp.transpose(label_feats).astype(BF16))
    box_pad, cls_pad = heads(params, q.reshape(B * Nq, D), lbl_pad)
    box = box_pad[:, :4].reshape(B, Nq, 4)
    cls = cls_pad[:, :NL].reshape(B, Nq, NL)
    return box, cls


# ----------------------------------------------------------------------------
# Deterministic parameter initialization (bf16 weights, packed f32 vec params)
# ----------------------------------------------------------------------------

def _pack_rows(rows, width):
    out = []
    for r in rows:
        r = jnp.asarray(r, jnp.float32).reshape(1, -1)
        out.append(jnp.pad(r, ((0, 0), (0, width - r.shape[1]))))
    return jnp.concatenate(out, axis=0)


def init_params(key, hidden=128, num_queries=16):
    D = hidden
    F = 2 * hidden
    head_w = max(D, 128)
    params = {}
    cnt = [0]

    def w(shape, scale=0.02, dtype=BF16):
        cnt[0] += 1
        k = jax.random.fold_in(key, cnt[0])
        return (jax.random.normal(k, shape, jnp.float32) * scale).astype(dtype)

    zf = lambda n: jnp.zeros((n,), jnp.float32)
    of = lambda n: jnp.ones((n,), jnp.float32)

    params["pixel_mean"] = jnp.array([123.675, 116.28, 103.53], jnp.float32)
    params["pixel_std"] = jnp.array([58.395, 57.12, 57.375], jnp.float32)

    # backbone convs (weights stored as (Cin*9, Cout) bf16 for im2col matmul)
    chans = [(3, 16, "stem"), (16, 32, "c2"), (32, 64, "c3"), (64, 128, "c4")]
    for cin, cout, name in chans:
        params[f"{name}_w"] = w((cin * 9, cout))
        params[f"{name}_b"] = jnp.zeros((1, cout), jnp.float32)

    # neck projections to hidden
    for i, cin in enumerate([32, 64, 128]):
        params[f"proj{i}_w"] = w((cin, D))
        params[f"proj{i}_b"] = jnp.zeros((1, D), jnp.float32)

    # encoder layer (fused QKV weight, packed vec params)
    params["enc_wqkv"] = w((D, 3 * D))
    params["enc_wo"] = w((D, D))
    params["enc_ffn_w1"] = w((D, F))
    params["enc_ffn_w2"] = w((F, D))
    params["enc_vec"] = _pack_rows(
        [zf(3 * D), zf(D), zf(F), zf(D), of(D), zf(D), of(D), zf(D)], 3 * D)

    # decoder layers: 3 attention blocks (self / task / memory) stacked
    for li in range(2):
        p = f"dec{li}"
        params[p + "_wqkv"] = w((3, D, 3 * D))
        params[p + "_wo"] = w((3, D, D))
        params[p + "_ffn_w1"] = w((D, F))
        params[p + "_ffn_w2"] = w((F, D))
        rows = ([zf(3 * D)] * 3 + [zf(D)] * 3 + [zf(F), zf(D)]
                + [of(D)] * 4 + [zf(D)] * 4)
        params[p + "_vec"] = _pack_rows(rows, 3 * D)

    # queries + heads (box / cls output weights padded to >=128 lanes)
    params["query_embed"] = w((num_queries, D), scale=0.1)
    params["bbox_w1"] = w((D, D))
    params["bbox_w2"] = w((D, D))
    w3 = w((D, 4), dtype=jnp.float32)
    params["bbox_w3"] = jnp.pad(w3, ((0, 0), (0, head_w - 4))).astype(BF16)
    params["cls_w"] = w((D, D))
    params["heads_vec"] = _pack_rows([zf(D), zf(D), zf(4), zf(D)], head_w)
    return params


# ----------------------------------------------------------------------------
# Main
# ----------------------------------------------------------------------------

if __name__ == "__main__":
    B, C, H, W = 2, 3, 64, 64
    hidden, num_queries, num_labels, T = 128, 16, 8, 6

    key = jax.random.PRNGKey(0)
    kx, kl, kt = jax.random.split(key, 3)
    x = jax.random.uniform(kx, (B, C, H, W), jnp.float32) * 255.0   # NCHW image
    label_feats = jax.random.normal(kl, (num_labels, hidden), jnp.float32)
    task_feats = jax.random.normal(kt, (B, T, hidden), jnp.float32)
    task_mask = jnp.array([[1, 1, 1, 1, 0, 0],
                           [1, 1, 1, 0, 0, 0]], jnp.float32)

    params = init_params(jax.random.PRNGKey(42), hidden, num_queries)

    fwd = jax.jit(omdet_v2_turbo_forward)
    box_pred, box_cls = fwd(params, x, label_feats, task_feats, task_mask)
    jax.block_until_ready((box_pred, box_cls))

    assert box_pred.shape == (B, num_queries, 4)
    assert box_cls.shape == (B, num_queries, num_labels)
    assert bool(jnp.all(jnp.isfinite(box_pred)))
    assert bool(jnp.all(jnp.isfinite(box_cls)))
    print("KERNEL_OK")
</pallas_src>

<mosaic_0001>
module attributes {stable_mosaic.version = 11 : i64} {
  func.func @_matmul_bias_kernel(%arg0: i32, %arg1: memref<512x27xbf16, #tpu.memory_space<vmem>>, %arg2: memref<27x16xbf16, #tpu.memory_space<vmem>>, %arg3: memref<1x16xf32, #tpu.memory_space<vmem>>, %arg4: memref<512x16xbf16, #tpu.memory_space<vmem>>) attributes {dimension_semantics = [#tpu.dimension_semantics<parallel>], iteration_bounds = array<i64: 4>, scalar_prefetch = 0 : i64, scratch_operands = 0 : i64, tpu.core_type = #tpu.core_type<tc>, window_params = [{transform_indices = @transform_0, window_bounds = array<i64: 512, 27>}, {pipeline_mode = #tpu.pipeline_mode<synchronous>, transform_indices = @transform_1, window_bounds = array<i64: 27, 16>}, {pipeline_mode = #tpu.pipeline_mode<synchronous>, transform_indices = @transform_2, window_bounds = array<i64: 1, 16>}, {transform_indices = @transform_3, window_bounds = array<i64: 512, 16>}]} {
    %c0 = arith.constant 0 : index
    %c0_0 = arith.constant 0 : index
    %0 = vector.load %arg1[%c0, %c0_0] : memref<512x27xbf16, #tpu.memory_space<vmem>>, vector<512x27xbf16>
    %c0_1 = arith.constant 0 : index
    %c0_2 = arith.constant 0 : index
    %1 = vector.load %arg2[%c0_1, %c0_2] : memref<27x16xbf16, #tpu.memory_space<vmem>>, vector<27x16xbf16>
    %cst = arith.constant dense<0.000000e+00> : vector<512x16xf32>
    %2 = tpu.matmul %0, %1, %cst {dimension_numbers = #tpu.dot_dimension_numbers<[1], [0], [0], [1], [0, 0, 1, 1], [], []>} : vector<512x27xbf16>, vector<27x16xbf16>, vector<512x16xf32> -> vector<512x16xf32>
    %c0_3 = arith.constant 0 : index
    %c0_4 = arith.constant 0 : index
    %3 = vector.load %arg3[%c0_3, %c0_4] : memref<1x16xf32, #tpu.memory_space<vmem>>, vector<1x16xf32>
    %4 = vector.broadcast %3 : vector<1x16xf32> to vector<512x16xf32>
    %5 = arith.addf %2, %4 : vector<512x16xf32>
    %cst_5 = arith.constant 0.000000e+00 : f32
    %6 = vector.broadcast %cst_5 : f32 to vector<512x16xf32>
    %7 = arith.maximumf %5, %6 : vector<512x16xf32>
    %8 = arith.truncf %7 : vector<512x16xf32> to vector<512x16xbf16>
    %c0_6 = arith.constant 0 : index
    %c0_7 = arith.constant 0 : index
    %9 = vector.load %arg4[%c0_6, %c0_7] : memref<512x16xbf16, #tpu.memory_space<vmem>>, vector<512x16xbf16>
    tpu.vector_store %arg4[%c0_6, %c0_7], %8 {strides = array<i32>} : memref<512x16xbf16, #tpu.memory_space<vmem>>, vector<512x16xbf16>,
    return
  }
  func.func @transform_0(%arg0: i32) -> (i32, i32) {
    %c0_i32 = arith.constant 0 : i32
    %c0_i32_0 = arith.constant 0 : i32
    return %arg0, %c0_i32 : i32, i32
  }
  func.func @transform_1(%arg0: i32) -> (i32, i32) {
    %c0_i32 = arith.constant 0 : i32
    %c0_i32_0 = arith.constant 0 : i32
    %c0_i32_1 = arith.constant 0 : i32
    return %c0_i32, %c0_i32_0 : i32, i32
  }
  func.func @transform_2(%arg0: i32) -> (i32, i32) {
    %c0_i32 = arith.constant 0 : i32
    %c0_i32_0 = arith.constant 0 : i32
    %c0_i32_1 = arith.constant 0 : i32
    return %c0_i32, %c0_i32_0 : i32, i32
  }
  func.func @transform_3(%arg0: i32) -> (i32, i32) {
    %c0_i32 = arith.constant 0 : i32
    %c0_i32_0 = arith.constant 0 : i32
    return %arg0, %c0_i32 : i32, i32
  }
}

module attributes {stable_mosaic.version = 11 : i64} {
  func.func @_matmul_bias_kernel(%arg0: i32, %arg1: memref<512x144xbf16, #tpu.memory_space<vmem>>, %arg2: memref<144x32xbf16, #tpu.memory_space<vmem>>, %arg3: memref<1x32xf32, #tpu.memory_space<vmem>>, %arg4: memref<512x32xbf16, #tpu.memory_space<vmem>>) attributes {dimension_semantics = [#tpu.dimension_semantics<parallel>], iteration_bounds = array<i64: 1>, scalar_prefetch = 0 : i64, scratch_operands = 0 : i64, tpu.core_type = #tpu.core_type<tc>, window_params = [{transform_indices = @transform_0, window_bounds = array<i64: 512, 144>}, {pipeline_mode = #tpu.pipeline_mode<synchronous>, transform_indices = @transform_1, window_bounds = array<i64: 144, 32>}, {pipeline_mode = #tpu.pipeline_mode<synchronous>, transform_indices = @transform_2, window_bounds = array<i64: 1, 32>}, {transform_indices = @transform_3, window_bounds = array<i64: 512, 32>}]} {
    %c0 = arith.constant 0 : index
    %c0_0 = arith.constant 0 : index
    %0 = vector.load %arg1[%c0, %c0_0] : memref<512x144xbf16, #tpu.memory_space<vmem>>, vector<512x144xbf16>
    %c0_1 = arith.constant 0 : index
    %c0_2 = arith.constant 0 : index
    %1 = vector.load %arg2[%c0_1, %c0_2] : memref<144x32xbf16, #tpu.memory_space<vmem>>, vector<144x32xbf16>
    %cst = arith.constant dense<0.000000e+00> : vector<512x32xf32>
    %2 = tpu.matmul %0, %1, %cst {dimension_numbers = #tpu.dot_dimension_numbers<[1], [0], [0], [1], [0, 0, 1, 1], [], []>} : vector<512x144xbf16>, vector<144x32xbf16>, vector<512x32xf32> -> vector<512x32xf32>
    %c0_3 = arith.constant 0 : index
    %c0_4 = arith.constant 0 : index
    %3 = vector.load %arg3[%c0_3, %c0_4] : memref<1x32xf32, #tpu.memory_space<vmem>>, vector<1x32xf32>
    %4 = vector.broadcast %3 : vector<1x32xf32> to vector<512x32xf32>
    %5 = arith.addf %2, %4 : vector<512x32xf32>
    %cst_5 = arith.constant 0.000000e+00 : f32
    %6 = vector.broadcast %cst_5 : f32 to vector<512x32xf32>
    %7 = arith.maximumf %5, %6 : vector<512x32xf32>
    %8 = arith.truncf %7 : vector<512x32xf32> to vector<512x32xbf16>
    %c0_6 = arith.constant 0 : index
    %c0_7 = arith.constant 0 : index
    %9 = vector.load %arg4[%c0_6, %c0_7] : memref<512x32xbf16, #tpu.memory_space<vmem>>, vector<512x32xbf16>
    tpu.vector_store %arg4[%c0_6, %c0_7], %8 {strides = array<i32>} : memref<512x32xbf16, #tpu.memory_space<vmem>>, vector<512x32xbf16>,
    return
  }
  func.func @transform_0(%arg0: i32) -> (i32, i32) {
    %c0_i32 = arith.constant 0 : i32
    %c0_i32_0 = arith.constant 0 : i32
    return %arg0, %c0_i32 : i32, i32
  }
  func.func @transform_1(%arg0: i32) -> (i32, i32) {
    %c0_i32 = arith.constant 0 : i32
    %c0_i32_0 = arith.constant 0 : i32
    %c0_i32_1 = arith.constant 0 : i32
    return %c0_i32, %c0_i32_0 : i32, i32
  }
  func.func @transform_2(%arg0: i32) -> (i32, i32) {
    %c0_i32 = arith.constant 0 : i32
    %c0_i32_0 = arith.constant 0 : i32
    %c0_i32_1 = arith.constant 0 : i32
    return %c0_i32, %c0_i32_0 : i32, i32
  }
  func.func @transform_3(%arg0: i32) -> (i32, i32) {
    %c0_i32 = arith.constant 0 : i32
    %c0_i32_0 = arith.constant 0 : i32
    return %arg0, %c0_i32 : i32, i32
  }
}

module attributes {stable_mosaic.version = 11 : i64} {
  func.func @_matmul_bias_kernel(%arg0: i32, %arg1: memref<128x288xbf16, #tpu.memory_space<vmem>>, %arg2: memref<288x64xbf16, #tpu.memory_space<vmem>>, %arg3: memref<1x64xf32, #tpu.memory_space<vmem>>, %arg4: memref<128x64xbf16, #tpu.memory_space<vmem>>) attributes {dimension_semantics = [#tpu.dimension_semantics<parallel>], iteration_bounds = array<i64: 1>, scalar_prefetch = 0 : i64, scratch_operands = 0 : i64, tpu.core_type = #tpu.core_type<tc>, window_params = [{transform_indices = @transform_0, window_bounds = array<i64: 128, 288>}, {pipeline_mode = #tpu.pipeline_mode<synchronous>, transform_indices = @transform_1, window_bounds = array<i64: 288, 64>}, {pipeline_mode = #tpu.pipeline_mode<synchronous>, transform_indices = @transform_2, window_bounds = array<i64: 1, 64>}, {transform_indices = @transform_3, window_bounds = array<i64: 128, 64>}]} {
    %c0 = arith.constant 0 : index
    %c0_0 = arith.constant 0 : index
    %0 = vector.load %arg1[%c0, %c0_0] : memref<128x288xbf16, #tpu.memory_space<vmem>>, vector<128x288xbf16>
    %c0_1 = arith.constant 0 : index
    %c0_2 = arith.constant 0 : index
    %1 = vector.load %arg2[%c0_1, %c0_2] : memref<288x64xbf16, #tpu.memory_space<vmem>>, vector<288x64xbf16>
    %cst = arith.constant dense<0.000000e+00> : vector<128x64xf32>
    %2 = tpu.matmul %0, %1, %cst {dimension_numbers = #tpu.dot_dimension_numbers<[1], [0], [0], [1], [0, 0, 1, 1], [], []>} : vector<128x288xbf16>, vector<288x64xbf16>, vector<128x64xf32> -> vector<128x64xf32>
    %c0_3 = arith.constant 0 : index
    %c0_4 = arith.constant 0 : index
    %3 = vector.load %arg3[%c0_3, %c0_4] : memref<1x64xf32, #tpu.memory_space<vmem>>, vector<1x64xf32>
    %4 = vector.broadcast %3 : vector<1x64xf32> to vector<128x64xf32>
    %5 = arith.addf %2, %4 : vector<128x64xf32>
    %cst_5 = arith.constant 0.000000e+00 : f32
    %6 = vector.broadcast %cst_5 : f32 to vector<128x64xf32>
    %7 = arith.maximumf %5, %6 : vector<128x64xf32>
    %8 = arith.truncf %7 : vector<128x64xf32> to vector<128x64xbf16>
    %c0_6 = arith.constant 0 : index
    %c0_7 = arith.constant 0 : index
    %9 = vector.load %arg4[%c0_6, %c0_7] : memref<128x64xbf16, #tpu.memory_space<vmem>>, vector<128x64xbf16>
    tpu.vector_store %arg4[%c0_6, %c0_7], %8 {strides = array<i32>} : memref<128x64xbf16, #tpu.memory_space<vmem>>, vector<128x64xbf16>,
    return
  }
  func.func @transform_0(%arg0: i32) -> (i32, i32) {
    %c0_i32 = arith.constant 0 : i32
    %c0_i32_0 = arith.constant 0 : i32
    return %arg0, %c0_i32 : i32, i32
  }
  func.func @transform_1(%arg0: i32) -> (i32, i32) {
    %c0_i32 = arith.constant 0 : i32
    %c0_i32_0 = arith.constant 0 : i32
    %c0_i32_1 = arith.constant 0 : i32
    return %c0_i32, %c0_i32_0 : i32, i32
  }
  func.func @transform_2(%arg0: i32) -> (i32, i32) {
    %c0_i32 = arith.constant 0 : i32
    %c0_i32_0 = arith.constant 0 : i32
    %c0_i32_1 = arith.constant 0 : i32
    return %c0_i32, %c0_i32_0 : i32, i32
  }
  func.func @transform_3(%arg0: i32) -> (i32, i32) {
    %c0_i32 = arith.constant 0 : i32
    %c0_i32_0 = arith.constant 0 : i32
    return %arg0, %c0_i32 : i32, i32
  }
}

module attributes {stable_mosaic.version = 11 : i64} {
  func.func @_matmul_bias_kernel(%arg0: i32, %arg1: memref<32x576xbf16, #tpu.memory_space<vmem>>, %arg2: memref<576x128xbf16, #tpu.memory_space<vmem>>, %arg3: memref<1x128xf32, #tpu.memory_space<vmem>>, %arg4: memref<32x128xbf16, #tpu.memory_space<vmem>>) attributes {dimension_semantics = [#tpu.dimension_semantics<parallel>], iteration_bounds = array<i64: 1>, scalar_prefetch = 0 : i64, scratch_operands = 0 : i64, tpu.core_type = #tpu.core_type<tc>, window_params = [{transform_indices = @transform_0, window_bounds = array<i64: 32, 576>}, {pipeline_mode = #tpu.pipeline_mode<synchronous>, transform_indices = @transform_1, window_bounds = array<i64: 576, 128>}, {pipeline_mode = #tpu.pipeline_mode<synchronous>, transform_indices = @transform_2, window_bounds = array<i64: 1, 128>}, {transform_indices = @transform_3, window_bounds = array<i64: 32, 128>}]} {
    %c0 = arith.constant 0 : index
    %c0_0 = arith.constant 0 : index
    %0 = vector.load %arg1[%c0, %c0_0] : memref<32x576xbf16, #tpu.memory_space<vmem>>, vector<32x576xbf16>
    %c0_1 = arith.constant 0 : index
    %c0_2 = arith.constant 0 : index
    %1 = vector.load %arg2[%c0_1, %c0_2] : memref<576x128xbf16, #tpu.memory_space<vmem>>, vector<576x128xbf16>
    %cst = arith.constant dense<0.000000e+00> : vector<32x128xf32>
    %2 = tpu.matmul %0, %1, %cst {dimension_numbers = #tpu.dot_dimension_numbers<[1], [0], [0], [1], [0, 0, 1, 1], [], []>} : vector<32x576xbf16>, vector<576x128xbf16>, vector<32x128xf32> -> vector<32x128xf32>
    %c0_3 = arith.constant 0 : index
    %c0_4 = arith.constant 0 : index
    %3 = vector.load %arg3[%c0_3, %c0_4] : memref<1x128xf32, #tpu.memory_space<vmem>>, vector<1x128xf32>
    %4 = vector.broadcast %3 : vector<1x128xf32> to vector<32x128xf32>
    %5 = arith.addf %2, %4 : vector<32x128xf32>
    %cst_5 = arith.constant 0.000000e+00 : f32
    %6 = vector.broadcast %cst_5 : f32 to vector<32x128xf32>
    %7 = arith.maximumf %5, %6 : vector<32x128xf32>
    %8 = arith.truncf %7 : vector<32x128xf32> to vector<32x128xbf16>
    %c0_6 = arith.constant 0 : index
    %c0_7 = arith.constant 0 : index
    %9 = vector.load %arg4[%c0_6, %c0_7] : memref<32x128xbf16, #tpu.memory_space<vmem>>, vector<32x128xbf16>
    tpu.vector_store %arg4[%c0_6, %c0_7], %8 {strides = array<i32>} : memref<32x128xbf16, #tpu.memory_space<vmem>>, vector<32x128xbf16>,
    return
  }
  func.func @transform_0(%arg0: i32) -> (i32, i32) {
    %c0_i32 = arith.constant 0 : i32
    %c0_i32_0 = arith.constant 0 : i32
    return %arg0, %c0_i32 : i32, i32
  }
  func.func @transform_1(%arg0: i32) -> (i32, i32) {
    %c0_i32 = arith.constant 0 : i32
    %c0_i32_0 = arith.constant 0 : i32
    %c0_i32_1 = arith.constant 0 : i32
    return %c0_i32, %c0_i32_0 : i32, i32
  }
  func.func @transform_2(%arg0: i32) -> (i32, i32) {
    %c0_i32 = arith.constant 0 : i32
    %c0_i32_0 = arith.constant 0 : i32
    %c0_i32_1 = arith.constant 0 : i32
    return %c0_i32, %c0_i32_0 : i32, i32
  }
  func.func @transform_3(%arg0: i32) -> (i32, i32) {
    %c0_i32 = arith.constant 0 : i32
    %c0_i32_0 = arith.constant 0 : i32
    return %arg0, %c0_i32 : i32, i32
  }
}

module attributes {stable_mosaic.version = 11 : i64} {
  func.func @_matmul_bias_kernel(%arg0: i32, %arg1: memref<32x128xbf16, #tpu.memory_space<vmem>>, %arg2: memref<128x128xbf16, #tpu.memory_space<vmem>>, %arg3: memref<1x128xf32, #tpu.memory_space<vmem>>, %arg4: memref<32x128xbf16, #tpu.memory_space<vmem>>) attributes {dimension_semantics = [#tpu.dimension_semantics<parallel>], iteration_bounds = array<i64: 1>, scalar_prefetch = 0 : i64, scratch_operands = 0 : i64, tpu.core_type = #tpu.core_type<tc>, window_params = [{transform_indices = @transform_0, window_bounds = array<i64: 32, 128>}, {pipeline_mode = #tpu.pipeline_mode<synchronous>, transform_indices = @transform_1, window_bounds = array<i64: 128, 128>}, {pipeline_mode = #tpu.pipeline_mode<synchronous>, transform_indices = @transform_2, window_bounds = array<i64: 1, 128>}, {transform_indices = @transform_3, window_bounds = array<i64: 32, 128>}]} {
    %c0 = arith.constant 0 : index
    %c0_0 = arith.constant 0 : index
    %0 = vector.load %arg1[%c0, %c0_0] : memref<32x128xbf16, #tpu.memory_space<vmem>>, vector<32x128xbf16>
    %c0_1 = arith.constant 0 : index
    %c0_2 = arith.constant 0 : index
    %1 = vector.load %arg2[%c0_1, %c0_2] : memref<128x128xbf16, #tpu.memory_space<vmem>>, vector<128x128xbf16>
    %cst = arith.constant dense<0.000000e+00> : vector<32x128xf32>
    %2 = tpu.matmul %0, %1, %cst {dimension_numbers = #tpu.dot_dimension_numbers<[1], [0], [0], [1], [0, 0, 1, 1], [], []>} : vector<32x128xbf16>, vector<128x128xbf16>, vector<32x128xf32> -> vector<32x128xf32>
    %c0_3 = arith.constant 0 : index
    %c0_4 = arith.constant 0 : index
    %3 = vector.load %arg3[%c0_3, %c0_4] : memref<1x128xf32, #tpu.memory_space<vmem>>, vector<1x128xf32>
    %4 = vector.broadcast %3 : vector<1x128xf32> to vector<32x128xf32>
    %5 = arith.addf %2, %4 : vector<32x128xf32>
    %6 = arith.truncf %5 : vector<32x128xf32> to vector<32x128xbf16>
    %c0_5 = arith.constant 0 : index
    %c0_6 = arith.constant 0 : index
    %7 = vector.load %arg4[%c0_5, %c0_6] : memref<32x128xbf16, #tpu.memory_space<vmem>>, vector<32x128xbf16>
    tpu.vector_store %arg4[%c0_5, %c0_6], %6 {strides = array<i32>} : memref<32x128xbf16, #tpu.memory_space<vmem>>, vector<32x128xbf16>,
    return
  }
  func.func @transform_0(%arg0: i32) -> (i32, i32) {
    %c0_i32 = arith.constant 0 : i32
    %c0_i32_0 = arith.constant 0 : i32
    return %arg0, %c0_i32 : i32, i32
  }
  func.func @transform_1(%arg0: i32) -> (i32, i32) {
    %c0_i32 = arith.constant 0 : i32
    %c0_i32_0 = arith.constant 0 : i32
    %c0_i32_1 = arith.constant 0 : i32
    return %c0_i32, %c0_i32_0 : i32, i32
  }
  func.func @transform_2(%arg0: i32) -> (i32, i32) {
    %c0_i32 = arith.constant 0 : i32
    %c0_i32_0 = arith.constant 0 : i32
    %c0_i32_1 = arith.constant 0 : i32
    return %c0_i32, %c0_i32_0 : i32, i32
  }
  func.func @transform_3(%arg0: i32) -> (i32, i32) {
    %c0_i32 = arith.constant 0 : i32
    %c0_i32_0 = arith.constant 0 : i32
    return %arg0, %c0_i32 : i32, i32
  }
}

module attributes {stable_mosaic.version = 11 : i64} {
  func.func @_encoder_layer_kernel(%arg0: i32, %arg1: memref<1x16x128xbf16, #tpu.memory_space<vmem>>, %arg2: memref<128x384xbf16, #tpu.memory_space<vmem>>, %arg3: memref<128x128xbf16, #tpu.memory_space<vmem>>, %arg4: memref<128x256xbf16, #tpu.memory_space<vmem>>, %arg5: memref<256x128xbf16, #tpu.memory_space<vmem>>, %arg6: memref<8x384xf32, #tpu.memory_space<vmem>>, %arg7: memref<1x16x128xbf16, #tpu.memory_space<vmem>>) attributes {dimension_semantics = [#tpu.dimension_semantics<parallel>], iteration_bounds = array<i64: 2>, scalar_prefetch = 0 : i64, scratch_operands = 0 : i64, tpu.core_type = #tpu.core_type<tc>, window_params = [{transform_indices = @transform_0, window_bounds = array<i64: 1, 16, 128>}, {pipeline_mode = #tpu.pipeline_mode<synchronous>, transform_indices = @transform_1, window_bounds = array<i64: 128, 384>}, {pipeline_mode = #tpu.pipeline_mode<synchronous>, transform_indices = @transform_2, window_bounds = array<i64: 128, 128>}, {pipeline_mode = #tpu.pipeline_mode<synchronous>, transform_indices = @transform_3, window_bounds = array<i64: 128, 256>}, {pipeline_mode = #tpu.pipeline_mode<synchronous>, transform_indices = @transform_4, window_bounds = array<i64: 256, 128>}, {pipeline_mode = #tpu.pipeline_mode<synchronous>, transform_indices = @transform_5, window_bounds = array<i64: 8, 384>}, {transform_indices = @transform_6, window_bounds = array<i64: 1, 16, 128>}]} {
    %c0 = arith.constant 0 : index
    %c0_0 = arith.constant 0 : index
    %0 = vector.load %arg6[%c0, %c0_0] : memref<8x384xf32, #tpu.memory_space<vmem>>, vector<8x384xf32>
    %c0_1 = arith.constant 0 : index
    %c0_2 = arith.constant 0 : index
    %c0_3 = arith.constant 0 : index
    %1 = vector.load %arg1[%c0_1, %c0_2, %c0_3] : memref<1x16x128xbf16, #tpu.memory_space<vmem>>, vector<1x16x128xbf16>
    %2 = vector.shape_cast %1 : vector<1x16x128xbf16> to vector<16x128xbf16>
    %3 = arith.extf %2 : vector<16x128xbf16> to vector<16x128xf32>
    %c0_4 = arith.constant 0 : index
    %c0_5 = arith.constant 0 : index
    %4 = vector.load %arg2[%c0_4, %c0_5] : memref<128x384xbf16, #tpu.memory_space<vmem>>, vector<128x384xbf16>
    %5 = vector.extract_strided_slice %0 {offsets = [0, 0], sizes = [1, 384], strides = [1, 1]} : vector<8x384xf32> to vector<1x384xf32>
    %c0_6 = arith.constant 0 : index
    %c0_7 = arith.constant 0 : index
    %6 = vector.load %arg3[%c0_6, %c0_7] : memref<128x128xbf16, #tpu.memory_space<vmem>>, vector<128x128xbf16>
    %7 = vector.extract_strided_slice %0 {offsets = [1, 0], sizes = [1, 128], strides = [1, 1]} : vector<8x384xf32> to vector<1x128xf32>
    %8 = arith.truncf %3 : vector<16x128xf32> to vector<16x128xbf16>
    %cst = arith.constant dense<0.000000e+00> : vector<16x384xf32>
    %9 = tpu.matmul %8, %4, %cst {dimension_numbers = #tpu.dot_dimension_numbers<[1], [0], [0], [1], [0, 0, 1, 1], [], []>} : vector<16x128xbf16>, vector<128x384xbf16>, vector<16x384xf32> -> vector<16x384xf32>
    %10 = vector.broadcast %5 : vector<1x384xf32> to vector<16x384xf32>
    %11 = arith.addf %9, %10 : vector<16x384xf32>
    %12 = vector.extract_strided_slice %11 {offsets = [0, 0], sizes = [16, 128], strides = [1, 1]} : vector<16x384xf32> to vector<16x128xf32>
    %13 = vector.extract_strided_slice %11 {offsets = [0, 128], sizes = [16, 128], strides = [1, 1]} : vector<16x384xf32> to vector<16x128xf32>
    %14 = vector.extract_strided_slice %11 {offsets = [0, 256], sizes = [16, 128], strides = [1, 1]} : vector<16x384xf32> to vector<16x128xf32>
    %cst_8 = arith.constant 1.280000e+02 : f32
    %15 = math.sqrt %cst_8 : f32
    %cst_9 = arith.constant 1.000000e+00 : f32
    %16 = arith.divf %cst_9, %15 : f32
    %17 = arith.truncf %12 : vector<16x128xf32> to vector<16x128xbf16>
    %18 = arith.truncf %13 : vector<16x128xf32> to vector<16x128xbf16>
    %cst_10 = arith.constant dense<0.000000e+00> : vector<16x16xf32>
    %19 = tpu.matmul %17, %18, %cst_10 {dimension_numbers = #tpu.dot_dimension_numbers<[1], [1], [0], [0], [0, 0, 1, 0], [], []>} : vector<16x128xbf16>, vector<16x128xbf16>, vector<16x16xf32> -> vector<16x16xf32>
    %20 = vector.broadcast %16 : f32 to vector<16x16xf32>
    %21 = arith.mulf %19, %20 : vector<16x16xf32>
    %cst_11 = arith.constant dense<0xFF800000> : vector<16xf32>
    %22 = vector.multi_reduction <maximumf>, %21, %cst_11 [1] : vector<16x16xf32> to vector<16xf32>
    %23 = vector.shape_cast %22 : vector<16xf32> to vector<16x1xf32>
    %24 = vector.broadcast %23 : vector<16x1xf32> to vector<16x16xf32>
    %25 = arith.subf %21, %24 : vector<16x16xf32>
    %26 = math.exp %25 : vector<16x16xf32>
    %cst_12 = arith.constant dense<0.000000e+00> : vector<16xf32>
    %27 = vector.multi_reduction <add>, %26, %cst_12 [1] : vector<16x16xf32> to vector<16xf32>
    %28 = vector.shape_cast %27 : vector<16xf32> to vector<16x1xf32>
    %29 = tpu.reciprocal %28 {approx = true} : vector<16x1xf32> -> vector<16x1xf32>
    %30 = vector.broadcast %29 : vector<16x1xf32> to vector<16x16xf32>
    %31 = arith.mulf %26, %30 : vector<16x16xf32>
    %32 = arith.truncf %31 : vector<16x16xf32> to vector<16x16xbf16>
    %33 = arith.truncf %14 : vector<16x128xf32> to vector<16x128xbf16>
    %cst_13 = arith.constant dense<0.000000e+00> : vector<16x128xf32>
    %34 = tpu.matmul %32, %33, %cst_13 {dimension_numbers = #tpu.dot_dimension_numbers<[1], [0], [0], [1], [0, 0, 1, 1], [], []>} : vector<16x16xbf16>, vector<16x128xbf16>, vector<16x128xf32> -> vector<16x128xf32>
    %35 = arith.truncf %34 : vector<16x128xf32> to vector<16x128xbf16>
    %cst_14 = arith.constant dense<0.000000e+00> : vector<16x128xf32>
    %36 = tpu.matmul %35, %6, %cst_14 {dimension_numbers = #tpu.dot_dimension_numbers<[1], [0], [0], [1], [0, 0, 1, 1], [], []>} : vector<16x128xbf16>, vector<128x128xbf16>, vector<16x128xf32> -> vector<16x128xf32>
    %37 = vector.broadcast %7 : vector<1x128xf32> to vector<16x128xf32>
    %38 = arith.addf %36, %37 : vector<16x128xf32>
    %39 = vector.extract_strided_slice %0 {offsets = [4, 0], sizes = [1, 128], strides = [1, 1]} : vector<8x384xf32> to vector<1x128xf32>
    %40 = vector.extract_strided_slice %0 {offsets = [5, 0], sizes = [1, 128], strides = [1, 1]} : vector<8x384xf32> to vector<1x128xf32>
    %41 = arith.addf %3, %38 : vector<16x128xf32>
    %cst_15 = arith.constant dense<0.000000e+00> : vector<16xf32>
    %42 = vector.multi_reduction <add>, %41, %cst_15 [1] : vector<16x128xf32> to vector<16xf32>
    %43 = vector.shape_cast %42 : vector<16xf32> to vector<16x1xf32>
    %cst_16 = arith.constant 1.280000e+02 : f32
    %44 = vector.broadcast %cst_16 : f32 to vector<16x1xf32>
    %45 = arith.divf %43, %44 : vector<16x1xf32>
    %46 = vector.broadcast %45 : vector<16x1xf32> to vector<16x128xf32>
    %47 = arith.subf %41, %46 : vector<16x128xf32>
    %48 = arith.mulf %47, %47 : vector<16x128xf32>
    %cst_17 = arith.constant dense<0.000000e+00> : vector<16xf32>
    %49 = vector.multi_reduction <add>, %48, %cst_17 [1] : vector<16x128xf32> to vector<16xf32>
    %50 = vector.shape_cast %49 : vector<16xf32> to vector<16x1xf32>
    %cst_18 = arith.constant 1.280000e+02 : f32
    %51 = vector.broadcast %cst_18 : f32 to vector<16x1xf32>
    %52 = arith.divf %50, %51 : vector<16x1xf32>
    %53 = vector.broadcast %45 : vector<16x1xf32> to vector<16x128xf32>
    %54 = arith.subf %41, %53 : vector<16x128xf32>
    %cst_19 = arith.constant 9.99999974E-6 : f32
    %55 = vector.broadcast %cst_19 : f32 to vector<16x1xf32>
    %56 = arith.addf %52, %55 : vector<16x1xf32>
    %57 = math.rsqrt %56 : vector<16x1xf32>
    %58 = vector.broadcast %57 : vector<16x1xf32> to vector<16x128xf32>
    %59 = arith.mulf %54, %58 : vector<16x128xf32>
    %60 = vector.broadcast %39 : vector<1x128xf32> to vector<16x128xf32>
    %61 = arith.mulf %59, %60 : vector<16x128xf32>
    %62 = vector.broadcast %40 : vector<1x128xf32> to vector<16x128xf32>
    %63 = arith.addf %61, %62 : vector<16x128xf32>
    %64 = arith.truncf %63 : vector<16x128xf32> to vector<16x128xbf16>
    %c0_20 = arith.constant 0 : index
    %c0_21 = arith.constant 0 : index
    %65 = vector.load %arg4[%c0_20, %c0_21] : memref<128x256xbf16, #tpu.memory_space<vmem>>, vector<128x256xbf16>
    %cst_22 = arith.constant dense<0.000000e+00> : vector<16x256xf32>
    %66 = tpu.matmul %64, %65, %cst_22 {dimension_numbers = #tpu.dot_dimension_numbers<[1], [0], [0], [1], [0, 0, 1, 1], [], []>} : vector<16x128xbf16>, vector<128x256xbf16>, vector<16x256xf32> -> vector<16x256xf32>
    %67 = vector.extract_strided_slice %0 {offsets = [2, 0], sizes = [1, 256], strides = [1, 1]} : vector<8x384xf32> to vector<1x256xf32>
    %68 = vector.broadcast %67 : vector<1x256xf32> to vector<16x256xf32>
    %69 = arith.addf %66, %68 : vector<16x256xf32>
    %cst_23 = arith.constant 0.000000e+00 : f32
    %70 = vector.broadcast %cst_23 : f32 to vector<16x256xf32>
    %71 = arith.maximumf %69, %70 : vector<16x256xf32>
    %72 = arith.truncf %71 : vector<16x256xf32> to vector<16x256xbf16>
    %c0_24 = arith.constant 0 : index
    %c0_25 = arith.constant 0 : index
    %73 = vector.load %arg5[%c0_24, %c0_25] : memref<256x128xbf16, #tpu.memory_space<vmem>>, vector<256x128xbf16>
    %cst_26 = arith.constant dense<0.000000e+00> : vector<16x128xf32>
    %74 = tpu.matmul %72, %73, %cst_26 {dimension_numbers = #tpu.dot_dimension_numbers<[1], [0], [0], [1], [0, 0, 1, 1], [], []>} : vector<16x256xbf16>, vector<256x128xbf16>, vector<16x128xf32> -> vector<16x128xf32>
    %75 = vector.extract_strided_slice %0 {offsets = [3, 0], sizes = [1, 128], strides = [1, 1]} : vector<8x384xf32> to vector<1x128xf32>
    %76 = vector.broadcast %75 : vector<1x128xf32> to vector<16x128xf32>
    %77 = arith.addf %74, %76 : vector<16x128xf32>
    %78 = vector.extract_strided_slice %0 {offsets = [6, 0], sizes = [1, 128], strides = [1, 1]} : vector<8x384xf32> to vector<1x128xf32>
    %79 = vector.extract_strided_slice %0 {offsets = [7, 0], sizes = [1, 128], strides = [1, 1]} : vector<8x384xf32> to vector<1x128xf32>
    %80 = arith.addf %63, %77 : vector<16x128xf32>
    %cst_27 = arith.constant dense<0.000000e+00> : vector<16xf32>
    %81 = vector.multi_reduction <add>, %80, %cst_27 [1] : vector<16x128xf32> to vector<16xf32>
    %82 = vector.shape_cast %81 : vector<16xf32> to vector<16x1xf32>
    %cst_28 = arith.constant 1.280000e+02 : f32
    %83 = vector.broadcast %cst_28 : f32 to vector<16x1xf32>
    %84 = arith.divf %82, %83 : vector<16x1xf32>
    %85 = vector.broadcast %84 : vector<16x1xf32> to vector<16x128xf32>
    %86 = arith.subf %80, %85 : vector<16x128xf32>
    %87 = arith.mulf %86, %86 : vector<16x128xf32>
    %cst_29 = arith.constant dense<0.000000e+00> : vector<16xf32>
    %88 = vector.multi_reduction <add>, %87, %cst_29 [1] : vector<16x128xf32> to vector<16xf32>
    %89 = vector.shape_cast %88 : vector<16xf32> to vector<16x1xf32>
    %cst_30 = arith.constant 1.280000e+02 : f32
    %90 = vector.broadcast %cst_30 : f32 to vector<16x1xf32>
    %91 = arith.divf %89, %90 : vector<16x1xf32>
    %92 = vector.broadcast %84 : vector<16x1xf32> to vector<16x128xf32>
    %93 = arith.subf %80, %92 : vector<16x128xf32>
    %cst_31 = arith.constant 9.99999974E-6 : f32
    %94 = vector.broadcast %cst_31 : f32 to vector<16x1xf32>
    %95 = arith.addf %91, %94 : vector<16x1xf32>
    %96 = math.rsqrt %95 : vector<16x1xf32>
    %97 = vector.broadcast %96 : vector<16x1xf32> to vector<16x128xf32>
    %98 = arith.mulf %93, %97 : vector<16x128xf32>
    %99 = vector.broadcast %78 : vector<1x128xf32> to vector<16x128xf32>
    %100 = arith.mulf %98, %99 : vector<16x128xf32>
    %101 = vector.broadcast %79 : vector<1x128xf32> to vector<16x128xf32>
    %102 = arith.addf %100, %101 : vector<16x128xf32>
    %103 = arith.truncf %102 : vector<16x128xf32> to vector<16x128xbf16>
    %c0_32 = arith.constant 0 : index
    %c0_33 = arith.constant 0 : index
    %c0_34 = arith.constant 0 : index
    %104 = vector.load %arg7[%c0_32, %c0_33, %c0_34] : memref<1x16x128xbf16, #tpu.memory_space<vmem>>, vector<1x16x128xbf16>
    %105 = vector.shape_cast %104 : vector<1x16x128xbf16> to vector<16x128xbf16>
    %106 = vector.shape_cast %103 : vector<16x128xbf16> to vector<1x16x128xbf16>
    tpu.vector_store %arg7[%c0_32, %c0_33, %c0_34], %106 {strides = array<i32>} : memref<1x16x128xbf16, #tpu.memory_space<vmem>>, vector<1x16x128xbf16>,
    return
  }
  func.func @transform_0(%arg0: i32) -> (i32, i32, i32) {
    %c0_i32 = arith.constant 0 : i32
    %c0_i32_0 = arith.constant 0 : i32
    %c0_i32_1 = arith.constant 0 : i32
    return %arg0, %c0_i32, %c0_i32_0 : i32, i32, i32
  }
  func.func @transform_1(%arg0: i32) -> (i32, i32) {
    %c0_i32 = arith.constant 0 : i32
    %c0_i32_0 = arith.constant 0 : i32
    %c0_i32_1 = arith.constant 0 : i32
    return %c0_i32, %c0_i32_0 : i32, i32
  }
  func.func @transform_2(%arg0: i32) -> (i32, i32) {
    %c0_i32 = arith.constant 0 : i32
    %c0_i32_0 = arith.constant 0 : i32
    %c0_i32_1 = arith.constant 0 : i32
    return %c0_i32, %c0_i32_0 : i32, i32
  }
  func.func @transform_3(%arg0: i32) -> (i32, i32) {
    %c0_i32 = arith.constant 0 : i32
    %c0_i32_0 = arith.constant 0 : i32
    %c0_i32_1 = arith.constant 0 : i32
    return %c0_i32, %c0_i32_0 : i32, i32
  }
  func.func @transform_4(%arg0: i32) -> (i32, i32) {
    %c0_i32 = arith.constant 0 : i32
    %c0_i32_0 = arith.constant 0 : i32
    %c0_i32_1 = arith.constant 0 : i32
    return %c0_i32, %c0_i32_0 : i32, i32
  }
  func.func @transform_5(%arg0: i32) -> (i32, i32) {
    %c0_i32 = arith.constant 0 : i32
    %c0_i32_0 = arith.constant 0 : i32
    %c0_i32_1 = arith.constant 0 : i32
    return %c0_i32, %c0_i32_0 : i32, i32
  }
  func.func @transform_6(%arg0: i32) -> (i32, i32, i32) {
    %c0_i32 = arith.constant 0 : i32
    %c0_i32_0 = arith.constant 0 : i32
    %c0_i32_1 = arith.constant 0 : i32
    return %arg0, %c0_i32, %c0_i32_0 : i32, i32, i32
  }
}

module attributes {stable_mosaic.version = 11 : i64} {
  func.func @_matmul_bias_kernel(%arg0: i32, %arg1: memref<128x64xbf16, #tpu.memory_space<vmem>>, %arg2: memref<64x128xbf16, #tpu.memory_space<vmem>>, %arg3: memref<1x128xf32, #tpu.memory_space<vmem>>, %arg4: memref<128x128xbf16, #tpu.memory_space<vmem>>) attributes {dimension_semantics = [#tpu.dimension_semantics<parallel>], iteration_bounds = array<i64: 1>, scalar_prefetch = 0 : i64, scratch_operands = 0 : i64, tpu.core_type = #tpu.core_type<tc>, window_params = [{transform_indices = @transform_0, window_bounds = array<i64: 128, 64>}, {pipeline_mode = #tpu.pipeline_mode<synchronous>, transform_indices = @transform_1, window_bounds = array<i64: 64, 128>}, {pipeline_mode = #tpu.pipeline_mode<synchronous>, transform_indices = @transform_2, window_bounds = array<i64: 1, 128>}, {transform_indices = @transform_3, window_bounds = array<i64: 128, 128>}]} {
    %c0 = arith.constant 0 : index
    %c0_0 = arith.constant 0 : index
    %0 = vector.load %arg1[%c0, %c0_0] : memref<128x64xbf16, #tpu.memory_space<vmem>>, vector<128x64xbf16>
    %c0_1 = arith.constant 0 : index
    %c0_2 = arith.constant 0 : index
    %1 = vector.load %arg2[%c0_1, %c0_2] : memref<64x128xbf16, #tpu.memory_space<vmem>>, vector<64x128xbf16>
    %cst = arith.constant dense<0.000000e+00> : vector<128x128xf32>
    %2 = tpu.matmul %0, %1, %cst {dimension_numbers = #tpu.dot_dimension_numbers<[1], [0], [0], [1], [0, 0, 1, 1], [], []>} : vector<128x64xbf16>, vector<64x128xbf16>, vector<128x128xf32> -> vector<128x128xf32>
    %c0_3 = arith.constant 0 : index
    %c0_4 = arith.constant 0 : index
    %3 = vector.load %arg3[%c0_3, %c0_4] : memref<1x128xf32, #tpu.memory_space<vmem>>, vector<1x128xf32>
    %4 = vector.broadcast %3 : vector<1x128xf32> to vector<128x128xf32>
    %5 = arith.addf %2, %4 : vector<128x128xf32>
    %6 = arith.truncf %5 : vector<128x128xf32> to vector<128x128xbf16>
    %c0_5 = arith.constant 0 : index
    %c0_6 = arith.constant 0 : index
    %7 = vector.load %arg4[%c0_5, %c0_6] : memref<128x128xbf16, #tpu.memory_space<vmem>>, vector<128x128xbf16>
    tpu.vector_store %arg4[%c0_5, %c0_6], %6 {strides = array<i32>} : memref<128x128xbf16, #tpu.memory_space<vmem>>, vector<128x128xbf16>,
    return
  }
  func.func @transform_0(%arg0: i32) -> (i32, i32) {
    %c0_i32 = arith.constant 0 : i32
    %c0_i32_0 = arith.constant 0 : i32
    return %arg0, %c0_i32 : i32, i32
  }
  func.func @transform_1(%arg0: i32) -> (i32, i32) {
    %c0_i32 = arith.constant 0 : i32
    %c0_i32_0 = arith.constant 0 : i32
    %c0_i32_1 = arith.constant 0 : i32
    return %c0_i32, %c0_i32_0 : i32, i32
  }
  func.func @transform_2(%arg0: i32) -> (i32, i32) {
    %c0_i32 = arith.constant 0 : i32
    %c0_i32_0 = arith.constant 0 : i32
    %c0_i32_1 = arith.constant 0 : i32
    return %c0_i32, %c0_i32_0 : i32, i32
  }
  func.func @transform_3(%arg0: i32) -> (i32, i32) {
    %c0_i32 = arith.constant 0 : i32
    %c0_i32_0 = arith.constant 0 : i32
    return %arg0, %c0_i32 : i32, i32
  }
}

module attributes {stable_mosaic.version = 11 : i64} {
  func.func @_matmul_bias_kernel(%arg0: i32, %arg1: memref<512x32xbf16, #tpu.memory_space<vmem>>, %arg2: memref<32x128xbf16, #tpu.memory_space<vmem>>, %arg3: memref<1x128xf32, #tpu.memory_space<vmem>>, %arg4: memref<512x128xbf16, #tpu.memory_space<vmem>>) attributes {dimension_semantics = [#tpu.dimension_semantics<parallel>], iteration_bounds = array<i64: 1>, scalar_prefetch = 0 : i64, scratch_operands = 0 : i64, tpu.core_type = #tpu.core_type<tc>, window_params = [{transform_indices = @transform_0, window_bounds = array<i64: 512, 32>}, {pipeline_mode = #tpu.pipeline_mode<synchronous>, transform_indices = @transform_1, window_bounds = array<i64: 32, 128>}, {pipeline_mode = #tpu.pipeline_mode<synchronous>, transform_indices = @transform_2, window_bounds = array<i64: 1, 128>}, {transform_indices = @transform_3, window_bounds = array<i64: 512, 128>}]} {
    %c0 = arith.constant 0 : index
    %c0_0 = arith.constant 0 : index
    %0 = vector.load %arg1[%c0, %c0_0] : memref<512x32xbf16, #tpu.memory_space<vmem>>, vector<512x32xbf16>
    %c0_1 = arith.constant 0 : index
    %c0_2 = arith.constant 0 : index
    %1 = vector.load %arg2[%c0_1, %c0_2] : memref<32x128xbf16, #tpu.memory_space<vmem>>, vector<32x128xbf16>
    %cst = arith.constant dense<0.000000e+00> : vector<512x128xf32>
    %2 = tpu.matmul %0, %1, %cst {dimension_numbers = #tpu.dot_dimension_numbers<[1], [0], [0], [1], [0, 0, 1, 1], [], []>} : vector<512x32xbf16>, vector<32x128xbf16>, vector<512x128xf32> -> vector<512x128xf32>
    %c0_3 = arith.constant 0 : index
    %c0_4 = arith.constant 0 : index
    %3 = vector.load %arg3[%c0_3, %c0_4] : memref<1x128xf32, #tpu.memory_space<vmem>>, vector<1x128xf32>
    %4 = vector.broadcast %3 : vector<1x128xf32> to vector<512x128xf32>
    %5 = arith.addf %2, %4 : vector<512x128xf32>
    %6 = arith.truncf %5 : vector<512x128xf32> to vector<512x128xbf16>
    %c0_5 = arith.constant 0 : index
    %c0_6 = arith.constant 0 : index
    %7 = vector.load %arg4[%c0_5, %c0_6] : memref<512x128xbf16, #tpu.memory_space<vmem>>, vector<512x128xbf16>
    tpu.vector_store %arg4[%c0_5, %c0_6], %6 {strides = array<i32>} : memref<512x128xbf16, #tpu.memory_space<vmem>>, vector<512x128xbf16>,
    return
  }
  func.func @transform_0(%arg0: i32) -> (i32, i32) {
    %c0_i32 = arith.constant 0 : i32
    %c0_i32_0 = arith.constant 0 : i32
    return %arg0, %c0_i32 : i32, i32
  }
  func.func @transform_1(%arg0: i32) -> (i32, i32) {
    %c0_i32 = arith.constant 0 : i32
    %c0_i32_0 = arith.constant 0 : i32
    %c0_i32_1 = arith.constant 0 : i32
    return %c0_i32, %c0_i32_0 : i32, i32
  }
  func.func @transform_2(%arg0: i32) -> (i32, i32) {
    %c0_i32 = arith.constant 0 : i32
    %c0_i32_0 = arith.constant 0 : i32
    %c0_i32_1 = arith.constant 0 : i32
    return %c0_i32, %c0_i32_0 : i32, i32
  }
  func.func @transform_3(%arg0: i32) -> (i32, i32) {
    %c0_i32 = arith.constant 0 : i32
    %c0_i32_0 = arith.constant 0 : i32
    return %arg0, %c0_i32 : i32, i32
  }
}

module attributes {stable_mosaic.version = 11 : i64} {
  func.func @_decoder_layer_kernel(%arg0: i32, %arg1: memref<1x16x128xbf16, #tpu.memory_space<vmem>>, %arg2: memref<1x336x128xbf16, #tpu.memory_space<vmem>>, %arg3: memref<1x6x128xbf16, #tpu.memory_space<vmem>>, %arg4: memref<1x1x6xf32, #tpu.memory_space<vmem>>, %arg5: memref<3x128x384xbf16, #tpu.memory_space<vmem>>, %arg6: memref<3x128x128xbf16, #tpu.memory_space<vmem>>, %arg7: memref<128x256xbf16, #tpu.memory_space<vmem>>, %arg8: memref<256x128xbf16, #tpu.memory_space<vmem>>, %arg9: memref<16x384xf32, #tpu.memory_space<vmem>>, %arg10: memref<1x16x128xbf16, #tpu.memory_space<vmem>>) attributes {dimension_semantics = [#tpu.dimension_semantics<parallel>], iteration_bounds = array<i64: 2>, scalar_prefetch = 0 : i64, scratch_operands = 0 : i64, tpu.core_type = #tpu.core_type<tc>, window_params = [{transform_indices = @transform_0, window_bounds = array<i64: 1, 16, 128>}, {transform_indices = @transform_1, window_bounds = array<i64: 1, 336, 128>}, {transform_indices = @transform_2, window_bounds = array<i64: 1, 6, 128>}, {transform_indices = @transform_3, window_bounds = array<i64: 1, 1, 6>}, {pipeline_mode = #tpu.pipeline_mode<synchronous>, transform_indices = @transform_4, window_bounds = array<i64: 3, 128, 384>}, {pipeline_mode = #tpu.pipeline_mode<synchronous>, transform_indices = @transform_5, window_bounds = array<i64: 3, 128, 128>}, {pipeline_mode = #tpu.pipeline_mode<synchronous>, transform_indices = @transform_6, window_bounds = array<i64: 128, 256>}, {pipeline_mode = #tpu.pipeline_mode<synchronous>, transform_indices = @transform_7, window_bounds = array<i64: 256, 128>}, {pipeline_mode = #tpu.pipeline_mode<synchronous>, transform_indices = @transform_8, window_bounds = array<i64: 16, 384>}, {transform_indices = @transform_9, window_bounds = array<i64: 1, 16, 128>}]} {
    %c0 = arith.constant 0 : index
    %c0_0 = arith.constant 0 : index
    %0 = vector.load %arg9[%c0, %c0_0] : memref<16x384xf32, #tpu.memory_space<vmem>>, vector<16x384xf32>
    %c0_1 = arith.constant 0 : index
    %c0_2 = arith.constant 0 : index
    %c0_3 = arith.constant 0 : index
    %1 = vector.load %arg1[%c0_1, %c0_2, %c0_3] : memref<1x16x128xbf16, #tpu.memory_space<vmem>>, vector<1x16x128xbf16>
    %2 = vector.shape_cast %1 : vector<1x16x128xbf16> to vector<16x128xbf16>
    %3 = arith.extf %2 : vector<16x128xbf16> to vector<16x128xf32>
    %c0_4 = arith.constant 0 : index
    %c0_5 = arith.constant 0 : index
    %c0_6 = arith.constant 0 : index
    %4 = vector.load %arg2[%c0_4, %c0_5, %c0_6] : memref<1x336x128xbf16, #tpu.memory_space<vmem>>, vector<1x336x128xbf16>
    %5 = vector.shape_cast %4 : vector<1x336x128xbf16> to vector<336x128xbf16>
    %c0_7 = arith.constant 0 : index
    %c0_8 = arith.constant 0 : index
    %c0_9 = arith.constant 0 : index
    %6 = vector.load %arg3[%c0_7, %c0_8, %c0_9] : memref<1x6x128xbf16, #tpu.memory_space<vmem>>, vector<1x6x128xbf16>
    %7 = vector.shape_cast %6 : vector<1x6x128xbf16> to vector<6x128xbf16>
    %c0_10 = arith.constant 0 : index
    %c0_11 = arith.constant 0 : index
    %c0_12 = arith.constant 0 : index
    %8 = vector.load %arg4[%c0_10, %c0_11, %c0_12] : memref<1x1x6xf32, #tpu.memory_space<vmem>>, vector<1x1x6xf32>
    %9 = vector.shape_cast %8 : vector<1x1x6xf32> to vector<1x6xf32>
    %c0_13 = arith.constant 0 : index
    %c0_14 = arith.constant 0 : index
    %c0_15 = arith.constant 0 : index
    %10 = vector.load %arg5[%c0_13, %c0_14, %c0_15] : memref<3x128x384xbf16, #tpu.memory_space<vmem>>, vector<1x128x384xbf16>
    %11 = vector.shape_cast %10 : vector<1x128x384xbf16> to vector<128x384xbf16>
    %12 = vector.extract_strided_slice %0 {offsets = [0, 0], sizes = [1, 384], strides = [1, 1]} : vector<16x384xf32> to vector<1x384xf32>
    %c0_16 = arith.constant 0 : index
    %c0_17 = arith.constant 0 : index
    %c0_18 = arith.constant 0 : index
    %13 = vector.load %arg6[%c0_16, %c0_17, %c0_18] : memref<3x128x128xbf16, #tpu.memory_space<vmem>>, vector<1x128x128xbf16>
    %14 = vector.shape_cast %13 : vector<1x128x128xbf16> to vector<128x128xbf16>
    %15 = vector.extract_strided_slice %0 {offsets = [3, 0], sizes = [1, 128], strides = [1, 1]} : vector<16x384xf32> to vector<1x128xf32>
    %16 = arith.truncf %3 : vector<16x128xf32> to vector<16x128xbf16>
    %cst = arith.constant dense<0.000000e+00> : vector<16x384xf32>
    %17 = tpu.matmul %16, %11, %cst {dimension_numbers = #tpu.dot_dimension_numbers<[1], [0], [0], [1], [0, 0, 1, 1], [], []>} : vector<16x128xbf16>, vector<128x384xbf16>, vector<16x384xf32> -> vector<16x384xf32>
    %18 = vector.broadcast %12 : vector<1x384xf32> to vector<16x384xf32>
    %19 = arith.addf %17, %18 : vector<16x384xf32>
    %20 = vector.extract_strided_slice %19 {offsets = [0, 0], sizes = [16, 128], strides = [1, 1]} : vector<16x384xf32> to vector<16x128xf32>
    %21 = vector.extract_strided_slice %19 {offsets = [0, 128], sizes = [16, 128], strides = [1, 1]} : vector<16x384xf32> to vector<16x128xf32>
    %22 = vector.extract_strided_slice %19 {offsets = [0, 256], sizes = [16, 128], strides = [1, 1]} : vector<16x384xf32> to vector<16x128xf32>
    %cst_19 = arith.constant 1.280000e+02 : f32
    %23 = math.sqrt %cst_19 : f32
    %cst_20 = arith.constant 1.000000e+00 : f32
    %24 = arith.divf %cst_20, %23 : f32
    %25 = arith.truncf %20 : vector<16x128xf32> to vector<16x128xbf16>
    %26 = arith.truncf %21 : vector<16x128xf32> to vector<16x128xbf16>
    %cst_21 = arith.constant dense<0.000000e+00> : vector<16x16xf32>
    %27 = tpu.matmul %25, %26, %cst_21 {dimension_numbers = #tpu.dot_dimension_numbers<[1], [1], [0], [0], [0, 0, 1, 0], [], []>} : vector<16x128xbf16>, vector<16x128xbf16>, vector<16x16xf32> -> vector<16x16xf32>
    %28 = vector.broadcast %24 : f32 to vector<16x16xf32>
    %29 = arith.mulf %27, %28 : vector<16x16xf32>
    %cst_22 = arith.constant dense<0xFF800000> : vector<16xf32>
    %30 = vector.multi_reduction <maximumf>, %29, %cst_22 [1] : vector<16x16xf32> to vector<16xf32>
    %31 = vector.shape_cast %30 : vector<16xf32> to vector<16x1xf32>
    %32 = vector.broadcast %31 : vector<16x1xf32> to vector<16x16xf32>
    %33 = arith.subf %29, %32 : vector<16x16xf32>
    %34 = math.exp %33 : vector<16x16xf32>
    %cst_23 = arith.constant dense<0.000000e+00> : vector<16xf32>
    %35 = vector.multi_reduction <add>, %34, %cst_23 [1] : vector<16x16xf32> to vector<16xf32>
    %36 = vector.shape_cast %35 : vector<16xf32> to vector<16x1xf32>
    %37 = tpu.reciprocal %36 {approx = true} : vector<16x1xf32> -> vector<16x1xf32>
    %38 = vector.broadcast %37 : vector<16x1xf32> to vector<16x16xf32>
    %39 = arith.mulf %34, %38 : vector<16x16xf32>
    %40 = arith.truncf %39 : vector<16x16xf32> to vector<16x16xbf16>
    %41 = arith.truncf %22 : vector<16x128xf32> to vector<16x128xbf16>
    %cst_24 = arith.constant dense<0.000000e+00> : vector<16x128xf32>
    %42 = tpu.matmul %40, %41, %cst_24 {dimension_numbers = #tpu.dot_dimension_numbers<[1], [0], [0], [1], [0, 0, 1, 1], [], []>} : vector<16x16xbf16>, vector<16x128xbf16>, vector<16x128xf32> -> vector<16x128xf32>
    %43 = arith.truncf %42 : vector<16x128xf32> to vector<16x128xbf16>
    %cst_25 = arith.constant dense<0.000000e+00> : vector<16x128xf32>
    %44 = tpu.matmul %43, %14, %cst_25 {dimension_numbers = #tpu.dot_dimension_numbers<[1], [0], [0], [1], [0, 0, 1, 1], [], []>} : vector<16x128xbf16>, vector<128x128xbf16>, vector<16x128xf32> -> vector<16x128xf32>
    %45 = vector.broadcast %15 : vector<1x128xf32> to vector<16x128xf32>
    %46 = arith.addf %44, %45 : vector<16x128xf32>
    %47 = vector.extract_strided_slice %0 {offsets = [8, 0], sizes = [1, 128], strides = [1, 1]} : vector<16x384xf32> to vector<1x128xf32>
    %48 = vector.extract_strided_slice %0 {offsets = [12, 0], sizes = [1, 128], strides = [1, 1]} : vector<16x384xf32> to vector<1x128xf32>
    %49 = arith.addf %3, %46 : vector<16x128xf32>
    %cst_26 = arith.constant dense<0.000000e+00> : vector<16xf32>
    %50 = vector.multi_reduction <add>, %49, %cst_26 [1] : vector<16x128xf32> to vector<16xf32>
    %51 = vector.shape_cast %50 : vector<16xf32> to vector<16x1xf32>
    %cst_27 = arith.constant 1.280000e+02 : f32
    %52 = vector.broadcast %cst_27 : f32 to vector<16x1xf32>
    %53 = arith.divf %51, %52 : vector<16x1xf32>
    %54 = vector.broadcast %53 : vector<16x1xf32> to vector<16x128xf32>
    %55 = arith.subf %49, %54 : vector<16x128xf32>
    %56 = arith.mulf %55, %55 : vector<16x128xf32>
    %cst_28 = arith.constant dense<0.000000e+00> : vector<16xf32>
    %57 = vector.multi_reduction <add>, %56, %cst_28 [1] : vector<16x128xf32> to vector<16xf32>
    %58 = vector.shape_cast %57 : vector<16xf32> to vector<16x1xf32>
    %cst_29 = arith.constant 1.280000e+02 : f32
    %59 = vector.broadcast %cst_29 : f32 to vector<16x1xf32>
    %60 = arith.divf %58, %59 : vector<16x1xf32>
    %61 = vector.broadcast %53 : vector<16x1xf32> to vector<16x128xf32>
    %62 = arith.subf %49, %61 : vector<16x128xf32>
    %cst_30 = arith.constant 9.99999974E-6 : f32
    %63 = vector.broadcast %cst_30 : f32 to vector<16x1xf32>
    %64 = arith.addf %60, %63 : vector<16x1xf32>
    %65 = math.rsqrt %64 : vector<16x1xf32>
    %66 = vector.broadcast %65 : vector<16x1xf32> to vector<16x128xf32>
    %67 = arith.mulf %62, %66 : vector<16x128xf32>
    %68 = vector.broadcast %47 : vector<1x128xf32> to vector<16x128xf32>
    %69 = arith.mulf %67, %68 : vector<16x128xf32>
    %70 = vector.broadcast %48 : vector<1x128xf32> to vector<16x128xf32>
    %71 = arith.addf %69, %70 : vector<16x128xf32>
    %c1 = arith.constant 1 : index
    %c0_31 = arith.constant 0 : index
    %c0_32 = arith.constant 0 : index
    %72 = vector.load %arg5[%c1, %c0_31, %c0_32] : memref<3x128x384xbf16, #tpu.memory_space<vmem>>, vector<1x128x128xbf16>
    %73 = vector.shape_cast %72 : vector<1x128x128xbf16> to vector<128x128xbf16>
    %c1_33 = arith.constant 1 : index
    %c0_34 = arith.constant 0 : index
    %c128 = arith.constant 128 : index
    %74 = vector.load %arg5[%c1_33, %c0_34, %c128] : memref<3x128x384xbf16, #tpu.memory_space<vmem>>, vector<1x128x256xbf16>
    %75 = vector.shape_cast %74 : vector<1x128x256xbf16> to vector<128x256xbf16>
    %76 = vector.extract_strided_slice %0 {offsets = [1, 0], sizes = [1, 128], strides = [1, 1]} : vector<16x384xf32> to vector<1x128xf32>
    %77 = vector.extract_strided_slice %0 {offsets = [1, 128], sizes = [1, 256], strides = [1, 1]} : vector<16x384xf32> to vector<1x256xf32>
    %c1_35 = arith.constant 1 : index
    %c0_36 = arith.constant 0 : index
    %c0_37 = arith.constant 0 : index
    %78 = vector.load %arg6[%c1_35, %c0_36, %c0_37] : memref<3x128x128xbf16, #tpu.memory_space<vmem>>, vector<1x128x128xbf16>
    %79 = vector.shape_cast %78 : vector<1x128x128xbf16> to vector<128x128xbf16>
    %80 = vector.extract_strided_slice %0 {offsets = [4, 0], sizes = [1, 128], strides = [1, 1]} : vector<16x384xf32> to vector<1x128xf32>
    %81 = arith.truncf %71 : vector<16x128xf32> to vector<16x128xbf16>
    %cst_38 = arith.constant dense<0.000000e+00> : vector<16x128xf32>
    %82 = tpu.matmul %81, %73, %cst_38 {dimension_numbers = #tpu.dot_dimension_numbers<[1], [0], [0], [1], [0, 0, 1, 1], [], []>} : vector<16x128xbf16>, vector<128x128xbf16>, vector<16x128xf32> -> vector<16x128xf32>
    %83 = vector.broadcast %76 : vector<1x128xf32> to vector<16x128xf32>
    %84 = arith.addf %82, %83 : vector<16x128xf32>
    %cst_39 = arith.constant dense<0.000000e+00> : vector<6x256xf32>
    %85 = tpu.matmul %7, %75, %cst_39 {dimension_numbers = #tpu.dot_dimension_numbers<[1], [0], [0], [1], [0, 0, 1, 1], [], []>} : vector<6x128xbf16>, vector<128x256xbf16>, vector<6x256xf32> -> vector<6x256xf32>
    %86 = vector.broadcast %77 : vector<1x256xf32> to vector<6x256xf32>
    %87 = arith.addf %85, %86 : vector<6x256xf32>
    %88 = vector.extract_strided_slice %87 {offsets = [0, 0], sizes = [6, 128], strides = [1, 1]} : vector<6x256xf32> to vector<6x128xf32>
    %89 = vector.extract_strided_slice %87 {offsets = [0, 128], sizes = [6, 128], strides = [1, 1]} : vector<6x256xf32> to vector<6x128xf32>
    %cst_40 = arith.constant 1.280000e+02 : f32
    %90 = math.sqrt %cst_40 : f32
    %cst_41 = arith.constant 1.000000e+00 : f32
    %91 = arith.divf %cst_41, %90 : f32
    %92 = arith.truncf %84 : vector<16x128xf32> to vector<16x128xbf16>
    %93 = arith.truncf %88 : vector<6x128xf32> to vector<6x128xbf16>
    %cst_42 = arith.constant dense<0.000000e+00> : vector<16x6xf32>
    %94 = tpu.matmul %92, %93, %cst_42 {dimension_numbers = #tpu.dot_dimension_numbers<[1], [1], [0], [0], [0, 0, 1, 0], [], []>} : vector<16x128xbf16>, vector<6x128xbf16>, vector<16x6xf32> -> vector<16x6xf32>
    %95 = vector.broadcast %91 : f32 to vector<16x6xf32>
    %96 = arith.mulf %94, %95 : vector<16x6xf32>
    %cst_43 = arith.constant 5.000000e-01 : f32
    %97 = vector.broadcast %cst_43 : f32 to vector<1x6xf32>
    %98 = arith.cmpf ogt, %9, %97 : vector<1x6xf32>
    %cst_44 = arith.constant -1.000000e+09 : f32
    %99 = vector.shape_cast %98 : vector<1x6xi1> to vector<1x6xi1>
    %100 = vector.broadcast %99 : vector<1x6xi1> to vector<16x6xi1>
    %101 = vector.broadcast %cst_44 : f32 to vector<16x6xf32>
    %102 = arith.select %100, %96, %101 : vector<16x6xi1>, vector<16x6xf32>
    %cst_45 = arith.constant dense<0xFF800000> : vector<16xf32>
    %103 = vector.multi_reduction <maximumf>, %102, %cst_45 [1] : vector<16x6xf32> to vector<16xf32>
    %104 = vector.shape_cast %103 : vector<16xf32> to vector<16x1xf32>
    %105 = vector.broadcast %104 : vector<16x1xf32> to vector<16x6xf32>
    %106 = arith.subf %102, %105 : vector<16x6xf32>
    %107 = math.exp %106 : vector<16x6xf32>
    %108 = vector.broadcast %9 : vector<1x6xf32> to vector<16x6xf32>
    %109 = arith.mulf %107, %108 : vector<16x6xf32>
    %cst_46 = arith.constant dense<0.000000e+00> : vector<16xf32>
    %110 = vector.multi_reduction <add>, %109, %cst_46 [1] : vector<16x6xf32> to vector<16xf32>
    %111 = vector.shape_cast %110 : vector<16xf32> to vector<16x1xf32>
    %cst_47 = arith.constant 9.99999997E-7 : f32
    %112 = vector.broadcast %cst_47 : f32 to vector<16x1xf32>
    %113 = arith.addf %111, %112 : vector<16x1xf32>
    %114 = tpu.reciprocal %113 {approx = true} : vector<16x1xf32> -> vector<16x1xf32>
    %115 = vector.broadcast %114 : vector<16x1xf32> to vector<16x6xf32>
    %116 = arith.mulf %109, %115 : vector<16x6xf32>
    %117 = arith.truncf %116 : vector<16x6xf32> to vector<16x6xbf16>
    %118 = arith.truncf %89 : vector<6x128xf32> to vector<6x128xbf16>
    %cst_48 = arith.constant dense<0.000000e+00> : vector<16x128xf32>
    %119 = tpu.matmul %117, %118, %cst_48 {dimension_numbers = #tpu.dot_dimension_numbers<[1], [0], [0], [1], [0, 0, 1, 1], [], []>} : vector<16x6xbf16>, vector<6x128xbf16>, vector<16x128xf32> -> vector<16x128xf32>
    %120 = arith.truncf %119 : vector<16x128xf32> to vector<16x128xbf16>
    %cst_49 = arith.constant dense<0.000000e+00> : vector<16x128xf32>
    %121 = tpu.matmul %120, %79, %cst_49 {dimension_numbers = #tpu.dot_dimension_numbers<[1], [0], [0], [1], [0, 0, 1, 1], [], []>} : vector<16x128xbf16>, vector<128x128xbf16>, vector<16x128xf32> -> vector<16x128xf32>
    %122 = vector.broadcast %80 : vector<1x128xf32> to vector<16x128xf32>
    %123 = arith.addf %121, %122 : vector<16x128xf32>
    %124 = vector.extract_strided_slice %0 {offsets = [9, 0], sizes = [1, 128], strides = [1, 1]} : vector<16x384xf32> to vector<1x128xf32>
    %125 = vector.extract_strided_slice %0 {offsets = [13, 0], sizes = [1, 128], strides = [1, 1]} : vector<16x384xf32> to vector<1x128xf32>
    %126 = arith.addf %71, %123 : vector<16x128xf32>
    %cst_50 = arith.constant dense<0.000000e+00> : vector<16xf32>
    %127 = vector.multi_reduction <add>, %126, %cst_50 [1] : vector<16x128xf32> to vector<16xf32>
    %128 = vector.shape_cast %127 : vector<16xf32> to vector<16x1xf32>
    %cst_51 = arith.constant 1.280000e+02 : f32
    %129 = vector.broadcast %cst_51 : f32 to vector<16x1xf32>
    %130 = arith.divf %128, %129 : vector<16x1xf32>
    %131 = vector.broadcast %130 : vector<16x1xf32> to vector<16x128xf32>
    %132 = arith.subf %126, %131 : vector<16x128xf32>
    %133 = arith.mulf %132, %132 : vector<16x128xf32>
    %cst_52 = arith.constant dense<0.000000e+00> : vector<16xf32>
    %134 = vector.multi_reduction <add>, %133, %cst_52 [1] : vector<16x128xf32> to vector<16xf32>
    %135 = vector.shape_cast %134 : vector<16xf32> to vector<16x1xf32>
    %cst_53 = arith.constant 1.280000e+02 : f32
    %136 = vector.broadcast %cst_53 : f32 to vector<16x1xf32>
    %137 = arith.divf %135, %136 : vector<16x1xf32>
    %138 = vector.broadcast %130 : vector<16x1xf32> to vector<16x128xf32>
    %139 = arith.subf %126, %138 : vector<16x128xf32>
    %cst_54 = arith.constant 9.99999974E-6 : f32
    %140 = vector.broadcast %cst_54 : f32 to vector<16x1xf32>
    %141 = arith.addf %137, %140 : vector<16x1xf32>
    %142 = math.rsqrt %141 : vector<16x1xf32>
    %143 = vector.broadcast %142 : vector<16x1xf32> to vector<16x128xf32>
    %144 = arith.mulf %139, %143 : vector<16x128xf32>
    %145 = vector.broadcast %124 : vector<1x128xf32> to vector<16x128xf32>
    %146 = arith.mulf %144, %145 : vector<16x128xf32>
    %147 = vector.broadcast %125 : vector<1x128xf32> to vector<16x128xf32>
    %148 = arith.addf %146, %147 : vector<16x128xf32>
    %c2 = arith.constant 2 : index
    %c0_55 = arith.constant 0 : index
    %c0_56 = arith.constant 0 : index
    %149 = vector.load %arg5[%c2, %c0_55, %c0_56] : memref<3x128x384xbf16, #tpu.memory_space<vmem>>, vector<1x128x128xbf16>
    %150 = vector.shape_cast %149 : vector<1x128x128xbf16> to vector<128x128xbf16>
    %c2_57 = arith.constant 2 : index
    %c0_58 = arith.constant 0 : index
    %c128_59 = arith.constant 128 : index
    %151 = vector.load %arg5[%c2_57, %c0_58, %c128_59] : memref<3x128x384xbf16, #tpu.memory_space<vmem>>, vector<1x128x256xbf16>
    %152 = vector.shape_cast %151 : vector<1x128x256xbf16> to vector<128x256xbf16>
    %153 = vector.extract_strided_slice %0 {offsets = [2, 0], sizes = [1, 128], strides = [1, 1]} : vector<16x384xf32> to vector<1x128xf32>
    %154 = vector.extract_strided_slice %0 {offsets = [2, 128], sizes = [1, 256], strides = [1, 1]} : vector<16x384xf32> to vector<1x256xf32>
    %c2_60 = arith.constant 2 : index
    %c0_61 = arith.constant 0 : index
    %c0_62 = arith.constant 0 : index
    %155 = vector.load %arg6[%c2_60, %c0_61, %c0_62] : memref<3x128x128xbf16, #tpu.memory_space<vmem>>, vector<1x128x128xbf16>
    %156 = vector.shape_cast %155 : vector<1x128x128xbf16> to vector<128x128xbf16>
    %157 = vector.extract_strided_slice %0 {offsets = [5, 0], sizes = [1, 128], strides = [1, 1]} : vector<16x384xf32> to vector<1x128xf32>
    %158 = arith.truncf %148 : vector<16x128xf32> to vector<16x128xbf16>
    %cst_63 = arith.constant dense<0.000000e+00> : vector<16x128xf32>
    %159 = tpu.matmul %158, %150, %cst_63 {dimension_numbers = #tpu.dot_dimension_numbers<[1], [0], [0], [1], [0, 0, 1, 1], [], []>} : vector<16x128xbf16>, vector<128x128xbf16>, vector<16x128xf32> -> vector<16x128xf32>
    %160 = vector.broadcast %153 : vector<1x128xf32> to vector<16x128xf32>
    %161 = arith.addf %159, %160 : vector<16x128xf32>
    %cst_64 = arith.constant dense<0.000000e+00> : vector<336x256xf32>
    %162 = tpu.matmul %5, %152, %cst_64 {dimension_numbers = #tpu.dot_dimension_numbers<[1], [0], [0], [1], [0, 0, 1, 1], [], []>} : vector<336x128xbf16>, vector<128x256xbf16>, vector<336x256xf32> -> vector<336x256xf32>
    %163 = vector.broadcast %154 : vector<1x256xf32> to vector<336x256xf32>
    %164 = arith.addf %162, %163 : vector<336x256xf32>
    %165 = vector.extract_strided_slice %164 {offsets = [0, 0], sizes = [336, 128], strides = [1, 1]} : vector<336x256xf32> to vector<336x128xf32>
    %166 = vector.extract_strided_slice %164 {offsets = [0, 128], sizes = [336, 128], strides = [1, 1]} : vector<336x256xf32> to vector<336x128xf32>
    %cst_65 = arith.constant 1.280000e+02 : f32
    %167 = math.sqrt %cst_65 : f32
    %cst_66 = arith.constant 1.000000e+00 : f32
    %168 = arith.divf %cst_66, %167 : f32
    %169 = arith.truncf %161 : vector<16x128xf32> to vector<16x128xbf16>
    %170 = arith.truncf %165 : vector<336x128xf32> to vector<336x128xbf16>
    %cst_67 = arith.constant dense<0.000000e+00> : vector<16x336xf32>
    %171 = tpu.matmul %169, %170, %cst_67 {dimension_numbers = #tpu.dot_dimension_numbers<[1], [1], [0], [0], [0, 0, 1, 0], [], []>} : vector<16x128xbf16>, vector<336x128xbf16>, vector<16x336xf32> -> vector<16x336xf32>
    %172 = vector.broadcast %168 : f32 to vector<16x336xf32>
    %173 = arith.mulf %171, %172 : vector<16x336xf32>
    %cst_68 = arith.constant dense<0xFF800000> : vector<16xf32>
    %174 = vector.multi_reduction <maximumf>, %173, %cst_68 [1] : vector<16x336xf32> to vector<16xf32>
    %175 = vector.shape_cast %174 : vector<16xf32> to vector<16x1xf32>
    %176 = vector.broadcast %175 : vector<16x1xf32> to vector<16x336xf32>
    %177 = arith.subf %173, %176 : vector<16x336xf32>
    %178 = math.exp %177 : vector<16x336xf32>
    %cst_69 = arith.constant dense<0.000000e+00> : vector<16xf32>
    %179 = vector.multi_reduction <add>, %178, %cst_69 [1] : vector<16x336xf32> to vector<16xf32>
    %180 = vector.shape_cast %179 : vector<16xf32> to vector<16x1xf32>
    %181 = tpu.reciprocal %180 {approx = true} : vector<16x1xf32> -> vector<16x1xf32>
    %182 = vector.broadcast %181 : vector<16x1xf32> to vector<16x336xf32>
    %183 = arith.mulf %178, %182 : vector<16x336xf32>
    %184 = arith.truncf %183 : vector<16x336xf32> to vector<16x336xbf16>
    %185 = arith.truncf %166 : vector<336x128xf32> to vector<336x128xbf16>
    %cst_70 = arith.constant dense<0.000000e+00> : vector<16x128xf32>
    %186 = tpu.matmul %184, %185, %cst_70 {dimension_numbers = #tpu.dot_dimension_numbers<[1], [0], [0], [1], [0, 0, 1, 1], [], []>} : vector<16x336xbf16>, vector<336x128xbf16>, vector<16x128xf32> -> vector<16x128xf32>
    %187 = arith.truncf %186 : vector<16x128xf32> to vector<16x128xbf16>
    %cst_71 = arith.constant dense<0.000000e+00> : vector<16x128xf32>
    %188 = tpu.matmul %187, %156, %cst_71 {dimension_numbers = #tpu.dot_dimension_numbers<[1], [0], [0], [1], [0, 0, 1, 1], [], []>} : vector<16x128xbf16>, vector<128x128xbf16>, vector<16x128xf32> -> vector<16x128xf32>
    %189 = vector.broadcast %157 : vector<1x128xf32> to vector<16x128xf32>
    %190 = arith.addf %188, %189 : vector<16x128xf32>
    %191 = vector.extract_strided_slice %0 {offsets = [10, 0], sizes = [1, 128], strides = [1, 1]} : vector<16x384xf32> to vector<1x128xf32>
    %192 = vector.extract_strided_slice %0 {offsets = [14, 0], sizes = [1, 128], strides = [1, 1]} : vector<16x384xf32> to vector<1x128xf32>
    %193 = arith.addf %148, %190 : vector<16x128xf32>
    %cst_72 = arith.constant dense<0.000000e+00> : vector<16xf32>
    %194 = vector.multi_reduction <add>, %193, %cst_72 [1] : vector<16x128xf32> to vector<16xf32>
    %195 = vector.shape_cast %194 : vector<16xf32> to vector<16x1xf32>
    %cst_73 = arith.constant 1.280000e+02 : f32
    %196 = vector.broadcast %cst_73 : f32 to vector<16x1xf32>
    %197 = arith.divf %195, %196 : vector<16x1xf32>
    %198 = vector.broadcast %197 : vector<16x1xf32> to vector<16x128xf32>
    %199 = arith.subf %193, %198 : vector<16x128xf32>
    %200 = arith.mulf %199, %199 : vector<16x128xf32>
    %cst_74 = arith.constant dense<0.000000e+00> : vector<16xf32>
    %201 = vector.multi_reduction <add>, %200, %cst_74 [1] : vector<16x128xf32> to vector<16xf32>
    %202 = vector.shape_cast %201 : vector<16xf32> to vector<16x1xf32>
    %cst_75 = arith.constant 1.280000e+02 : f32
    %203 = vector.broadcast %cst_75 : f32 to vector<16x1xf32>
    %204 = arith.divf %202, %203 : vector<16x1xf32>
    %205 = vector.broadcast %197 : vector<16x1xf32> to vector<16x128xf32>
    %206 = arith.subf %193, %205 : vector<16x128xf32>
    %cst_76 = arith.constant 9.99999974E-6 : f32
    %207 = vector.broadcast %cst_76 : f32 to vector<16x1xf32>
    %208 = arith.addf %204, %207 : vector<16x1xf32>
    %209 = math.rsqrt %208 : vector<16x1xf32>
    %210 = vector.broadcast %209 : vector<16x1xf32> to vector<16x128xf32>
    %211 = arith.mulf %206, %210 : vector<16x128xf32>
    %212 = vector.broadcast %191 : vector<1x128xf32> to vector<16x128xf32>
    %213 = arith.mulf %211, %212 : vector<16x128xf32>
    %214 = vector.broadcast %192 : vector<1x128xf32> to vector<16x128xf32>
    %215 = arith.addf %213, %214 : vector<16x128xf32>
    %216 = arith.truncf %215 : vector<16x128xf32> to vector<16x128xbf16>
    %c0_77 = arith.constant 0 : index
    %c0_78 = arith.constant 0 : index
    %217 = vector.load %arg7[%c0_77, %c0_78] : memref<128x256xbf16, #tpu.memory_space<vmem>>, vector<128x256xbf16>
    %cst_79 = arith.constant dense<0.000000e+00> : vector<16x256xf32>
    %218 = tpu.matmul %216, %217, %cst_79 {dimension_numbers = #tpu.dot_dimension_numbers<[1], [0], [0], [1], [0, 0, 1, 1], [], []>} : vector<16x128xbf16>, vector<128x256xbf16>, vector<16x256xf32> -> vector<16x256xf32>
    %219 = vector.extract_strided_slice %0 {offsets = [6, 0], sizes = [1, 256], strides = [1, 1]} : vector<16x384xf32> to vector<1x256xf32>
    %220 = vector.broadcast %219 : vector<1x256xf32> to vector<16x256xf32>
    %221 = arith.addf %218, %220 : vector<16x256xf32>
    %cst_80 = arith.constant 0.000000e+00 : f32
    %222 = vector.broadcast %cst_80 : f32 to vector<16x256xf32>
    %223 = arith.maximumf %221, %222 : vector<16x256xf32>
    %224 = arith.truncf %223 : vector<16x256xf32> to vector<16x256xbf16>
    %c0_81 = arith.constant 0 : index
    %c0_82 = arith.constant 0 : index
    %225 = vector.load %arg8[%c0_81, %c0_82] : memref<256x128xbf16, #tpu.memory_space<vmem>>, vector<256x128xbf16>
    %cst_83 = arith.constant dense<0.000000e+00> : vector<16x128xf32>
    %226 = tpu.matmul %224, %225, %cst_83 {dimension_numbers = #tpu.dot_dimension_numbers<[1], [0], [0], [1], [0, 0, 1, 1], [], []>} : vector<16x256xbf16>, vector<256x128xbf16>, vector<16x128xf32> -> vector<16x128xf32>
    %227 = vector.extract_strided_slice %0 {offsets = [7, 0], sizes = [1, 128], strides = [1, 1]} : vector<16x384xf32> to vector<1x128xf32>
    %228 = vector.broadcast %227 : vector<1x128xf32> to vector<16x128xf32>
    %229 = arith.addf %226, %228 : vector<16x128xf32>
    %230 = vector.extract_strided_slice %0 {offsets = [11, 0], sizes = [1, 128], strides = [1, 1]} : vector<16x384xf32> to vector<1x128xf32>
    %231 = vector.extract_strided_slice %0 {offsets = [15, 0], sizes = [1, 128], strides = [1, 1]} : vector<16x384xf32> to vector<1x128xf32>
    %232 = arith.addf %215, %229 : vector<16x128xf32>
    %cst_84 = arith.constant dense<0.000000e+00> : vector<16xf32>
    %233 = vector.multi_reduction <add>, %232, %cst_84 [1] : vector<16x128xf32> to vector<16xf32>
    %234 = vector.shape_cast %233 : vector<16xf32> to vector<16x1xf32>
    %cst_85 = arith.constant 1.280000e+02 : f32
    %235 = vector.broadcast %cst_85 : f32 to vector<16x1xf32>
    %236 = arith.divf %234, %235 : vector<16x1xf32>
    %237 = vector.broadcast %236 : vector<16x1xf32> to vector<16x128xf32>
    %238 = arith.subf %232, %237 : vector<16x128xf32>
    %239 = arith.mulf %238, %238 : vector<16x128xf32>
    %cst_86 = arith.constant dense<0.000000e+00> : vector<16xf32>
    %240 = vector.multi_reduction <add>, %239, %cst_86 [1] : vector<16x128xf32> to vector<16xf32>
    %241 = vector.shape_cast %240 : vector<16xf32> to vector<16x1xf32>
    %cst_87 = arith.constant 1.280000e+02 : f32
    %242 = vector.broadcast %cst_87 : f32 to vector<16x1xf32>
    %243 = arith.divf %241, %242 : vector<16x1xf32>
    %244 = vector.broadcast %236 : vector<16x1xf32> to vector<16x128xf32>
    %245 = arith.subf %232, %244 : vector<16x128xf32>
    %cst_88 = arith.constant 9.99999974E-6 : f32
    %246 = vector.broadcast %cst_88 : f32 to vector<16x1xf32>
    %247 = arith.addf %243, %246 : vector<16x1xf32>
    %248 = math.rsqrt %247 : vector<16x1xf32>
    %249 = vector.broadcast %248 : vector<16x1xf32> to vector<16x128xf32>
    %250 = arith.mulf %245, %249 : vector<16x128xf32>
    %251 = vector.broadcast %230 : vector<1x128xf32> to vector<16x128xf32>
    %252 = arith.mulf %250, %251 : vector<16x128xf32>
    %253 = vector.broadcast %231 : vector<1x128xf32> to vector<16x128xf32>
    %254 = arith.addf %252, %253 : vector<16x128xf32>
    %255 = arith.truncf %254 : vector<16x128xf32> to vector<16x128xbf16>
    %c0_89 = arith.constant 0 : index
    %c0_90 = arith.constant 0 : index
    %c0_91 = arith.constant 0 : index
    %256 = vector.load %arg10[%c0_89, %c0_90, %c0_91] : memref<1x16x128xbf16, #tpu.memory_space<vmem>>, vector<1x16x128xbf16>
    %257 = vector.shape_cast %256 : vector<1x16x128xbf16> to vector<16x128xbf16>
    %258 = vector.shape_cast %255 : vector<16x128xbf16> to vector<1x16x128xbf16>
    tpu.vector_store %arg10[%c0_89, %c0_90, %c0_91], %258 {strides = array<i32>} : memref<1x16x128xbf16, #tpu.memory_space<vmem>>, vector<1x16x128xbf16>,
    return
  }
  func.func @transform_0(%arg0: i32) -> (i32, i32, i32) {
    %c0_i32 = arith.constant 0 : i32
    %c0_i32_0 = arith.constant 0 : i32
    %c0_i32_1 = arith.constant 0 : i32
    return %arg0, %c0_i32, %c0_i32_0 : i32, i32, i32
  }
  func.func @transform_1(%arg0: i32) -> (i32, i32, i32) {
    %c0_i32 = arith.constant 0 : i32
    %c0_i32_0 = arith.constant 0 : i32
    %c0_i32_1 = arith.constant 0 : i32
    return %arg0, %c0_i32, %c0_i32_0 : i32, i32, i32
  }
  func.func @transform_2(%arg0: i32) -> (i32, i32, i32) {
    %c0_i32 = arith.constant 0 : i32
    %c0_i32_0 = arith.constant 0 : i32
    %c0_i32_1 = arith.constant 0 : i32
    return %arg0, %c0_i32, %c0_i32_0 : i32, i32, i32
  }
  func.func @transform_3(%arg0: i32) -> (i32, i32, i32) {
    %c0_i32 = arith.constant 0 : i32
    %c0_i32_0 = arith.constant 0 : i32
    %c0_i32_1 = arith.constant 0 : i32
    return %arg0, %c0_i32, %c0_i32_0 : i32, i32, i32
  }
  func.func @transform_4(%arg0: i32) -> (i32, i32, i32) {
    %c0_i32 = arith.constant 0 : i32
    %c0_i32_0 = arith.constant 0 : i32
    %c0_i32_1 = arith.constant 0 : i32
    %c0_i32_2 = arith.constant 0 : i32
    return %c0_i32, %c0_i32_0, %c0_i32_1 : i32, i32, i32
  }
  func.func @transform_5(%arg0: i32) -> (i32, i32, i32) {
    %c0_i32 = arith.constant 0 : i32
    %c0_i32_0 = arith.constant 0 : i32
    %c0_i32_1 = arith.constant 0 : i32
    %c0_i32_2 = arith.constant 0 : i32
    return %c0_i32, %c0_i32_0, %c0_i32_1 : i32, i32, i32
  }
  func.func @transform_6(%arg0: i32) -> (i32, i32) {
    %c0_i32 = arith.constant 0 : i32
    %c0_i32_0 = arith.constant 0 : i32
    %c0_i32_1 = arith.constant 0 : i32
    return %c0_i32, %c0_i32_0 : i32, i32
  }
  func.func @transform_7(%arg0: i32) -> (i32, i32) {
    %c0_i32 = arith.constant 0 : i32
    %c0_i32_0 = arith.constant 0 : i32
    %c0_i32_1 = arith.constant 0 : i32
    return %c0_i32, %c0_i32_0 : i32, i32
  }
  func.func @transform_8(%arg0: i32) -> (i32, i32) {
    %c0_i32 = arith.constant 0 : i32
    %c0_i32_0 = arith.constant 0 : i32
    %c0_i32_1 = arith.constant 0 : i32
    return %c0_i32, %c0_i32_0 : i32, i32
  }
  func.func @transform_9(%arg0: i32) -> (i32, i32, i32) {
    %c0_i32 = arith.constant 0 : i32
    %c0_i32_0 = arith.constant 0 : i32
    %c0_i32_1 = arith.constant 0 : i32
    return %arg0, %c0_i32, %c0_i32_0 : i32, i32, i32
  }
}

module attributes {stable_mosaic.version = 11 : i64} {
  func.func @_heads_kernel(%arg0: i32, %arg1: memref<32x128xbf16, #tpu.memory_space<vmem>>, %arg2: memref<128x128xbf16, #tpu.memory_space<vmem>>, %arg3: memref<128x128xbf16, #tpu.memory_space<vmem>>, %arg4: memref<128x128xbf16, #tpu.memory_space<vmem>>, %arg5: memref<128x128xbf16, #tpu.memory_space<vmem>>, %arg6: memref<128x128xbf16, #tpu.memory_space<vmem>>, %arg7: memref<4x128xf32, #tpu.memory_space<vmem>>, %arg8: memref<32x128xf32, #tpu.memory_space<vmem>>, %arg9: memref<32x128xf32, #tpu.memory_space<vmem>>) attributes {dimension_semantics = [#tpu.dimension_semantics<parallel>], iteration_bounds = array<i64: 1>, scalar_prefetch = 0 : i64, scratch_operands = 0 : i64, tpu.core_type = #tpu.core_type<tc>, window_params = [{transform_indices = @transform_0, window_bounds = array<i64: 32, 128>}, {pipeline_mode = #tpu.pipeline_mode<synchronous>, transform_indices = @transform_1, window_bounds = array<i64: 128, 128>}, {pipeline_mode = #tpu.pipeline_mode<synchronous>, transform_indices = @transform_2, window_bounds = array<i64: 128, 128>}, {pipeline_mode = #tpu.pipeline_mode<synchronous>, transform_indices = @transform_3, window_bounds = array<i64: 128, 128>}, {pipeline_mode = #tpu.pipeline_mode<synchronous>, transform_indices = @transform_4, window_bounds = array<i64: 128, 128>}, {pipeline_mode = #tpu.pipeline_mode<synchronous>, transform_indices = @transform_5, window_bounds = array<i64: 128, 128>}, {pipeline_mode = #tpu.pipeline_mode<synchronous>, transform_indices = @transform_6, window_bounds = array<i64: 4, 128>}, {transform_indices = @transform_7, window_bounds = array<i64: 32, 128>}, {transform_indices = @transform_8, window_bounds = array<i64: 32, 128>}]} {
    %c0 = arith.constant 0 : index
    %c0_0 = arith.constant 0 : index
    %0 = vector.load %arg7[%c0, %c0_0] : memref<4x128xf32, #tpu.memory_space<vmem>>, vector<4x128xf32>
    %c0_1 = arith.constant 0 : index
    %c0_2 = arith.constant 0 : index
    %1 = vector.load %arg1[%c0_1, %c0_2] : memref<32x128xbf16, #tpu.memory_space<vmem>>, vector<32x128xbf16>
    %c0_3 = arith.constant 0 : index
    %c0_4 = arith.constant 0 : index
    %2 = vector.load %arg2[%c0_3, %c0_4] : memref<128x128xbf16, #tpu.memory_space<vmem>>, vector<128x128xbf16>
    %cst = arith.constant dense<0.000000e+00> : vector<32x128xf32>
    %3 = tpu.matmul %1, %2, %cst {dimension_numbers = #tpu.dot_dimension_numbers<[1], [0], [0], [1], [0, 0, 1, 1], [], []>} : vector<32x128xbf16>, vector<128x128xbf16>, vector<32x128xf32> -> vector<32x128xf32>
    %4 = vector.extract_strided_slice %0 {offsets = [0, 0], sizes = [1, 128], strides = [1, 1]} : vector<4x128xf32> to vector<1x128xf32>
    %5 = vector.broadcast %4 : vector<1x128xf32> to vector<32x128xf32>
    %6 = arith.addf %3, %5 : vector<32x128xf32>
    %cst_5 = arith.constant 0.000000e+00 : f32
    %7 = vector.broadcast %cst_5 : f32 to vector<32x128xf32>
    %8 = arith.maximumf %6, %7 : vector<32x128xf32>
    %9 = arith.truncf %8 : vector<32x128xf32> to vector<32x128xbf16>
    %c0_6 = arith.constant 0 : index
    %c0_7 = arith.constant 0 : index
    %10 = vector.load %arg3[%c0_6, %c0_7] : memref<128x128xbf16, #tpu.memory_space<vmem>>, vector<128x128xbf16>
    %cst_8 = arith.constant dense<0.000000e+00> : vector<32x128xf32>
    %11 = tpu.matmul %9, %10, %cst_8 {dimension_numbers = #tpu.dot_dimension_numbers<[1], [0], [0], [1], [0, 0, 1, 1], [], []>} : vector<32x128xbf16>, vector<128x128xbf16>, vector<32x128xf32> -> vector<32x128xf32>
    %12 = vector.extract_strided_slice %0 {offsets = [1, 0], sizes = [1, 128], strides = [1, 1]} : vector<4x128xf32> to vector<1x128xf32>
    %13 = vector.broadcast %12 : vector<1x128xf32> to vector<32x128xf32>
    %14 = arith.addf %11, %13 : vector<32x128xf32>
    %cst_9 = arith.constant 0.000000e+00 : f32
    %15 = vector.broadcast %cst_9 : f32 to vector<32x128xf32>
    %16 = arith.maximumf %14, %15 : vector<32x128xf32>
    %17 = arith.truncf %16 : vector<32x128xf32> to vector<32x128xbf16>
    %c0_10 = arith.constant 0 : index
    %c0_11 = arith.constant 0 : index
    %18 = vector.load %arg4[%c0_10, %c0_11] : memref<128x128xbf16, #tpu.memory_space<vmem>>, vector<128x128xbf16>
    %cst_12 = arith.constant dense<0.000000e+00> : vector<32x128xf32>
    %19 = tpu.matmul %17, %18, %cst_12 {dimension_numbers = #tpu.dot_dimension_numbers<[1], [0], [0], [1], [0, 0, 1, 1], [], []>} : vector<32x128xbf16>, vector<128x128xbf16>, vector<32x128xf32> -> vector<32x128xf32>
    %20 = vector.extract_strided_slice %0 {offsets = [2, 0], sizes = [1, 128], strides = [1, 1]} : vector<4x128xf32> to vector<1x128xf32>
    %21 = vector.broadcast %20 : vector<1x128xf32> to vector<32x128xf32>
    %22 = arith.addf %19, %21 : vector<32x128xf32>
    %23 = arith.negf %22 : vector<32x128xf32>
    %24 = math.exp %23 : vector<32x128xf32>
    %cst_13 = arith.constant 1.000000e+00 : f32
    %25 = vector.broadcast %cst_13 : f32 to vector<32x128xf32>
    %26 = arith.addf %25, %24 : vector<32x128xf32>
    %27 = arith.divf %25, %26 : vector<32x128xf32>
    %c0_14 = arith.constant 0 : index
    %c0_15 = arith.constant 0 : index
    %28 = vector.load %arg8[%c0_14, %c0_15] : memref<32x128xf32, #tpu.memory_space<vmem>>, vector<32x128xf32>
    tpu.vector_store %arg8[%c0_14, %c0_15], %27 {strides = array<i32>} : memref<32x128xf32, #tpu.memory_space<vmem>>, vector<32x128xf32>,
    %c0_16 = arith.constant 0 : index
    %c0_17 = arith.constant 0 : index
    %29 = vector.load %arg5[%c0_16, %c0_17] : memref<128x128xbf16, #tpu.memory_space<vmem>>, vector<128x128xbf16>
    %cst_18 = arith.constant dense<0.000000e+00> : vector<32x128xf32>
    %30 = tpu.matmul %1, %29, %cst_18 {dimension_numbers = #tpu.dot_dimension_numbers<[1], [0], [0], [1], [0, 0, 1, 1], [], []>} : vector<32x128xbf16>, vector<128x128xbf16>, vector<32x128xf32> -> vector<32x128xf32>
    %31 = vector.extract_strided_slice %0 {offsets = [3, 0], sizes = [1, 128], strides = [1, 1]} : vector<4x128xf32> to vector<1x128xf32>
    %32 = vector.broadcast %31 : vector<1x128xf32> to vector<32x128xf32>
    %33 = arith.addf %30, %32 : vector<32x128xf32>
    %34 = arith.truncf %33 : vector<32x128xf32> to vector<32x128xbf16>
    %c0_19 = arith.constant 0 : index
    %c0_20 = arith.constant 0 : index
    %35 = vector.load %arg6[%c0_19, %c0_20] : memref<128x128xbf16, #tpu.memory_space<vmem>>, vector<128x128xbf16>
    %cst_21 = arith.constant dense<0.000000e+00> : vector<32x128xf32>
    %36 = tpu.matmul %34, %35, %cst_21 {dimension_numbers = #tpu.dot_dimension_numbers<[1], [0], [0], [1], [0, 0, 1, 1], [], []>} : vector<32x128xbf16>, vector<128x128xbf16>, vector<32x128xf32> -> vector<32x128xf32>
    %c0_22 = arith.constant 0 : index
    %c0_23 = arith.constant 0 : index
    %37 = vector.load %arg9[%c0_22, %c0_23] : memref<32x128xf32, #tpu.memory_space<vmem>>, vector<32x128xf32>
    tpu.vector_store %arg9[%c0_22, %c0_23], %36 {strides = array<i32>} : memref<32x128xf32, #tpu.memory_space<vmem>>, vector<32x128xf32>,
    return
  }
  func.func @transform_0(%arg0: i32) -> (i32, i32) {
    %c0_i32 = arith.constant 0 : i32
    %c0_i32_0 = arith.constant 0 : i32
    return %arg0, %c0_i32 : i32, i32
  }
  func.func @transform_1(%arg0: i32) -> (i32, i32) {
    %c0_i32 = arith.constant 0 : i32
    %c0_i32_0 = arith.constant 0 : i32
    %c0_i32_1 = arith.constant 0 : i32
    return %c0_i32, %c0_i32_0 : i32, i32
  }
  func.func @transform_2(%arg0: i32) -> (i32, i32) {
    %c0_i32 = arith.constant 0 : i32
    %c0_i32_0 = arith.constant 0 : i32
    %c0_i32_1 = arith.constant 0 : i32
    return %c0_i32, %c0_i32_0 : i32, i32
  }
  func.func @transform_3(%arg0: i32) -> (i32, i32) {
    %c0_i32 = arith.constant 0 : i32
    %c0_i32_0 = arith.constant 0 : i32
    %c0_i32_1 = arith.constant 0 : i32
    return %c0_i32, %c0_i32_0 : i32, i32
  }
  func.func @transform_4(%arg0: i32) -> (i32, i32) {
    %c0_i32 = arith.constant 0 : i32
    %c0_i32_0 = arith.constant 0 : i32
    %c0_i32_1 = arith.constant 0 : i32
    return %c0_i32, %c0_i32_0 : i32, i32
  }
  func.func @transform_5(%arg0: i32) -> (i32, i32) {
    %c0_i32 = arith.constant 0 : i32
    %c0_i32_0 = arith.constant 0 : i32
    %c0_i32_1 = arith.constant 0 : i32
    return %c0_i32, %c0_i32_0 : i32, i32
  }
  func.func @transform_6(%arg0: i32) -> (i32, i32) {
    %c0_i32 = arith.constant 0 : i32
    %c0_i32_0 = arith.constant 0 : i32
    %c0_i32_1 = arith.constant 0 : i32
    return %c0_i32, %c0_i32_0 : i32, i32
  }
  func.func @transform_7(%arg0: i32) -> (i32, i32) {
    %c0_i32 = arith.constant 0 : i32
    %c0_i32_0 = arith.constant 0 : i32
    return %arg0, %c0_i32 : i32, i32
  }
  func.func @transform_8(%arg0: i32) -> (i32, i32) {
    %c0_i32 = arith.constant 0 : i32
    %c0_i32_0 = arith.constant 0 : i32
    return %arg0, %c0_i32 : i32, i32
  }
}

</mosaic_0001>

<bundles_post_ra>
// kernel: omdet_v2_turbo_forward.11
= control target key start
LH: loop header
LB: loop body
LE: loop exit
PB: predicated region body
PF: predicated region fallthrough
CT: control target
= control target key end

     0   :  { %s1639_s12 = smov 0   ;;  %s1934_s0 = inlined_call_operand.vmem [shape: bf16[2048,27], index: 0, kind: input, shape index: {}]   ;;  %s1935_s1 = inlined_call_operand.vmem [shape: bf16[27,16], index: 1, kind: input, shape index: {}]   ;;  %s1936_s2 = inlined_call_operand.vmem [shape: f32[1,16], index: 2, kind: input, shape index: {}]   ;;  %s1937_s3 = inlined_call_operand.vmem [shape: bf16[2048,16], index: 3, kind: output, shape index: {}]  }
   0x1 LB: > { %s1255_s13 = sadd.s32 4294967295, %s1616_s12   ;;  %p1259_p0 = scmp.ge.s32.totalorder %s1616_s12, 1  ;;  %s1616_s12 = sphi %s1639_s12, %s13_s12  }
   0x2   : > { %p138_p1 = scmp.lt.s32.totalorder %s1616_s12, 5 }
   0x4   : > { %p139_p2 = pnand %p1259_p0, %p138_p1 }
   0x5   : > { %s1260_s16 = sshll.u32 (!%p139_p2), %s1255_s13, 6 }
   0x6   : > { %142 = sbr.rel (%p139_p2) target bundleno = 286 (0x11e), region = 32  ;;  %p163_p3 = scmp.lt.s32.totalorder (!%p139_p2), %s1260_s16, 255 }
   0xb   : > { %v1576_v0 = vld [vmem:[%s1935_s1 + $0x8] sm:$0x3f]   ;;  %vm518_vm0 = vcmask 1044480   ;;  %vm519_vm1 = vcmask 1045504   ;;  %v1618_v1 = vmov 65535   ;;  %v1577_v5 = vld [vmem:[%s1935_s1] sm:$0xff]  }
   0xc   : > { %v520_v2 = vsel %vm518_vm0, 4294967295, %v1618_v1  ;;  %s1939_s16 = smov (!%p163_p3, %s1260_s16), 255  ;;  %vm421_vm2 = vcmask 220160   ;;  %v1730_v38 = vld [vmem:[%s1936_s2] ss:$0 sm:$0xff]  ;;  %vm1134_vm3 = vcmask 125952  }
   0xd   : > { %v521_v3 = vsel %vm519_vm1, %v520_v2, 0  ;;  %s1261_s19 = sshll.u32 %s1939_s16, 2 }
   0xe   : > { %v523_v4 = vand.u32 %v1576_v0, %v521_v3  ;;  %s1661_s22 = scalar_lea.vmem %s1934_s0, %s1261_s19  ;;  %s1741_s27 = scalar_lea.vmem %s1937_s3, %s1261_s19 }
   0xf   : > { %v1578_v6 = vld [vmem:[%s1661_s22] sm:$0xff]   ;;  %v1580_v8 = vld [vmem:[%s1661_s22 + $0x8] sm:$0xff]   ;;  %v1582_v10 = vld [vmem:[%s1661_s22 + $0x10] sm:$0xff]  }
  0x10   : > { %1495 = vmatprep.subr.bf16.mxu0 %v523_v4  ;;  %1563 = vmatprep.subr.bf16.mxu1 %v523_v4  ;;  %v1579_v7 = vld [vmem:[%s1661_s22 + $0x80] sm:$0xff]   ;;  %v1581_v9 = vld [vmem:[%s1661_s22 + $0x88] sm:$0xff]   ;;  %v1583_v11 = vld [vmem:[%s1661_s22 + $0x90] sm:$0xff]  }
  0x11   : > { %1496 = vmatpush3.bf16.msra.mxu0 %v523_v4  ;;  %1565 = vmatpush3.bf16.msra.mxu1 %v523_v4  ;;  %v1584_v12 = vld [vmem:[%s1661_s22 + $0x18] sm:$0xff]   ;;  %v1586_v14 = vld [vmem:[%s1661_s22 + $0x20] sm:$0xff]   ;;  %v1588_v16 = vld [vmem:[%s1661_s22 + $0x28] sm:$0xff]  }
  0x12   : > { %1497 = vmatprep.subr.bf16.mxu0 %v1577_v5  ;;  %1564 = vmatprep.subr.bf16.mxu1 %v1577_v5  ;;  %v1585_v13 = vld [vmem:[%s1661_s22 + $0x98] sm:$0xff]   ;;  %v1587_v15 = vld [vmem:[%s1661_s22 + $0xa0] sm:$0xff]   ;;  %v1589_v17 = vld [vmem:[%s1661_s22 + $0xa8] sm:$0xff]  }
  0x13   : > { %1499 = vmatprep.mubr.msk.bf16.mxu0 %vm421_vm2, %v1578_v6  ;;  %1531 = vmatprep.mubr.msk.bf16.mxu1 %vm421_vm2, %v1579_v7  ;;  %v1590_v18 = vld [vmem:[%s1661_s22 + $0x30] sm:$0xff]   ;;  %v1592_v20 = vld [vmem:[%s1661_s22 + $0x38] sm:$0xff]   ;;  %v1594_v22 = vld [vmem:[%s1661_s22 + $0x40] sm:$0xff]  }
  0x14   : > { %v1591_v19 = vld [vmem:[%s1661_s22 + $0xb0] sm:$0xff]   ;;  %v1593_v21 = vld [vmem:[%s1661_s22 + $0xb8] sm:$0xff]   ;;  %v1595_v23 = vld [vmem:[%s1661_s22 + $0xc0] sm:$0xff]  }
  0x15   : > { %1498 = vmatpush3.bf16.msra.mxu0 %v1577_v5  ;;  %1566 = vmatpush3.bf16.msra.mxu1 %v1577_v5  ;;  %v1596_v24 = vld [vmem:[%s1661_s22 + $0x48] sm:$0xff]   ;;  %v1598_v26 = vld [vmem:[%s1661_s22 + $0x50] sm:$0xff]   ;;  %v1600_v28 = vld [vmem:[%s1661_s22 + $0x58] sm:$0xff]  }
  0x16   : > { %v1597_v25 = vld [vmem:[%s1661_s22 + $0xc8] sm:$0xff]   ;;  %v1599_v27 = vld [vmem:[%s1661_s22 + $0xd0] sm:$0xff]   ;;  %v1601_v29 = vld [vmem:[%s1661_s22 + $0xd8] sm:$0xff]  }
  0x17   : > { %v1602_v30 = vld [vmem:[%s1661_s22 + $0x60] sm:$0xff]   ;;  %v1604_v32 = vld [vmem:[%s1661_s22 + $0x68] sm:$0xff]   ;;  %v1606_v34 = vld [vmem:[%s1661_s22 + $0x70] sm:$0xff]  }
  0x18   : > { %1500 = vmatmul.mubr.msk.bf16.vlgmr.msra.gmra.mxu0 %vm421_vm2, %v1580_v8  ;;  %1532 = vmatmul.mubr.msk.bf16.vlgmr.msra.gmra.mxu1 %vm421_vm2, %v1581_v9  ;;  %v1603_v31 = vld [vmem:[%s1661_s22 + $0xe0] sm:$0xff]   ;;  %v1605_v33 = vld [vmem:[%s1661_s22 + $0xe8] sm:$0xff]   ;;  %v1607_v35 = vld [vmem:[%s1661_s22 + $0xf0] sm:$0xff]  }
  0x19   : > { %1503 = vmatprep.mubr.msk.bf16.mxu0 %vm421_vm2, %v1582_v10  ;;  %1535 = vmatprep.mubr.msk.bf16.mxu1 %vm421_vm2, %v1583_v11  ;;  %v1608_v36 = vld [vmem:[%s1661_s22 + $0x78] sm:$0xff]  }
  0x1a   : > { %v1609_v37 = vld [vmem:[%s1661_s22 + $0xf8] sm:$0xff]  }
  0x20   : > { %1504 = vmatmul.mubr.msk.bf16.gmra.mxu0 %vm421_vm2, %v1584_v12  ;;  %1536 = vmatmul.mubr.msk.bf16.gmra.mxu1 %vm421_vm2, %v1585_v13 }
  0x21   : > { %1507 = vmatprep.mubr.msk.bf16.mxu0 %vm421_vm2, %v1586_v14  ;;  %1539 = vmatprep.mubr.msk.bf16.mxu1 %vm421_vm2, %v1587_v15 }
  0x28   : > { %1508 = vmatmul.mubr.msk.bf16.gmra.mxu0 %vm421_vm2, %v1588_v16  ;;  %1540 = vmatmul.mubr.msk.bf16.gmra.mxu1 %vm421_vm2, %v1589_v17 }
  0x29   : > { %1511 = vmatprep.mubr.msk.bf16.mxu0 %vm421_vm2, %v1590_v18  ;;  %1543 = vmatprep.mubr.msk.bf16.mxu1 %vm421_vm2, %v1591_v19 }
  0x30   : > { %1512 = vmatmul.mubr.msk.bf16.gmra.mxu0 %vm421_vm2, %v1592_v20  ;;  %1544 = vmatmul.mubr.msk.bf16.gmra.mxu1 %vm421_vm2, %v1593_v21 }
  0x31   : > { %1515 = vmatprep.mubr.msk.bf16.mxu0 %vm421_vm2, %v1594_v22  ;;  %1547 = vmatprep.mubr.msk.bf16.mxu1 %vm421_vm2, %v1595_v23 }
  0x38   : > { %1516 = vmatmul.mubr.msk.bf16.gmra.mxu0 %vm421_vm2, %v1596_v24  ;;  %1548 = vmatmul.mubr.msk.bf16.gmra.mxu1 %vm421_vm2, %v1597_v25 }
  0x39   : > { %1519 = vmatprep.mubr.msk.bf16.mxu0 %vm421_vm2, %v1598_v26  ;;  %1551 = vmatprep.mubr.msk.bf16.mxu1 %vm421_vm2, %v1599_v27 }
  0x40   : > { %1520 = vmatmul.mubr.msk.bf16.gmra.mxu0 %vm421_vm2, %v1600_v28  ;;  %1552 = vmatmul.mubr.msk.bf16.gmra.mxu1 %vm421_vm2, %v1601_v29 }
  0x41   : > { %1523 = vmatprep.mubr.msk.bf16.mxu0 %vm421_vm2, %v1602_v30  ;;  %1555 = vmatprep.mubr.msk.bf16.mxu1 %vm421_vm2, %v1603_v31 }
  0x48   : > { %1524 = vmatmul.mubr.msk.bf16.gmra.mxu0 %vm421_vm2, %v1604_v32  ;;  %1556 = vmatmul.mubr.msk.bf16.gmra.mxu1 %vm421_vm2, %v1605_v33 }
  0x49   : > { %1527 = vmatprep.mubr.msk.bf16.mxu0 %vm421_vm2, %v1606_v34  ;;  %1559 = vmatprep.mubr.msk.bf16.mxu1 %vm421_vm2, %v1607_v35 }
  0x50   : > { %1528 = vmatmul.mubr.msk.bf16.gmra.mxu0 %vm421_vm2, %v1608_v36  ;;  %1560 = vmatmul.mubr.msk.bf16.gmra.mxu1 %vm421_vm2, %v1609_v37 }
  0xd8   : > { %v1501_v39 = vpop.f32.mrf.mxu0  ;;  %v1533_v40 = vpop.f32.mrf.mxu1 }
  0xd9   : > { %v568_v41 = vadd.f32 %v1501_v39, %v1730_v38  ;;  %v696_v42 = vadd.f32 %v1533_v40, %v1730_v38 }
  0xda   : > { %v559_v43 = vpop.f32.mrf.mxu0  ;;  %v687_v44 = vpop.f32.mrf.mxu1 }
  0xdb   : > { %v816_v45 = vmax.f32 %v568_v41, 0.0  ;;  %v848_v46 = vmax.f32 %v696_v42, 0.0  ;;  %v560_v47 = vadd.f32 %v1730_v38, %v559_v43  ;;  %v688_v48 = vadd.f32 %v1730_v38, %v687_v44 }
  0xdc   : > { %v1502_v49 = vpop.f32.mrf.mxu0  ;;  %v1534_v50 = vpop.f32.mrf.mxu1 }
  0xdd   : > { %v1399_v51 = vpack.c.bf16 %v816_v45, %v816_v45  ;;  %v1431_v52 = vpack.c.bf16 %v848_v46, %v848_v46  ;;  %v814_v53 = vmax.f32 %v560_v47, 0.0  ;;  %v846_v54 = vmax.f32 %v688_v48, 0.0 }
  0xde   : > { %v571_v55 = vadd.f32 %v1502_v49, %v1730_v38  ;;  %v699_v56 = vadd.f32 %v1534_v50, %v1730_v38  ;;  %v562_v57 = vpop.f32.mrf.mxu0  ;;  %v690_v58 = vpop.f32.mrf.mxu1 }
  0xdf   : > { %1137 = vst.msk [vmem:[%s1741_s27 + $0x8] sm:$0xf] %vm1134_vm3, %v1399_v51  ;;  %1169 = vst.msk [vmem:[%s1741_s27 + $0x88] sm:$0xf] %vm1134_vm3, %v1431_v52  ;;  %v1397_v59 = vpack.c.bf16 %v814_v53, %v814_v53  ;;  %v1429_v60 = vpack.c.bf16 %v846_v54, %v846_v54  ;;  %v563_v61 = vadd.f32 %v1730_v38, %v562_v57 }
  0xe0   : > { %v691_v62 = vadd.f32 %v1730_v38, %v690_v58  ;;  %v817_v63 = vmax.f32 %v571_v55, 0.0  ;;  %v849_v0 = vmax.f32 %v699_v56, 0.0  ;;  %v1505_v1 = vpop.f32.mrf.mxu0  ;;  %v1537_v2 = vpop.f32.mrf.mxu1 }
  0xe1   : > { %1135 = vst.msk [vmem:[%s1741_s27] sm:$0xf] %vm1134_vm3, %v1397_v59  ;;  %1167 = vst.msk [vmem:[%s1741_s27 + $0x80] sm:$0xf] %vm1134_vm3, %v1429_v60  ;;  %v815_v3 = vmax.f32 %v563_v61, 0.0  ;;  %v584_v5 = vadd.f32 %v1505_v1, %v1730_v38  ;;  %v712_v6 = vadd.f32 %v1537_v2, %v1730_v38 }
  0xe2   : > { %v847_v4 = vmax.f32 %v691_v62, 0.0  ;;  %v1400_v7 = vpack.c.bf16 %v817_v63, %v817_v63  ;;  %v1432_v8 = vpack.c.bf16 %v849_v0, %v849_v0  ;;  %v575_v9 = vpop.f32.mrf.mxu0  ;;  %v703_v10 = vpop.f32.mrf.mxu1 }
  0xe3   : > { %v1398_v11 = vpack.c.bf16 %v815_v3, %v815_v3  ;;  %v820_v13 = vmax.f32 %v584_v5, 0.0  ;;  %v852_v14 = vmax.f32 %v712_v6, 0.0  ;;  %v576_v15 = vadd.f32 %v1730_v38, %v575_v9 }
  0xe4   : > { %v1430_v12 = vpack.c.bf16 %v847_v4, %v847_v4  ;;  %1138 = vst.msk [vmem:[%s1741_s27 + $0xc] sm:$0xf] %vm1134_vm3, %v1400_v7  ;;  %1170 = vst.msk [vmem:[%s1741_s27 + $0x8c] sm:$0xf] %vm1134_vm3, %v1432_v8  ;;  %v704_v16 = vadd.f32 %v1730_v38, %v703_v10  ;;  %v1506_v17 = vpop.f32.mrf.mxu0  ;;  %v1538_v18 = vpop.f32.mrf.mxu1 }
  0xe5   : > { %1136 = vst.msk [vmem:[%s1741_s27 + $0x4] sm:$0xf] %vm1134_vm3, %v1398_v11  ;;  %v1403_v19 = vpack.c.bf16 %v820_v13, %v820_v13  ;;  %v1435_v20 = vpack.c.bf16 %v852_v14, %v852_v14  ;;  %v587_v21 = vadd.f32 %v1506_v17, %v1730_v38  ;;  %v715_v22 = vadd.f32 %v1538_v18, %v1730_v38 }
  0xe6   : > { %1168 = vst.msk [vmem:[%s1741_s27 + $0x84] sm:$0xf] %vm1134_vm3, %v1430_v12  ;;  %v818_v23 = vmax.f32 %v576_v15, 0.0  ;;  %v850_v24 = vmax.f32 %v704_v16, 0.0  ;;  %v578_v25 = vpop.f32.mrf.mxu0  ;;  %v706_v26 = vpop.f32.mrf.mxu1 }
  0xe7   : > { %1141 = vst.msk [vmem:[%s1741_s27 + $0x18] sm:$0xf] %vm1134_vm3, %v1403_v19  ;;  %1173 = vst.msk [vmem:[%s1741_s27 + $0x98] sm:$0xf] %vm1134_vm3, %v1435_v20  ;;  %v821_v27 = vmax.f32 %v587_v21, 0.0  ;;  %v853_v28 = vmax.f32 %v715_v22, 0.0  ;;  %v579_v29 = vadd.f32 %v1730_v38, %v578_v25  ;;  %v707_v30 = vadd.f32 %v1730_v38, %v706_v26 }
  0xe8   : > { %v1401_v31 = vpack.c.bf16 %v818_v23, %v818_v23  ;;  %v1433_v32 = vpack.c.bf16 %v850_v24, %v850_v24  ;;  %v1509_v33 = vpop.f32.mrf.mxu0  ;;  %v1541_v34 = vpop.f32.mrf.mxu1 }
  0xe9   : > { %v1404_v35 = vpack.c.bf16 %v821_v27, %v821_v27  ;;  %v1436_v36 = vpack.c.bf16 %v853_v28, %v853_v28  ;;  %v819_v37 = vmax.f32 %v579_v29, 0.0  ;;  %v851_v39 = vmax.f32 %v707_v30, 0.0 }
  0xea   : > { %1139 = vst.msk [vmem:[%s1741_s27 + $0x10] sm:$0xf] %vm1134_vm3, %v1401_v31  ;;  %1171 = vst.msk [vmem:[%s1741_s27 + $0x90] sm:$0xf] %vm1134_vm3, %v1433_v32  ;;  %v600_v40 = vadd.f32 %v1509_v33, %v1730_v38  ;;  %v728_v41 = vadd.f32 %v1541_v34, %v1730_v38  ;;  %v591_v42 = vpop.f32.mrf.mxu0  ;;  %v719_v43 = vpop.f32.mrf.mxu1 }
  0xeb   : > { %1142 = vst.msk [vmem:[%s1741_s27 + $0x1c] sm:$0xf] %vm1134_vm3, %v1404_v35  ;;  %1174 = vst.msk [vmem:[%s1741_s27 + $0x9c] sm:$0xf] %vm1134_vm3, %v1436_v36  ;;  %v1402_v44 = vpack.c.bf16 %v819_v37, %v819_v37  ;;  %v1434_v45 = vpack.c.bf16 %v851_v39, %v851_v39  ;;  %v592_v46 = vadd.f32 %v1730_v38, %v591_v42 }
  0xec   : > { %v720_v47 = vadd.f32 %v1730_v38, %v719_v43  ;;  %v824_v48 = vmax.f32 %v600_v40, 0.0  ;;  %v856_v49 = vmax.f32 %v728_v41, 0.0  ;;  %v1510_v50 = vpop.f32.mrf.mxu0  ;;  %v1542_v51 = vpop.f32.mrf.mxu1 }
  0xed   : > { %1140 = vst.msk [vmem:[%s1741_s27 + $0x14] sm:$0xf] %vm1134_vm3, %v1402_v44  ;;  %1172 = vst.msk [vmem:[%s1741_s27 + $0x94] sm:$0xf] %vm1134_vm3, %v1434_v45  ;;  %v822_v52 = vmax.f32 %v592_v46, 0.0  ;;  %v603_v54 = vadd.f32 %v1510_v50, %v1730_v38  ;;  %v731_v55 = vadd.f32 %v1542_v51, %v1730_v38 }
  0xee   : > { %v854_v53 = vmax.f32 %v720_v47, 0.0  ;;  %v1407_v56 = vpack.c.bf16 %v824_v48, %v824_v48  ;;  %v1439_v57 = vpack.c.bf16 %v856_v49, %v856_v49  ;;  %v594_v58 = vpop.f32.mrf.mxu0  ;;  %v722_v59 = vpop.f32.mrf.mxu1 }
  0xef   : > { %v1405_v60 = vpack.c.bf16 %v822_v52, %v822_v52  ;;  %v825_v62 = vmax.f32 %v603_v54, 0.0  ;;  %v857_v63 = vmax.f32 %v731_v55, 0.0  ;;  %v595_v0 = vadd.f32 %v1730_v38, %v594_v58 }
  0xf0   : > { %v1437_v61 = vpack.c.bf16 %v854_v53, %v854_v53  ;;  %1145 = vst.msk [vmem:[%s1741_s27 + $0x28] sm:$0xf] %vm1134_vm3, %v1407_v56  ;;  %1177 = vst.msk [vmem:[%s1741_s27 + $0xa8] sm:$0xf] %vm1134_vm3, %v1439_v57  ;;  %v723_v1 = vadd.f32 %v1730_v38, %v722_v59  ;;  %v1513_v2 = vpop.f32.mrf.mxu0  ;;  %v1545_v3 = vpop.f32.mrf.mxu1 }
  0xf1   : > { %1143 = vst.msk [vmem:[%s1741_s27 + $0x20] sm:$0xf] %vm1134_vm3, %v1405_v60  ;;  %v1408_v4 = vpack.c.bf16 %v825_v62, %v825_v62  ;;  %v1440_v5 = vpack.c.bf16 %v857_v63, %v857_v63  ;;  %v616_v6 = vadd.f32 %v1513_v2, %v1730_v38  ;;  %v744_v7 = vadd.f32 %v1545_v3, %v1730_v38 }
  0xf2   : > { %1175 = vst.msk [vmem:[%s1741_s27 + $0xa0] sm:$0xf] %vm1134_vm3, %v1437_v61  ;;  %v823_v8 = vmax.f32 %v595_v0, 0.0  ;;  %v855_v9 = vmax.f32 %v723_v1, 0.0  ;;  %v607_v10 = vpop.f32.mrf.mxu0  ;;  %v735_v11 = vpop.f32.mrf.mxu1 }
  0xf3   : > { %1146 = vst.msk [vmem:[%s1741_s27 + $0x2c] sm:$0xf] %vm1134_vm3, %v1408_v4  ;;  %1178 = vst.msk [vmem:[%s1741_s27 + $0xac] sm:$0xf] %vm1134_vm3, %v1440_v5  ;;  %v828_v12 = vmax.f32 %v616_v6, 0.0  ;;  %v860_v13 = vmax.f32 %v744_v7, 0.0  ;;  %v608_v14 = vadd.f32 %v1730_v38, %v607_v10  ;;  %v736_v15 = vadd.f32 %v1730_v38, %v735_v11 }
  0xf4   : > { %v1406_v16 = vpack.c.bf16 %v823_v8, %v823_v8  ;;  %v1438_v17 = vpack.c.bf16 %v855_v9, %v855_v9  ;;  %v1514_v18 = vpop.f32.mrf.mxu0  ;;  %v1546_v19 = vpop.f32.mrf.mxu1 }
  0xf5   : > { %v1411_v20 = vpack.c.bf16 %v828_v12, %v828_v12  ;;  %v1443_v21 = vpack.c.bf16 %v860_v13, %v860_v13  ;;  %v826_v22 = vmax.f32 %v608_v14, 0.0  ;;  %v858_v23 = vmax.f32 %v736_v15, 0.0 }
  0xf6   : > { %1144 = vst.msk [vmem:[%s1741_s27 + $0x24] sm:$0xf] %vm1134_vm3, %v1406_v16  ;;  %1176 = vst.msk [vmem:[%s1741_s27 + $0xa4] sm:$0xf] %vm1134_vm3, %v1438_v17  ;;  %v619_v24 = vadd.f32 %v1514_v18, %v1730_v38  ;;  %v747_v25 = vadd.f32 %v1546_v19, %v1730_v38  ;;  %v610_v26 = vpop.f32.mrf.mxu0  ;;  %v738_v27 = vpop.f32.mrf.mxu1 }
  0xf7   : > { %1149 = vst.msk [vmem:[%s1741_s27 + $0x38] sm:$0xf] %vm1134_vm3, %v1411_v20  ;;  %1181 = vst.msk [vmem:[%s1741_s27 + $0xb8] sm:$0xf] %vm1134_vm3, %v1443_v21  ;;  %v1409_v28 = vpack.c.bf16 %v826_v22, %v826_v22  ;;  %v1441_v29 = vpack.c.bf16 %v858_v23, %v858_v23  ;;  %v611_v30 = vadd.f32 %v1730_v38, %v610_v26 }
  0xf8   : > { %v739_v31 = vadd.f32 %v1730_v38, %v738_v27  ;;  %v829_v32 = vmax.f32 %v619_v24, 0.0  ;;  %v861_v33 = vmax.f32 %v747_v25, 0.0  ;;  %v1517_v34 = vpop.f32.mrf.mxu0  ;;  %v1549_v35 = vpop.f32.mrf.mxu1 }
  0xf9   : > { %1147 = vst.msk [vmem:[%s1741_s27 + $0x30] sm:$0xf] %vm1134_vm3, %v1409_v28  ;;  %1179 = vst.msk [vmem:[%s1741_s27 + $0xb0] sm:$0xf] %vm1134_vm3, %v1441_v29  ;;  %v827_v36 = vmax.f32 %v611_v30, 0.0  ;;  %v632_v39 = vadd.f32 %v1517_v34, %v1730_v38  ;;  %v760_v40 = vadd.f32 %v1549_v35, %v1730_v38 }
  0xfa   : > { %v859_v37 = vmax.f32 %v739_v31, 0.0  ;;  %v1412_v41 = vpack.c.bf16 %v829_v32, %v829_v32  ;;  %v1444_v42 = vpack.c.bf16 %v861_v33, %v861_v33  ;;  %v623_v43 = vpop.f32.mrf.mxu0  ;;  %v751_v44 = vpop.f32.mrf.mxu1 }
  0xfb   : > { %v1410_v45 = vpack.c.bf16 %v827_v36, %v827_v36  ;;  %v832_v47 = vmax.f32 %v632_v39, 0.0  ;;  %v864_v48 = vmax.f32 %v760_v40, 0.0  ;;  %v624_v49 = vadd.f32 %v1730_v38, %v623_v43 }
  0xfc   : > { %v1442_v46 = vpack.c.bf16 %v859_v37, %v859_v37  ;;  %1150 = vst.msk [vmem:[%s1741_s27 + $0x3c] sm:$0xf] %vm1134_vm3, %v1412_v41  ;;  %1182 = vst.msk [vmem:[%s1741_s27 + $0xbc] sm:$0xf] %vm1134_vm3, %v1444_v42  ;;  %v752_v50 = vadd.f32 %v1730_v38, %v751_v44  ;;  %v1518_v51 = vpop.f32.mrf.mxu0  ;;  %v1550_v52 = vpop.f32.mrf.mxu1 }
  0xfd   : > { %1148 = vst.msk [vmem:[%s1741_s27 + $0x34] sm:$0xf] %vm1134_vm3, %v1410_v45  ;;  %v1415_v53 = vpack.c.bf16 %v832_v47, %v832_v47  ;;  %v1447_v54 = vpack.c.bf16 %v864_v48, %v864_v48  ;;  %v635_v55 = vadd.f32 %v1518_v51, %v1730_v38  ;;  %v763_v56 = vadd.f32 %v1550_v52, %v1730_v38 }
  0xfe   : > { %1180 = vst.msk [vmem:[%s1741_s27 + $0xb4] sm:$0xf] %vm1134_vm3, %v1442_v46  ;;  %v830_v57 = vmax.f32 %v624_v49, 0.0  ;;  %v862_v58 = vmax.f32 %v752_v50, 0.0  ;;  %v626_v59 = vpop.f32.mrf.mxu0  ;;  %v754_v60 = vpop.f32.mrf.mxu1 }
  0xff   : > { %1153 = vst.msk [vmem:[%s1741_s27 + $0x48] sm:$0xf] %vm1134_vm3, %v1415_v53  ;;  %1185 = vst.msk [vmem:[%s1741_s27 + $0xc8] sm:$0xf] %vm1134_vm3, %v1447_v54  ;;  %v833_v61 = vmax.f32 %v635_v55, 0.0  ;;  %v865_v62 = vmax.f32 %v763_v56, 0.0  ;;  %v627_v63 = vadd.f32 %v1730_v38, %v626_v59  ;;  %v755_v0 = vadd.f32 %v1730_v38, %v754_v60 }
 0x100   : > { %v1413_v1 = vpack.c.bf16 %v830_v57, %v830_v57  ;;  %v1445_v2 = vpack.c.bf16 %v862_v58, %v862_v58  ;;  %v1521_v3 = vpop.f32.mrf.mxu0  ;;  %v1553_v4 = vpop.f32.mrf.mxu1 }
 0x101   : > { %v1416_v5 = vpack.c.bf16 %v833_v61, %v833_v61  ;;  %v1448_v6 = vpack.c.bf16 %v865_v62, %v865_v62  ;;  %v831_v7 = vmax.f32 %v627_v63, 0.0  ;;  %v863_v8 = vmax.f32 %v755_v0, 0.0 }
 0x102   : > { %1151 = vst.msk [vmem:[%s1741_s27 + $0x40] sm:$0xf] %vm1134_vm3, %v1413_v1  ;;  %1183 = vst.msk [vmem:[%s1741_s27 + $0xc0] sm:$0xf] %vm1134_vm3, %v1445_v2  ;;  %v648_v9 = vadd.f32 %v1521_v3, %v1730_v38  ;;  %v776_v10 = vadd.f32 %v1553_v4, %v1730_v38  ;;  %v639_v11 = vpop.f32.mrf.mxu0  ;;  %v767_v12 = vpop.f32.mrf.mxu1 }
 0x103   : > { %1154 = vst.msk [vmem:[%s1741_s27 + $0x4c] sm:$0xf] %vm1134_vm3, %v1416_v5  ;;  %1186 = vst.msk [vmem:[%s1741_s27 + $0xcc] sm:$0xf] %vm1134_vm3, %v1448_v6  ;;  %v1414_v13 = vpack.c.bf16 %v831_v7, %v831_v7  ;;  %v1446_v14 = vpack.c.bf16 %v863_v8, %v863_v8  ;;  %v640_v15 = vadd.f32 %v1730_v38, %v639_v11 }
 0x104   : > { %v768_v16 = vadd.f32 %v1730_v38, %v767_v12  ;;  %v836_v17 = vmax.f32 %v648_v9, 0.0  ;;  %v868_v18 = vmax.f32 %v776_v10, 0.0  ;;  %v1522_v19 = vpop.f32.mrf.mxu0  ;;  %v1554_v20 = vpop.f32.mrf.mxu1 }
 0x105   : > { %1152 = vst.msk [vmem:[%s1741_s27 + $0x44] sm:$0xf] %vm1134_vm3, %v1414_v13  ;;  %1184 = vst.msk [vmem:[%s1741_s27 + $0xc4] sm:$0xf] %vm1134_vm3, %v1446_v14  ;;  %v834_v21 = vmax.f32 %v640_v15, 0.0  ;;  %v651_v23 = vadd.f32 %v1522_v19, %v1730_v38  ;;  %v779_v24 = vadd.f32 %v1554_v20, %v1730_v38 }
 0x106   : > { %v866_v22 = vmax.f32 %v768_v16, 0.0  ;;  %v1419_v25 = vpack.c.bf16 %v836_v17, %v836_v17  ;;  %v1451_v26 = vpack.c.bf16 %v868_v18, %v868_v18  ;;  %v642_v27 = vpop.f32.mrf.mxu0  ;;  %v770_v28 = vpop.f32.mrf.mxu1 }
 0x107   : > { %v1417_v29 = vpack.c.bf16 %v834_v21, %v834_v21  ;;  %v837_v31 = vmax.f32 %v651_v23, 0.0  ;;  %v869_v32 = vmax.f32 %v779_v24, 0.0  ;;  %v643_v33 = vadd.f32 %v1730_v38, %v642_v27 }
 0x108   : > { %v1449_v30 = vpack.c.bf16 %v866_v22, %v866_v22  ;;  %1157 = vst.msk [vmem:[%s1741_s27 + $0x58] sm:$0xf] %vm1134_vm3, %v1419_v25  ;;  %1189 = vst.msk [vmem:[%s1741_s27 + $0xd8] sm:$0xf] %vm1134_vm3, %v1451_v26  ;;  %v771_v34 = vadd.f32 %v1730_v38, %v770_v28  ;;  %v1525_v35 = vpop.f32.mrf.mxu0  ;;  %v1557_v36 = vpop.f32.mrf.mxu1 }
 0x109   : > { %1155 = vst.msk [vmem:[%s1741_s27 + $0x50] sm:$0xf] %vm1134_vm3, %v1417_v29  ;;  %v1420_v37 = vpack.c.bf16 %v837_v31, %v837_v31  ;;  %v1452_v39 = vpack.c.bf16 %v869_v32, %v869_v32  ;;  %v664_v40 = vadd.f32 %v1525_v35, %v1730_v38  ;;  %v792_v41 = vadd.f32 %v1557_v36, %v1730_v38 }
 0x10a   : > { %1187 = vst.msk [vmem:[%s1741_s27 + $0xd0] sm:$0xf] %vm1134_vm3, %v1449_v30  ;;  %v835_v42 = vmax.f32 %v643_v33, 0.0  ;;  %v867_v43 = vmax.f32 %v771_v34, 0.0  ;;  %v655_v44 = vpop.f32.mrf.mxu0  ;;  %v783_v45 = vpop.f32.mrf.mxu1 }
 0x10b   : > { %1158 = vst.msk [vmem:[%s1741_s27 + $0x5c] sm:$0xf] %vm1134_vm3, %v1420_v37  ;;  %1190 = vst.msk [vmem:[%s1741_s27 + $0xdc] sm:$0xf] %vm1134_vm3, %v1452_v39  ;;  %v840_v46 = vmax.f32 %v664_v40, 0.0  ;;  %v872_v47 = vmax.f32 %v792_v41, 0.0  ;;  %v656_v48 = vadd.f32 %v1730_v38, %v655_v44  ;;  %v784_v49 = vadd.f32 %v1730_v38, %v783_v45 }
 0x10c   : > { %v1418_v50 = vpack.c.bf16 %v835_v42, %v835_v42  ;;  %v1450_v51 = vpack.c.bf16 %v867_v43, %v867_v43  ;;  %v1526_v52 = vpop.f32.mrf.mxu0  ;;  %v1558_v53 = vpop.f32.mrf.mxu1 }
 0x10d   : > { %v1423_v54 = vpack.c.bf16 %v840_v46, %v840_v46  ;;  %v1455_v55 = vpack.c.bf16 %v872_v47, %v872_v47  ;;  %v838_v56 = vmax.f32 %v656_v48, 0.0  ;;  %v870_v57 = vmax.f32 %v784_v49, 0.0 }
 0x10e   : > { %1156 = vst.msk [vmem:[%s1741_s27 + $0x54] sm:$0xf] %vm1134_vm3, %v1418_v50  ;;  %1188 = vst.msk [vmem:[%s1741_s27 + $0xd4] sm:$0xf] %vm1134_vm3, %v1450_v51  ;;  %v667_v58 = vadd.f32 %v1526_v52, %v1730_v38  ;;  %v795_v59 = vadd.f32 %v1558_v53, %v1730_v38  ;;  %v658_v60 = vpop.f32.mrf.mxu0  ;;  %v786_v61 = vpop.f32.mrf.mxu1 }
 0x10f   : > { %1161 = vst.msk [vmem:[%s1741_s27 + $0x68] sm:$0xf] %vm1134_vm3, %v1423_v54  ;;  %1193 = vst.msk [vmem:[%s1741_s27 + $0xe8] sm:$0xf] %vm1134_vm3, %v1455_v55  ;;  %v1421_v62 = vpack.c.bf16 %v838_v56, %v838_v56  ;;  %v1453_v63 = vpack.c.bf16 %v870_v57, %v870_v57  ;;  %v659_v0 = vadd.f32 %v1730_v38, %v658_v60 }
 0x110   : > { %v787_v1 = vadd.f32 %v1730_v38, %v786_v61  ;;  %v841_v2 = vmax.f32 %v667_v58, 0.0  ;;  %v873_v3 = vmax.f32 %v795_v59, 0.0  ;;  %v1529_v4 = vpop.f32.mrf.mxu0  ;;  %v1561_v5 = vpop.f32.mrf.mxu1 }
 0x111   : > { %1159 = vst.msk [vmem:[%s1741_s27 + $0x60] sm:$0xf] %vm1134_vm3, %v1421_v62  ;;  %1191 = vst.msk [vmem:[%s1741_s27 + $0xe0] sm:$0xf] %vm1134_vm3, %v1453_v63  ;;  %v839_v6 = vmax.f32 %v659_v0, 0.0  ;;  %v680_v8 = vadd.f32 %v1529_v4, %v1730_v38  ;;  %v808_v9 = vadd.f32 %v1561_v5, %v1730_v38 }
 0x112   : > { %v871_v7 = vmax.f32 %v787_v1, 0.0  ;;  %v1424_v10 = vpack.c.bf16 %v841_v2, %v841_v2  ;;  %v1456_v11 = vpack.c.bf16 %v873_v3, %v873_v3  ;;  %v671_v12 = vpop.f32.mrf.mxu0  ;;  %v799_v13 = vpop.f32.mrf.mxu1 }
 0x113   : > { %v1422_v14 = vpack.c.bf16 %v839_v6, %v839_v6  ;;  %v844_v16 = vmax.f32 %v680_v8, 0.0  ;;  %v876_v17 = vmax.f32 %v808_v9, 0.0  ;;  %v672_v18 = vadd.f32 %v1730_v38, %v671_v12 }
 0x114   : > { %v1454_v15 = vpack.c.bf16 %v871_v7, %v871_v7  ;;  %1162 = vst.msk [vmem:[%s1741_s27 + $0x6c] sm:$0xf] %vm1134_vm3, %v1424_v10  ;;  %1194 = vst.msk [vmem:[%s1741_s27 + $0xec] sm:$0xf] %vm1134_vm3, %v1456_v11  ;;  %v800_v19 = vadd.f32 %v1730_v38, %v799_v13  ;;  %v1530_v20 = vpop.f32.mrf.mxu0  ;;  %v1562_v21 = vpop.f32.mrf.mxu1 }
 0x115   : > { %1160 = vst.msk [vmem:[%s1741_s27 + $0x64] sm:$0xf] %vm1134_vm3, %v1422_v14  ;;  %v1427_v22 = vpack.c.bf16 %v844_v16, %v844_v16  ;;  %v1459_v23 = vpack.c.bf16 %v876_v17, %v876_v17  ;;  %v683_v24 = vadd.f32 %v1530_v20, %v1730_v38  ;;  %v811_v25 = vadd.f32 %v1562_v21, %v1730_v38 }
 0x116   : > { %1192 = vst.msk [vmem:[%s1741_s27 + $0xe4] sm:$0xf] %vm1134_vm3, %v1454_v15  ;;  %v842_v26 = vmax.f32 %v672_v18, 0.0  ;;  %v874_v27 = vmax.f32 %v800_v19, 0.0  ;;  %v674_v28 = vpop.f32.mrf.mxu0  ;;  %v802_v29 = vpop.f32.mrf.mxu1 }
 0x117   : > { %1165 = vst.msk [vmem:[%s1741_s27 + $0x78] sm:$0xf] %vm1134_vm3, %v1427_v22  ;;  %1197 = vst.msk [vmem:[%s1741_s27 + $0xf8] sm:$0xf] %vm1134_vm3, %v1459_v23  ;;  %v845_v30 = vmax.f32 %v683_v24, 0.0  ;;  %v877_v31 = vmax.f32 %v811_v25, 0.0  ;;  %v675_v32 = vadd.f32 %v1730_v38, %v674_v28  ;;  %v803_v33 = vadd.f32 %v1730_v38, %v802_v29 }
 0x118   : > { %v1425_v34 = vpack.c.bf16 %v842_v26, %v842_v26  ;;  %v1457_v35 = vpack.c.bf16 %v874_v27, %v874_v27 }
 0x119   : > { %v1428_v36 = vpack.c.bf16 %v845_v30, %v845_v30  ;;  %v1460_v37 = vpack.c.bf16 %v877_v31, %v877_v31  ;;  %v843_v39 = vmax.f32 %v675_v32, 0.0  ;;  %v875_v40 = vmax.f32 %v803_v33, 0.0 }
 0x11a   : > { %1163 = vst.msk [vmem:[%s1741_s27 + $0x70] sm:$0xf] %vm1134_vm3, %v1425_v34  ;;  %1195 = vst.msk [vmem:[%s1741_s27 + $0xf0] sm:$0xf] %vm1134_vm3, %v1457_v35 }
 0x11b   : > { %1166 = vst.msk [vmem:[%s1741_s27 + $0x7c] sm:$0xf] %vm1134_vm3, %v1428_v36  ;;  %1198 = vst.msk [vmem:[%s1741_s27 + $0xfc] sm:$0xf] %vm1134_vm3, %v1460_v37  ;;  %v1426_v41 = vpack.c.bf16 %v843_v39, %v843_v39  ;;  %v1458_v42 = vpack.c.bf16 %v875_v40, %v875_v40 }
 0x11d   : > { %1164 = vst.msk [vmem:[%s1741_s27 + $0x74] sm:$0xf] %vm1134_vm3, %v1426_v41  ;;  %1196 = vst.msk [vmem:[%s1741_s27 + $0xf4] sm:$0xf] %vm1134_vm3, %v1458_v42 }
 0x11e PF: > { %s13_s12 = sadd.s32 1, %s1616_s12  }
 0x11f   : > { %p10_p4 = scmp.ge.s32.totalorder %s13_s12, 6  }
 0x121   :  { %12 = sbr.rel (!%p10_p4) target bundleno = 1 (0x1), region = 62 }

// kernel: omdet_v2_turbo_forward.12
= control target key start
LH: loop header
LB: loop body
LE: loop exit
PB: predicated region body
PF: predicated region fallthrough
CT: control target
= control target key end

     0   :  { %v1579_v0 = vmov 0   ;;  %vm446_vm0 = vcmask 130048   ;;  %vm1152_vm1 = vcmask 257024   ;;  %s2176_s1 = inlined_call_operand.vmem [shape: bf16[144,32], index: 1, kind: input, shape index: {}]   ;;  %s2177_s0 = inlined_call_operand.vmem [shape: bf16[512,144], index: 0, kind: input, shape index: {}]   ;;  %s2178_s2 = inlined_call_operand.vmem [shape: f32[1,32], index: 2, kind: input, shape index: {}]   ;;  %s2179_s3 = inlined_call_operand.vmem [shape: bf16[512,32], index: 3, kind: output, shape index: {}]  }
   0x1   :  { %543 = vmatprep.subr.bf16.mxu0 %v1579_v0  ;;  %1455 = vmatprep.subr.bf16.mxu1 %v1579_v0  ;;  %v1474_v1 = vld [vmem:[%s2176_s1 + $0x38] sm:$0xff]   ;;  %v1475_v2 = vld [vmem:[%s2176_s1 + $0x30] sm:$0xff]   ;;  %v1476_v3 = vld [vmem:[%s2176_s1 + $0x28] sm:$0xff]  }
   0x2   :  { %544 = vmatpush1.bf16.msra.mxu0 %v1474_v1  ;;  %1464 = vmatpush1.bf16.msra.mxu1 %v1474_v1  ;;  %v1477_v4 = vld [vmem:[%s2176_s1 + $0x20] sm:$0xff]   ;;  %v1478_v7 = vld [vmem:[%s2176_s1 + $0x18] sm:$0xff]   ;;  %v1479_v8 = vld [vmem:[%s2176_s1 + $0x10] sm:$0xff]  }
   0x3   :  { %545 = vmatprep.subr.bf16.mxu0 %v1579_v0  ;;  %1456 = vmatprep.subr.bf16.mxu1 %v1579_v0  ;;  %v1485_v5 = vld [vmem:[%s2177_s0 + $0x4] ss:$8 sps:$4 sm:$0xff]   ;;  %v1483_v12 = vld [vmem:[%s2177_s0] ss:$8 sps:$4 sm:$0xff]   ;;  %v1489_v14 = vld [vmem:[%s2177_s0 + $0x14] ss:$8 sps:$4 sm:$0xff]  }
   0x4   :  { %v1488_v6 = vld [vmem:[%s2177_s0 + $0x104] ss:$8 sps:$4 sm:$0xff]   ;;  %1295 = vmatprep.mubr.msk.bf16.mxu0 %vm446_vm0, %v1485_v5  ;;  %v1486_v13 = vld [vmem:[%s2177_s0 + $0x100] ss:$8 sps:$4 sm:$0xff]   ;;  %v1491_v15 = vld [vmem:[%s2177_s0 + $0x114] ss:$8 sps:$4 sm:$0xff]  }
   0x5   :  { %1311 = vmatprep.mubr.msk.bf16.mxu1 %vm446_vm0, %v1488_v6  ;;  %v1480_v9 = vld [vmem:[%s2176_s1 + $0x8] sm:$0xff]   ;;  %v1481_v10 = vld [vmem:[%s2176_s1] sm:$0xff]   ;;  %v1493_v16 = vld [vmem:[%s2177_s0 + $0x10] ss:$8 sps:$4 sm:$0xff]  }
   0x6   :  { %546 = vmatpush1.bf16.msra.mxu0 %v1475_v2  ;;  %1465 = vmatpush1.bf16.msra.mxu1 %v1475_v2  ;;  %v1482_v11 = vld [vmem:[%s2176_s1 + $0x40] sm:$0xff]   ;;  %v1494_v17 = vld [vmem:[%s2177_s0 + $0x110] ss:$8 sps:$4 sm:$0xff]   ;;  %v1501_v22 = vld [vmem:[%s2177_s0 + $0x34] ss:$8 sps:$4 sm:$0xff]  }
   0x7   :  { %547 = vmatprep.subr.bf16.mxu0 %v1579_v0  ;;  %1457 = vmatprep.subr.bf16.mxu1 %v1579_v0  ;;  %v1495_v18 = vld [vmem:[%s2177_s0 + $0x24] ss:$8 sps:$4 sm:$0xff]   ;;  %v1499_v20 = vld [vmem:[%s2177_s0 + $0x20] ss:$8 sps:$4 sm:$0xff]   ;;  %v1503_v23 = vld [vmem:[%s2177_s0 + $0x134] ss:$8 sps:$4 sm:$0xff]  }
   0x8   :  { %v1497_v19 = vld [vmem:[%s2177_s0 + $0x124] ss:$8 sps:$4 sm:$0xff]   ;;  %v1500_v21 = vld [vmem:[%s2177_s0 + $0x120] ss:$8 sps:$4 sm:$0xff]   ;;  %v1505_v24 = vld [vmem:[%s2177_s0 + $0x30] ss:$8 sps:$4 sm:$0xff]  }
   0x9   :  { %v1506_v25 = vld [vmem:[%s2177_s0 + $0x130] ss:$8 sps:$4 sm:$0xff]   ;;  %v1507_v26 = vld [vmem:[%s2177_s0 + $0x44] ss:$8 sps:$4 sm:$0xff]   ;;  %v1511_v28 = vld [vmem:[%s2177_s0 + $0x40] ss:$8 sps:$4 sm:$0xff]  }
   0xa   :  { %548 = vmatpush1.bf16.msra.mxu0 %v1476_v3  ;;  %1466 = vmatpush1.bf16.msra.mxu1 %v1476_v3  ;;  %v1509_v27 = vld [vmem:[%s2177_s0 + $0x144] ss:$8 sps:$4 sm:$0xff]   ;;  %v1512_v29 = vld [vmem:[%s2177_s0 + $0x140] ss:$8 sps:$4 sm:$0xff]   ;;  %v1513_v30 = vld [vmem:[%s2177_s0 + $0x54] ss:$8 sps:$4 sm:$0xff]  }
   0xb   :  { %549 = vmatprep.subr.bf16.mxu0 %v1579_v0  ;;  %1458 = vmatprep.subr.bf16.mxu1 %v1579_v0  ;;  %v1515_v31 = vld [vmem:[%s2177_s0 + $0x154] ss:$8 sps:$4 sm:$0xff]   ;;  %v1517_v32 = vld [vmem:[%s2177_s0 + $0x50] ss:$8 sps:$4 sm:$0xff]   ;;  %v1519_v34 = vld [vmem:[%s2177_s0 + $0x64] ss:$8 sps:$4 sm:$0xff]  }
   0xc   :  { %v1518_v33 = vld [vmem:[%s2177_s0 + $0x150] ss:$8 sps:$4 sm:$0xff]   ;;  %v1521_v35 = vld [vmem:[%s2177_s0 + $0x164] ss:$8 sps:$4 sm:$0xff]   ;;  %v1523_v36 = vld [vmem:[%s2177_s0 + $0x60] ss:$8 sps:$4 sm:$0xff]  }
   0xd   :  { %v1524_v37 = vld [vmem:[%s2177_s0 + $0x160] ss:$8 sps:$4 sm:$0xff]   ;;  %v1525_v38 = vld [vmem:[%s2177_s0 + $0x74] ss:$8 sps:$4 sm:$0xff]   ;;  %v1529_v40 = vld [vmem:[%s2177_s0 + $0x70] ss:$8 sps:$4 sm:$0xff]  }
   0xe   :  { %550 = vmatpush1.bf16.msra.mxu0 %v1477_v4  ;;  %1467 = vmatpush1.bf16.msra.mxu1 %v1477_v4  ;;  %v1527_v39 = vld [vmem:[%s2177_s0 + $0x174] ss:$8 sps:$4 sm:$0xff]   ;;  %v1530_v41 = vld [vmem:[%s2177_s0 + $0x170] ss:$8 sps:$4 sm:$0xff]   ;;  %v1531_v42 = vld [vmem:[%s2177_s0 + $0x84] ss:$8 sps:$4 sm:$0xff]  }
   0xf   :  { %551 = vmatprep.subr.bf16.mxu0 %v1579_v0  ;;  %1459 = vmatprep.subr.bf16.mxu1 %v1579_v0  ;;  %v1533_v43 = vld [vmem:[%s2177_s0 + $0x184] ss:$8 sps:$4 sm:$0xff]   ;;  %v1535_v44 = vld [vmem:[%s2177_s0 + $0x80] ss:$8 sps:$4 sm:$0xff]   ;;  %v1537_v46 = vld [vmem:[%s2177_s0 + $0x94] ss:$8 sps:$4 sm:$0xff]  }
  0x10   :  { %v1536_v45 = vld [vmem:[%s2177_s0 + $0x180] ss:$8 sps:$4 sm:$0xff]   ;;  %v1539_v47 = vld [vmem:[%s2177_s0 + $0x194] ss:$8 sps:$4 sm:$0xff]   ;;  %v1541_v48 = vld [vmem:[%s2177_s0 + $0x90] ss:$8 sps:$4 sm:$0xff]  }
  0x11   :  { %v1542_v49 = vld [vmem:[%s2177_s0 + $0x190] ss:$8 sps:$4 sm:$0xff]   ;;  %v1543_v50 = vld [vmem:[%s2177_s0 + $0xa4] ss:$8 sps:$4 sm:$0xff]   ;;  %v1547_v52 = vld [vmem:[%s2177_s0 + $0xa0] ss:$8 sps:$4 sm:$0xff]  }
  0x12   :  { %552 = vmatpush1.bf16.msra.mxu0 %v1478_v7  ;;  %1468 = vmatpush1.bf16.msra.mxu1 %v1478_v7  ;;  %v1545_v51 = vld [vmem:[%s2177_s0 + $0x1a4] ss:$8 sps:$4 sm:$0xff]   ;;  %v1548_v53 = vld [vmem:[%s2177_s0 + $0x1a0] ss:$8 sps:$4 sm:$0xff]   ;;  %v1549_v54 = vld [vmem:[%s2177_s0 + $0xb4] ss:$8 sps:$4 sm:$0xff]  }
  0x13   :  { %553 = vmatprep.subr.bf16.mxu0 %v1579_v0  ;;  %1460 = vmatprep.subr.bf16.mxu1 %v1579_v0  ;;  %v1551_v55 = vld [vmem:[%s2177_s0 + $0x1b4] ss:$8 sps:$4 sm:$0xff]   ;;  %v1553_v56 = vld [vmem:[%s2177_s0 + $0xb0] ss:$8 sps:$4 sm:$0xff]   ;;  %v1555_v58 = vld [vmem:[%s2177_s0 + $0xc4] ss:$8 sps:$4 sm:$0xff]  }
  0x14   :  { %v1554_v57 = vld [vmem:[%s2177_s0 + $0x1b0] ss:$8 sps:$4 sm:$0xff]   ;;  %v1557_v59 = vld [vmem:[%s2177_s0 + $0x1c4] ss:$8 sps:$4 sm:$0xff]   ;;  %v1559_v60 = vld [vmem:[%s2177_s0 + $0xc0] ss:$8 sps:$4 sm:$0xff]  }
  0x15   :  { %v1560_v61 = vld [vmem:[%s2177_s0 + $0x1c0] ss:$8 sps:$4 sm:$0xff]   ;;  %v1561_v62 = vld [vmem:[%s2177_s0 + $0xd4] ss:$8 sps:$4 sm:$0xff]   ;;  %v1566_v1 = vld [vmem:[%s2177_s0 + $0x1d0] ss:$8 sps:$4 sm:$0xff]  }
  0x16   :  { %554 = vmatpush1.bf16.msra.mxu0 %v1479_v8  ;;  %1469 = vmatpush1.bf16.msra.mxu1 %v1479_v8  ;;  %v1563_v63 = vld [vmem:[%s2177_s0 + $0x1d4] ss:$8 sps:$4 sm:$0xff]   ;;  %v1567_v2 = vld [vmem:[%s2177_s0 + $0xe4] ss:$8 sps:$4 sm:$0xff]   ;;  %v1571_v4 = vld [vmem:[%s2177_s0 + $0xe0] ss:$8 sps:$4 sm:$0xff]  }
  0x17   :  { %555 = vmatprep.subr.bf16.mxu0 %v1579_v0  ;;  %1461 = vmatprep.subr.bf16.mxu1 %v1579_v0  ;;  %v1569_v3 = vld [vmem:[%s2177_s0 + $0x1e4] ss:$8 sps:$4 sm:$0xff]   ;;  %v1572_v5 = vld [vmem:[%s2177_s0 + $0x1e0] ss:$8 sps:$4 sm:$0xff]   ;;  %v1573_v6 = vld [vmem:[%s2177_s0 + $0xf4] ss:$8 sps:$4 sm:$0xff]  }
  0x18   :  { %v1575_v7 = vld [vmem:[%s2177_s0 + $0x1f4] ss:$8 sps:$4 sm:$0xff]   ;;  %v1577_v8 = vld [vmem:[%s2177_s0 + $0xf0] ss:$8 sps:$4 sm:$0xff]  }
  0x1a   :  { %556 = vmatpush1.bf16.msra.mxu0 %v1480_v9  ;;  %1470 = vmatpush1.bf16.msra.mxu1 %v1480_v9  ;;  %v1578_v9 = vld [vmem:[%s2177_s0 + $0x1f0] ss:$8 sps:$4 sm:$0xff]  }
  0x1b   :  { %557 = vmatprep.subr.bf16.mxu0 %v1579_v0  ;;  %1462 = vmatprep.subr.bf16.mxu1 %v1579_v0 }
  0x1e   :  { %558 = vmatpush1.bf16.msra.mxu0 %v1481_v10  ;;  %1471 = vmatpush1.bf16.msra.mxu1 %v1481_v10  ;;  %v1854_v10 = vld [vmem:[%s2178_s2] ss:$0 sm:$0xff] }
  0x1f   :  { %573 = vmatprep.subr.bf16.mxu0 %v1579_v0  ;;  %1463 = vmatprep.subr.bf16.mxu1 %v1579_v0  ;;  %v1565_v0 = vld [vmem:[%s2177_s0 + $0xd0] ss:$8 sps:$4 sm:$0xff]  }
  0x22   :  { %574 = vmatpush2.bf16.msra.mxu0 %v1482_v11  ;;  %1472 = vmatpush2.bf16.msra.mxu1 %v1482_v11 }
  0x25   :  { %576 = vmatmul.mubr.bf16.vlgmr.msra.gmra.mxu0 %v1483_v12  ;;  %704 = vmatmul.mubr.bf16.vlgmr.msra.gmra.mxu1 %v1486_v13 }
  0x26   :  { %1296 = vmatprep.mubr.msk.bf16.mxu0 %vm446_vm0, %v1489_v14  ;;  %1312 = vmatprep.mubr.msk.bf16.mxu1 %vm446_vm0, %v1491_v15 }
  0x2d   :  { %584 = vmatmul.mubr.bf16.gmra.mxu0 %v1493_v16  ;;  %712 = vmatmul.mubr.bf16.gmra.mxu1 %v1494_v17 }
  0x2e   :  { %1297 = vmatprep.mubr.msk.bf16.mxu0 %vm446_vm0, %v1495_v18  ;;  %1313 = vmatprep.mubr.msk.bf16.mxu1 %vm446_vm0, %v1497_v19 }
  0x35   :  { %592 = vmatmul.mubr.bf16.gmra.mxu0 %v1499_v20  ;;  %720 = vmatmul.mubr.bf16.gmra.mxu1 %v1500_v21 }
  0x36   :  { %1298 = vmatprep.mubr.msk.bf16.mxu0 %vm446_vm0, %v1501_v22  ;;  %1314 = vmatprep.mubr.msk.bf16.mxu1 %vm446_vm0, %v1503_v23 }
  0x3d   :  { %600 = vmatmul.mubr.bf16.gmra.mxu0 %v1505_v24  ;;  %728 = vmatmul.mubr.bf16.gmra.mxu1 %v1506_v25 }
  0x3e   :  { %1299 = vmatprep.mubr.msk.bf16.mxu0 %vm446_vm0, %v1507_v26  ;;  %1315 = vmatprep.mubr.msk.bf16.mxu1 %vm446_vm0, %v1509_v27 }
  0x45   :  { %608 = vmatmul.mubr.bf16.gmra.mxu0 %v1511_v28  ;;  %736 = vmatmul.mubr.bf16.gmra.mxu1 %v1512_v29 }
  0x46   :  { %1300 = vmatprep.mubr.msk.bf16.mxu0 %vm446_vm0, %v1513_v30  ;;  %1316 = vmatprep.mubr.msk.bf16.mxu1 %vm446_vm0, %v1515_v31 }
  0x4d   :  { %616 = vmatmul.mubr.bf16.gmra.mxu0 %v1517_v32  ;;  %744 = vmatmul.mubr.bf16.gmra.mxu1 %v1518_v33 }
  0x4e   :  { %1301 = vmatprep.mubr.msk.bf16.mxu0 %vm446_vm0, %v1519_v34  ;;  %1317 = vmatprep.mubr.msk.bf16.mxu1 %vm446_vm0, %v1521_v35 }
  0x55   :  { %624 = vmatmul.mubr.bf16.gmra.mxu0 %v1523_v36  ;;  %752 = vmatmul.mubr.bf16.gmra.mxu1 %v1524_v37 }
  0x56   :  { %1302 = vmatprep.mubr.msk.bf16.mxu0 %vm446_vm0, %v1525_v38  ;;  %1318 = vmatprep.mubr.msk.bf16.mxu1 %vm446_vm0, %v1527_v39 }
  0x5d   :  { %632 = vmatmul.mubr.bf16.gmra.mxu0 %v1529_v40  ;;  %760 = vmatmul.mubr.bf16.gmra.mxu1 %v1530_v41 }
  0x5e   :  { %1303 = vmatprep.mubr.msk.bf16.mxu0 %vm446_vm0, %v1531_v42  ;;  %1319 = vmatprep.mubr.msk.bf16.mxu1 %vm446_vm0, %v1533_v43 }
  0x65   :  { %640 = vmatmul.mubr.bf16.gmra.mxu0 %v1535_v44  ;;  %768 = vmatmul.mubr.bf16.gmra.mxu1 %v1536_v45 }
  0x66   :  { %1304 = vmatprep.mubr.msk.bf16.mxu0 %vm446_vm0, %v1537_v46  ;;  %1320 = vmatprep.mubr.msk.bf16.mxu1 %vm446_vm0, %v1539_v47 }
  0x6d   :  { %648 = vmatmul.mubr.bf16.gmra.mxu0 %v1541_v48  ;;  %776 = vmatmul.mubr.bf16.gmra.mxu1 %v1542_v49 }
  0x6e   :  { %1305 = vmatprep.mubr.msk.bf16.mxu0 %vm446_vm0, %v1543_v50  ;;  %1321 = vmatprep.mubr.msk.bf16.mxu1 %vm446_vm0, %v1545_v51 }
  0x75   :  { %656 = vmatmul.mubr.bf16.gmra.mxu0 %v1547_v52  ;;  %784 = vmatmul.mubr.bf16.gmra.mxu1 %v1548_v53 }
  0x76   :  { %1306 = vmatprep.mubr.msk.bf16.mxu0 %vm446_vm0, %v1549_v54  ;;  %1322 = vmatprep.mubr.msk.bf16.mxu1 %vm446_vm0, %v1551_v55 }
  0x7d   :  { %664 = vmatmul.mubr.bf16.gmra.mxu0 %v1553_v56  ;;  %792 = vmatmul.mubr.bf16.gmra.mxu1 %v1554_v57 }
  0x7e   :  { %1307 = vmatprep.mubr.msk.bf16.mxu0 %vm446_vm0, %v1555_v58  ;;  %1323 = vmatprep.mubr.msk.bf16.mxu1 %vm446_vm0, %v1557_v59 }
  0x85   :  { %672 = vmatmul.mubr.bf16.gmra.mxu0 %v1559_v60  ;;  %800 = vmatmul.mubr.bf16.gmra.mxu1 %v1560_v61 }
  0x86   :  { %1308 = vmatprep.mubr.msk.bf16.mxu0 %vm446_vm0, %v1561_v62  ;;  %1324 = vmatprep.mubr.msk.bf16.mxu1 %vm446_vm0, %v1563_v63 }
  0x8d   :  { %680 = vmatmul.mubr.bf16.gmra.mxu0 %v1565_v0  ;;  %808 = vmatmul.mubr.bf16.gmra.mxu1 %v1566_v1 }
  0x8e   :  { %1309 = vmatprep.mubr.msk.bf16.mxu0 %vm446_vm0, %v1567_v2  ;;  %1325 = vmatprep.mubr.msk.bf16.mxu1 %vm446_vm0, %v1569_v3 }
  0x95   :  { %688 = vmatmul.mubr.bf16.gmra.mxu0 %v1571_v4  ;;  %816 = vmatmul.mubr.bf16.gmra.mxu1 %v1572_v5 }
  0x96   :  { %1310 = vmatprep.mubr.msk.bf16.mxu0 %vm446_vm0, %v1573_v6  ;;  %1326 = vmatprep.mubr.msk.bf16.mxu1 %vm446_vm0, %v1575_v7 }
  0x9d   :  { %696 = vmatmul.mubr.bf16.gmra.mxu0 %v1577_v8  ;;  %824 = vmatmul.mubr.bf16.gmra.mxu1 %v1578_v9 }
  0xe5   :  { %v577_v11 = vpop.f32.mrf.mxu0  ;;  %v705_v12 = vpop.f32.mrf.mxu1 }
  0xe6   :  { %v578_v13 = vadd.f32 %v1854_v10, %v577_v11  ;;  %v706_v14 = vadd.f32 %v1854_v10, %v705_v12 }
  0xe7   :  { %v579_v15 = vpop.f32.mrf.mxu0  ;;  %v707_v16 = vpop.f32.mrf.mxu1 }
  0xe8   :  { %v832_v17 = vmax.f32 %v578_v13, 0.0  ;;  %v864_v18 = vmax.f32 %v706_v14, 0.0 }
  0xe9   :  { %v580_v19 = vpop.f32.mrf.mxu0  ;;  %v708_v20 = vpop.f32.mrf.mxu1 }
  0xea   :  { %v1391_v21 = vpack.c.bf16 %v832_v17, %v832_v17  ;;  %v1423_v22 = vpack.c.bf16 %v864_v18, %v864_v18  ;;  %v581_v23 = vadd.f32 %v1854_v10, %v580_v19  ;;  %v709_v24 = vadd.f32 %v1854_v10, %v708_v20 }
  0xeb   :  { %v582_v25 = vpop.f32.mrf.mxu0  ;;  %v710_v26 = vpop.f32.mrf.mxu1 }
  0xec   :  { %1153 = vst.msk [vmem:[%s2179_s3] sm:$0xf] %vm1152_vm1, %v1391_v21  ;;  %1185 = vst.msk [vmem:[%s2179_s3 + $0x80] sm:$0xf] %vm1152_vm1, %v1423_v22  ;;  %v833_v27 = vmax.f32 %v581_v23, 0.0  ;;  %v865_v28 = vmax.f32 %v709_v24, 0.0 }
  0xed   :  { %v585_v29 = vpop.f32.mrf.mxu0  ;;  %v713_v30 = vpop.f32.mrf.mxu1 }
  0xee   :  { %v1392_v31 = vpack.c.bf16 %v833_v27, %v833_v27  ;;  %v1424_v32 = vpack.c.bf16 %v865_v28, %v865_v28  ;;  %v586_v33 = vadd.f32 %v1854_v10, %v585_v29  ;;  %v714_v34 = vadd.f32 %v1854_v10, %v713_v30 }
  0xef   :  { %v587_v35 = vpop.f32.mrf.mxu0  ;;  %v715_v36 = vpop.f32.mrf.mxu1 }
  0xf0   :  { %1154 = vst.msk [vmem:[%s2179_s3 + $0x4] sm:$0xf] %vm1152_vm1, %v1392_v31  ;;  %1186 = vst.msk [vmem:[%s2179_s3 + $0x84] sm:$0xf] %vm1152_vm1, %v1424_v32  ;;  %v834_v37 = vmax.f32 %v586_v33, 0.0  ;;  %v866_v38 = vmax.f32 %v714_v34, 0.0 }
  0xf1   :  { %v588_v39 = vpop.f32.mrf.mxu0  ;;  %v716_v40 = vpop.f32.mrf.mxu1 }
  0xf2   :  { %v1393_v41 = vpack.c.bf16 %v834_v37, %v834_v37  ;;  %v1425_v42 = vpack.c.bf16 %v866_v38, %v866_v38  ;;  %v589_v43 = vadd.f32 %v1854_v10, %v588_v39  ;;  %v717_v44 = vadd.f32 %v1854_v10, %v716_v40 }
  0xf3   :  { %v590_v45 = vpop.f32.mrf.mxu0  ;;  %v718_v46 = vpop.f32.mrf.mxu1 }
  0xf4   :  { %1155 = vst.msk [vmem:[%s2179_s3 + $0x8] sm:$0xf] %vm1152_vm1, %v1393_v41  ;;  %1187 = vst.msk [vmem:[%s2179_s3 + $0x88] sm:$0xf] %vm1152_vm1, %v1425_v42  ;;  %v835_v47 = vmax.f32 %v589_v43, 0.0  ;;  %v867_v48 = vmax.f32 %v717_v44, 0.0 }
  0xf5   :  { %v593_v49 = vpop.f32.mrf.mxu0  ;;  %v721_v50 = vpop.f32.mrf.mxu1 }
  0xf6   :  { %v1394_v51 = vpack.c.bf16 %v835_v47, %v835_v47  ;;  %v1426_v52 = vpack.c.bf16 %v867_v48, %v867_v48  ;;  %v594_v53 = vadd.f32 %v1854_v10, %v593_v49  ;;  %v722_v54 = vadd.f32 %v1854_v10, %v721_v50 }
  0xf7   :  { %v595_v55 = vpop.f32.mrf.mxu0  ;;  %v723_v56 = vpop.f32.mrf.mxu1 }
  0xf8   :  { %1156 = vst.msk [vmem:[%s2179_s3 + $0xc] sm:$0xf] %vm1152_vm1, %v1394_v51  ;;  %1188 = vst.msk [vmem:[%s2179_s3 + $0x8c] sm:$0xf] %vm1152_vm1, %v1426_v52  ;;  %v836_v57 = vmax.f32 %v594_v53, 0.0  ;;  %v868_v58 = vmax.f32 %v722_v54, 0.0 }
  0xf9   :  { %v596_v59 = vpop.f32.mrf.mxu0  ;;  %v724_v60 = vpop.f32.mrf.mxu1 }
  0xfa   :  { %v1395_v61 = vpack.c.bf16 %v836_v57, %v836_v57  ;;  %v1427_v62 = vpack.c.bf16 %v868_v58, %v868_v58  ;;  %v597_v63 = vadd.f32 %v1854_v10, %v596_v59  ;;  %v725_v0 = vadd.f32 %v1854_v10, %v724_v60 }
  0xfb   :  { %v598_v1 = vpop.f32.mrf.mxu0  ;;  %v726_v2 = vpop.f32.mrf.mxu1 }
  0xfc   :  { %1157 = vst.msk [vmem:[%s2179_s3 + $0x10] sm:$0xf] %vm1152_vm1, %v1395_v61  ;;  %1189 = vst.msk [vmem:[%s2179_s3 + $0x90] sm:$0xf] %vm1152_vm1, %v1427_v62  ;;  %v837_v3 = vmax.f32 %v597_v63, 0.0  ;;  %v869_v4 = vmax.f32 %v725_v0, 0.0 }
  0xfd   :  { %v601_v5 = vpop.f32.mrf.mxu0  ;;  %v729_v6 = vpop.f32.mrf.mxu1 }
  0xfe   :  { %v1396_v7 = vpack.c.bf16 %v837_v3, %v837_v3  ;;  %v1428_v8 = vpack.c.bf16 %v869_v4, %v869_v4  ;;  %v602_v9 = vadd.f32 %v1854_v10, %v601_v5  ;;  %v730_v11 = vadd.f32 %v1854_v10, %v729_v6 }
  0xff   :  { %v603_v12 = vpop.f32.mrf.mxu0  ;;  %v731_v13 = vpop.f32.mrf.mxu1 }
 0x100   :  { %1158 = vst.msk [vmem:[%s2179_s3 + $0x14] sm:$0xf] %vm1152_vm1, %v1396_v7  ;;  %1190 = vst.msk [vmem:[%s2179_s3 + $0x94] sm:$0xf] %vm1152_vm1, %v1428_v8  ;;  %v838_v14 = vmax.f32 %v602_v9, 0.0  ;;  %v870_v15 = vmax.f32 %v730_v11, 0.0 }
 0x101   :  { %v604_v16 = vpop.f32.mrf.mxu0  ;;  %v732_v17 = vpop.f32.mrf.mxu1 }
 0x102   :  { %v1397_v18 = vpack.c.bf16 %v838_v14, %v838_v14  ;;  %v1429_v19 = vpack.c.bf16 %v870_v15, %v870_v15  ;;  %v605_v20 = vadd.f32 %v1854_v10, %v604_v16  ;;  %v733_v21 = vadd.f32 %v1854_v10, %v732_v17 }
 0x103   :  { %v606_v22 = vpop.f32.mrf.mxu0  ;;  %v734_v23 = vpop.f32.mrf.mxu1 }
 0x104   :  { %1159 = vst.msk [vmem:[%s2179_s3 + $0x18] sm:$0xf] %vm1152_vm1, %v1397_v18  ;;  %1191 = vst.msk [vmem:[%s2179_s3 + $0x98] sm:$0xf] %vm1152_vm1, %v1429_v19  ;;  %v839_v24 = vmax.f32 %v605_v20, 0.0  ;;  %v871_v25 = vmax.f32 %v733_v21, 0.0 }
 0x105   :  { %v609_v26 = vpop.f32.mrf.mxu0  ;;  %v737_v27 = vpop.f32.mrf.mxu1 }
 0x106   :  { %v1398_v28 = vpack.c.bf16 %v839_v24, %v839_v24  ;;  %v1430_v29 = vpack.c.bf16 %v871_v25, %v871_v25  ;;  %v610_v30 = vadd.f32 %v1854_v10, %v609_v26  ;;  %v738_v31 = vadd.f32 %v1854_v10, %v737_v27 }
 0x107   :  { %v611_v32 = vpop.f32.mrf.mxu0  ;;  %v739_v33 = vpop.f32.mrf.mxu1 }
 0x108   :  { %1160 = vst.msk [vmem:[%s2179_s3 + $0x1c] sm:$0xf] %vm1152_vm1, %v1398_v28  ;;  %1192 = vst.msk [vmem:[%s2179_s3 + $0x9c] sm:$0xf] %vm1152_vm1, %v1430_v29  ;;  %v840_v34 = vmax.f32 %v610_v30, 0.0  ;;  %v872_v35 = vmax.f32 %v738_v31, 0.0 }
 0x109   :  { %v612_v36 = vpop.f32.mrf.mxu0  ;;  %v740_v37 = vpop.f32.mrf.mxu1 }
 0x10a   :  { %v1399_v38 = vpack.c.bf16 %v840_v34, %v840_v34  ;;  %v1431_v39 = vpack.c.bf16 %v872_v35, %v872_v35  ;;  %v613_v40 = vadd.f32 %v1854_v10, %v612_v36  ;;  %v741_v41 = vadd.f32 %v1854_v10, %v740_v37 }
 0x10b   :  { %v614_v42 = vpop.f32.mrf.mxu0  ;;  %v742_v43 = vpop.f32.mrf.mxu1 }
 0x10c   :  { %1161 = vst.msk [vmem:[%s2179_s3 + $0x20] sm:$0xf] %vm1152_vm1, %v1399_v38  ;;  %1193 = vst.msk [vmem:[%s2179_s3 + $0xa0] sm:$0xf] %vm1152_vm1, %v1431_v39  ;;  %v841_v44 = vmax.f32 %v613_v40, 0.0  ;;  %v873_v45 = vmax.f32 %v741_v41, 0.0 }
 0x10d   :  { %v617_v46 = vpop.f32.mrf.mxu0  ;;  %v745_v47 = vpop.f32.mrf.mxu1 }
 0x10e   :  { %v1400_v48 = vpack.c.bf16 %v841_v44, %v841_v44  ;;  %v1432_v49 = vpack.c.bf16 %v873_v45, %v873_v45  ;;  %v618_v50 = vadd.f32 %v1854_v10, %v617_v46  ;;  %v746_v51 = vadd.f32 %v1854_v10, %v745_v47 }
 0x10f   :  { %v619_v52 = vpop.f32.mrf.mxu0  ;;  %v747_v53 = vpop.f32.mrf.mxu1 }
 0x110   :  { %1162 = vst.msk [vmem:[%s2179_s3 + $0x24] sm:$0xf] %vm1152_vm1, %v1400_v48  ;;  %1194 = vst.msk [vmem:[%s2179_s3 + $0xa4] sm:$0xf] %vm1152_vm1, %v1432_v49  ;;  %v842_v54 = vmax.f32 %v618_v50, 0.0  ;;  %v874_v55 = vmax.f32 %v746_v51, 0.0 }
 0x111   :  { %v620_v56 = vpop.f32.mrf.mxu0  ;;  %v748_v57 = vpop.f32.mrf.mxu1 }
 0x112   :  { %v1401_v58 = vpack.c.bf16 %v842_v54, %v842_v54  ;;  %v1433_v59 = vpack.c.bf16 %v874_v55, %v874_v55  ;;  %v621_v60 = vadd.f32 %v1854_v10, %v620_v56  ;;  %v749_v61 = vadd.f32 %v1854_v10, %v748_v57 }
 0x113   :  { %v622_v62 = vpop.f32.mrf.mxu0  ;;  %v750_v63 = vpop.f32.mrf.mxu1 }
 0x114   :  { %1163 = vst.msk [vmem:[%s2179_s3 + $0x28] sm:$0xf] %vm1152_vm1, %v1401_v58  ;;  %1195 = vst.msk [vmem:[%s2179_s3 + $0xa8] sm:$0xf] %vm1152_vm1, %v1433_v59  ;;  %v843_v0 = vmax.f32 %v621_v60, 0.0  ;;  %v875_v1 = vmax.f32 %v749_v61, 0.0 }
 0x115   :  { %v625_v2 = vpop.f32.mrf.mxu0  ;;  %v753_v3 = vpop.f32.mrf.mxu1 }
 0x116   :  { %v1402_v4 = vpack.c.bf16 %v843_v0, %v843_v0  ;;  %v1434_v5 = vpack.c.bf16 %v875_v1, %v875_v1  ;;  %v626_v6 = vadd.f32 %v1854_v10, %v625_v2  ;;  %v754_v7 = vadd.f32 %v1854_v10, %v753_v3 }
 0x117   :  { %v627_v8 = vpop.f32.mrf.mxu0  ;;  %v755_v9 = vpop.f32.mrf.mxu1 }
 0x118   :  { %1164 = vst.msk [vmem:[%s2179_s3 + $0x2c] sm:$0xf] %vm1152_vm1, %v1402_v4  ;;  %1196 = vst.msk [vmem:[%s2179_s3 + $0xac] sm:$0xf] %vm1152_vm1, %v1434_v5  ;;  %v844_v11 = vmax.f32 %v626_v6, 0.0  ;;  %v876_v12 = vmax.f32 %v754_v7, 0.0 }
 0x119   :  { %v628_v13 = vpop.f32.mrf.mxu0  ;;  %v756_v14 = vpop.f32.mrf.mxu1 }
 0x11a   :  { %v1403_v15 = vpack.c.bf16 %v844_v11, %v844_v11  ;;  %v1435_v16 = vpack.c.bf16 %v876_v12, %v876_v12  ;;  %v629_v17 = vadd.f32 %v1854_v10, %v628_v13  ;;  %v757_v18 = vadd.f32 %v1854_v10, %v756_v14 }
 0x11b   :  { %v630_v19 = vpop.f32.mrf.mxu0  ;;  %v758_v20 = vpop.f32.mrf.mxu1 }
 0x11c   :  { %1165 = vst.msk [vmem:[%s2179_s3 + $0x30] sm:$0xf] %vm1152_vm1, %v1403_v15  ;;  %1197 = vst.msk [vmem:[%s2179_s3 + $0xb0] sm:$0xf] %vm1152_vm1, %v1435_v16  ;;  %v845_v21 = vmax.f32 %v629_v17, 0.0  ;;  %v877_v22 = vmax.f32 %v757_v18, 0.0 }
 0x11d   :  { %v633_v23 = vpop.f32.mrf.mxu0  ;;  %v761_v24 = vpop.f32.mrf.mxu1 }
 0x11e   :  { %v1404_v25 = vpack.c.bf16 %v845_v21, %v845_v21  ;;  %v1436_v26 = vpack.c.bf16 %v877_v22, %v877_v22  ;;  %v634_v27 = vadd.f32 %v1854_v10, %v633_v23  ;;  %v762_v28 = vadd.f32 %v1854_v10, %v761_v24 }
 0x11f   :  { %v635_v29 = vpop.f32.mrf.mxu0  ;;  %v763_v30 = vpop.f32.mrf.mxu1 }
 0x120   :  { %1166 = vst.msk [vmem:[%s2179_s3 + $0x34] sm:$0xf] %vm1152_vm1, %v1404_v25  ;;  %1198 = vst.msk [vmem:[%s2179_s3 + $0xb4] sm:$0xf] %vm1152_vm1, %v1436_v26  ;;  %v846_v31 = vmax.f32 %v634_v27, 0.0  ;;  %v878_v32 = vmax.f32 %v762_v28, 0.0 }
 0x121   :  { %v636_v33 = vpop.f32.mrf.mxu0  ;;  %v764_v34 = vpop.f32.mrf.mxu1 }
 0x122   :  { %v1405_v35 = vpack.c.bf16 %v846_v31, %v846_v31  ;;  %v1437_v36 = vpack.c.bf16 %v878_v32, %v878_v32  ;;  %v637_v37 = vadd.f32 %v1854_v10, %v636_v33  ;;  %v765_v38 = vadd.f32 %v1854_v10, %v764_v34 }
 0x123   :  { %v638_v39 = vpop.f32.mrf.mxu0  ;;  %v766_v40 = vpop.f32.mrf.mxu1 }
 0x124   :  { %1167 = vst.msk [vmem:[%s2179_s3 + $0x38] sm:$0xf] %vm1152_vm1, %v1405_v35  ;;  %1199 = vst.msk [vmem:[%s2179_s3 + $0xb8] sm:$0xf] %vm1152_vm1, %v1437_v36  ;;  %v847_v41 = vmax.f32 %v637_v37, 0.0  ;;  %v879_v42 = vmax.f32 %v765_v38, 0.0 }
 0x125   :  { %v641_v43 = vpop.f32.mrf.mxu0  ;;  %v769_v44 = vpop.f32.mrf.mxu1 }
 0x126   :  { %v1406_v45 = vpack.c.bf16 %v847_v41, %v847_v41  ;;  %v1438_v46 = vpack.c.bf16 %v879_v42, %v879_v42  ;;  %v642_v47 = vadd.f32 %v1854_v10, %v641_v43  ;;  %v770_v48 = vadd.f32 %v1854_v10, %v769_v44 }
 0x127   :  { %v643_v49 = vpop.f32.mrf.mxu0  ;;  %v771_v50 = vpop.f32.mrf.mxu1 }
 0x128   :  { %1168 = vst.msk [vmem:[%s2179_s3 + $0x3c] sm:$0xf] %vm1152_vm1, %v1406_v45  ;;  %1200 = vst.msk [vmem:[%s2179_s3 + $0xbc] sm:$0xf] %vm1152_vm1, %v1438_v46  ;;  %v848_v51 = vmax.f32 %v642_v47, 0.0  ;;  %v880_v52 = vmax.f32 %v770_v48, 0.0 }
 0x129   :  { %v644_v53 = vpop.f32.mrf.mxu0  ;;  %v772_v54 = vpop.f32.mrf.mxu1 }
 0x12a   :  { %v1407_v55 = vpack.c.bf16 %v848_v51, %v848_v51  ;;  %v1439_v56 = vpack.c.bf16 %v880_v52, %v880_v52  ;;  %v645_v57 = vadd.f32 %v1854_v10, %v644_v53  ;;  %v773_v58 = vadd.f32 %v1854_v10, %v772_v54 }
 0x12b   :  { %v646_v59 = vpop.f32.mrf.mxu0  ;;  %v774_v60 = vpop.f32.mrf.mxu1 }
 0x12c   :  { %1169 = vst.msk [vmem:[%s2179_s3 + $0x40] sm:$0xf] %vm1152_vm1, %v1407_v55  ;;  %1201 = vst.msk [vmem:[%s2179_s3 + $0xc0] sm:$0xf] %vm1152_vm1, %v1439_v56  ;;  %v849_v61 = vmax.f32 %v645_v57, 0.0  ;;  %v881_v62 = vmax.f32 %v773_v58, 0.0 }
 0x12d   :  { %v649_v63 = vpop.f32.mrf.mxu0  ;;  %v777_v0 = vpop.f32.mrf.mxu1 }
 0x12e   :  { %v1408_v1 = vpack.c.bf16 %v849_v61, %v849_v61  ;;  %v1440_v2 = vpack.c.bf16 %v881_v62, %v881_v62  ;;  %v650_v3 = vadd.f32 %v1854_v10, %v649_v63  ;;  %v778_v4 = vadd.f32 %v1854_v10, %v777_v0 }
 0x12f   :  { %v651_v5 = vpop.f32.mrf.mxu0  ;;  %v779_v6 = vpop.f32.mrf.mxu1 }
 0x130   :  { %1170 = vst.msk [vmem:[%s2179_s3 + $0x44] sm:$0xf] %vm1152_vm1, %v1408_v1  ;;  %1202 = vst.msk [vmem:[%s2179_s3 + $0xc4] sm:$0xf] %vm1152_vm1, %v1440_v2  ;;  %v850_v7 = vmax.f32 %v650_v3, 0.0  ;;  %v882_v8 = vmax.f32 %v778_v4, 0.0 }
 0x131   :  { %v652_v9 = vpop.f32.mrf.mxu0  ;;  %v780_v11 = vpop.f32.mrf.mxu1 }
 0x132   :  { %v1409_v12 = vpack.c.bf16 %v850_v7, %v850_v7  ;;  %v1441_v13 = vpack.c.bf16 %v882_v8, %v882_v8  ;;  %v653_v14 = vadd.f32 %v1854_v10, %v652_v9  ;;  %v781_v15 = vadd.f32 %v1854_v10, %v780_v11 }
 0x133   :  { %v654_v16 = vpop.f32.mrf.mxu0  ;;  %v782_v17 = vpop.f32.mrf.mxu1 }
 0x134   :  { %1171 = vst.msk [vmem:[%s2179_s3 + $0x48] sm:$0xf] %vm1152_vm1, %v1409_v12  ;;  %1203 = vst.msk [vmem:[%s2179_s3 + $0xc8] sm:$0xf] %vm1152_vm1, %v1441_v13  ;;  %v851_v18 = vmax.f32 %v653_v14, 0.0  ;;  %v883_v19 = vmax.f32 %v781_v15, 0.0 }
 0x135   :  { %v657_v20 = vpop.f32.mrf.mxu0  ;;  %v785_v21 = vpop.f32.mrf.mxu1 }
 0x136   :  { %v1410_v22 = vpack.c.bf16 %v851_v18, %v851_v18  ;;  %v1442_v23 = vpack.c.bf16 %v883_v19, %v883_v19  ;;  %v658_v24 = vadd.f32 %v1854_v10, %v657_v20  ;;  %v786_v25 = vadd.f32 %v1854_v10, %v785_v21 }
 0x137   :  { %v659_v26 = vpop.f32.mrf.mxu0  ;;  %v787_v27 = vpop.f32.mrf.mxu1 }
 0x138   :  { %1172 = vst.msk [vmem:[%s2179_s3 + $0x4c] sm:$0xf] %vm1152_vm1, %v1410_v22  ;;  %1204 = vst.msk [vmem:[%s2179_s3 + $0xcc] sm:$0xf] %vm1152_vm1, %v1442_v23  ;;  %v852_v28 = vmax.f32 %v658_v24, 0.0  ;;  %v884_v29 = vmax.f32 %v786_v25, 0.0 }
 0x139   :  { %v660_v30 = vpop.f32.mrf.mxu0  ;;  %v788_v31 = vpop.f32.mrf.mxu1 }
 0x13a   :  { %v1411_v32 = vpack.c.bf16 %v852_v28, %v852_v28  ;;  %v1443_v33 = vpack.c.bf16 %v884_v29, %v884_v29  ;;  %v661_v34 = vadd.f32 %v1854_v10, %v660_v30  ;;  %v789_v35 = vadd.f32 %v1854_v10, %v788_v31 }
 0x13b   :  { %v662_v36 = vpop.f32.mrf.mxu0  ;;  %v790_v37 = vpop.f32.mrf.mxu1 }
 0x13c   :  { %1173 = vst.msk [vmem:[%s2179_s3 + $0x50] sm:$0xf] %vm1152_vm1, %v1411_v32  ;;  %1205 = vst.msk [vmem:[%s2179_s3 + $0xd0] sm:$0xf] %vm1152_vm1, %v1443_v33  ;;  %v853_v38 = vmax.f32 %v661_v34, 0.0  ;;  %v885_v39 = vmax.f32 %v789_v35, 0.0 }
 0x13d   :  { %v665_v40 = vpop.f32.mrf.mxu0  ;;  %v793_v41 = vpop.f32.mrf.mxu1 }
 0x13e   :  { %v1412_v42 = vpack.c.bf16 %v853_v38, %v853_v38  ;;  %v1444_v43 = vpack.c.bf16 %v885_v39, %v885_v39  ;;  %v666_v44 = vadd.f32 %v1854_v10, %v665_v40  ;;  %v794_v45 = vadd.f32 %v1854_v10, %v793_v41 }
 0x13f   :  { %v667_v46 = vpop.f32.mrf.mxu0  ;;  %v795_v47 = vpop.f32.mrf.mxu1 }
 0x140   :  { %1174 = vst.msk [vmem:[%s2179_s3 + $0x54] sm:$0xf] %vm1152_vm1, %v1412_v42  ;;  %1206 = vst.msk [vmem:[%s2179_s3 + $0xd4] sm:$0xf] %vm1152_vm1, %v1444_v43  ;;  %v854_v48 = vmax.f32 %v666_v44, 0.0  ;;  %v886_v49 = vmax.f32 %v794_v45, 0.0 }
 0x141   :  { %v668_v50 = vpop.f32.mrf.mxu0  ;;  %v796_v51 = vpop.f32.mrf.mxu1 }
 0x142   :  { %v1413_v52 = vpack.c.bf16 %v854_v48, %v854_v48  ;;  %v1445_v53 = vpack.c.bf16 %v886_v49, %v886_v49  ;;  %v669_v54 = vadd.f32 %v1854_v10, %v668_v50  ;;  %v797_v55 = vadd.f32 %v1854_v10, %v796_v51 }
 0x143   :  { %v670_v56 = vpop.f32.mrf.mxu0  ;;  %v798_v57 = vpop.f32.mrf.mxu1 }
 0x144   :  { %1175 = vst.msk [vmem:[%s2179_s3 + $0x58] sm:$0xf] %vm1152_vm1, %v1413_v52  ;;  %1207 = vst.msk [vmem:[%s2179_s3 + $0xd8] sm:$0xf] %vm1152_vm1, %v1445_v53  ;;  %v855_v58 = vmax.f32 %v669_v54, 0.0  ;;  %v887_v59 = vmax.f32 %v797_v55, 0.0 }
 0x145   :  { %v673_v60 = vpop.f32.mrf.mxu0  ;;  %v801_v61 = vpop.f32.mrf.mxu1 }
 0x146   :  { %v1414_v62 = vpack.c.bf16 %v855_v58, %v855_v58  ;;  %v1446_v63 = vpack.c.bf16 %v887_v59, %v887_v59  ;;  %v674_v0 = vadd.f32 %v1854_v10, %v673_v60  ;;  %v802_v1 = vadd.f32 %v1854_v10, %v801_v61 }
 0x147   :  { %v675_v2 = vpop.f32.mrf.mxu0  ;;  %v803_v3 = vpop.f32.mrf.mxu1 }
 0x148   :  { %1176 = vst.msk [vmem:[%s2179_s3 + $0x5c] sm:$0xf] %vm1152_vm1, %v1414_v62  ;;  %1208 = vst.msk [vmem:[%s2179_s3 + $0xdc] sm:$0xf] %vm1152_vm1, %v1446_v63  ;;  %v856_v4 = vmax.f32 %v674_v0, 0.0  ;;  %v888_v5 = vmax.f32 %v802_v1, 0.0 }
 0x149   :  { %v676_v6 = vpop.f32.mrf.mxu0  ;;  %v804_v7 = vpop.f32.mrf.mxu1 }
 0x14a   :  { %v1415_v8 = vpack.c.bf16 %v856_v4, %v856_v4  ;;  %v1447_v9 = vpack.c.bf16 %v888_v5, %v888_v5  ;;  %v677_v11 = vadd.f32 %v1854_v10, %v676_v6  ;;  %v805_v12 = vadd.f32 %v1854_v10, %v804_v7 }
 0x14b   :  { %v678_v13 = vpop.f32.mrf.mxu0  ;;  %v806_v14 = vpop.f32.mrf.mxu1 }
 0x14c   :  { %1177 = vst.msk [vmem:[%s2179_s3 + $0x60] sm:$0xf] %vm1152_vm1, %v1415_v8  ;;  %1209 = vst.msk [vmem:[%s2179_s3 + $0xe0] sm:$0xf] %vm1152_vm1, %v1447_v9  ;;  %v857_v15 = vmax.f32 %v677_v11, 0.0  ;;  %v889_v16 = vmax.f32 %v805_v12, 0.0 }
 0x14d   :  { %v681_v17 = vpop.f32.mrf.mxu0  ;;  %v809_v18 = vpop.f32.mrf.mxu1 }
 0x14e   :  { %v1416_v19 = vpack.c.bf16 %v857_v15, %v857_v15  ;;  %v1448_v20 = vpack.c.bf16 %v889_v16, %v889_v16  ;;  %v682_v21 = vadd.f32 %v1854_v10, %v681_v17  ;;  %v810_v22 = vadd.f32 %v1854_v10, %v809_v18 }
 0x14f   :  { %v683_v23 = vpop.f32.mrf.mxu0  ;;  %v811_v24 = vpop.f32.mrf.mxu1 }
 0x150   :  { %1178 = vst.msk [vmem:[%s2179_s3 + $0x64] sm:$0xf] %vm1152_vm1, %v1416_v19  ;;  %1210 = vst.msk [vmem:[%s2179_s3 + $0xe4] sm:$0xf] %vm1152_vm1, %v1448_v20  ;;  %v858_v25 = vmax.f32 %v682_v21, 0.0  ;;  %v890_v26 = vmax.f32 %v810_v22, 0.0 }
 0x151   :  { %v684_v27 = vpop.f32.mrf.mxu0  ;;  %v812_v28 = vpop.f32.mrf.mxu1 }
 0x152   :  { %v1417_v29 = vpack.c.bf16 %v858_v25, %v858_v25  ;;  %v1449_v30 = vpack.c.bf16 %v890_v26, %v890_v26  ;;  %v685_v31 = vadd.f32 %v1854_v10, %v684_v27  ;;  %v813_v32 = vadd.f32 %v1854_v10, %v812_v28 }
 0x153   :  { %v686_v33 = vpop.f32.mrf.mxu0  ;;  %v814_v34 = vpop.f32.mrf.mxu1 }
 0x154   :  { %1179 = vst.msk [vmem:[%s2179_s3 + $0x68] sm:$0xf] %vm1152_vm1, %v1417_v29  ;;  %1211 = vst.msk [vmem:[%s2179_s3 + $0xe8] sm:$0xf] %vm1152_vm1, %v1449_v30  ;;  %v859_v35 = vmax.f32 %v685_v31, 0.0  ;;  %v891_v36 = vmax.f32 %v813_v32, 0.0 }
 0x155   :  { %v689_v37 = vpop.f32.mrf.mxu0  ;;  %v817_v38 = vpop.f32.mrf.mxu1 }
 0x156   :  { %v1418_v39 = vpack.c.bf16 %v859_v35, %v859_v35  ;;  %v1450_v40 = vpack.c.bf16 %v891_v36, %v891_v36  ;;  %v690_v41 = vadd.f32 %v1854_v10, %v689_v37  ;;  %v818_v42 = vadd.f32 %v1854_v10, %v817_v38 }
 0x157   :  { %v691_v43 = vpop.f32.mrf.mxu0  ;;  %v819_v44 = vpop.f32.mrf.mxu1 }
 0x158   :  { %1180 = vst.msk [vmem:[%s2179_s3 + $0x6c] sm:$0xf] %vm1152_vm1, %v1418_v39  ;;  %1212 = vst.msk [vmem:[%s2179_s3 + $0xec] sm:$0xf] %vm1152_vm1, %v1450_v40  ;;  %v860_v45 = vmax.f32 %v690_v41, 0.0  ;;  %v892_v46 = vmax.f32 %v818_v42, 0.0 }
 0x159   :  { %v692_v47 = vpop.f32.mrf.mxu0  ;;  %v820_v48 = vpop.f32.mrf.mxu1 }
 0x15a   :  { %v1419_v49 = vpack.c.bf16 %v860_v45, %v860_v45  ;;  %v1451_v50 = vpack.c.bf16 %v892_v46, %v892_v46  ;;  %v693_v51 = vadd.f32 %v1854_v10, %v692_v47  ;;  %v821_v52 = vadd.f32 %v1854_v10, %v820_v48 }
 0x15b   :  { %v694_v53 = vpop.f32.mrf.mxu0  ;;  %v822_v54 = vpop.f32.mrf.mxu1 }
 0x15c   :  { %1181 = vst.msk [vmem:[%s2179_s3 + $0x70] sm:$0xf] %vm1152_vm1, %v1419_v49  ;;  %1213 = vst.msk [vmem:[%s2179_s3 + $0xf0] sm:$0xf] %vm1152_vm1, %v1451_v50  ;;  %v861_v55 = vmax.f32 %v693_v51, 0.0  ;;  %v893_v56 = vmax.f32 %v821_v52, 0.0 }
 0x15d   :  { %v697_v57 = vpop.f32.mrf.mxu0  ;;  %v825_v58 = vpop.f32.mrf.mxu1 }
 0x15e   :  { %v1420_v59 = vpack.c.bf16 %v861_v55, %v861_v55  ;;  %v1452_v60 = vpack.c.bf16 %v893_v56, %v893_v56  ;;  %v698_v61 = vadd.f32 %v1854_v10, %v697_v57  ;;  %v826_v62 = vadd.f32 %v1854_v10, %v825_v58 }
 0x15f   :  { %v699_v63 = vpop.f32.mrf.mxu0  ;;  %v827_v0 = vpop.f32.mrf.mxu1 }
 0x160   :  { %1182 = vst.msk [vmem:[%s2179_s3 + $0x74] sm:$0xf] %vm1152_vm1, %v1420_v59  ;;  %1214 = vst.msk [vmem:[%s2179_s3 + $0xf4] sm:$0xf] %vm1152_vm1, %v1452_v60  ;;  %v862_v1 = vmax.f32 %v698_v61, 0.0  ;;  %v894_v2 = vmax.f32 %v826_v62, 0.0 }
 0x161   :  { %v700_v3 = vpop.f32.mrf.mxu0  ;;  %v828_v4 = vpop.f32.mrf.mxu1 }
 0x162   :  { %v1421_v5 = vpack.c.bf16 %v862_v1, %v862_v1  ;;  %v1453_v6 = vpack.c.bf16 %v894_v2, %v894_v2  ;;  %v701_v7 = vadd.f32 %v1854_v10, %v700_v3  ;;  %v829_v8 = vadd.f32 %v1854_v10, %v828_v4 }
 0x163   :  { %v702_v9 = vpop.f32.mrf.mxu0  ;;  %v830_v11 = vpop.f32.mrf.mxu1 }
 0x164   :  { %1183 = vst.msk [vmem:[%s2179_s3 + $0x78] sm:$0xf] %vm1152_vm1, %v1421_v5  ;;  %1215 = vst.msk [vmem:[%s2179_s3 + $0xf8] sm:$0xf] %vm1152_vm1, %v1453_v6  ;;  %v863_v12 = vmax.f32 %v701_v7, 0.0  ;;  %v895_v13 = vmax.f32 %v829_v8, 0.0 }
 0x166   :  { %v1422_v14 = vpack.c.bf16 %v863_v12, %v863_v12  ;;  %v1454_v15 = vpack.c.bf16 %v895_v13, %v895_v13 }
 0x168   :  { %1184 = vst.msk [vmem:[%s2179_s3 + $0x7c] sm:$0xf] %vm1152_vm1, %v1422_v14  ;;  %1216 = vst.msk [vmem:[%s2179_s3 + $0xfc] sm:$0xf] %vm1152_vm1, %v1454_v15 }

// kernel: omdet_v2_turbo_forward.13
= control target key start
LH: loop header
LB: loop body
LE: loop exit
PB: predicated region body
PF: predicated region fallthrough
CT: control target
= control target key end

     0   :  { %vm318_vm0 = vcmask 261120   ;;  %vm617_vm1 = vcmask 519168   ;;  %s1144_s1 = inlined_call_operand.vmem [shape: bf16[288,64], index: 1, kind: input, shape index: {}]   ;;  %s1145_s0 = inlined_call_operand.vmem [shape: bf16[128,288], index: 0, kind: input, shape index: {}]   ;;  %s1146_s2 = inlined_call_operand.vmem [shape: f32[1,64], index: 2, kind: input, shape index: {}]   ;;  %s1147_s3 = inlined_call_operand.vmem [shape: bf16[128,64], index: 3, kind: output, shape index: {}]  }
   0x1   :  { %v831_v0 = vld [vmem:[%s1144_s1 + $0x78] sm:$0xff]   ;;  %v833_v2 = vld [vmem:[%s1144_s1 + $0x70] sm:$0xff]   ;;  %v835_v4 = vld [vmem:[%s1144_s1 + $0x68] sm:$0xff]  }
   0x2   :  { %v832_v1 = vld [vmem:[%s1144_s1 + $0x38] sm:$0xff]   ;;  %721 = vmatprep.subr.bf16.mxu0 %v831_v0  ;;  %815 = vmatprep.subr.bf16.mxu1 %v831_v0  ;;  %v834_v3 = vld [vmem:[%s1144_s1 + $0x30] sm:$0xff]   ;;  %v836_v5 = vld [vmem:[%s1144_s1 + $0x28] sm:$0xff]  }
   0x3   :  { %722 = vmatpush3.bf16.msra.mxu0 %v832_v1  ;;  %823 = vmatpush3.bf16.msra.mxu1 %v832_v1  ;;  %v837_v6 = vld [vmem:[%s1144_s1 + $0x60] sm:$0xff]   ;;  %v839_v8 = vld [vmem:[%s1144_s1 + $0x58] sm:$0xff]   ;;  %v841_v10 = vld [vmem:[%s1144_s1 + $0x50] sm:$0xff]  }
   0x4   :  { %723 = vmatprep.subr.bf16.mxu0 %v833_v2  ;;  %816 = vmatprep.subr.bf16.mxu1 %v833_v2  ;;  %v838_v7 = vld [vmem:[%s1144_s1 + $0x20] sm:$0xff]   ;;  %v840_v9 = vld [vmem:[%s1144_s1 + $0x18] sm:$0xff]   ;;  %v842_v13 = vld [vmem:[%s1144_s1 + $0x10] sm:$0xff]  }
   0x5   :  { %v849_v11 = vld [vmem:[%s1145_s0 + $0x4] ss:$12 sps:$4 sm:$0xff]   ;;  %v852_v12 = vld [vmem:[%s1145_s0 + $0x94] ss:$12 sps:$4 sm:$0xff]   ;;  %v843_v14 = vld [vmem:[%s1144_s1 + $0x48] sm:$0xff]  }
   0x6   :  { %375 = vmatprep.mubr.bf16.mxu0 %v849_v11  ;;  %423 = vmatprep.mubr.bf16.mxu1 %v852_v12  ;;  %v844_v15 = vld [vmem:[%s1144_s1 + $0x8] sm:$0xff]   ;;  %v845_v16 = vld [vmem:[%s1144_s1 + $0x40] sm:$0xff]   ;;  %v850_v20 = vld [vmem:[%s1145_s0 + $0x90] ss:$12 sps:$4 sm:$0xff]  }
   0x7   :  { %724 = vmatpush3.bf16.msra.mxu0 %v834_v3  ;;  %824 = vmatpush3.bf16.msra.mxu1 %v834_v3  ;;  %v846_v17 = vld [vmem:[%s1144_s1] sm:$0xff]   ;;  %v853_v19 = vld [vmem:[%s1144_s1 + $0x88] sm:$0xff]   ;;  %v864_v28 = vld [vmem:[%s1145_s0 + $0x30] ss:$12 sps:$4 sm:$0xff]  }
   0x8   :  { %725 = vmatprep.subr.bf16.mxu0 %v835_v4  ;;  %817 = vmatprep.subr.bf16.mxu1 %v835_v4  ;;  %v847_v18 = vld [vmem:[%s1145_s0] ss:$12 sps:$4 sm:$0xff]   ;;  %v854_v21 = vld [vmem:[%s1145_s0 + $0x1c] ss:$12 sps:$4 sm:$0xff]   ;;  %v858_v24 = vld [vmem:[%s1145_s0 + $0x18] ss:$12 sps:$4 sm:$0xff]  }
   0x9   :  { %v856_v22 = vld [vmem:[%s1145_s0 + $0xac] ss:$12 sps:$4 sm:$0xff]   ;;  %v860_v23 = vld [vmem:[%s1144_s1 + $0x80] sm:$0xff]   ;;  %v859_v25 = vld [vmem:[%s1145_s0 + $0xa8] ss:$12 sps:$4 sm:$0xff]  }
   0xa   :  { %v861_v26 = vld [vmem:[%s1145_s0 + $0x34] ss:$12 sps:$4 sm:$0xff]   ;;  %v866_v30 = vld [vmem:[%s1145_s0 + $0x4c] ss:$12 sps:$4 sm:$0xff]   ;;  %v870_v33 = vld [vmem:[%s1145_s0 + $0x50] ss:$12 sps:$4 sm:$0xff]  }
   0xb   :  { %726 = vmatpush3.bf16.msra.mxu0 %v836_v5  ;;  %825 = vmatpush3.bf16.msra.mxu1 %v836_v5  ;;  %v863_v27 = vld [vmem:[%s1145_s0 + $0x8] ss:$12 sps:$4 sm:$0xff]   ;;  %v865_v29 = vld [vmem:[%s1145_s0 + $0x20] ss:$12 sps:$4 sm:$0xff]   ;;  %v868_v31 = vld [vmem:[%s1145_s0 + $0x38] ss:$12 sps:$4 sm:$0xff]  }
   0xc   :  { %727 = vmatprep.subr.bf16.mxu0 %v837_v6  ;;  %818 = vmatprep.subr.bf16.mxu1 %v837_v6  ;;  %v869_v32 = vld [vmem:[%s1145_s0 + $0x48] ss:$12 sps:$4 sm:$0xff]   ;;  %v871_v34 = vld [vmem:[%s1145_s0 + $0x64] ss:$12 sps:$4 sm:$0xff]   ;;  %v874_v36 = vld [vmem:[%s1145_s0 + $0x60] ss:$12 sps:$4 sm:$0xff]  }
   0xd   :  { %v873_v35 = vld [vmem:[%s1145_s0 + $0x68] ss:$12 sps:$4 sm:$0xff]   ;;  %v875_v37 = vld [vmem:[%s1145_s0 + $0x80] ss:$12 sps:$4 sm:$0xff]   ;;  %v878_v39 = vld [vmem:[%s1145_s0 + $0x98] ss:$12 sps:$4 sm:$0xff]  }
   0xe   :  { %v876_v38 = vld [vmem:[%s1145_s0 + $0x7c] ss:$12 sps:$4 sm:$0xff]   ;;  %v879_v40 = vld [vmem:[%s1145_s0 + $0x78] ss:$12 sps:$4 sm:$0xff]   ;;  %v1054_v60 = vld [vmem:[%s1146_s2] ss:$0 sm:$0xff] }
   0xf   :  { %728 = vmatpush3.bf16.msra.mxu0 %v838_v7  ;;  %826 = vmatpush3.bf16.msra.mxu1 %v838_v7  ;;  %v880_v41 = vld [vmem:[%s1145_s0 + $0xb0] ss:$12 sps:$4 sm:$0xff]  }
  0x10   :  { %729 = vmatprep.subr.bf16.mxu0 %v839_v8  ;;  %819 = vmatprep.subr.bf16.mxu1 %v839_v8 }
  0x13   :  { %730 = vmatpush3.bf16.msra.mxu0 %v840_v9  ;;  %827 = vmatpush3.bf16.msra.mxu1 %v840_v9 }
  0x14   :  { %731 = vmatprep.subr.bf16.mxu0 %v841_v10  ;;  %820 = vmatprep.subr.bf16.mxu1 %v841_v10 }
  0x17   :  { %732 = vmatpush3.bf16.msra.mxu0 %v842_v13  ;;  %828 = vmatpush3.bf16.msra.mxu1 %v842_v13 }
  0x18   :  { %733 = vmatprep.subr.bf16.mxu0 %v843_v14  ;;  %821 = vmatprep.subr.bf16.mxu1 %v843_v14 }
  0x1b   :  { %734 = vmatpush3.bf16.msra.mxu0 %v844_v15  ;;  %829 = vmatpush3.bf16.msra.mxu1 %v844_v15 }
  0x1c   :  { %735 = vmatprep.subr.bf16.mxu0 %v845_v16  ;;  %822 = vmatprep.subr.bf16.mxu1 %v845_v16 }
  0x1f   :  { %736 = vmatpush3.bf16.msra.mxu0 %v846_v17  ;;  %830 = vmatpush3.bf16.msra.mxu1 %v846_v17 }
  0x20   :  { %795 = vmatprep.subr.bf16.mxu1 %v853_v19 }
  0x22   :  { %376 = vmatmul.mubr.bf16.vlgmr.msra.gmra.mxu0 %v847_v18  ;;  %424 = vmatmul.mubr.bf16.vlgmr.msra.gmra.mxu1 %v850_v20 }
  0x23   :  { %796 = vmatpush3.bf16.msra.mxu1 %v853_v19  ;;  %383 = vmatprep.mubr.bf16.mxu0 %v854_v21 }
  0x24   :  { %431 = vmatprep.mubr.bf16.mxu1 %v856_v22  ;;  %797 = vmatprep.subr.bf16.mxu1 %v860_v23 }
  0x27   :  { %798 = vmatpush3.bf16.msra.mxu1 %v860_v23 }
  0x2a   :  { %384 = vmatmul.mubr.bf16.gmra.mxu0 %v858_v24  ;;  %432 = vmatmul.mubr.bf16.gmra.mxu1 %v859_v25 }
  0x2b   :  { %391 = vmatprep.mubr.bf16.mxu0 %v861_v26  ;;  %799 = vmatprep.mubr.msk.bf16.mxu1 %vm318_vm0, %v863_v27 }
  0x32   :  { %392 = vmatmul.mubr.bf16.gmra.mxu0 %v864_v28  ;;  %800 = vmatmul.mubr.msk.bf16.vlgmr.msra.gmra.mxu1 %vm318_vm0, %v865_v29 }
  0x33   :  { %399 = vmatprep.mubr.bf16.mxu0 %v866_v30  ;;  %803 = vmatprep.mubr.msk.bf16.mxu1 %vm318_vm0, %v868_v31 }
  0x3a   :  { %400 = vmatmul.mubr.bf16.gmra.mxu0 %v869_v32  ;;  %804 = vmatmul.mubr.msk.bf16.gmra.mxu1 %vm318_vm0, %v870_v33 }
  0x3b   :  { %407 = vmatprep.mubr.bf16.mxu0 %v871_v34  ;;  %807 = vmatprep.mubr.msk.bf16.mxu1 %vm318_vm0, %v873_v35 }
  0x42   :  { %408 = vmatmul.mubr.bf16.gmra.mxu0 %v874_v36  ;;  %808 = vmatmul.mubr.msk.bf16.gmra.mxu1 %vm318_vm0, %v875_v37 }
  0x43   :  { %415 = vmatprep.mubr.bf16.mxu0 %v876_v38  ;;  %811 = vmatprep.mubr.msk.bf16.mxu1 %vm318_vm0, %v878_v39 }
  0x4a   :  { %416 = vmatmul.mubr.bf16.gmra.mxu0 %v879_v40  ;;  %812 = vmatmul.mubr.msk.bf16.gmra.mxu1 %vm318_vm0, %v880_v41 }
  0xe2   :  { %v737_v42 = vpop.f32.mrf.mxu0  ;;  %v1035_v43 = vpop.f32.mrf.mxu1 }
  0xe4   :  { %v738_v44 = vpop.f32.mrf.mxu0  ;;  %v1037_v45 = vpop.f32.mrf.mxu1 }
  0xe5   :  { %v739_v57 = vadd.f32 %v738_v44, %v737_v42 }
  0xe6   :  { %v740_v46 = vpop.f32.mrf.mxu0  ;;  %v1039_v47 = vpop.f32.mrf.mxu1 }
  0xe7   :  { %v378_v3 = vadd.f32 %v739_v57, %v1054_v60 }
  0xe8   :  { %v741_v48 = vpop.f32.mrf.mxu0  ;;  %v1041_v49 = vpop.f32.mrf.mxu1 }
  0xe9   :  { %v742_v63 = vadd.f32 %v741_v48, %v740_v46 }
  0xea   :  { %v743_v50 = vpop.f32.mrf.mxu0  ;;  %v1043_v51 = vpop.f32.mrf.mxu1 }
  0xeb   :  { %v381_v11 = vadd.f32 %v742_v63, %v1054_v60 }
  0xec   :  { %v744_v52 = vpop.f32.mrf.mxu0  ;;  %v1045_v53 = vpop.f32.mrf.mxu1 }
  0xed   :  { %v745_v54 = vadd.f32 %v744_v52, %v743_v50 }
  0xee   :  { %v746_v55 = vpop.f32.mrf.mxu0  ;;  %v1047_v56 = vpop.f32.mrf.mxu1 }
  0xef   :  { %v386_v62 = vadd.f32 %v745_v54, %v1054_v60  ;;  %v781_v54 = vadd.f32 %v1045_v53, %v1043_v51  ;;  %v775_v53 = vadd.f32 %v1037_v45, %v1035_v43 }
  0xf0   :  { %v747_v58 = vpop.f32.mrf.mxu0  ;;  %v1049_v59 = vpop.f32.mrf.mxu1 }
  0xf1   :  { %v748_v61 = vadd.f32 %v747_v58, %v746_v55 }
  0xf2   :  { %v749_v0 = vpop.f32.mrf.mxu0  ;;  %v801_v1 = vpop.f32.mrf.mxu1 }
  0xf3   :  { %v483_v2 = vadd.f32 %v801_v1, %v386_v62  ;;  %v389_v8 = vadd.f32 %v748_v61, %v1054_v60 }
  0xf4   :  { %v750_v4 = vpop.f32.mrf.mxu0  ;;  %v474_v5 = vpop.f32.mrf.mxu1 }
  0xf5   :  { %v539_v6 = vmax.f32 %v483_v2, 0.0  ;;  %v475_v7 = vadd.f32 %v474_v5, %v378_v3  ;;  %v751_v13 = vadd.f32 %v750_v4, %v749_v0  ;;  %v784_v3 = vadd.f32 %v1049_v59, %v1047_v56 }
  0xf6   :  { %v752_v9 = vpop.f32.mrf.mxu0  ;;  %v802_v10 = vpop.f32.mrf.mxu1  ;;  %v778_v56 = vadd.f32 %v1041_v49, %v1039_v47 }
  0xf7   :  { %v707_v12 = vpack.c.bf16 %v539_v6, %v539_v6  ;;  %v537_v14 = vmax.f32 %v475_v7, 0.0  ;;  %v486_v15 = vadd.f32 %v802_v10, %v389_v8  ;;  %v394_v26 = vadd.f32 %v751_v13, %v1054_v60 }
  0xf8   :  { %v753_v16 = vpop.f32.mrf.mxu0  ;;  %v477_v17 = vpop.f32.mrf.mxu1  ;;  %v426_v13 = vadd.f32 %v775_v53, %v1054_v60 }
  0xf9   :  { %620 = vst.msk [vmem:[%s1147_s3 + $0x8] sm:$0xf] %vm617_vm1, %v707_v12  ;;  %v705_v18 = vpack.c.bf16 %v537_v14, %v537_v14  ;;  %v540_v19 = vmax.f32 %v486_v15, 0.0  ;;  %v478_v20 = vadd.f32 %v477_v17, %v381_v11  ;;  %v754_v24 = vadd.f32 %v753_v16, %v752_v9 }
  0xfa   :  { %v755_v21 = vpop.f32.mrf.mxu0  ;;  %v805_v22 = vpop.f32.mrf.mxu1  ;;  %v434_v9 = vadd.f32 %v781_v54, %v1054_v60  ;;  %v437_v15 = vadd.f32 %v784_v3, %v1054_v60 }
  0xfb   :  { %618 = vst.msk [vmem:[%s1147_s3] sm:$0xf] %vm617_vm1, %v705_v18  ;;  %v708_v23 = vpack.c.bf16 %v540_v19, %v540_v19  ;;  %v538_v25 = vmax.f32 %v478_v20, 0.0  ;;  %v397_v36 = vadd.f32 %v754_v24, %v1054_v60 }
  0xfc   :  { %v756_v27 = vpop.f32.mrf.mxu0  ;;  %v490_v28 = vpop.f32.mrf.mxu1 }
  0xfd   :  { %621 = vst.msk [vmem:[%s1147_s3 + $0xc] sm:$0xf] %vm617_vm1, %v708_v23  ;;  %v706_v29 = vpack.c.bf16 %v538_v25, %v538_v25  ;;  %v757_v30 = vadd.f32 %v756_v27, %v755_v21  ;;  %v491_v31 = vadd.f32 %v490_v28, %v394_v26  ;;  %v429_v27 = vadd.f32 %v778_v56, %v1054_v60 }
  0xfe   :  { %v758_v32 = vpop.f32.mrf.mxu0  ;;  %v806_v33 = vpop.f32.mrf.mxu1 }
  0xff   :  { %619 = vst.msk [vmem:[%s1147_s3 + $0x4] sm:$0xf] %vm617_vm1, %v706_v29  ;;  %v402_v34 = vadd.f32 %v757_v30, %v1054_v60  ;;  %v541_v35 = vmax.f32 %v491_v31, 0.0 }
 0x100   :  { %v759_v37 = vpop.f32.mrf.mxu0  ;;  %v493_v38 = vpop.f32.mrf.mxu1 }
 0x101   :  { %v499_v39 = vadd.f32 %v805_v22, %v402_v34  ;;  %v709_v40 = vpack.c.bf16 %v541_v35, %v541_v35  ;;  %v760_v41 = vadd.f32 %v759_v37, %v758_v32  ;;  %v494_v42 = vadd.f32 %v493_v38, %v397_v36 }
 0x102   :  { %v761_v44 = vpop.f32.mrf.mxu0  ;;  %v809_v46 = vpop.f32.mrf.mxu1 }
 0x103   :  { %v543_v48 = vmax.f32 %v499_v39, 0.0  ;;  %622 = vst.msk [vmem:[%s1147_s3 + $0x10] sm:$0xf] %vm617_vm1, %v709_v40  ;;  %v405_v50 = vadd.f32 %v760_v41, %v1054_v60  ;;  %v542_v52 = vmax.f32 %v494_v42, 0.0 }
 0x104   :  { %v762_v55 = vpop.f32.mrf.mxu0  ;;  %v506_v57 = vpop.f32.mrf.mxu1 }
 0x105   :  { %v711_v58 = vpack.c.bf16 %v543_v48, %v543_v48  ;;  %v502_v61 = vadd.f32 %v806_v33, %v405_v50  ;;  %v710_v62 = vpack.c.bf16 %v542_v52, %v542_v52  ;;  %v763_v63 = vadd.f32 %v762_v55, %v761_v44 }
 0x106   :  { %v764_v0 = vpop.f32.mrf.mxu0  ;;  %v810_v1 = vpop.f32.mrf.mxu1 }
 0x107   :  { %624 = vst.msk [vmem:[%s1147_s3 + $0x18] sm:$0xf] %vm617_vm1, %v711_v58  ;;  %v544_v2 = vmax.f32 %v502_v61, 0.0  ;;  %623 = vst.msk [vmem:[%s1147_s3 + $0x14] sm:$0xf] %vm617_vm1, %v710_v62  ;;  %v410_v51 = vadd.f32 %v763_v63, %v1054_v60 }
 0x108   :  { %v765_v4 = vpop.f32.mrf.mxu0  ;;  %v509_v5 = vpop.f32.mrf.mxu1 }
 0x109   :  { %v712_v6 = vpack.c.bf16 %v544_v2, %v544_v2  ;;  %v507_v7 = vadd.f32 %v506_v57, %v410_v51  ;;  %v766_v8 = vadd.f32 %v765_v4, %v764_v0 }
 0x10a   :  { %v767_v10 = vpop.f32.mrf.mxu0  ;;  %v813_v11 = vpop.f32.mrf.mxu1 }
 0x10b   :  { %625 = vst.msk [vmem:[%s1147_s3 + $0x1c] sm:$0xf] %vm617_vm1, %v712_v6  ;;  %v545_v12 = vmax.f32 %v507_v7, 0.0  ;;  %v413_v43 = vadd.f32 %v766_v8, %v1054_v60  ;;  %v531_v45 = vadd.f32 %v813_v11, %v434_v9 }
 0x10c   :  { %v768_v59 = vpop.f32.mrf.mxu0  ;;  %v522_v14 = vpop.f32.mrf.mxu1 }
 0x10d   :  { %v713_v16 = vpack.c.bf16 %v545_v12, %v545_v12  ;;  %v510_v17 = vadd.f32 %v509_v5, %v413_v43  ;;  %v551_v18 = vmax.f32 %v531_v45, 0.0  ;;  %v769_v19 = vadd.f32 %v768_v59, %v767_v10 }
 0x10e   :  { %v523_v20 = vadd.f32 %v522_v14, %v426_v13  ;;  %v770_v21 = vpop.f32.mrf.mxu0  ;;  %v814_v22 = vpop.f32.mrf.mxu1 }
 0x10f   :  { %626 = vst.msk [vmem:[%s1147_s3 + $0x20] sm:$0xf] %vm617_vm1, %v713_v16  ;;  %v546_v23 = vmax.f32 %v510_v17, 0.0  ;;  %v719_v47 = vpack.c.bf16 %v551_v18, %v551_v18  ;;  %v418_v49 = vadd.f32 %v769_v19, %v1054_v60  ;;  %v534_v24 = vadd.f32 %v814_v22, %v437_v15 }
 0x110   :  { %v549_v25 = vmax.f32 %v523_v20, 0.0  ;;  %v771_v26 = vpop.f32.mrf.mxu0  ;;  %v525_v28 = vpop.f32.mrf.mxu1 }
 0x111   :  { %v714_v29 = vpack.c.bf16 %v546_v23, %v546_v23  ;;  %632 = vst.msk [vmem:[%s1147_s3 + $0x38] sm:$0xf] %vm617_vm1, %v719_v47  ;;  %v515_v30 = vadd.f32 %v809_v46, %v418_v49  ;;  %v552_v31 = vmax.f32 %v534_v24, 0.0  ;;  %v772_v32 = vadd.f32 %v771_v26, %v770_v21 }
 0x112   :  { %v717_v33 = vpack.c.bf16 %v549_v25, %v549_v25  ;;  %v526_v34 = vadd.f32 %v525_v28, %v429_v27 }
 0x113   :  { %627 = vst.msk [vmem:[%s1147_s3 + $0x24] sm:$0xf] %vm617_vm1, %v714_v29  ;;  %v547_v35 = vmax.f32 %v515_v30, 0.0  ;;  %v720_v36 = vpack.c.bf16 %v552_v31, %v552_v31  ;;  %v421_v37 = vadd.f32 %v772_v32, %v1054_v60 }
 0x114   :  { %630 = vst.msk [vmem:[%s1147_s3 + $0x30] sm:$0xf] %vm617_vm1, %v717_v33  ;;  %v550_v38 = vmax.f32 %v526_v34, 0.0 }
 0x115   :  { %v715_v39 = vpack.c.bf16 %v547_v35, %v547_v35  ;;  %633 = vst.msk [vmem:[%s1147_s3 + $0x3c] sm:$0xf] %vm617_vm1, %v720_v36  ;;  %v518_v40 = vadd.f32 %v810_v1, %v421_v37 }
 0x116   :  { %v718_v41 = vpack.c.bf16 %v550_v38, %v550_v38 }
 0x117   :  { %628 = vst.msk [vmem:[%s1147_s3 + $0x28] sm:$0xf] %vm617_vm1, %v715_v39  ;;  %v548_v60 = vmax.f32 %v518_v40, 0.0 }
 0x118   :  { %631 = vst.msk [vmem:[%s1147_s3 + $0x34] sm:$0xf] %vm617_vm1, %v718_v41 }
 0x119   :  { %v716_v42 = vpack.c.bf16 %v548_v60, %v548_v60 }
 0x11b   :  { %629 = vst.msk [vmem:[%s1147_s3 + $0x2c] sm:$0xf] %vm617_vm1, %v716_v42 }

// kernel: omdet_v2_turbo_forward.14
= control target key start
LH: loop header
LB: loop body
LE: loop exit
PB: predicated region body
PF: predicated region fallthrough
CT: control target
= control target key end

     0   :  { %vm372_vm0 = vcmask 523264   ;;  %s913_s1 = inlined_call_operand.vmem [shape: bf16[576,128], index: 1, kind: input, shape index: {}]   ;;  %s914_s0 = inlined_call_operand.vmem [shape: bf16[32,576], index: 0, kind: input, shape index: {}]   ;;  %s915_s2 = inlined_call_operand.vmem [shape: f32[1,128], index: 2, kind: input, shape index: {}]   ;;  %s916_s3 = inlined_call_operand.vmem [shape: bf16[32,128], index: 3, kind: output, shape index: {}]  }
   0x1   :  { %v696_v0 = vld [vmem:[%s913_s1 + $0x78] sm:$0xff]   ;;  %v700_v4 = vld [vmem:[%s913_s1 + $0x70] sm:$0xff]   ;;  %v704_v8 = vld [vmem:[%s913_s1 + $0x68] sm:$0xff]  }
   0x2   :  { %v697_v1 = vld [vmem:[%s913_s1 + $0xf8] sm:$0xff]   ;;  %622 = vmatprep.subr.bf16.mxu0 %v696_v0  ;;  %v701_v5 = vld [vmem:[%s913_s1 + $0xf0] sm:$0xff]   ;;  %v705_v9 = vld [vmem:[%s913_s1 + $0xe8] sm:$0xff]  }
   0x3   :  { %v698_v2 = vld [vmem:[%s913_s1 + $0x38] sm:$0xff]   ;;  %650 = vmatprep.subr.bf16.mxu1 %v697_v1  ;;  %v702_v6 = vld [vmem:[%s913_s1 + $0x30] sm:$0xff]   ;;  %v706_v10 = vld [vmem:[%s913_s1 + $0x28] sm:$0xff]  }
   0x4   :  { %v699_v3 = vld [vmem:[%s913_s1 + $0xb8] sm:$0xff]   ;;  %623 = vmatpush3.bf16.msra.mxu0 %v698_v2  ;;  %v703_v7 = vld [vmem:[%s913_s1 + $0xb0] sm:$0xff]   ;;  %v707_v11 = vld [vmem:[%s913_s1 + $0xa8] sm:$0xff]  }
   0x5   :  { %651 = vmatpush3.bf16.msra.mxu1 %v699_v3  ;;  %624 = vmatprep.subr.bf16.mxu0 %v700_v4  ;;  %v708_v12 = vld [vmem:[%s913_s1 + $0x60] sm:$0xff]   ;;  %v712_v16 = vld [vmem:[%s913_s1 + $0x58] sm:$0xff]   ;;  %v716_v20 = vld [vmem:[%s913_s1 + $0x50] sm:$0xff]  }
   0x6   :  { %652 = vmatprep.subr.bf16.mxu1 %v701_v5  ;;  %v709_v13 = vld [vmem:[%s913_s1 + $0xe0] sm:$0xff]   ;;  %v713_v17 = vld [vmem:[%s913_s1 + $0xd8] sm:$0xff]   ;;  %v717_v21 = vld [vmem:[%s913_s1 + $0xd0] sm:$0xff]  }
   0x7   :  { %v710_v14 = vld [vmem:[%s913_s1 + $0x20] sm:$0xff]   ;;  %v714_v18 = vld [vmem:[%s913_s1 + $0x18] sm:$0xff]   ;;  %v718_v22 = vld [vmem:[%s913_s1 + $0x10] sm:$0xff]  }
   0x8   :  { %625 = vmatpush3.bf16.msra.mxu0 %v702_v6  ;;  %v711_v15 = vld [vmem:[%s913_s1 + $0xa0] sm:$0xff]   ;;  %v715_v19 = vld [vmem:[%s913_s1 + $0x98] sm:$0xff]   ;;  %v719_v23 = vld [vmem:[%s913_s1 + $0x90] sm:$0xff]  }
   0x9   :  { %653 = vmatpush3.bf16.msra.mxu1 %v703_v7  ;;  %626 = vmatprep.subr.bf16.mxu0 %v704_v8  ;;  %v720_v24 = vld [vmem:[%s913_s1 + $0x48] sm:$0xff]   ;;  %v724_v28 = vld [vmem:[%s913_s1 + $0x40] sm:$0xff]   ;;  %v734_v36 = vld [vmem:[%s913_s1 + $0x118] sm:$0xff]  }
   0xa   :  { %654 = vmatprep.subr.bf16.mxu1 %v705_v9  ;;  %v721_v25 = vld [vmem:[%s913_s1 + $0xc8] sm:$0xff]   ;;  %v725_v29 = vld [vmem:[%s913_s1 + $0xc0] sm:$0xff]   ;;  %v735_v37 = vld [vmem:[%s913_s1 + $0x110] sm:$0xff]  }
   0xb   :  { %v722_v26 = vld [vmem:[%s913_s1 + $0x8] sm:$0xff]   ;;  %v726_v30 = vld [vmem:[%s913_s1] sm:$0xff]  }
   0xc   :  { %627 = vmatpush3.bf16.msra.mxu0 %v706_v10  ;;  %v723_v27 = vld [vmem:[%s913_s1 + $0x88] sm:$0xff]   ;;  %v727_v31 = vld [vmem:[%s913_s1 + $0x80] sm:$0xff]  }
   0xd   :  { %655 = vmatpush3.bf16.msra.mxu1 %v707_v11  ;;  %628 = vmatprep.subr.bf16.mxu0 %v708_v12  ;;  %v728_v32 = vld [vmem:[%s914_s0] ss:$20 sps:$4 sm:$0xff]   ;;  %v730_v33 = vld [vmem:[%s914_s0 + $0x4] ss:$20 sps:$4 sm:$0xff]   ;;  %v731_v34 = vld [vmem:[%s914_s0 + $0x8] ss:$20 sps:$4 sm:$0xff]  }
   0xe   :  { %656 = vmatprep.subr.bf16.mxu1 %v709_v13  ;;  %v733_v35 = vld [vmem:[%s914_s0 + $0xc] ss:$20 sps:$4 sm:$0xff]   ;;  %411 = vmatprep.mubr.bf16.mxu0 %v730_v33  ;;  %v738_v39 = vld [vmem:[%s914_s0 + $0x34] ss:$20 sps:$4 sm:$0xff]   ;;  %v741_v42 = vld [vmem:[%s914_s0 + $0x30] ss:$20 sps:$4 sm:$0xff]  }
   0xf   :  { %460 = vmatprep.mubr.bf16.mxu1 %v733_v35  ;;  %v736_v38 = vld [vmem:[%s914_s0 + $0x2c] ss:$20 sps:$4 sm:$0xff]   ;;  %v740_v40 = vld [vmem:[%s914_s0 + $0x28] ss:$20 sps:$4 sm:$0xff]   ;;  %v744_v43 = vld [vmem:[%s914_s0 + $0x10] ss:$20 sps:$4 sm:$0xff]  }
  0x10   :  { %629 = vmatpush3.bf16.msra.mxu0 %v710_v14  ;;  %v742_v41 = vld [vmem:[%s913_s1 + $0x108] sm:$0xff]   ;;  %v743_v44 = vld [vmem:[%s913_s1 + $0x100] sm:$0xff]  }
  0x11   :  { %657 = vmatpush3.bf16.msra.mxu1 %v711_v15  ;;  %630 = vmatprep.subr.bf16.mxu0 %v712_v16  ;;  %v745_v45 = vld [vmem:[%s914_s0 + $0x38] ss:$20 sps:$4 sm:$0xff]   ;;  %v554_v59 = vld [vmem:[%s915_s2] ss:$0 sm:$0xff] }
  0x12   :  { %658 = vmatprep.subr.bf16.mxu1 %v713_v17 }
  0x14   :  { %631 = vmatpush3.bf16.msra.mxu0 %v714_v18 }
  0x15   :  { %659 = vmatpush3.bf16.msra.mxu1 %v715_v19  ;;  %632 = vmatprep.subr.bf16.mxu0 %v716_v20 }
  0x16   :  { %660 = vmatprep.subr.bf16.mxu1 %v717_v21 }
  0x18   :  { %633 = vmatpush3.bf16.msra.mxu0 %v718_v22 }
  0x19   :  { %661 = vmatpush3.bf16.msra.mxu1 %v719_v23  ;;  %634 = vmatprep.subr.bf16.mxu0 %v720_v24 }
  0x1a   :  { %662 = vmatprep.subr.bf16.mxu1 %v721_v25 }
  0x1c   :  { %635 = vmatpush3.bf16.msra.mxu0 %v722_v26 }
  0x1d   :  { %663 = vmatpush3.bf16.msra.mxu1 %v723_v27  ;;  %636 = vmatprep.subr.bf16.mxu0 %v724_v28 }
  0x1e   :  { %664 = vmatprep.subr.bf16.mxu1 %v725_v29 }
  0x20   :  { %637 = vmatpush3.bf16.msra.mxu0 %v726_v30 }
  0x21   :  { %665 = vmatpush3.bf16.msra.mxu1 %v727_v31  ;;  %684 = vmatprep.subr.bf16.mxu0 %v734_v36 }
  0x23   :  { %412 = vmatmul.mubr.bf16.vlgmr.msra.gmra.mxu0 %v728_v32 }
  0x24   :  { %461 = vmatmul.mubr.bf16.vlgmr.msra.gmra.mxu1 %v731_v34  ;;  %685 = vmatpush3.bf16.msra.mxu0 %v734_v36 }
  0x25   :  { %686 = vmatprep.subr.bf16.mxu0 %v735_v37  ;;  %419 = vmatprep.mubr.bf16.mxu0 %v736_v38 }
  0x26   :  { %468 = vmatprep.mubr.bf16.mxu1 %v738_v39 }
  0x28   :  { %687 = vmatpush3.bf16.msra.mxu0 %v735_v37 }
  0x29   :  { %688 = vmatprep.subr.bf16.mxu0 %v742_v41 }
  0x2b   :  { %420 = vmatmul.mubr.bf16.gmra.mxu0 %v740_v40 }
  0x2c   :  { %469 = vmatmul.mubr.bf16.gmra.mxu1 %v741_v42  ;;  %692 = vmatprep.mubr.msk.bf16.mxu0 %vm372_vm0, %v744_v43 }
  0x2d   :  { %689 = vmatpush3.bf16.msra.mxu0 %v742_v41 }
  0x2e   :  { %690 = vmatprep.subr.bf16.mxu0 %v743_v44 }
  0x31   :  { %691 = vmatpush3.bf16.msra.mxu0 %v743_v44 }
  0x34   :  { %693 = vmatmul.mubr.msk.bf16.vlgmr.msra.gmra.mxu0 %vm372_vm0, %v745_v45 }
  0xe3   :  { %v638_v46 = vpop.f32.mrf.mxu0 }
  0xe4   :  { %v666_v47 = vpop.f32.mrf.mxu1 }
  0xe5   :  { %v639_v48 = vpop.f32.mrf.mxu0 }
  0xe6   :  { %v667_v49 = vpop.f32.mrf.mxu1  ;;  %v640_v60 = vadd.f32 %v639_v48, %v638_v46 }
  0xe7   :  { %v641_v50 = vpop.f32.mrf.mxu0  ;;  %v668_v6 = vadd.f32 %v667_v49, %v666_v47 }
  0xe8   :  { %v669_v51 = vpop.f32.mrf.mxu1  ;;  %v414_v5 = vadd.f32 %v640_v60, %v554_v59 }
  0xe9   :  { %v642_v52 = vpop.f32.mrf.mxu0 }
  0xea   :  { %v670_v53 = vpop.f32.mrf.mxu1  ;;  %v643_v1 = vadd.f32 %v642_v52, %v641_v50  ;;  %v463_v16 = vadd.f32 %v668_v6, %v414_v5 }
  0xeb   :  { %v644_v54 = vpop.f32.mrf.mxu0  ;;  %v671_v14 = vadd.f32 %v670_v53, %v669_v51 }
  0xec   :  { %v672_v55 = vpop.f32.mrf.mxu1  ;;  %v417_v11 = vadd.f32 %v643_v1, %v554_v59 }
  0xed   :  { %v645_v56 = vpop.f32.mrf.mxu0 }
  0xee   :  { %v646_v57 = vadd.f32 %v645_v56, %v644_v54  ;;  %v673_v58 = vpop.f32.mrf.mxu1  ;;  %v466_v20 = vadd.f32 %v671_v14, %v417_v11 }
  0xef   :  { %v674_v61 = vadd.f32 %v673_v58, %v672_v55  ;;  %v647_v62 = vpop.f32.mrf.mxu0 }
  0xf0   :  { %v422_v63 = vadd.f32 %v646_v57, %v554_v59  ;;  %v675_v0 = vpop.f32.mrf.mxu1 }
  0xf1   :  { %v648_v2 = vpop.f32.mrf.mxu0 }
  0xf2   :  { %v649_v3 = vadd.f32 %v648_v2, %v647_v62  ;;  %v676_v4 = vpop.f32.mrf.mxu1  ;;  %v471_v7 = vadd.f32 %v674_v61, %v422_v63 }
  0xf3   :  { %v677_v9 = vadd.f32 %v676_v4, %v675_v0 }
  0xf4   :  { %v425_v8 = vadd.f32 %v649_v3, %v554_v59  ;;  %v694_v10 = vpop.f32.mrf.mxu0 }
  0xf5   :  { %v520_v15 = vadd.f32 %v694_v10, %v471_v7 }
  0xf6   :  { %v511_v12 = vpop.f32.mrf.mxu0  ;;  %v474_v13 = vadd.f32 %v677_v9, %v425_v8 }
  0xf7   :  { %v512_v18 = vadd.f32 %v511_v12, %v463_v16  ;;  %v528_v22 = vmax.f32 %v520_v15, 0.0 }
  0xf8   :  { %v695_v17 = vpop.f32.mrf.mxu0 }
  0xf9   :  { %v523_v19 = vadd.f32 %v695_v17, %v474_v13  ;;  %v526_v25 = vmax.f32 %v512_v18, 0.0 }
  0xfa   :  { %v514_v21 = vpop.f32.mrf.mxu0 }
  0xfb   :  { %v529_v23 = vmax.f32 %v523_v19, 0.0  ;;  %v515_v24 = vadd.f32 %v514_v21, %v466_v20 }
  0xfd   :  { %v619_v26 = vpack.c.bf16 %v529_v23, %v528_v22  ;;  %v527_v27 = vmax.f32 %v515_v24, 0.0 }
  0xff   :  { %621 = vst [vmem:[%s916_s3 + $0x8] sm:$0xff] %v619_v26   ;;  %v614_v28 = vpack.c.bf16 %v527_v27, %v526_v25 }
 0x101   :  { %615 = vst [vmem:[%s916_s3] sm:$0xff] %v614_v28  }

// kernel: omdet_v2_turbo_forward.17
= control target key start
LH: loop header
LB: loop body
LE: loop exit
PB: predicated region body
PF: predicated region fallthrough
CT: control target
= control target key end

     0   :  { %s304_s1 = inlined_call_operand.vmem [shape: bf16[128,128], index: 1, kind: input, shape index: {}]   ;;  %s305_s0 = inlined_call_operand.vmem [shape: bf16[32,128], index: 0, kind: input, shape index: {}]   ;;  %s306_s2 = inlined_call_operand.vmem [shape: f32[1,128], index: 2, kind: input, shape index: {}]   ;;  %s307_s3 = inlined_call_operand.vmem [shape: bf16[32,128], index: 3, kind: output, shape index: {}]  }
   0x1   :  { %v235_v0 = vld [vmem:[%s304_s1 + $0x38] sm:$0xff]   ;;  %v236_v1 = vld [vmem:[%s304_s1 + $0x30] sm:$0xff]   ;;  %v237_v2 = vld [vmem:[%s304_s1 + $0x28] sm:$0xff]  }
   0x2   :  { %215 = vmatprep.subr.bf16.mxu0 %v235_v0  ;;  %v238_v3 = vld [vmem:[%s304_s1 + $0x20] sm:$0xff]   ;;  %v239_v5 = vld [vmem:[%s304_s1 + $0x18] sm:$0xff]   ;;  %v240_v6 = vld [vmem:[%s304_s1 + $0x10] sm:$0xff]  }
   0x3   :  { %216 = vmatpush3.bf16.msra.mxu0 %v235_v0  ;;  %v243_v4 = vld [vmem:[%s305_s0] sm:$0xff]   ;;  %v241_v7 = vld [vmem:[%s304_s1 + $0x8] sm:$0xff]  }
   0x4   :  { %217 = vmatprep.subr.bf16.mxu0 %v236_v1  ;;  %231 = vmatprep.mubr.bf16.mxu0 %v243_v4  ;;  %v242_v8 = vld [vmem:[%s304_s1] sm:$0xff]   ;;  %v244_v9 = vld [vmem:[%s305_s0 + $0x8] sm:$0xff]  }
   0x5   :  { %v175_v11 = vld [vmem:[%s306_s2] ss:$0 sm:$0xff] }
   0x7   :  { %218 = vmatpush3.bf16.msra.mxu0 %v236_v1 }
   0x8   :  { %219 = vmatprep.subr.bf16.mxu0 %v237_v2 }
   0xb   :  { %220 = vmatpush3.bf16.msra.mxu0 %v237_v2 }
   0xc   :  { %221 = vmatprep.subr.bf16.mxu0 %v238_v3 }
   0xf   :  { %222 = vmatpush3.bf16.msra.mxu0 %v238_v3 }
  0x10   :  { %223 = vmatprep.subr.bf16.mxu0 %v239_v5 }
  0x13   :  { %224 = vmatpush3.bf16.msra.mxu0 %v239_v5 }
  0x14   :  { %225 = vmatprep.subr.bf16.mxu0 %v240_v6 }
  0x17   :  { %226 = vmatpush3.bf16.msra.mxu0 %v240_v6 }
  0x18   :  { %227 = vmatprep.subr.bf16.mxu0 %v241_v7 }
  0x1b   :  { %228 = vmatpush3.bf16.msra.mxu0 %v241_v7 }
  0x1c   :  { %229 = vmatprep.subr.bf16.mxu0 %v242_v8 }
  0x1f   :  { %230 = vmatpush3.bf16.msra.mxu0 %v242_v8 }
  0x22   :  { %232 = vmatmul.mubr.bf16.vlgmr.msra.gmra.mxu0 %v244_v9 }
  0xe2   :  { %v233_v10 = vpop.f32.mrf.mxu0 }
  0xe3   :  { %v145_v14 = vadd.f32 %v233_v10, %v175_v11 }
  0xe4   :  { %v136_v12 = vpop.f32.mrf.mxu0 }
  0xe5   :  { %v137_v17 = vadd.f32 %v175_v11, %v136_v12 }
  0xe6   :  { %v234_v13 = vpop.f32.mrf.mxu0 }
  0xe7   :  { %v148_v15 = vadd.f32 %v234_v13, %v175_v11 }
  0xe8   :  { %v139_v16 = vpop.f32.mrf.mxu0 }
  0xe9   :  { %v202_v18 = vpack.c.bf16 %v148_v15, %v145_v14  ;;  %v140_v19 = vadd.f32 %v175_v11, %v139_v16 }
  0xeb   :  { %204 = vst [vmem:[%s307_s3 + $0x8] sm:$0xff] %v202_v18   ;;  %v197_v20 = vpack.c.bf16 %v140_v19, %v137_v17 }
  0xed   :  { %198 = vst [vmem:[%s307_s3] sm:$0xff] %v197_v20  }

// kernel: omdet_v2_turbo_forward.16
= control target key start
LH: loop header
LB: loop body
LE: loop exit
PB: predicated region body
PF: predicated region fallthrough
CT: control target
= control target key end

     0   :  { %vm110_vm0 = vcmask 523264   ;;  %s563_s1 = inlined_call_operand.vmem [shape: bf16[64,128], index: 1, kind: input, shape index: {}]   ;;  %s564_s0 = inlined_call_operand.vmem [shape: bf16[128,64], index: 0, kind: input, shape index: {}]   ;;  %s565_s2 = inlined_call_operand.vmem [shape: f32[1,128], index: 2, kind: input, shape index: {}]   ;;  %s566_s3 = inlined_call_operand.vmem [shape: bf16[128,128], index: 3, kind: output, shape index: {}]  }
   0x1   :  { %v460_v0 = vld [vmem:[%s563_s1 + $0x18] sm:$0xff]   ;;  %v461_v1 = vld [vmem:[%s563_s1 + $0x10] sm:$0xff]   ;;  %v462_v2 = vld [vmem:[%s563_s1 + $0x8] sm:$0xff]  }
   0x2   :  { %428 = vmatprep.subr.bf16.mxu0 %v460_v0  ;;  %452 = vmatprep.subr.bf16.mxu1 %v460_v0  ;;  %v464_v3 = vld [vmem:[%s564_s0] sm:$0xff]   ;;  %v466_v6 = vld [vmem:[%s564_s0 + $0x8] sm:$0xff]   ;;  %v468_v8 = vld [vmem:[%s564_s0 + $0x10] sm:$0xff]  }
   0x3   :  { %429 = vmatpush3.bf16.msra.mxu0 %v460_v0  ;;  %456 = vmatpush3.bf16.msra.mxu1 %v460_v0  ;;  %v465_v4 = vld [vmem:[%s564_s0 + $0x20] sm:$0xff]   ;;  %v467_v7 = vld [vmem:[%s564_s0 + $0x28] sm:$0xff]   ;;  %v469_v9 = vld [vmem:[%s564_s0 + $0x30] sm:$0xff]  }
   0x4   :  { %430 = vmatprep.subr.bf16.mxu0 %v461_v1  ;;  %453 = vmatprep.subr.bf16.mxu1 %v461_v1  ;;  %v463_v5 = vld [vmem:[%s563_s1] sm:$0xff]   ;;  %v470_v10 = vld [vmem:[%s564_s0 + $0x18] sm:$0xff]  }
   0x5   :  { %436 = vmatprep.mubr.msk.bf16.mxu0 %vm110_vm0, %v464_v3  ;;  %444 = vmatprep.mubr.msk.bf16.mxu1 %vm110_vm0, %v465_v4  ;;  %v471_v11 = vld [vmem:[%s564_s0 + $0x38] sm:$0xff]   ;;  %v316_v14 = vld [vmem:[%s565_s2] ss:$0 sm:$0xff] }
   0x7   :  { %431 = vmatpush3.bf16.msra.mxu0 %v461_v1  ;;  %457 = vmatpush3.bf16.msra.mxu1 %v461_v1 }
   0x8   :  { %432 = vmatprep.subr.bf16.mxu0 %v462_v2  ;;  %454 = vmatprep.subr.bf16.mxu1 %v462_v2 }
   0xb   :  { %433 = vmatpush3.bf16.msra.mxu0 %v462_v2  ;;  %458 = vmatpush3.bf16.msra.mxu1 %v462_v2 }
   0xc   :  { %434 = vmatprep.subr.bf16.mxu0 %v463_v5  ;;  %455 = vmatprep.subr.bf16.mxu1 %v463_v5 }
   0xf   :  { %435 = vmatpush3.bf16.msra.mxu0 %v463_v5  ;;  %459 = vmatpush3.bf16.msra.mxu1 %v463_v5 }
  0x12   :  { %437 = vmatmul.mubr.msk.bf16.vlgmr.msra.gmra.mxu0 %vm110_vm0, %v466_v6  ;;  %445 = vmatmul.mubr.msk.bf16.vlgmr.msra.gmra.mxu1 %vm110_vm0, %v467_v7 }
  0x13   :  { %440 = vmatprep.mubr.msk.bf16.mxu0 %vm110_vm0, %v468_v8  ;;  %448 = vmatprep.mubr.msk.bf16.mxu1 %vm110_vm0, %v469_v9 }
  0x1a   :  { %441 = vmatmul.mubr.msk.bf16.gmra.mxu0 %vm110_vm0, %v470_v10  ;;  %449 = vmatmul.mubr.msk.bf16.gmra.mxu1 %vm110_vm0, %v471_v11 }
  0xd2   :  { %v438_v12 = vpop.f32.mrf.mxu0  ;;  %v446_v13 = vpop.f32.mrf.mxu1 }
  0xd3   :  { %v178_v19 = vadd.f32 %v438_v12, %v316_v14  ;;  %v210_v20 = vadd.f32 %v446_v13, %v316_v14 }
  0xd4   :  { %v169_v15 = vpop.f32.mrf.mxu0  ;;  %v201_v16 = vpop.f32.mrf.mxu1 }
  0xd5   :  { %v170_v23 = vadd.f32 %v316_v14, %v169_v15  ;;  %v202_v24 = vadd.f32 %v316_v14, %v201_v16 }
  0xd6   :  { %v439_v17 = vpop.f32.mrf.mxu0  ;;  %v447_v18 = vpop.f32.mrf.mxu1 }
  0xd7   :  { %v181_v21 = vadd.f32 %v439_v17, %v316_v14  ;;  %v213_v22 = vadd.f32 %v447_v18, %v316_v14 }
  0xd8   :  { %v172_v25 = vpop.f32.mrf.mxu0  ;;  %v204_v26 = vpop.f32.mrf.mxu1 }
  0xd9   :  { %v377_v27 = vpack.c.bf16 %v181_v21, %v178_v19  ;;  %v397_v28 = vpack.c.bf16 %v213_v22, %v210_v20  ;;  %v173_v29 = vadd.f32 %v316_v14, %v172_v25  ;;  %v205_v30 = vadd.f32 %v316_v14, %v204_v26 }
  0xda   :  { %v442_v31 = vpop.f32.mrf.mxu0  ;;  %v450_v32 = vpop.f32.mrf.mxu1 }
  0xdb   :  { %409 = vst [vmem:[%s566_s3 + $0x8] sm:$0xff] %v377_v27   ;;  %413 = vst [vmem:[%s566_s3 + $0x28] sm:$0xff] %v397_v28   ;;  %v372_v33 = vpack.c.bf16 %v173_v29, %v170_v23  ;;  %v392_v34 = vpack.c.bf16 %v205_v30, %v202_v24  ;;  %v194_v39 = vadd.f32 %v442_v31, %v316_v14 }
  0xdc   :  { %v185_v35 = vpop.f32.mrf.mxu0  ;;  %v217_v36 = vpop.f32.mrf.mxu1  ;;  %v226_v40 = vadd.f32 %v450_v32, %v316_v14 }
  0xdd   :  { %373 = vst [vmem:[%s566_s3] sm:$0xff] %v372_v33   ;;  %412 = vst [vmem:[%s566_s3 + $0x20] sm:$0xff] %v392_v34   ;;  %v186_v43 = vadd.f32 %v316_v14, %v185_v35  ;;  %v218_v44 = vadd.f32 %v316_v14, %v217_v36 }
  0xde   :  { %v443_v37 = vpop.f32.mrf.mxu0  ;;  %v451_v38 = vpop.f32.mrf.mxu1 }
  0xdf   :  { %v197_v41 = vadd.f32 %v443_v37, %v316_v14  ;;  %v229_v42 = vadd.f32 %v451_v38, %v316_v14 }
  0xe0   :  { %v188_v45 = vpop.f32.mrf.mxu0  ;;  %v220_v46 = vpop.f32.mrf.mxu1 }
  0xe1   :  { %v387_v47 = vpack.c.bf16 %v197_v41, %v194_v39  ;;  %v407_v48 = vpack.c.bf16 %v229_v42, %v226_v40  ;;  %v189_v49 = vadd.f32 %v316_v14, %v188_v45  ;;  %v221_v50 = vadd.f32 %v316_v14, %v220_v46 }
  0xe3   :  { %411 = vst [vmem:[%s566_s3 + $0x18] sm:$0xff] %v387_v47   ;;  %415 = vst [vmem:[%s566_s3 + $0x38] sm:$0xff] %v407_v48   ;;  %v382_v51 = vpack.c.bf16 %v189_v49, %v186_v43  ;;  %v402_v52 = vpack.c.bf16 %v221_v50, %v218_v44 }
  0xe5   :  { %410 = vst [vmem:[%s566_s3 + $0x10] sm:$0xff] %v382_v51   ;;  %414 = vst [vmem:[%s566_s3 + $0x30] sm:$0xff] %v402_v52  }

// kernel: omdet_v2_turbo_forward.18
= control target key start
LH: loop header
LB: loop body
LE: loop exit
PB: predicated region body
PF: predicated region fallthrough
CT: control target
= control target key end

     0   :  { %s1550_s21 = smov 0   ;;  %s1848_s0 = inlined_call_operand.vmem [shape: bf16[2,16,128], index: 0, kind: input, shape index: {}]   ;;  %s1849_s1 = inlined_call_operand.vmem [shape: bf16[128,384], index: 1, kind: input, shape index: {}]   ;;  %s1850_s2 = inlined_call_operand.vmem [shape: bf16[128,128], index: 2, kind: input, shape index: {}]   ;;  %s1851_s3 = inlined_call_operand.vmem [shape: bf16[128,256], index: 3, kind: input, shape index: {}]   ;;  %s1852_s4 = inlined_call_operand.vmem [shape: bf16[256,128], index: 4, kind: input, shape index: {}]   ;;  %s1853_s5 = inlined_call_operand.vmem [shape: f32[8,384], index: 5, kind: input, shape index: {}]   ;;  %s1854_s6 = inlined_call_operand.vmem [shape: bf16[2,16,128], index: 6, kind: output, shape index: {}]  }
   0x1 LB: > { %s1211_s22 = sadd.s32 4294967295, %s1510_s21   ;;  %p1215_p0 = scmp.ge.s32.totalorder %s1510_s21, 1  ;;  %s1510_s21 = sphi %s1550_s21, %s16_s21  }
   0x2   : > { %p212_p1 = scmp.lt.s32.totalorder %s1510_s21, 3 }
   0x4   : > { %p213_p2 = pnand %p1215_p0, %p212_p1 }
   0x5   : > { %p242_p3 = scmp.lt.s32.totalorder (!%p213_p2), %s1211_s22, 1 }
   0x6   : > { %216 = sbr.rel (%p213_p2) target bundleno = 2195 (0x893), region = 44 }
   0xb   : > { %v1406_v0 = vld [vmem:[%s1849_s1 + $0xac] ss:$12 sps:$4 sm:$0xff]   ;;  %v1408_v1 = vld [vmem:[%s1849_s1 + $0xa8] ss:$12 sps:$4 sm:$0xff]   ;;  %v1512_v2 = vmov 0   ;;  %v1513_v4 = vmov 0.0   ;;  %v308_v27 = vlaneseq }
   0xc   : > { %486 = vmatprep.mubr.bf16.mxu0 %v1512_v2  ;;  %454 = vmatprep.subr.bf16.mxu0 %v1406_v0  ;;  %v1409_v3 = vld [vmem:[%s1849_s1 + $0x94] ss:$12 sps:$4 sm:$0xff]   ;;  %v1411_v5 = vld [vmem:[%s1849_s1 + $0x90] ss:$12 sps:$4 sm:$0xff]   ;;  %v1414_v7 = vld [vmem:[%s1849_s1 + $0x78] ss:$12 sps:$4 sm:$0xff]  }
   0xd   : > { %1343 = vmatprep.subr.bf16.mxu1 %v1513_v4  ;;  %455 = vmatpush1.bf16.msra.mxu0 %v1408_v1  ;;  %v1412_v6 = vld [vmem:[%s1849_s1 + $0x7c] ss:$12 sps:$4 sm:$0xff]   ;;  %v1415_v8 = vld [vmem:[%s1849_s1 + $0x64] ss:$12 sps:$4 sm:$0xff]   ;;  %v1417_v9 = vld [vmem:[%s1849_s1 + $0x60] ss:$12 sps:$4 sm:$0xff]  }
   0xe   : > { %456 = vmatprep.subr.bf16.mxu0 %v1409_v3  ;;  %s1856_s22 = smov (!%p242_p3, %s1211_s22), 1  ;;  %v1431_v10 = vld [vmem:[%s1849_s1 + $0xb0] ss:$12 sps:$4 sm:$0xff]   ;;  %v1418_v11 = vld [vmem:[%s1849_s1 + $0x4c] ss:$12 sps:$4 sm:$0xff]   ;;  %vm1514_vm0 = vmmov 0  }
   0xf   : > { %1344 = vmatpush3.bf16.msra.mxu1 %v1431_v10  ;;  %v1432_v12 = vld [vmem:[%s1849_s1 + $0x98] ss:$12 sps:$4 sm:$0xff]   ;;  %s1290_s23 = sshll.u32 %s1856_s22, 3  ;;  %v1420_v13 = vld [vmem:[%s1849_s1 + $0x48] ss:$12 sps:$4 sm:$0xff]   ;;  %1359 = vmatprep.mubr.msk.bf16.mxu1 %vm1514_vm0, %v1513_v4  ;;  %v1659_v28 = vshrl.u32 %v308_v27, 7 }
  0x10   : > { %1345 = vmatprep.subr.bf16.mxu1 %v1513_v4  ;;  %v1421_v14 = vld [vmem:[%s1849_s1 + $0x34] ss:$12 sps:$4 sm:$0xff]   ;;  %v1423_v15 = vld [vmem:[%s1849_s1 + $0x30] ss:$12 sps:$4 sm:$0xff]   ;;  %v1426_v19 = vld [vmem:[%s1849_s1 + $0x18] ss:$12 sps:$4 sm:$0xff]   ;;  %s246_s18 = scalar_lea.vmem %s1848_s0, %s1290_s23  ;;  %s251_s12 = scalar_lea.vmem %s1854_s6, %s1290_s23 }
  0x11   : > { %457 = vmatpush1.bf16.msra.mxu0 %v1411_v5  ;;  %v1433_v16 = vld [vmem:[%s1849_s1 + $0x80] ss:$12 sps:$4 sm:$0xff]   ;;  %v1424_v17 = vld [vmem:[%s1849_s1 + $0x1c] ss:$12 sps:$4 sm:$0xff]   ;;  %v1427_v20 = vld [vmem:[%s1849_s1 + $0x4] ss:$12 sps:$4 sm:$0xff]  }
  0x12   : > { %458 = vmatprep.subr.bf16.mxu0 %v1412_v6  ;;  %v1434_v18 = vld [vmem:[%s1849_s1 + $0x68] ss:$12 sps:$4 sm:$0xff]   ;;  %v1435_v21 = vld [vmem:[%s1849_s1 + $0x50] ss:$12 sps:$4 sm:$0xff]   ;;  %v1429_v22 = vld [vmem:[%s1849_s1] ss:$12 sps:$4 sm:$0xff]  }
  0x13   : > { %1346 = vmatpush3.bf16.msra.mxu1 %v1432_v12  ;;  %v1634_v23 = vld [vmem:[%s246_s18] sm:$0xff]   ;;  %v1438_v26 = vld [vmem:[%s1849_s1 + $0x8] ss:$12 sps:$4 sm:$0xff]   ;;  %v310_v31 = vsub.s32 0, %v1659_v28  ;;  %vm583_vm1 = vcmask 130048  }
  0x14   : > { %1347 = vmatprep.subr.bf16.mxu1 %v1513_v4  ;;  %v1436_v24 = vld [vmem:[%s1849_s1 + $0x38] ss:$12 sps:$4 sm:$0xff]   ;;  %v1437_v25 = vld [vmem:[%s1849_s1 + $0x20] ss:$12 sps:$4 sm:$0xff]   ;;  %v255_v44 = vld [vmem:[%s1853_s5 + $0x10] sm:$0xff] }
  0x15   : > { %459 = vmatpush1.bf16.msra.mxu0 %v1414_v7  ;;  %v1664_v30 = vld [vmem:[%s1853_s5 + $0x8] sm:$0xff]  ;;  %v1671_v36 = vld [vmem:[%s1853_s5] sm:$0xff]  ;;  %v319_v45 = vrot.slane %v255_v44, %v310_v31  ;;  %v1440_v10 = vld [vmem:[%s1850_s2 + $0x30] sm:$0xff]  }
  0x16   : > { %460 = vmatprep.subr.bf16.mxu0 %v1415_v8  ;;  %v315_v33 = vrot.slane %v1664_v30, %v310_v31  ;;  %v311_v40 = vrot.slane %v1671_v36, %v310_v31  ;;  %v1442_v12 = vld [vmem:[%s1850_s2 + $0x20] sm:$0xff]   ;;  %v1449_v44 = vld [vmem:[%s1851_s3 + $0x74] ss:$8 sps:$4 sm:$0xff]  }
  0x17   : > { %1348 = vmatpush3.bf16.msra.mxu1 %v1433_v16 }
  0x18   : > { %1349 = vmatprep.subr.bf16.mxu1 %v1513_v4 }
  0x19   : > { %461 = vmatpush1.bf16.msra.mxu0 %v1417_v9  ;;  %v1439_v9 = vld [vmem:[%s1850_s2 + $0x38] sm:$0xff]  }
  0x1a   : > { %462 = vmatprep.subr.bf16.mxu0 %v1418_v11  ;;  %v1441_v11 = vld [vmem:[%s1850_s2 + $0x28] sm:$0xff]  }
  0x1b   : > { %1350 = vmatpush3.bf16.msra.mxu1 %v1434_v18 }
  0x1c   : > { %1351 = vmatprep.subr.bf16.mxu1 %v1513_v4 }
  0x1d   : > { %463 = vmatpush1.bf16.msra.mxu0 %v1420_v13  ;;  %v1443_v13 = vld [vmem:[%s1850_s2 + $0x18] sm:$0xff]  }
  0x1e   : > { %464 = vmatprep.subr.bf16.mxu0 %v1421_v14  ;;  %v1444_v14 = vld [vmem:[%s1850_s2 + $0x10] sm:$0xff]  }
  0x1f   : > { %1352 = vmatpush3.bf16.msra.mxu1 %v1435_v21 }
  0x20   : > { %1353 = vmatprep.subr.bf16.mxu1 %v1513_v4 }
  0x21   : > { %465 = vmatpush1.bf16.msra.mxu0 %v1423_v15 }
  0x22   : > { %466 = vmatprep.subr.bf16.mxu0 %v1424_v17 }
  0x23   : > { %1354 = vmatpush3.bf16.msra.mxu1 %v1436_v24  ;;  %v1446_v24 = vld [vmem:[%s1850_s2] sm:$0xff]  }
  0x24   : > { %1355 = vmatprep.subr.bf16.mxu1 %v1513_v4 }
  0x25   : > { %467 = vmatpush1.bf16.msra.mxu0 %v1426_v19 }
  0x26   : > { %468 = vmatprep.subr.bf16.mxu0 %v1427_v20 }
  0x27   : > { %1356 = vmatpush3.bf16.msra.mxu1 %v1437_v25 }
  0x28   : > { %1357 = vmatprep.subr.bf16.mxu1 %v1513_v4 }
  0x29   : > { %469 = vmatpush1.bf16.msra.mxu0 %v1429_v22  ;;  %v1445_v22 = vld [vmem:[%s1850_s2 + $0x8] sm:$0xff]  }
  0x2a   : > { %1375 = vmatprep.subr.bf16.mxu0 %v1513_v4 }
  0x2b   : > { %1358 = vmatpush3.bf16.msra.mxu1 %v1438_v26 }
  0x2c   : > { %487 = vmatmul.mubr.bf16.vlgmr.msra.gmra.mxu0 %v1634_v23  ;;  %1363 = vmatprep.subr.bf16.mxu1 %v1513_v4 }
  0x2d   : > { %1391 = vmatprep.mubr.msk.bf16.mxu0 %vm1514_vm0, %v1513_v4  ;;  %1376 = vmatpush3.bf16.msra.mxu0 %v1439_v9  ;;  %v1476_v9 = vld [vmem:[%s1852_s4 + $0x28] sm:$0xff]  }
  0x2e   : > { %1360 = vmatmul.mubr.bf16.vlgmr.msra.gmra.mxu1 %v1634_v23  ;;  %1377 = vmatprep.subr.bf16.mxu0 %v1513_v4 }
  0x2f   : > { %1365 = vmatprep.mubr.msk.bf16.mxu1 %vm1514_vm0, %v1513_v4 }
  0x31   : > { %1378 = vmatpush3.bf16.msra.mxu0 %v1440_v10  ;;  %v1477_v10 = vld [vmem:[%s1852_s4 + $0x60] sm:$0xff]  }
  0x32   : > { %1379 = vmatprep.subr.bf16.mxu0 %v1513_v4 }
  0x35   : > { %1380 = vmatpush3.bf16.msra.mxu0 %v1441_v11  ;;  %v1478_v11 = vld [vmem:[%s1852_s4 + $0x20] sm:$0xff]  }
  0x36   : > { %1381 = vmatprep.subr.bf16.mxu0 %v1513_v4 }
  0x39   : > { %1382 = vmatpush3.bf16.msra.mxu0 %v1442_v12  ;;  %v1479_v12 = vld [vmem:[%s1852_s4 + $0x58] sm:$0xff]  }
  0x3a   : > { %1383 = vmatprep.subr.bf16.mxu0 %v1513_v4 }
  0x3d   : > { %1384 = vmatpush3.bf16.msra.mxu0 %v1443_v13  ;;  %v1480_v13 = vld [vmem:[%s1852_s4 + $0x18] sm:$0xff]  }
  0x3e   : > { %1385 = vmatprep.subr.bf16.mxu0 %v1513_v4 }
  0x41   : > { %1386 = vmatpush3.bf16.msra.mxu0 %v1444_v14 }
  0x42   : > { %1387 = vmatprep.subr.bf16.mxu0 %v1513_v4 }
  0x45   : > { %1388 = vmatpush3.bf16.msra.mxu0 %v1445_v22 }
  0x46   : > { %1389 = vmatprep.subr.bf16.mxu0 %v1513_v4 }
  0x49   : > { %1390 = vmatpush3.bf16.msra.mxu0 %v1446_v24 }
  0xec   : > { %v488_v29 = vpop.f32.mrf.mxu0 }
  0xed   : > { %v489_v42 = vadd.f32 %v488_v29, %v311_v40 }
  0xee   : > { %v490_v32 = vpop.f32.mrf.mxu0  ;;  %v531_v46 = vpop.f32.mrf.mxu1 }
  0xef   : > { %v491_v37 = vadd.f32 %v490_v32, %v315_v33  ;;  %v532_v48 = vadd.f32 %v531_v46, %v319_v45 }
  0xf0   : > { %v492_v34 = vpop.f32.mrf.mxu0  ;;  %v1361_v47 = vpop.f32.mrf.mxu1 }
  0xf1   : > { %v493_v41 = vadd.f32 %v492_v34, %v311_v40 }
  0xf2   : > { %v494_v35 = vpop.f32.mrf.mxu0  ;;  %v534_v49 = vpop.f32.mrf.mxu1 }
  0xf3   : > { %v495_v38 = vadd.f32 %v494_v35, %v315_v33  ;;  %v538_v43 = vpack.c.bf16 %v493_v41, %v489_v42  ;;  %v535_v50 = vadd.f32 %v534_v49, %v319_v45  ;;  %v258_v33 = vunpack.c.l.bf16 %v1634_v23 }
  0xf4   : > { %v1362_v51 = vpop.f32.mrf.mxu1 }
  0xf5   : > { %v539_v39 = vpack.c.bf16 %v495_v38, %v491_v37  ;;  %v607_v52 = vpack.c.bf16 %v535_v50, %v532_v48  ;;  %v259_v38 = vunpack.c.h.bf16 %v1634_v23 }
  0xf7   : > { %1364 = vmatpush3.bf16.xpose.msra.mxu1 %v539_v39 }
  0xf8   : > { %1369 = vmatprep.subr.bf16.mxu1 %v1513_v4 }
  0xfe   : > { %1366 = vmatmul.mubr.bf16.vlgmr.msra.gmra.mxu1 %v538_v43  ;;  %v1447_v43 = vld [vmem:[%s1851_s3 + $0x70] ss:$8 sps:$4 sm:$0xff]  }
  0xff   : > { %1371 = vmatprep.mubr.msk.bf16.mxu1 %vm1514_vm0, %v1513_v4  ;;  %1370 = vmatpush3.bf16.msra.mxu1 %v607_v52  ;;  %v1452_v52 = vld [vmem:[%s1851_s3 + $0x64] ss:$8 sps:$4 sm:$0xff]  }
 0x100   : > { %888 = vmatprep.subr.bf16.mxu1 %v1449_v44 }
 0x1be   : > { %v574_v53 = vpop.f32.mrf.mxu1 }
 0x1bf   : > { %v581_v54 = vmul.f32 0.088388346, %v574_v53  ;;  %v1450_v53 = vld [vmem:[%s1851_s3 + $0x60] ss:$8 sps:$4 sm:$0xff]  }
 0x1c0   : > { %v1367_v55 = vpop.f32.mrf.mxu1 }
 0x1c1   : > { %v584_v56 = vsel %vm583_vm1, %v581_v54, -inf  ;;  %v1453_v55 = vld [vmem:[%s1851_s3 + $0x50] ss:$8 sps:$4 sm:$0xff]  }
 0x1c2   : > { %585 = vmax.xlane.f32.xlu0 %v584_v56  ;;  %v577_v57 = vpop.f32.mrf.mxu1  ;;  %v1456_v56 = vld [vmem:[%s1851_s3 + $0x40] ss:$8 sps:$4 sm:$0xff]  }
 0x1c3   : > { %v582_v58 = vmul.f32 0.088388346, %v577_v57  ;;  %v1458_v57 = vld [vmem:[%s1851_s3 + $0x44] ss:$8 sps:$4 sm:$0xff]  }
 0x1c4   : > { %v1368_v59 = vpop.f32.mrf.mxu1 }
 0x1c5   : > { %v587_v60 = vsel %vm583_vm1, %v582_v58, -inf  ;;  %v1459_v59 = vld [vmem:[%s1851_s3 + $0x30] ss:$8 sps:$4 sm:$0xff]  }
 0x1c6   : > { %588 = vmax.xlane.f32.xlu0 %v587_v60  ;;  %v1464_v60 = vld [vmem:[%s1851_s3 + $0x24] ss:$8 sps:$4 sm:$0xff]  }
 0x24b   : > { %v586_v61 = vpop.xlane.xlu0 %585 }
 0x24c   : > { %v590_v62 = vsub.f32 %v581_v54, %v586_v61  ;;  %v1455_v54 = vld [vmem:[%s1851_s3 + $0x54] ss:$8 sps:$4 sm:$0xff]   ;;  %v1462_v61 = vld [vmem:[%s1851_s3 + $0x20] ss:$8 sps:$4 sm:$0xff]  }
 0x24e   : > { %v592_v63 = vmul.f32 1.442695, %v590_v62  ;;  %v1467_v62 = vld [vmem:[%s1851_s3 + $0x14] ss:$8 sps:$4 sm:$0xff]  }
 0x24f   : > { %v589_v0 = vpop.xlane.xlu0 %588 }
 0x250   : > { %1488 = vpow2.f32 %v592_v63  ;;  %v591_v1 = vsub.f32 %v582_v58, %v589_v0  ;;  %v1461_v58 = vld [vmem:[%s1851_s3 + $0x34] ss:$8 sps:$4 sm:$0xff]   ;;  %v1465_v63 = vld [vmem:[%s1851_s3 + $0x10] ss:$8 sps:$4 sm:$0xff]   ;;  %v1470_v0 = vld [vmem:[%s1851_s3 + $0x4] ss:$8 sps:$4 sm:$0xff]  }
 0x252   : > { %v594_v3 = vmul.f32 1.442695, %v591_v1  ;;  %v1468_v1 = vld [vmem:[%s1851_s3] ss:$8 sps:$4 sm:$0xff]  }
 0x254   : > { %1490 = vpow2.f32 %v594_v3  ;;  %v1471_v3 = vld [vmem:[%s1852_s4 + $0x78] sm:$0xff]  }
 0x255   : > { %1321 = vmatprep.subr.bf16.mxu0 %v1471_v3 }
 0x25d   : > { %v1489_v5 = vpop.eup %1488 }
 0x25e   : > { %v596_v6 = vsel %vm583_vm1, %v1489_v5, 0.0 }
 0x25f   : > { %597 = vadd.xlane.f32.xlu1 %v596_v6  ;;  %v1473_v6 = vld [vmem:[%s1852_s4 + $0x70] sm:$0xff]  }
 0x261   : > { %v1491_v7 = vpop.eup %1490 }
 0x262   : > { %v599_v8 = vsel %vm583_vm1, %v1491_v7, 0.0 }
 0x263   : > { %600 = vadd.xlane.f32.xlu1 %v599_v8  ;;  %v1475_v8 = vld [vmem:[%s1852_s4 + $0x68] sm:$0xff]  }
 0x2e8   : > { %v598_v15 = vpop.xlane.xlu1 %597 }
 0x2e9   : > { %1492 = vrcp.f32 %v598_v15 }
 0x2ec   : > { %v601_v16 = vpop.xlane.xlu1 %600 }
 0x2ed   : > { %1494 = vrcp.f32 %v601_v16 }
 0x2f6   : > { %v1493_v17 = vpop.eup %1492 }
 0x2f7   : > { %v604_v19 = vmul.f32 %v1493_v17, %v1489_v5  ;;  %v1472_v5 = vld [vmem:[%s1852_s4 + $0x38] sm:$0xff]  }
 0x2fa   : > { %v1495_v18 = vpop.eup %1494 }
 0x2fb   : > { %v605_v20 = vmul.f32 %v1495_v18, %v1491_v7  ;;  %v1474_v7 = vld [vmem:[%s1852_s4 + $0x30] sm:$0xff]  }
 0x2fd   : > { %v606_v21 = vpack.c.bf16 %v605_v20, %v604_v19  ;;  %v773_v20 = vsub.s32 4, %v1659_v28 }
 0x2ff   : > { %1372 = vmatmul.mubr.msk.bf16.vlgmr.msra.gmra.mxu1 %vm583_vm1, %v606_v21  ;;  %v774_v24 = vrot.slane %v1671_v36, %v773_v20  ;;  %v1136_v20 = vsub.s32 6, %v1659_v28 }
 0x300   : > { %920 = vmatprep.mubr.bf16.mxu1 %v1512_v2  ;;  %v655_v2 = vsub.s32 1, %v1659_v28  ;;  %889 = vmatpush1.bf16.msra.mxu1 %v1447_v43 }
 0x301   : > { %890 = vmatprep.subr.bf16.mxu1 %v1452_v52 }
 0x302   : > { %v656_v32 = vrot.slane %v1671_v36, %v655_v2 }
 0x304   : > { %891 = vmatpush1.bf16.msra.mxu1 %v1450_v53 }
 0x305   : > { %892 = vmatprep.subr.bf16.mxu1 %v1455_v54 }
 0x308   : > { %893 = vmatpush1.bf16.msra.mxu1 %v1453_v55 }
 0x309   : > { %894 = vmatprep.subr.bf16.mxu1 %v1458_v57  ;;  %v971_v57 = vsub.s32 3, %v1659_v28 }
 0x30c   : > { %895 = vmatpush1.bf16.msra.mxu1 %v1456_v56 }
 0x30d   : > { %896 = vmatprep.subr.bf16.mxu1 %v1461_v58  ;;  %v972_v58 = vrot.slane %v1671_v36, %v971_v57 }
 0x310   : > { %897 = vmatpush1.bf16.msra.mxu1 %v1459_v59 }
 0x311   : > { %898 = vmatprep.subr.bf16.mxu1 %v1464_v60 }
 0x314   : > { %899 = vmatpush1.bf16.msra.mxu1 %v1462_v61 }
 0x315   : > { %900 = vmatprep.subr.bf16.mxu1 %v1467_v62 }
 0x318   : > { %901 = vmatpush1.bf16.msra.mxu1 %v1465_v63 }
 0x319   : > { %902 = vmatprep.subr.bf16.mxu1 %v1470_v0 }
 0x31c   : > { %903 = vmatpush1.bf16.msra.mxu1 %v1468_v1 }
 0x3bf   : > { %v645_v25 = vpop.f32.mrf.mxu1 }
 0x3c1   : > { %v1373_v26 = vpop.f32.mrf.mxu1 }
 0x3c3   : > { %v648_v27 = vpop.f32.mrf.mxu1 }
 0x3c4   : > { %v652_v29 = vpack.c.bf16 %v648_v27, %v645_v25  ;;  %v779_v25 = vsub.s32 5, %v1659_v28 }
 0x3c5   : > { %v1374_v31 = vpop.f32.mrf.mxu1 }
 0x3c6   : > { %1392 = vmatmul.mubr.bf16.vlgmr.msra.gmra.mxu0 %v652_v29  ;;  %v780_v31 = vrot.slane %v1671_v36, %v779_v25 }
 0x3c7   : > { %1322 = vmatpush3.bf16.msra.mxu0 %v1472_v5 }
 0x3c8   : > { %1323 = vmatprep.subr.bf16.mxu0 %v1473_v6 }
 0x3cb   : > { %1324 = vmatpush3.bf16.msra.mxu0 %v1474_v7 }
 0x3cc   : > { %1325 = vmatprep.subr.bf16.mxu0 %v1475_v8 }
 0x3cf   : > { %1326 = vmatpush3.bf16.msra.mxu0 %v1476_v9 }
 0x3d0   : > { %1327 = vmatprep.subr.bf16.mxu0 %v1477_v10 }
 0x3d3   : > { %1328 = vmatpush3.bf16.msra.mxu0 %v1478_v11 }
 0x3d4   : > { %1329 = vmatprep.subr.bf16.mxu0 %v1479_v12 }
 0x3d7   : > { %1330 = vmatpush3.bf16.msra.mxu0 %v1480_v13 }
 0x486   : > { %v739_v34 = vpop.f32.mrf.mxu0 }
 0x487   : > { %v740_v35 = vadd.f32 %v739_v34, %v656_v32 }
 0x488   : > { %v1393_v4 = vpop.f32.mrf.mxu0 }
 0x489   : > { %v746_v37 = vadd.f32 %v740_v35, %v258_v33  ;;  %v1481_v35 = vld [vmem:[%s1852_s4 + $0x50] sm:$0xff]  }
 0x48a   : > { %v742_v39 = vpop.f32.mrf.mxu0  ;;  %v1482_v4 = vld [vmem:[%s1852_s4 + $0x10] sm:$0xff]   ;;  %1331 = vmatprep.subr.bf16.mxu0 %v1481_v35 }
 0x48b   : > { %v743_v40 = vadd.f32 %v742_v39, %v656_v32  ;;  %748 = vadd.xlane.f32.xlu0 %v746_v37  ;;  %1332 = vmatpush3.bf16.msra.mxu0 %v1482_v4  ;;  %v1485_v39 = vld [vmem:[%s1852_s4 + $0x40] sm:$0xff]  }
 0x48c   : > { %v1394_v41 = vpop.f32.mrf.mxu0 }
 0x48d   : > { %v747_v42 = vadd.f32 %v743_v40, %v259_v38  ;;  %v1484_v38 = vld [vmem:[%s1852_s4 + $0x8] sm:$0xff]   ;;  %v1486_v40 = vld [vmem:[%s1852_s4] sm:$0xff]   ;;  %v802_v41 = vsub.s32 2, %v1659_v28 }
 0x48f   : > { %750 = vadd.xlane.f32.xlu1 %v747_v42  ;;  %v807_v43 = vrot.slane %v1664_v30, %v802_v41  ;;  %v803_v44 = vrot.slane %v1671_v36, %v802_v41 }
 0x514   : > { %v749_v45 = vpop.xlane.xlu0 %748 }
 0x515   : > { %v753_v46 = vmul.f32 0.0078125, %v749_v45 }
 0x517   : > { %v1727_v47 = vsub.f32 %v746_v37, %v753_v46  ;;  %v1483_v37 = vld [vmem:[%s1852_s4 + $0x48] sm:$0xff]  }
 0x518   : > { %v751_v23 = vpop.xlane.xlu1 %750  ;;  %1333 = vmatprep.subr.bf16.mxu0 %v1483_v37 }
 0x519   : > { %v754_v48 = vmul.f32 0.0078125, %v751_v23  ;;  %v757_v49 = vmul.f32 %v1727_v47, %v1727_v47  ;;  %1334 = vmatpush3.bf16.msra.mxu0 %v1484_v38 }
 0x51a   : > { %1335 = vmatprep.subr.bf16.mxu0 %v1485_v39 }
 0x51b   : > { %v1731_v50 = vsub.f32 %v747_v42, %v754_v48  ;;  %759 = vadd.xlane.f32.xlu0 %v757_v49 }
 0x51d   : > { %v758_v51 = vmul.f32 %v1731_v50, %v1731_v50  ;;  %1336 = vmatpush3.bf16.msra.mxu0 %v1486_v40 }
 0x51f   : > { %761 = vadd.xlane.f32.xlu1 %v758_v51 }
 0x5a4   : > { %v760_v14 = vpop.xlane.xlu0 %759 }
 0x5a5   : > { %v763_v15 = vmul.f32 0.0078125, %v760_v14 }
 0x5a7   : > { %v765_v16 = vadd.f32 1e-05, %v763_v15 }
 0x5a8   : > { %v762_v17 = vpop.xlane.xlu1 %761 }
 0x5a9   : > { %1496 = vrsqrt.f32 %v765_v16  ;;  %v764_v18 = vmul.f32 0.0078125, %v762_v17 }
 0x5ab   : > { %v766_v19 = vadd.f32 1e-05, %v764_v18 }
 0x5ad   : > { %1498 = vrsqrt.f32 %v766_v19 }
 0x5b6   : > { %v1497_v21 = vpop.eup %1496 }
 0x5b7   : > { %v769_v22 = vmul.f32 %v1497_v21, %v1727_v47 }
 0x5b9   : > { %v775_v29 = vmul.f32 %v774_v24, %v769_v22  ;;  %v1137_v22 = vrot.slane %v1671_v36, %v1136_v20 }
 0x5ba   : > { %v1499_v26 = vpop.eup %1498 }
 0x5bb   : > { %v770_v27 = vmul.f32 %v1499_v26, %v1731_v50  ;;  %v781_v32 = vadd.f32 %v780_v31, %v775_v29 }
 0x5bd   : > { %v776_v2 = vmul.f32 %v774_v24, %v770_v27  ;;  %v1142_v24 = vsub.s32 7, %v1659_v28 }
 0x5bf   : > { %v782_v33 = vadd.f32 %v780_v31, %v776_v2  ;;  %v1143_v27 = vrot.slane %v1671_v36, %v1142_v24 }
 0x5c1   : > { %v783_v34 = vpack.c.bf16 %v782_v33, %v781_v32 }
 0x5c3   : > { %921 = vmatmul.mubr.bf16.vlgmr.msra.gmra.mxu1 %v783_v34 }
 0x683   : > { %v922_v42 = vpop.f32.mrf.mxu1 }
 0x684   : > { %v923_v48 = vadd.f32 %v922_v42, %v803_v44 }
 0x685   : > { %v924_v45 = vpop.f32.mrf.mxu1 }
 0x686   : > { %v925_v47 = vadd.f32 %v924_v45, %v807_v43  ;;  %v931_v54 = vmax.f32 %v923_v48, 0.0 }
 0x687   : > { %v926_v46 = vpop.f32.mrf.mxu1 }
 0x688   : > { %v927_v23 = vadd.f32 %v926_v46, %v803_v44  ;;  %v932_v52 = vmax.f32 %v925_v47, 0.0 }
 0x689   : > { %v928_v49 = vpop.f32.mrf.mxu1 }
 0x68a   : > { %v929_v50 = vadd.f32 %v928_v49, %v807_v43  ;;  %v933_v51 = vmax.f32 %v927_v23, 0.0 }
 0x68c   : > { %v934_v53 = vmax.f32 %v929_v50, 0.0  ;;  %v935_v56 = vpack.c.bf16 %v933_v51, %v931_v54 }
 0x68e   : > { %v936_v55 = vpack.c.bf16 %v934_v53, %v932_v52 }
 0x690   : > { %1101 = vmatprep.mubr.bf16.mxu0 %v936_v55 }
 0x691   : > { %1102 = vmatmul.mubr.bf16.vlgmr.msra.gmra.mxu0 %v935_v56 }
 0x751   : > { %v1337_v30 = vpop.f32.mrf.mxu0 }
 0x753   : > { %v1338_v59 = vpop.f32.mrf.mxu0 }
 0x754   : > { %v1339_v60 = vadd.f32 %v1338_v59, %v1337_v30 }
 0x755   : > { %v1340_v61 = vpop.f32.mrf.mxu0 }
 0x756   : > { %v1104_v62 = vadd.f32 %v1339_v60, %v972_v58 }
 0x757   : > { %v1341_v63 = vpop.f32.mrf.mxu0 }
 0x758   : > { %v1342_v0 = vadd.f32 %v1341_v63, %v1340_v61  ;;  %v1110_v1 = vadd.f32 %v1104_v62, %v781_v32 }
 0x75a   : > { %v1107_v3 = vadd.f32 %v1342_v0, %v972_v58  ;;  %1112 = vadd.xlane.f32.xlu0 %v1110_v1 }
 0x75c   : > { %v1111_v5 = vadd.f32 %v1107_v3, %v782_v33 }
 0x75e   : > { %1114 = vadd.xlane.f32.xlu1 %v1111_v5 }
 0x7e3   : > { %v1113_v6 = vpop.xlane.xlu0 %1112 }
 0x7e4   : > { %v1116_v7 = vmul.f32 0.0078125, %v1113_v6 }
 0x7e6   : > { %v1118_v8 = vsub.f32 %v1110_v1, %v1116_v7 }
 0x7e7   : > { %v1115_v9 = vpop.xlane.xlu1 %1114 }
 0x7e8   : > { %v1117_v10 = vmul.f32 0.0078125, %v1115_v9  ;;  %v1120_v11 = vmul.f32 %v1118_v8, %v1118_v8 }
 0x7ea   : > { %v1119_v12 = vsub.f32 %v1111_v5, %v1117_v10  ;;  %1122 = vadd.xlane.f32.xlu0 %v1120_v11 }
 0x7ec   : > { %v1121_v13 = vmul.f32 %v1119_v12, %v1119_v12 }
 0x7ee   : > { %1124 = vadd.xlane.f32.xlu1 %v1121_v13 }
 0x873   : > { %v1123_v14 = vpop.xlane.xlu0 %1122 }
 0x874   : > { %v1126_v15 = vmul.f32 0.0078125, %v1123_v14 }
 0x876   : > { %v1128_v16 = vadd.f32 1e-05, %v1126_v15 }
 0x877   : > { %v1125_v17 = vpop.xlane.xlu1 %1124 }
 0x878   : > { %1500 = vrsqrt.f32 %v1128_v16  ;;  %v1127_v18 = vmul.f32 0.0078125, %v1125_v17 }
 0x87a   : > { %v1129_v19 = vadd.f32 1e-05, %v1127_v18 }
 0x87c   : > { %1502 = vrsqrt.f32 %v1129_v19 }
 0x885   : > { %v1501_v21 = vpop.eup %1500 }
 0x886   : > { %v1132_v25 = vmul.f32 %v1501_v21, %v1118_v8 }
 0x888   : > { %v1138_v29 = vmul.f32 %v1137_v22, %v1132_v25 }
 0x889   : > { %v1503_v26 = vpop.eup %1502 }
 0x88a   : > { %v1133_v31 = vmul.f32 %v1503_v26, %v1119_v12  ;;  %v1144_v32 = vadd.f32 %v1143_v27, %v1138_v29 }
 0x88c   : > { %v1139_v2 = vmul.f32 %v1137_v22, %v1133_v31 }
 0x88e   : > { %v1145_v33 = vadd.f32 %v1143_v27, %v1139_v2 }
 0x890   : > { %v1297_v34 = vpack.c.bf16 %v1145_v33, %v1144_v32 }
 0x892   : > { %1298 = vst [vmem:[%s251_s12] sm:$0xff] %v1297_v34  }
 0x893 PF: > { %s16_s21 = sadd.s32 1, %s1510_s21  }
 0x894   : > { %p13_p4 = scmp.ge.s32.totalorder %s16_s21, 4  }
 0x896   :  { %15 = sbr.rel (!%p13_p4) target bundleno = 1 (0x1), region = 74 }

// kernel: omdet_v2_turbo_forward.15
= control target key start
LH: loop header
LB: loop body
LE: loop exit
PB: predicated region body
PF: predicated region fallthrough
CT: control target
= control target key end

     0   :  { %vm262_vm0 = vcmask 261120   ;;  %s1817_s1 = inlined_call_operand.vmem [shape: bf16[32,128], index: 1, kind: input, shape index: {}]   ;;  %s1818_s0 = inlined_call_operand.vmem [shape: bf16[512,32], index: 0, kind: input, shape index: {}]   ;;  %s1819_s2 = inlined_call_operand.vmem [shape: f32[1,128], index: 2, kind: input, shape index: {}]   ;;  %s1820_s3 = inlined_call_operand.vmem [shape: bf16[512,128], index: 3, kind: output, shape index: {}]  }
   0x1   :  { %v1464_v0 = vld [vmem:[%s1817_s1 + $0x8] sm:$0xff]   ;;  %v1465_v1 = vld [vmem:[%s1817_s1] sm:$0xff]   ;;  %v1470_v6 = vld [vmem:[%s1818_s0 + $0x10] sm:$0xff]  }
   0x2   :  { %1392 = vmatprep.subr.bf16.mxu0 %v1464_v0  ;;  %1460 = vmatprep.subr.bf16.mxu1 %v1464_v0  ;;  %v1466_v2 = vld [vmem:[%s1818_s0] sm:$0xff]   ;;  %v1468_v4 = vld [vmem:[%s1818_s0 + $0x8] sm:$0xff]   ;;  %v1471_v7 = vld [vmem:[%s1818_s0 + $0x90] sm:$0xff]  }
   0x3   :  { %1393 = vmatpush3.bf16.msra.mxu0 %v1464_v0  ;;  %1462 = vmatpush3.bf16.msra.mxu1 %v1464_v0  ;;  %v1467_v3 = vld [vmem:[%s1818_s0 + $0x80] sm:$0xff]   ;;  %v1469_v5 = vld [vmem:[%s1818_s0 + $0x88] sm:$0xff]   ;;  %v1472_v8 = vld [vmem:[%s1818_s0 + $0x18] sm:$0xff]  }
   0x4   :  { %1394 = vmatprep.subr.bf16.mxu0 %v1465_v1  ;;  %1461 = vmatprep.subr.bf16.mxu1 %v1465_v1  ;;  %v1473_v9 = vld [vmem:[%s1818_s0 + $0x98] sm:$0xff]   ;;  %v1474_v10 = vld [vmem:[%s1818_s0 + $0x20] sm:$0xff]   ;;  %v1476_v12 = vld [vmem:[%s1818_s0 + $0x28] sm:$0xff]  }
   0x5   :  { %1396 = vmatprep.mubr.msk.bf16.mxu0 %vm262_vm0, %v1466_v2  ;;  %1428 = vmatprep.mubr.msk.bf16.mxu1 %vm262_vm0, %v1467_v3  ;;  %v1475_v11 = vld [vmem:[%s1818_s0 + $0xa0] sm:$0xff]   ;;  %v1477_v13 = vld [vmem:[%s1818_s0 + $0xa8] sm:$0xff]   ;;  %v1478_v14 = vld [vmem:[%s1818_s0 + $0x30] sm:$0xff]  }
   0x6   :  { %v1479_v15 = vld [vmem:[%s1818_s0 + $0xb0] sm:$0xff]   ;;  %v1480_v16 = vld [vmem:[%s1818_s0 + $0x38] sm:$0xff]   ;;  %v1482_v18 = vld [vmem:[%s1818_s0 + $0x40] sm:$0xff]  }
   0x7   :  { %1395 = vmatpush3.bf16.msra.mxu0 %v1465_v1  ;;  %1463 = vmatpush3.bf16.msra.mxu1 %v1465_v1  ;;  %v1481_v17 = vld [vmem:[%s1818_s0 + $0xb8] sm:$0xff]   ;;  %v1483_v19 = vld [vmem:[%s1818_s0 + $0xc0] sm:$0xff]   ;;  %v1484_v20 = vld [vmem:[%s1818_s0 + $0x48] sm:$0xff]  }
   0x8   :  { %v1485_v21 = vld [vmem:[%s1818_s0 + $0xc8] sm:$0xff]   ;;  %v1486_v22 = vld [vmem:[%s1818_s0 + $0x50] sm:$0xff]   ;;  %v1488_v24 = vld [vmem:[%s1818_s0 + $0x58] sm:$0xff]  }
   0x9   :  { %v1487_v23 = vld [vmem:[%s1818_s0 + $0xd0] sm:$0xff]   ;;  %v1489_v25 = vld [vmem:[%s1818_s0 + $0xd8] sm:$0xff]   ;;  %v1490_v26 = vld [vmem:[%s1818_s0 + $0x60] sm:$0xff]  }
   0xa   :  { %1397 = vmatmul.mubr.msk.bf16.vlgmr.msra.gmra.mxu0 %vm262_vm0, %v1468_v4  ;;  %1429 = vmatmul.mubr.msk.bf16.vlgmr.msra.gmra.mxu1 %vm262_vm0, %v1469_v5  ;;  %v1491_v27 = vld [vmem:[%s1818_s0 + $0xe0] sm:$0xff]   ;;  %v1492_v28 = vld [vmem:[%s1818_s0 + $0x68] sm:$0xff]   ;;  %v1494_v30 = vld [vmem:[%s1818_s0 + $0x70] sm:$0xff]  }
   0xb   :  { %1400 = vmatprep.mubr.msk.bf16.mxu0 %vm262_vm0, %v1470_v6  ;;  %1432 = vmatprep.mubr.msk.bf16.mxu1 %vm262_vm0, %v1471_v7  ;;  %v1493_v29 = vld [vmem:[%s1818_s0 + $0xe8] sm:$0xff]   ;;  %v1495_v31 = vld [vmem:[%s1818_s0 + $0xf0] sm:$0xff]   ;;  %v1496_v32 = vld [vmem:[%s1818_s0 + $0x78] sm:$0xff]  }
   0xc   :  { %v1497_v33 = vld [vmem:[%s1818_s0 + $0xf8] sm:$0xff]   ;;  %v1655_v36 = vld [vmem:[%s1819_s2] ss:$0 sm:$0xff] }
  0x12   :  { %1401 = vmatmul.mubr.msk.bf16.gmra.mxu0 %vm262_vm0, %v1472_v8  ;;  %1433 = vmatmul.mubr.msk.bf16.gmra.mxu1 %vm262_vm0, %v1473_v9 }
  0x13   :  { %1404 = vmatprep.mubr.msk.bf16.mxu0 %vm262_vm0, %v1474_v10  ;;  %1436 = vmatprep.mubr.msk.bf16.mxu1 %vm262_vm0, %v1475_v11 }
  0x1a   :  { %1405 = vmatmul.mubr.msk.bf16.gmra.mxu0 %vm262_vm0, %v1476_v12  ;;  %1437 = vmatmul.mubr.msk.bf16.gmra.mxu1 %vm262_vm0, %v1477_v13 }
  0x1b   :  { %1408 = vmatprep.mubr.msk.bf16.mxu0 %vm262_vm0, %v1478_v14  ;;  %1440 = vmatprep.mubr.msk.bf16.mxu1 %vm262_vm0, %v1479_v15 }
  0x22   :  { %1409 = vmatmul.mubr.msk.bf16.gmra.mxu0 %vm262_vm0, %v1480_v16  ;;  %1441 = vmatmul.mubr.msk.bf16.gmra.mxu1 %vm262_vm0, %v1481_v17 }
  0x23   :  { %1412 = vmatprep.mubr.msk.bf16.mxu0 %vm262_vm0, %v1482_v18  ;;  %1444 = vmatprep.mubr.msk.bf16.mxu1 %vm262_vm0, %v1483_v19 }
  0x2a   :  { %1413 = vmatmul.mubr.msk.bf16.gmra.mxu0 %vm262_vm0, %v1484_v20  ;;  %1445 = vmatmul.mubr.msk.bf16.gmra.mxu1 %vm262_vm0, %v1485_v21 }
  0x2b   :  { %1416 = vmatprep.mubr.msk.bf16.mxu0 %vm262_vm0, %v1486_v22  ;;  %1448 = vmatprep.mubr.msk.bf16.mxu1 %vm262_vm0, %v1487_v23 }
  0x32   :  { %1417 = vmatmul.mubr.msk.bf16.gmra.mxu0 %vm262_vm0, %v1488_v24  ;;  %1449 = vmatmul.mubr.msk.bf16.gmra.mxu1 %vm262_vm0, %v1489_v25 }
  0x33   :  { %1420 = vmatprep.mubr.msk.bf16.mxu0 %vm262_vm0, %v1490_v26  ;;  %1452 = vmatprep.mubr.msk.bf16.mxu1 %vm262_vm0, %v1491_v27 }
  0x3a   :  { %1421 = vmatmul.mubr.msk.bf16.gmra.mxu0 %vm262_vm0, %v1492_v28  ;;  %1453 = vmatmul.mubr.msk.bf16.gmra.mxu1 %vm262_vm0, %v1493_v29 }
  0x3b   :  { %1424 = vmatprep.mubr.msk.bf16.mxu0 %vm262_vm0, %v1494_v30  ;;  %1456 = vmatprep.mubr.msk.bf16.mxu1 %vm262_vm0, %v1495_v31 }
  0x42   :  { %1425 = vmatmul.mubr.msk.bf16.gmra.mxu0 %vm262_vm0, %v1496_v32  ;;  %1457 = vmatmul.mubr.msk.bf16.gmra.mxu1 %vm262_vm0, %v1497_v33 }
  0xca   :  { %v1398_v34 = vpop.f32.mrf.mxu0  ;;  %v1430_v35 = vpop.f32.mrf.mxu1 }
  0xcb   :  { %v402_v41 = vadd.f32 %v1398_v34, %v1655_v36  ;;  %v530_v42 = vadd.f32 %v1430_v35, %v1655_v36 }
  0xcc   :  { %v393_v37 = vpop.f32.mrf.mxu0  ;;  %v521_v38 = vpop.f32.mrf.mxu1 }
  0xcd   :  { %v394_v45 = vadd.f32 %v1655_v36, %v393_v37  ;;  %v522_v46 = vadd.f32 %v1655_v36, %v521_v38 }
  0xce   :  { %v1399_v39 = vpop.f32.mrf.mxu0  ;;  %v1431_v40 = vpop.f32.mrf.mxu1 }
  0xcf   :  { %v405_v43 = vadd.f32 %v1399_v39, %v1655_v36  ;;  %v533_v44 = vadd.f32 %v1431_v40, %v1655_v36 }
  0xd0   :  { %v396_v47 = vpop.f32.mrf.mxu0  ;;  %v524_v48 = vpop.f32.mrf.mxu1 }
  0xd1   :  { %v1175_v49 = vpack.c.bf16 %v405_v43, %v402_v41  ;;  %v1255_v50 = vpack.c.bf16 %v533_v44, %v530_v42  ;;  %v397_v51 = vadd.f32 %v1655_v36, %v396_v47  ;;  %v525_v52 = vadd.f32 %v1655_v36, %v524_v48 }
  0xd2   :  { %v1402_v53 = vpop.f32.mrf.mxu0  ;;  %v1434_v54 = vpop.f32.mrf.mxu1 }
  0xd3   :  { %1327 = vst [vmem:[%s1820_s3 + $0x8] sm:$0xff] %v1175_v49   ;;  %1343 = vst [vmem:[%s1820_s3 + $0x88] sm:$0xff] %v1255_v50   ;;  %v1170_v55 = vpack.c.bf16 %v397_v51, %v394_v45  ;;  %v1250_v56 = vpack.c.bf16 %v525_v52, %v522_v46  ;;  %v418_v61 = vadd.f32 %v1402_v53, %v1655_v36 }
  0xd4   :  { %v409_v57 = vpop.f32.mrf.mxu0  ;;  %v537_v58 = vpop.f32.mrf.mxu1  ;;  %v546_v62 = vadd.f32 %v1434_v54, %v1655_v36 }
  0xd5   :  { %1171 = vst [vmem:[%s1820_s3] sm:$0xff] %v1170_v55   ;;  %1342 = vst [vmem:[%s1820_s3 + $0x80] sm:$0xff] %v1250_v56   ;;  %v410_v1 = vadd.f32 %v1655_v36, %v409_v57  ;;  %v538_v2 = vadd.f32 %v1655_v36, %v537_v58 }
  0xd6   :  { %v1403_v59 = vpop.f32.mrf.mxu0  ;;  %v1435_v60 = vpop.f32.mrf.mxu1 }
  0xd7   :  { %v421_v63 = vadd.f32 %v1403_v59, %v1655_v36  ;;  %v549_v0 = vadd.f32 %v1435_v60, %v1655_v36 }
  0xd8   :  { %v412_v3 = vpop.f32.mrf.mxu0  ;;  %v540_v4 = vpop.f32.mrf.mxu1 }
  0xd9   :  { %v1185_v5 = vpack.c.bf16 %v421_v63, %v418_v61  ;;  %v1265_v6 = vpack.c.bf16 %v549_v0, %v546_v62  ;;  %v413_v7 = vadd.f32 %v1655_v36, %v412_v3  ;;  %v541_v8 = vadd.f32 %v1655_v36, %v540_v4 }
  0xda   :  { %v1406_v9 = vpop.f32.mrf.mxu0  ;;  %v1438_v10 = vpop.f32.mrf.mxu1 }
  0xdb   :  { %1329 = vst [vmem:[%s1820_s3 + $0x18] sm:$0xff] %v1185_v5   ;;  %1345 = vst [vmem:[%s1820_s3 + $0x98] sm:$0xff] %v1265_v6   ;;  %v1180_v11 = vpack.c.bf16 %v413_v7, %v410_v1  ;;  %v1260_v12 = vpack.c.bf16 %v541_v8, %v538_v2  ;;  %v434_v17 = vadd.f32 %v1406_v9, %v1655_v36 }
  0xdc   :  { %v425_v13 = vpop.f32.mrf.mxu0  ;;  %v553_v14 = vpop.f32.mrf.mxu1  ;;  %v562_v18 = vadd.f32 %v1438_v10, %v1655_v36 }
  0xdd   :  { %1328 = vst [vmem:[%s1820_s3 + $0x10] sm:$0xff] %v1180_v11   ;;  %1344 = vst [vmem:[%s1820_s3 + $0x90] sm:$0xff] %v1260_v12   ;;  %v426_v21 = vadd.f32 %v1655_v36, %v425_v13  ;;  %v554_v22 = vadd.f32 %v1655_v36, %v553_v14 }
  0xde   :  { %v1407_v15 = vpop.f32.mrf.mxu0  ;;  %v1439_v16 = vpop.f32.mrf.mxu1 }
  0xdf   :  { %v437_v19 = vadd.f32 %v1407_v15, %v1655_v36  ;;  %v565_v20 = vadd.f32 %v1439_v16, %v1655_v36 }
  0xe0   :  { %v428_v23 = vpop.f32.mrf.mxu0  ;;  %v556_v24 = vpop.f32.mrf.mxu1 }
  0xe1   :  { %v1195_v25 = vpack.c.bf16 %v437_v19, %v434_v17  ;;  %v1275_v26 = vpack.c.bf16 %v565_v20, %v562_v18  ;;  %v429_v27 = vadd.f32 %v1655_v36, %v428_v23  ;;  %v557_v28 = vadd.f32 %v1655_v36, %v556_v24 }
  0xe2   :  { %v1410_v29 = vpop.f32.mrf.mxu0  ;;  %v1442_v30 = vpop.f32.mrf.mxu1 }
  0xe3   :  { %1331 = vst [vmem:[%s1820_s3 + $0x28] sm:$0xff] %v1195_v25   ;;  %1347 = vst [vmem:[%s1820_s3 + $0xa8] sm:$0xff] %v1275_v26   ;;  %v1190_v31 = vpack.c.bf16 %v429_v27, %v426_v21  ;;  %v1270_v32 = vpack.c.bf16 %v557_v28, %v554_v22  ;;  %v450_v38 = vadd.f32 %v1410_v29, %v1655_v36 }
  0xe4   :  { %v441_v33 = vpop.f32.mrf.mxu0  ;;  %v569_v34 = vpop.f32.mrf.mxu1  ;;  %v578_v39 = vadd.f32 %v1442_v30, %v1655_v36 }
  0xe5   :  { %1330 = vst [vmem:[%s1820_s3 + $0x20] sm:$0xff] %v1190_v31   ;;  %1346 = vst [vmem:[%s1820_s3 + $0xa0] sm:$0xff] %v1270_v32   ;;  %v442_v42 = vadd.f32 %v1655_v36, %v441_v33  ;;  %v570_v43 = vadd.f32 %v1655_v36, %v569_v34 }
  0xe6   :  { %v1411_v35 = vpop.f32.mrf.mxu0  ;;  %v1443_v37 = vpop.f32.mrf.mxu1 }
  0xe7   :  { %v453_v40 = vadd.f32 %v1411_v35, %v1655_v36  ;;  %v581_v41 = vadd.f32 %v1443_v37, %v1655_v36 }
  0xe8   :  { %v444_v44 = vpop.f32.mrf.mxu0  ;;  %v572_v45 = vpop.f32.mrf.mxu1 }
  0xe9   :  { %v1205_v46 = vpack.c.bf16 %v453_v40, %v450_v38  ;;  %v1285_v47 = vpack.c.bf16 %v581_v41, %v578_v39  ;;  %v445_v48 = vadd.f32 %v1655_v36, %v444_v44  ;;  %v573_v49 = vadd.f32 %v1655_v36, %v572_v45 }
  0xea   :  { %v1414_v50 = vpop.f32.mrf.mxu0  ;;  %v1446_v51 = vpop.f32.mrf.mxu1 }
  0xeb   :  { %1333 = vst [vmem:[%s1820_s3 + $0x38] sm:$0xff] %v1205_v46   ;;  %1349 = vst [vmem:[%s1820_s3 + $0xb8] sm:$0xff] %v1285_v47   ;;  %v1200_v52 = vpack.c.bf16 %v445_v48, %v442_v42  ;;  %v1280_v53 = vpack.c.bf16 %v573_v49, %v570_v43  ;;  %v466_v58 = vadd.f32 %v1414_v50, %v1655_v36 }
  0xec   :  { %v457_v54 = vpop.f32.mrf.mxu0  ;;  %v585_v55 = vpop.f32.mrf.mxu1  ;;  %v594_v59 = vadd.f32 %v1446_v51, %v1655_v36 }
  0xed   :  { %1332 = vst [vmem:[%s1820_s3 + $0x30] sm:$0xff] %v1200_v52   ;;  %1348 = vst [vmem:[%s1820_s3 + $0xb0] sm:$0xff] %v1280_v53   ;;  %v458_v62 = vadd.f32 %v1655_v36, %v457_v54  ;;  %v586_v63 = vadd.f32 %v1655_v36, %v585_v55 }
  0xee   :  { %v1415_v56 = vpop.f32.mrf.mxu0  ;;  %v1447_v57 = vpop.f32.mrf.mxu1 }
  0xef   :  { %v469_v60 = vadd.f32 %v1415_v56, %v1655_v36  ;;  %v597_v61 = vadd.f32 %v1447_v57, %v1655_v36 }
  0xf0   :  { %v460_v0 = vpop.f32.mrf.mxu0  ;;  %v588_v1 = vpop.f32.mrf.mxu1 }
  0xf1   :  { %v1215_v2 = vpack.c.bf16 %v469_v60, %v466_v58  ;;  %v1295_v3 = vpack.c.bf16 %v597_v61, %v594_v59  ;;  %v461_v4 = vadd.f32 %v1655_v36, %v460_v0  ;;  %v589_v5 = vadd.f32 %v1655_v36, %v588_v1 }
  0xf2   :  { %v1418_v6 = vpop.f32.mrf.mxu0  ;;  %v1450_v7 = vpop.f32.mrf.mxu1 }
  0xf3   :  { %1335 = vst [vmem:[%s1820_s3 + $0x48] sm:$0xff] %v1215_v2   ;;  %1351 = vst [vmem:[%s1820_s3 + $0xc8] sm:$0xff] %v1295_v3   ;;  %v1210_v8 = vpack.c.bf16 %v461_v4, %v458_v62  ;;  %v1290_v9 = vpack.c.bf16 %v589_v5, %v586_v63  ;;  %v482_v14 = vadd.f32 %v1418_v6, %v1655_v36 }
  0xf4   :  { %v473_v10 = vpop.f32.mrf.mxu0  ;;  %v601_v11 = vpop.f32.mrf.mxu1  ;;  %v610_v15 = vadd.f32 %v1450_v7, %v1655_v36 }
  0xf5   :  { %1334 = vst [vmem:[%s1820_s3 + $0x40] sm:$0xff] %v1210_v8   ;;  %1350 = vst [vmem:[%s1820_s3 + $0xc0] sm:$0xff] %v1290_v9   ;;  %v474_v18 = vadd.f32 %v1655_v36, %v473_v10  ;;  %v602_v19 = vadd.f32 %v1655_v36, %v601_v11 }
  0xf6   :  { %v1419_v12 = vpop.f32.mrf.mxu0  ;;  %v1451_v13 = vpop.f32.mrf.mxu1 }
  0xf7   :  { %v485_v16 = vadd.f32 %v1419_v12, %v1655_v36  ;;  %v613_v17 = vadd.f32 %v1451_v13, %v1655_v36 }
  0xf8   :  { %v476_v20 = vpop.f32.mrf.mxu0  ;;  %v604_v21 = vpop.f32.mrf.mxu1 }
  0xf9   :  { %v1225_v22 = vpack.c.bf16 %v485_v16, %v482_v14  ;;  %v1305_v23 = vpack.c.bf16 %v613_v17, %v610_v15  ;;  %v477_v24 = vadd.f32 %v1655_v36, %v476_v20  ;;  %v605_v25 = vadd.f32 %v1655_v36, %v604_v21 }
  0xfa   :  { %v1422_v26 = vpop.f32.mrf.mxu0  ;;  %v1454_v27 = vpop.f32.mrf.mxu1 }
  0xfb   :  { %1337 = vst [vmem:[%s1820_s3 + $0x58] sm:$0xff] %v1225_v22   ;;  %1353 = vst [vmem:[%s1820_s3 + $0xd8] sm:$0xff] %v1305_v23   ;;  %v1220_v28 = vpack.c.bf16 %v477_v24, %v474_v18  ;;  %v1300_v29 = vpack.c.bf16 %v605_v25, %v602_v19  ;;  %v498_v34 = vadd.f32 %v1422_v26, %v1655_v36 }
  0xfc   :  { %v489_v30 = vpop.f32.mrf.mxu0  ;;  %v617_v31 = vpop.f32.mrf.mxu1  ;;  %v626_v35 = vadd.f32 %v1454_v27, %v1655_v36 }
  0xfd   :  { %1336 = vst [vmem:[%s1820_s3 + $0x50] sm:$0xff] %v1220_v28   ;;  %1352 = vst [vmem:[%s1820_s3 + $0xd0] sm:$0xff] %v1300_v29   ;;  %v490_v39 = vadd.f32 %v1655_v36, %v489_v30  ;;  %v618_v40 = vadd.f32 %v1655_v36, %v617_v31 }
  0xfe   :  { %v1423_v32 = vpop.f32.mrf.mxu0  ;;  %v1455_v33 = vpop.f32.mrf.mxu1 }
  0xff   :  { %v501_v37 = vadd.f32 %v1423_v32, %v1655_v36  ;;  %v629_v38 = vadd.f32 %v1455_v33, %v1655_v36 }
 0x100   :  { %v492_v41 = vpop.f32.mrf.mxu0  ;;  %v620_v42 = vpop.f32.mrf.mxu1 }
 0x101   :  { %v1235_v43 = vpack.c.bf16 %v501_v37, %v498_v34  ;;  %v1315_v44 = vpack.c.bf16 %v629_v38, %v626_v35  ;;  %v493_v45 = vadd.f32 %v1655_v36, %v492_v41  ;;  %v621_v46 = vadd.f32 %v1655_v36, %v620_v42 }
 0x102   :  { %v1426_v47 = vpop.f32.mrf.mxu0  ;;  %v1458_v48 = vpop.f32.mrf.mxu1 }
 0x103   :  { %1339 = vst [vmem:[%s1820_s3 + $0x68] sm:$0xff] %v1235_v43   ;;  %1355 = vst [vmem:[%s1820_s3 + $0xe8] sm:$0xff] %v1315_v44   ;;  %v1230_v49 = vpack.c.bf16 %v493_v45, %v490_v39  ;;  %v1310_v50 = vpack.c.bf16 %v621_v46, %v618_v40  ;;  %v514_v55 = vadd.f32 %v1426_v47, %v1655_v36 }
 0x104   :  { %v505_v51 = vpop.f32.mrf.mxu0  ;;  %v633_v52 = vpop.f32.mrf.mxu1  ;;  %v642_v56 = vadd.f32 %v1458_v48, %v1655_v36 }
 0x105   :  { %1338 = vst [vmem:[%s1820_s3 + $0x60] sm:$0xff] %v1230_v49   ;;  %1354 = vst [vmem:[%s1820_s3 + $0xe0] sm:$0xff] %v1310_v50   ;;  %v506_v59 = vadd.f32 %v1655_v36, %v505_v51  ;;  %v634_v60 = vadd.f32 %v1655_v36, %v633_v52 }
 0x106   :  { %v1427_v53 = vpop.f32.mrf.mxu0  ;;  %v1459_v54 = vpop.f32.mrf.mxu1 }
 0x107   :  { %v517_v57 = vadd.f32 %v1427_v53, %v1655_v36  ;;  %v645_v58 = vadd.f32 %v1459_v54, %v1655_v36 }
 0x108   :  { %v508_v61 = vpop.f32.mrf.mxu0  ;;  %v636_v62 = vpop.f32.mrf.mxu1 }
 0x109   :  { %v1245_v63 = vpack.c.bf16 %v517_v57, %v514_v55  ;;  %v1325_v0 = vpack.c.bf16 %v645_v58, %v642_v56  ;;  %v509_v1 = vadd.f32 %v1655_v36, %v508_v61  ;;  %v637_v2 = vadd.f32 %v1655_v36, %v636_v62 }
 0x10b   :  { %1341 = vst [vmem:[%s1820_s3 + $0x78] sm:$0xff] %v1245_v63   ;;  %1357 = vst [vmem:[%s1820_s3 + $0xf8] sm:$0xff] %v1325_v0   ;;  %v1240_v3 = vpack.c.bf16 %v509_v1, %v506_v59  ;;  %v1320_v4 = vpack.c.bf16 %v637_v2, %v634_v60 }
 0x10d   :  { %1340 = vst [vmem:[%s1820_s3 + $0x70] sm:$0xff] %v1240_v3   ;;  %1356 = vst [vmem:[%s1820_s3 + $0xf0] sm:$0xff] %v1320_v4  }

// kernel: omdet_v2_turbo_forward.21
= control target key start
LH: loop header
LB: loop body
LE: loop exit
PB: predicated region body
PF: predicated region fallthrough
CT: control target
= control target key end

     0   :  { %v50_v24 = vlaneseq  ;;  %s1153_s1 = inlined_call_operand.vmem [shape: bf16[128,128], index: 1, kind: input, shape index: {}]   ;;  %s1154_s0 = inlined_call_operand.vmem [shape: bf16[32,128], index: 0, kind: input, shape index: {}]   ;;  %s1155_s2 = inlined_call_operand.vmem [shape: bf16[128,128], index: 2, kind: input, shape index: {}]   ;;  %s1156_s4 = inlined_call_operand.vmem [shape: bf16[128,128], index: 4, kind: input, shape index: {}]   ;;  %s1157_s3 = inlined_call_operand.vmem [shape: bf16[128,128], index: 3, kind: input, shape index: {}]   ;;  %s1158_s6 = inlined_call_operand.vmem [shape: f32[4,128], index: 6, kind: input, shape index: {}]   ;;  %s1159_s5 = inlined_call_operand.vmem [shape: bf16[128,128], index: 5, kind: input, shape index: {}]   ;;  %s1160_s8 = inlined_call_operand.vmem [shape: f32[32,128], index: 8, kind: output, shape index: {1}]   ;;  %s1161_s7 = inlined_call_operand.vmem [shape: f32[32,128], index: 7, kind: output, shape index: {0}]  }
   0x1   :  { %v877_v0 = vld [vmem:[%s1153_s1 + $0x38] sm:$0xff]   ;;  %v878_v1 = vld [vmem:[%s1153_s1 + $0x30] sm:$0xff]   ;;  %v879_v2 = vld [vmem:[%s1153_s1 + $0x28] sm:$0xff]  }
   0x2   :  { %777 = vmatprep.subr.bf16.mxu0 %v877_v0  ;;  %v880_v3 = vld [vmem:[%s1153_s1 + $0x20] sm:$0xff]   ;;  %v887_v5 = vld [vmem:[%s1155_s2 + $0x38] sm:$0xff]   ;;  %v888_v6 = vld [vmem:[%s1155_s2 + $0x30] sm:$0xff]   ;;  %v1058_v25 = vshrl.u32 %v50_v24, 7 }
   0x3   :  { %778 = vmatpush3.bf16.msra.mxu0 %v877_v0  ;;  %v995_v4 = vld [vmem:[%s1154_s0] sm:$0xff]   ;;  %v881_v7 = vld [vmem:[%s1153_s1 + $0x18] sm:$0xff]   ;;  %797 = vmatprep.subr.bf16.mxu1 %v887_v5  ;;  %v889_v8 = vld [vmem:[%s1155_s2 + $0x28] sm:$0xff]  }
   0x4   :  { %779 = vmatprep.subr.bf16.mxu0 %v878_v1  ;;  %793 = vmatprep.mubr.bf16.mxu0 %v995_v4  ;;  %v882_v9 = vld [vmem:[%s1153_s1 + $0x10] sm:$0xff]   ;;  %v890_v10 = vld [vmem:[%s1155_s2 + $0x20] sm:$0xff]   ;;  %v883_v11 = vld [vmem:[%s1153_s1 + $0x8] sm:$0xff]   ;;  %v52_v26 = vsub.s32 0, %v1058_v25  ;;  %v187_v54 = vsub.s32 1, %v1058_v25 }
   0x5   :  { %798 = vmatpush3.bf16.msra.mxu1 %v887_v5  ;;  %v891_v12 = vld [vmem:[%s1155_s2 + $0x18] sm:$0xff]   ;;  %v884_v13 = vld [vmem:[%s1153_s1] sm:$0xff]   ;;  %v1028_v14 = vld [vmem:[%s1154_s0 + $0x8] sm:$0xff]  }
   0x6   :  { %799 = vmatprep.subr.bf16.mxu1 %v888_v6  ;;  %v892_v15 = vld [vmem:[%s1155_s2 + $0x10] sm:$0xff]   ;;  %v893_v16 = vld [vmem:[%s1155_s2 + $0x8] sm:$0xff]   ;;  %v894_v17 = vld [vmem:[%s1155_s2] sm:$0xff]  }
   0x7   :  { %780 = vmatpush3.bf16.msra.mxu0 %v878_v1  ;;  %v895_v18 = vld [vmem:[%s1156_s4 + $0x38] sm:$0xff]   ;;  %v904_v20 = vld [vmem:[%s1157_s3 + $0x30] sm:$0xff]   ;;  %v905_v21 = vld [vmem:[%s1157_s3 + $0x28] sm:$0xff]  }
   0x8   :  { %781 = vmatprep.subr.bf16.mxu0 %v879_v2  ;;  %v903_v19 = vld [vmem:[%s1157_s3 + $0x38] sm:$0xff]   ;;  %v906_v22 = vld [vmem:[%s1157_s3 + $0x20] sm:$0xff]   ;;  %v896_v43 = vld [vmem:[%s1156_s4 + $0x30] sm:$0xff]  }
   0x9   :  { %800 = vmatpush3.bf16.msra.mxu1 %v888_v6  ;;  %v907_v23 = vld [vmem:[%s1157_s3 + $0x18] sm:$0xff]   ;;  %v1064_v27 = vld [vmem:[%s1158_s6] sm:$0xf]  ;;  %v897_v44 = vld [vmem:[%s1156_s4 + $0x28] sm:$0xff]  }
   0xa   :  { %801 = vmatprep.subr.bf16.mxu1 %v889_v8  ;;  %v53_v29 = vrot.slane %v1064_v27, %v52_v26  ;;  %v898_v45 = vld [vmem:[%s1156_s4 + $0x20] sm:$0xff]   ;;  %v899_v46 = vld [vmem:[%s1156_s4 + $0x18] sm:$0xff]   ;;  %v900_v47 = vld [vmem:[%s1156_s4 + $0x10] sm:$0xff]   ;;  %v188_v56 = vrot.slane %v1064_v27, %v187_v54  ;;  %v310_v26 = vsub.s32 2, %v1058_v25 }
   0xb   :  { %782 = vmatpush3.bf16.msra.mxu0 %v879_v2  ;;  %v901_v48 = vld [vmem:[%s1156_s4 + $0x8] sm:$0xff]   ;;  %v902_v49 = vld [vmem:[%s1156_s4] sm:$0xff]   ;;  %v908_v50 = vld [vmem:[%s1157_s3 + $0x10] sm:$0xff]  }
   0xc   :  { %783 = vmatprep.subr.bf16.mxu0 %v880_v3  ;;  %v909_v51 = vld [vmem:[%s1157_s3 + $0x8] sm:$0xff]   ;;  %v910_v52 = vld [vmem:[%s1157_s3] sm:$0xff]   ;;  %v911_v53 = vld [vmem:[%s1159_s5 + $0x38] sm:$0xff]  }
   0xd   :  { %802 = vmatpush3.bf16.msra.mxu1 %v889_v8  ;;  %v912_v6 = vld [vmem:[%s1159_s5 + $0x30] sm:$0xff]   ;;  %v914_v8 = vld [vmem:[%s1159_s5 + $0x20] sm:$0xff]  }
   0xe   :  { %803 = vmatprep.subr.bf16.mxu1 %v890_v10 }
   0xf   :  { %784 = vmatpush3.bf16.msra.mxu0 %v880_v3 }
  0x10   :  { %785 = vmatprep.subr.bf16.mxu0 %v881_v7 }
  0x11   :  { %804 = vmatpush3.bf16.msra.mxu1 %v890_v10  ;;  %v916_v10 = vld [vmem:[%s1159_s5 + $0x10] sm:$0xff]  }
  0x12   :  { %805 = vmatprep.subr.bf16.mxu1 %v891_v12 }
  0x13   :  { %786 = vmatpush3.bf16.msra.mxu0 %v881_v7  ;;  %v913_v7 = vld [vmem:[%s1159_s5 + $0x28] sm:$0xff]  }
  0x14   :  { %787 = vmatprep.subr.bf16.mxu0 %v882_v9 }
  0x15   :  { %806 = vmatpush3.bf16.msra.mxu1 %v891_v12 }
  0x16   :  { %807 = vmatprep.subr.bf16.mxu1 %v892_v15 }
  0x17   :  { %788 = vmatpush3.bf16.msra.mxu0 %v882_v9  ;;  %v915_v9 = vld [vmem:[%s1159_s5 + $0x18] sm:$0xff]  }
  0x18   :  { %789 = vmatprep.subr.bf16.mxu0 %v883_v11 }
  0x19   :  { %808 = vmatpush3.bf16.msra.mxu1 %v892_v15 }
  0x1a   :  { %809 = vmatprep.subr.bf16.mxu1 %v893_v16 }
  0x1b   :  { %790 = vmatpush3.bf16.msra.mxu0 %v883_v11  ;;  %v455_v11 = vsub.s32 3, %v1058_v25 }
  0x1c   :  { %791 = vmatprep.subr.bf16.mxu0 %v884_v13 }
  0x1d   :  { %810 = vmatpush3.bf16.msra.mxu1 %v893_v16 }
  0x1e   :  { %811 = vmatprep.subr.bf16.mxu1 %v894_v17 }
  0x1f   :  { %792 = vmatpush3.bf16.msra.mxu0 %v884_v13  ;;  %v917_v13 = vld [vmem:[%s1159_s5 + $0x8] sm:$0xff]  }
  0x20   :  { %817 = vmatprep.subr.bf16.mxu0 %v903_v19 }
  0x21   :  { %812 = vmatpush3.bf16.msra.mxu1 %v894_v17  ;;  %v918_v17 = vld [vmem:[%s1159_s5] sm:$0xff]  }
  0x22   :  { %794 = vmatmul.mubr.bf16.vlgmr.msra.gmra.mxu0 %v1028_v14  ;;  %837 = vmatprep.subr.bf16.mxu1 %v895_v18 }
  0x23   :  { %818 = vmatpush3.bf16.msra.mxu0 %v903_v19 }
  0x24   :  { %819 = vmatprep.subr.bf16.mxu0 %v904_v20 }
  0x27   :  { %820 = vmatpush3.bf16.msra.mxu0 %v904_v20 }
  0x28   :  { %821 = vmatprep.subr.bf16.mxu0 %v905_v21 }
  0x2b   :  { %822 = vmatpush3.bf16.msra.mxu0 %v905_v21 }
  0x2c   :  { %823 = vmatprep.subr.bf16.mxu0 %v906_v22 }
  0x2f   :  { %824 = vmatpush3.bf16.msra.mxu0 %v906_v22 }
  0x30   :  { %825 = vmatprep.subr.bf16.mxu0 %v907_v23 }
  0x33   :  { %826 = vmatpush3.bf16.msra.mxu0 %v907_v23 }
  0x34   :  { %827 = vmatprep.subr.bf16.mxu0 %v908_v50 }
  0x37   :  { %828 = vmatpush3.bf16.msra.mxu0 %v908_v50 }
  0x38   :  { %829 = vmatprep.subr.bf16.mxu0 %v909_v51 }
  0x3b   :  { %830 = vmatpush3.bf16.msra.mxu0 %v909_v51 }
  0x3c   :  { %831 = vmatprep.subr.bf16.mxu0 %v910_v52 }
  0x3f   :  { %832 = vmatpush3.bf16.msra.mxu0 %v910_v52 }
  0x40   :  { %857 = vmatprep.subr.bf16.mxu0 %v911_v53 }
  0xe2   :  { %v795_v28 = vpop.f32.mrf.mxu0 }
  0xe3   :  { %v157_v34 = vadd.f32 %v795_v28, %v53_v29  ;;  %v311_v28 = vrot.slane %v1064_v27, %v310_v26 }
  0xe4   :  { %v148_v30 = vpop.f32.mrf.mxu0 }
  0xe5   :  { %v149_v32 = vadd.f32 %v148_v30, %v53_v29  ;;  %v165_v40 = vmax.f32 %v157_v34, 0.0 }
  0xe6   :  { %v796_v31 = vpop.f32.mrf.mxu0 }
  0xe7   :  { %v160_v33 = vadd.f32 %v796_v31, %v53_v29  ;;  %v163_v38 = vmax.f32 %v149_v32, 0.0 }
  0xe8   :  { %v151_v35 = vpop.f32.mrf.mxu0 }
  0xe9   :  { %v152_v36 = vadd.f32 %v151_v35, %v53_v29  ;;  %v166_v37 = vmax.f32 %v160_v33, 0.0 }
  0xeb   :  { %v164_v39 = vmax.f32 %v152_v36, 0.0  ;;  %v168_v42 = vpack.c.bf16 %v166_v37, %v165_v40 }
  0xed   :  { %v167_v41 = vpack.c.bf16 %v164_v39, %v163_v38 }
  0xef   :  { %813 = vmatprep.mubr.bf16.mxu1 %v167_v41 }
  0xf0   :  { %814 = vmatmul.mubr.bf16.vlgmr.msra.gmra.mxu1 %v168_v42 }
  0xf1   :  { %838 = vmatpush3.bf16.msra.mxu1 %v895_v18  ;;  %853 = vmatprep.mubr.bf16.mxu1 %v995_v4 }
  0xf2   :  { %839 = vmatprep.subr.bf16.mxu1 %v896_v43 }
  0xf5   :  { %840 = vmatpush3.bf16.msra.mxu1 %v896_v43 }
  0xf6   :  { %841 = vmatprep.subr.bf16.mxu1 %v897_v44 }
  0xf9   :  { %842 = vmatpush3.bf16.msra.mxu1 %v897_v44 }
  0xfa   :  { %843 = vmatprep.subr.bf16.mxu1 %v898_v45 }
  0xfd   :  { %844 = vmatpush3.bf16.msra.mxu1 %v898_v45 }
  0xfe   :  { %845 = vmatprep.subr.bf16.mxu1 %v899_v46 }
 0x101   :  { %846 = vmatpush3.bf16.msra.mxu1 %v899_v46 }
 0x102   :  { %847 = vmatprep.subr.bf16.mxu1 %v900_v47 }
 0x105   :  { %848 = vmatpush3.bf16.msra.mxu1 %v900_v47 }
 0x106   :  { %849 = vmatprep.subr.bf16.mxu1 %v901_v48 }
 0x109   :  { %850 = vmatpush3.bf16.msra.mxu1 %v901_v48 }
 0x10a   :  { %851 = vmatprep.subr.bf16.mxu1 %v902_v49 }
 0x10d   :  { %852 = vmatpush3.bf16.msra.mxu1 %v902_v49 }
 0x110   :  { %854 = vmatmul.mubr.bf16.vlgmr.msra.gmra.mxu1 %v1028_v14  ;;  %v456_v14 = vrot.slane %v1064_v27, %v455_v11 }
 0x1b0   :  { %v815_v55 = vpop.f32.mrf.mxu1 }
 0x1b1   :  { %v280_v61 = vadd.f32 %v815_v55, %v188_v56 }
 0x1b2   :  { %v271_v57 = vpop.f32.mrf.mxu1 }
 0x1b3   :  { %v272_v59 = vadd.f32 %v271_v57, %v188_v56  ;;  %v288_v3 = vmax.f32 %v280_v61, 0.0 }
 0x1b4   :  { %v816_v58 = vpop.f32.mrf.mxu1 }
 0x1b5   :  { %v283_v60 = vadd.f32 %v816_v58, %v188_v56  ;;  %v286_v1 = vmax.f32 %v272_v59, 0.0 }
 0x1b6   :  { %v274_v62 = vpop.f32.mrf.mxu1 }
 0x1b7   :  { %v275_v63 = vadd.f32 %v274_v62, %v188_v56  ;;  %v289_v0 = vmax.f32 %v283_v60, 0.0 }
 0x1b9   :  { %v287_v2 = vmax.f32 %v275_v63, 0.0  ;;  %v291_v5 = vpack.c.bf16 %v289_v0, %v288_v3 }
 0x1bb   :  { %v290_v4 = vpack.c.bf16 %v287_v2, %v286_v1 }
 0x1bd   :  { %833 = vmatprep.mubr.bf16.mxu0 %v290_v4 }
 0x1be   :  { %834 = vmatmul.mubr.bf16.vlgmr.msra.gmra.mxu0 %v291_v5 }
 0x1bf   :  { %858 = vmatpush3.bf16.msra.mxu0 %v911_v53 }
 0x1c0   :  { %859 = vmatprep.subr.bf16.mxu0 %v912_v6 }
 0x1c3   :  { %860 = vmatpush3.bf16.msra.mxu0 %v912_v6 }
 0x1c4   :  { %861 = vmatprep.subr.bf16.mxu0 %v913_v7 }
 0x1c7   :  { %862 = vmatpush3.bf16.msra.mxu0 %v913_v7 }
 0x1c8   :  { %863 = vmatprep.subr.bf16.mxu0 %v914_v8 }
 0x1cb   :  { %864 = vmatpush3.bf16.msra.mxu0 %v914_v8 }
 0x1cc   :  { %865 = vmatprep.subr.bf16.mxu0 %v915_v9 }
 0x1cf   :  { %866 = vmatpush3.bf16.msra.mxu0 %v915_v9 }
 0x1d0   :  { %v855_v12 = vpop.f32.mrf.mxu1  ;;  %867 = vmatprep.subr.bf16.mxu0 %v916_v10 }
 0x1d1   :  { %v548_v21 = vadd.f32 %v855_v12, %v456_v14 }
 0x1d2   :  { %v539_v15 = vpop.f32.mrf.mxu1 }
 0x1d3   :  { %868 = vmatpush3.bf16.msra.mxu0 %v916_v10  ;;  %v540_v18 = vadd.f32 %v539_v15, %v456_v14 }
 0x1d4   :  { %v856_v16 = vpop.f32.mrf.mxu1  ;;  %869 = vmatprep.subr.bf16.mxu0 %v917_v13 }
 0x1d5   :  { %v551_v22 = vadd.f32 %v856_v16, %v456_v14 }
 0x1d6   :  { %v542_v19 = vpop.f32.mrf.mxu1 }
 0x1d7   :  { %v543_v20 = vadd.f32 %v542_v19, %v456_v14  ;;  %870 = vmatpush3.bf16.msra.mxu0 %v917_v13  ;;  %v555_v24 = vpack.c.bf16 %v551_v22, %v548_v21 }
 0x1d8   :  { %871 = vmatprep.subr.bf16.mxu0 %v918_v17 }
 0x1d9   :  { %v554_v23 = vpack.c.bf16 %v543_v20, %v540_v18 }
 0x1db   :  { %872 = vmatpush3.bf16.msra.mxu0 %v918_v17  ;;  %873 = vmatprep.mubr.bf16.mxu0 %v554_v23 }
 0x1de   :  { %874 = vmatmul.mubr.bf16.vlgmr.msra.gmra.mxu0 %v555_v24 }
 0x27e   :  { %v835_v29 = vpop.f32.mrf.mxu0 }
 0x27f   :  { %v403_v30 = vadd.f32 %v835_v29, %v311_v28 }
 0x280   :  { %v394_v31 = vpop.f32.mrf.mxu0 }
 0x281   :  { %v709_v32 = vmul.f32 -1.442695, %v403_v30  ;;  %v395_v33 = vadd.f32 %v394_v31, %v311_v28 }
 0x282   :  { %v836_v34 = vpop.f32.mrf.mxu0 }
 0x283   :  { %919 = vpow2.f32 %v709_v32  ;;  %v707_v35 = vmul.f32 -1.442695, %v395_v33  ;;  %v406_v36 = vadd.f32 %v836_v34, %v311_v28 }
 0x284   :  { %v397_v37 = vpop.f32.mrf.mxu0 }
 0x285   :  { %921 = vpow2.f32 %v707_v35  ;;  %v710_v38 = vmul.f32 -1.442695, %v406_v36  ;;  %v398_v39 = vadd.f32 %v397_v37, %v311_v28 }
 0x287   :  { %923 = vpow2.f32 %v710_v38  ;;  %v708_v40 = vmul.f32 -1.442695, %v398_v39 }
 0x289   :  { %925 = vpow2.f32 %v708_v40 }
 0x290   :  { %v920_v41 = vpop.eup %919 }
 0x291   :  { %v423_v25 = vadd.f32 1.0, %v920_v41 }
 0x292   :  { %v922_v42 = vpop.eup %921 }
 0x293   :  { %927 = vrcp.f32 %v423_v25  ;;  %v421_v27 = vadd.f32 1.0, %v922_v42 }
 0x294   :  { %v924_v43 = vpop.eup %923 }
 0x295   :  { %929 = vrcp.f32 %v421_v27  ;;  %v424_v44 = vadd.f32 1.0, %v924_v43 }
 0x296   :  { %v926_v45 = vpop.eup %925 }
 0x297   :  { %931 = vrcp.f32 %v424_v44  ;;  %v422_v46 = vadd.f32 1.0, %v926_v45 }
 0x299   :  { %933 = vrcp.f32 %v422_v46 }
 0x29e   :  { %v875_v47 = vpop.f32.mrf.mxu0 }
 0x29f   :  { %671 = vst [vmem:[%s1160_s8 + $0x10] sm:$0xff] %v875_v47 }
 0x2a0   :  { %v928_v48 = vpop.eup %927  ;;  %v654_v49 = vpop.f32.mrf.mxu0 }
 0x2a1   :  { %435 = vst [vmem:[%s1161_s7 + $0x10] sm:$0xff] %v928_v48  ;;  %669 = vst [vmem:[%s1160_s8] sm:$0xff] %v654_v49 }
 0x2a2   :  { %v930_v50 = vpop.eup %929  ;;  %v876_v51 = vpop.f32.mrf.mxu0 }
 0x2a3   :  { %433 = vst [vmem:[%s1161_s7] sm:$0xff] %v930_v50  ;;  %672 = vst [vmem:[%s1160_s8 + $0x18] sm:$0xff] %v876_v51 }
 0x2a4   :  { %v932_v52 = vpop.eup %931  ;;  %v657_v53 = vpop.f32.mrf.mxu0 }
 0x2a5   :  { %436 = vst [vmem:[%s1161_s7 + $0x18] sm:$0xff] %v932_v52  ;;  %670 = vst [vmem:[%s1160_s8 + $0x8] sm:$0xff] %v657_v53 }
 0x2a6   :  { %v934_v54 = vpop.eup %933 }
 0x2a7   :  { %434 = vst [vmem:[%s1161_s7 + $0x8] sm:$0xff] %v934_v54 }

// kernel: omdet_v2_turbo_forward.19
= control target key start
LH: loop header
LB: loop body
LE: loop exit
PB: predicated region body
PF: predicated region fallthrough
CT: control target
= control target key end

     0   :  { %s3848_s30 = smov 0   ;;  %s4981_s0 = inlined_call_operand.vmem [shape: bf16[2,16,128], index: 0, kind: input, shape index: {}]   ;;  %s4982_s1 = inlined_call_operand.vmem [shape: bf16[2,336,128], index: 1, kind: input, shape index: {}]   ;;  %s4983_s2 = inlined_call_operand.vmem [shape: bf16[2,6,128], index: 2, kind: input, shape index: {}]   ;;  %s4984_s3 = inlined_call_operand.vmem [shape: f32[2,1,6], index: 3, kind: input, shape index: {}]   ;;  %s4985_s4 = inlined_call_operand.vmem [shape: bf16[3,128,384], index: 4, kind: input, shape index: {}]   ;;  %s4986_s5 = inlined_call_operand.vmem [shape: bf16[3,128,128], index: 5, kind: input, shape index: {}]   ;;  %s4987_s6 = inlined_call_operand.vmem [shape: bf16[128,256], index: 6, kind: input, shape index: {}]   ;;  %s4988_s7 = inlined_call_operand.vmem [shape: bf16[256,128], index: 7, kind: input, shape index: {}]   ;;  %s4989_s8 = inlined_call_operand.vmem [shape: f32[16,384], index: 8, kind: input, shape index: {}]   ;;  %s4990_s9 = inlined_call_operand.vmem [shape: bf16[2,16,128], index: 9, kind: output, shape index: {}]  }
   0x1 LB: > { %s2960_s10 = sadd.s32 4294967295, %s3793_s30   ;;  %p2964_p0 = scmp.ge.s32.totalorder %s3793_s30, 1  ;;  %s3793_s30 = sphi %s3848_s30, %s19_s30  }
   0x2   : > { %p314_p1 = scmp.lt.s32.totalorder %s3793_s30, 3 }
   0x4   : > { %p315_p2 = pnand %p2964_p0, %p314_p1 }
   0x6   : > { %318 = sbr.rel (%p315_p2) target bundleno = 5116 (0x13fc), region = 56 }
   0xb   : > { %v3553_v0 = vld [vmem:[%s4985_s4 + $0xac] ss:$12 sps:$4 sm:$0xff]   ;;  %v3555_v1 = vld [vmem:[%s4985_s4 + $0xa8] ss:$12 sps:$4 sm:$0xff]   ;;  %v4994_v2 = vmov 0   ;;  %p362_p3 = scmp.lt.s32.totalorder %s2960_s10, 1  ;;  %v485_v19 = vlaneseq }
   0xc   : > { %663 = vmatprep.mubr.bf16.mxu0 %v4994_v2  ;;  %631 = vmatprep.subr.bf16.mxu0 %v3553_v0  ;;  %v3556_v3 = vld [vmem:[%s4985_s4 + $0x94] ss:$12 sps:$4 sm:$0xff]   ;;  %v3558_v4 = vld [vmem:[%s4985_s4 + $0x90] ss:$12 sps:$4 sm:$0xff]   ;;  %v3561_v6 = vld [vmem:[%s4985_s4 + $0x78] ss:$12 sps:$4 sm:$0xff]  }
   0xd   : > { %632 = vmatpush1.bf16.msra.mxu0 %v3555_v1  ;;  %v3559_v5 = vld [vmem:[%s4985_s4 + $0x7c] ss:$12 sps:$4 sm:$0xff]   ;;  %s5098_s10 = smov (!%p362_p3, %s2960_s10), 1  ;;  %v3562_v7 = vld [vmem:[%s4985_s4 + $0x64] ss:$12 sps:$4 sm:$0xff]   ;;  %v4992_v18 = vmov 0.0  }
   0xe   : > { %633 = vmatprep.subr.bf16.mxu0 %v3556_v3  ;;  %v3564_v8 = vld [vmem:[%s4985_s4 + $0x60] ss:$12 sps:$4 sm:$0xff]   ;;  %s3224_s27 = sshll.u32 %s5098_s10, 3  ;;  %v3567_v10 = vld [vmem:[%s4985_s4 + $0x48] ss:$12 sps:$4 sm:$0xff]   ;;  %s3541_s29 = smul.u32 168, %s5098_s10  ;;  %3369 = vmatprep.subr.bf16.mxu1 %v4992_v18 }
   0xf   : > { %v3565_v9 = vld [vmem:[%s4985_s4 + $0x4c] ss:$12 sps:$4 sm:$0xff]   ;;  %v3568_v11 = vld [vmem:[%s4985_s4 + $0x34] ss:$12 sps:$4 sm:$0xff]   ;;  %v3570_v12 = vld [vmem:[%s4985_s4 + $0x30] ss:$12 sps:$4 sm:$0xff]   ;;  %s366_s25 = scalar_lea.vmem %s4981_s0, %s3224_s27  ;;  %s378_s23 = scalar_lea.vmem %s4984_s3, %s5098_s10 }
  0x10   : > { %v3571_v13 = vld [vmem:[%s4985_s4 + $0x1c] ss:$12 sps:$4 sm:$0xff]   ;;  %v3573_v14 = vld [vmem:[%s4985_s4 + $0x18] ss:$12 sps:$4 sm:$0xff]   ;;  %v3576_v16 = vld [vmem:[%s4985_s4] ss:$12 sps:$4 sm:$0xff]   ;;  %s3920_s13 = scalar_lea.vmem %s4982_s1, %s3541_s29  ;;  %s383_s18 = scalar_lea.vmem %s4990_s9, %s3224_s27 }
  0x11   : > { %634 = vmatpush1.bf16.msra.mxu0 %v3558_v4  ;;  %v3574_v15 = vld [vmem:[%s4985_s4 + $0x4] ss:$12 sps:$4 sm:$0xff]   ;;  %vm3797_vm0 = vmmov 0   ;;  %v3928_v20 = vshrl.u32 %v485_v19, 7  ;;  %v3933_v22 = vld [vmem:[%s4989_s8 + $0x8] sm:$0xff]  ;;  %vm760_vm1 = vcmask 130048  }
  0x12   : > { %635 = vmatprep.subr.bf16.mxu0 %v3559_v5  ;;  %v3913_v17 = vld [vmem:[%s366_s25] sm:$0xff]   ;;  %3385 = vmatprep.mubr.msk.bf16.mxu1 %vm3797_vm0, %v4992_v18  ;;  %v3578_v36 = vld [vmem:[%s4985_s4 + $0xb0] ss:$12 sps:$4 sm:$0xff]   ;;  %v3581_v39 = vld [vmem:[%s4985_s4 + $0x68] ss:$12 sps:$4 sm:$0xff]   ;;  %s2968_s24 = sshll.u32 %s5098_s10, 2 }
  0x13   : > { %v3936_v23 = vsub.s32 0, %v3928_v20  ;;  %v3943_v28 = vld [vmem:[%s4989_s8] sm:$0xff]  ;;  %3370 = vmatpush3.bf16.msra.mxu1 %v3578_v36  ;;  %v3582_v40 = vld [vmem:[%s4985_s4 + $0x50] ss:$12 sps:$4 sm:$0xff]   ;;  %v3585_v43 = vld [vmem:[%s4985_s4 + $0x8] ss:$12 sps:$4 sm:$0xff]   ;;  %v391_v36 = vunpack.c.l.bf16 %v3913_v17  ;;  %s375_s14 = scalar_lea.vmem %s4983_s2, %s2968_s24 }
  0x14   : > { %v3579_v37 = vld [vmem:[%s4985_s4 + $0x98] ss:$12 sps:$4 sm:$0xff]   ;;  %3371 = vmatprep.subr.bf16.mxu1 %v4992_v18  ;;  %v3580_v38 = vld [vmem:[%s4985_s4 + $0x80] ss:$12 sps:$4 sm:$0xff]   ;;  %v3992_v62 = vld [vmem:[%s4989_s8 + $0x10] sm:$0xff]  ;;  %vm1325_vm2 = vcmask 1042432  }
  0x15   : > { %636 = vmatpush1.bf16.msra.mxu0 %v3561_v6  ;;  %v492_v25 = vrot.slane %v3933_v22, %v3936_v23  ;;  %v488_v32 = vrot.slane %v3943_v28, %v3936_v23  ;;  %v3583_v41 = vld [vmem:[%s4985_s4 + $0x38] ss:$12 sps:$4 sm:$0xff]   ;;  %v3584_v42 = vld [vmem:[%s4985_s4 + $0x20] ss:$12 sps:$4 sm:$0xff]   ;;  %v496_v0 = vrot.slane %v3992_v62, %v3936_v23  ;;  %vm1287_vm5 = vcmask 48128  }
  0x16   : > { %637 = vmatprep.subr.bf16.mxu0 %v3562_v7  ;;  %v3588_v19 = vld [vmem:[%s4986_s5 + $0x28] sm:$0xff]   ;;  %vm2213_vm6 = vcmask 654336  }
  0x17   : > { %3372 = vmatpush3.bf16.msra.mxu1 %v3579_v37 }
  0x18   : > { %3373 = vmatprep.subr.bf16.mxu1 %v4992_v18 }
  0x19   : > { %638 = vmatpush1.bf16.msra.mxu0 %v3564_v8 }
  0x1a   : > { %639 = vmatprep.subr.bf16.mxu0 %v3565_v9 }
  0x1b   : > { %3374 = vmatpush3.bf16.msra.mxu1 %v3580_v38 }
  0x1c   : > { %3375 = vmatprep.subr.bf16.mxu1 %v4992_v18 }
  0x1d   : > { %640 = vmatpush1.bf16.msra.mxu0 %v3567_v10 }
  0x1e   : > { %641 = vmatprep.subr.bf16.mxu0 %v3568_v11 }
  0x1f   : > { %3376 = vmatpush3.bf16.msra.mxu1 %v3581_v39 }
  0x20   : > { %3377 = vmatprep.subr.bf16.mxu1 %v4992_v18 }
  0x21   : > { %642 = vmatpush1.bf16.msra.mxu0 %v3570_v12 }
  0x22   : > { %643 = vmatprep.subr.bf16.mxu0 %v3571_v13 }
  0x23   : > { %3378 = vmatpush3.bf16.msra.mxu1 %v3582_v40 }
  0x24   : > { %3379 = vmatprep.subr.bf16.mxu1 %v4992_v18 }
  0x25   : > { %644 = vmatpush1.bf16.msra.mxu0 %v3573_v14  ;;  %v3586_v14 = vld [vmem:[%s4986_s5 + $0x38] sm:$0xff]  }
  0x26   : > { %645 = vmatprep.subr.bf16.mxu0 %v3574_v15 }
  0x27   : > { %3380 = vmatpush3.bf16.msra.mxu1 %v3583_v41  ;;  %v392_v41 = vunpack.c.h.bf16 %v3913_v17 }
  0x28   : > { %3381 = vmatprep.subr.bf16.mxu1 %v4992_v18 }
  0x29   : > { %646 = vmatpush1.bf16.msra.mxu0 %v3576_v16  ;;  %v3587_v16 = vld [vmem:[%s4986_s5 + $0x30] sm:$0xff]  }
  0x2a   : > { %3389 = vmatprep.subr.bf16.mxu0 %v4992_v18 }
  0x2b   : > { %3382 = vmatpush3.bf16.msra.mxu1 %v3584_v42 }
  0x2c   : > { %664 = vmatmul.mubr.bf16.vlgmr.msra.gmra.mxu0 %v3913_v17  ;;  %3383 = vmatprep.subr.bf16.mxu1 %v4992_v18 }
  0x2d   : > { %3391 = vmatprep.mubr.msk.bf16.mxu0 %vm3797_vm0, %v4992_v18 }
  0x2f   : > { %3384 = vmatpush3.bf16.msra.mxu1 %v3585_v43 }
  0x30   : > { %3421 = vmatprep.subr.bf16.mxu1 %v4992_v18 }
  0x32   : > { %3386 = vmatmul.mubr.bf16.vlgmr.msra.gmra.mxu1 %v3913_v17  ;;  %v3603_v17 = vld [vmem:[%s4985_s4 + $0x168] ss:$12 sps:$4 sm:$0xff]  }
  0x33   : > { %3437 = vmatprep.mubr.msk.bf16.mxu1 %vm3797_vm0, %v4992_v18  ;;  %3422 = vmatpush3.bf16.msra.mxu1 %v3603_v17 }
  0x34   : > { %3423 = vmatprep.subr.bf16.mxu1 %v4992_v18 }
  0xec   : > { %v665_v21 = vpop.f32.mrf.mxu0 }
  0xed   : > { %v666_v34 = vadd.f32 %v665_v21, %v488_v32  ;;  %v3589_v21 = vld [vmem:[%s4986_s5 + $0x20] sm:$0xff]  }
  0xee   : > { %v667_v24 = vpop.f32.mrf.mxu0 }
  0xef   : > { %v668_v29 = vadd.f32 %v667_v24, %v492_v25  ;;  %v3590_v24 = vld [vmem:[%s4986_s5 + $0x18] sm:$0xff]  }
  0xf0   : > { %v669_v26 = vpop.f32.mrf.mxu0 }
  0xf1   : > { %v670_v33 = vadd.f32 %v669_v26, %v488_v32  ;;  %v3592_v26 = vld [vmem:[%s4986_s5 + $0x8] sm:$0xff]  }
  0xf2   : > { %v671_v27 = vpop.f32.mrf.mxu0  ;;  %v708_v63 = vpop.f32.mrf.mxu1 }
  0xf3   : > { %v672_v30 = vadd.f32 %v671_v27, %v492_v25  ;;  %v715_v35 = vpack.c.bf16 %v670_v33, %v666_v34  ;;  %v709_v3 = vadd.f32 %v708_v63, %v496_v0  ;;  %v3591_v25 = vld [vmem:[%s4986_s5 + $0x10] sm:$0xff]   ;;  %v3593_v27 = vld [vmem:[%s4986_s5] sm:$0xff]   ;;  %v4991_v34 = vsub.s32 3, %v3928_v20 }
  0xf4   : > { %v3387_v1 = vpop.f32.mrf.mxu1  ;;  %v3607_v63 = vld [vmem:[%s4985_s4 + $0x150] ss:$12 sps:$4 sm:$0xff]  }
  0xf5   : > { %v716_v31 = vpack.c.bf16 %v672_v30, %v668_v29  ;;  %3424 = vmatpush3.bf16.msra.mxu1 %v3607_v63  ;;  %v3608_v1 = vld [vmem:[%s4985_s4 + $0x10c] ss:$12 sps:$4 sm:$0xff]  }
  0xf6   : > { %v711_v4 = vpop.f32.mrf.mxu1  ;;  %3425 = vmatprep.subr.bf16.mxu1 %v4992_v18 }
  0xf7   : > { %3390 = vmatpush3.bf16.xpose.msra.mxu0 %v716_v31  ;;  %v712_v5 = vadd.f32 %v711_v4, %v496_v0  ;;  %v3610_v0 = vld [vmem:[%s4985_s4 + $0x110] ss:$12 sps:$4 sm:$0xff]   ;;  %v3614_v4 = vld [vmem:[%s4985_s4 + $0xf8] ss:$12 sps:$4 sm:$0xff]  }
  0xf8   : > { %3395 = vmatprep.subr.bf16.mxu0 %v4992_v18  ;;  %v3388_v6 = vpop.f32.mrf.mxu1 }
  0xf9   : > { %v784_v7 = vpack.c.bf16 %v712_v5, %v709_v3  ;;  %v3611_v3 = vld [vmem:[%s4985_s4 + $0x138] ss:$12 sps:$4 sm:$0xff]   ;;  %v3612_v5 = vld [vmem:[%s4985_s4 + $0xf4] ss:$12 sps:$4 sm:$0xff]  }
  0xfa   : > { %3426 = vmatpush3.bf16.msra.mxu1 %v3611_v3  ;;  %v3615_v6 = vld [vmem:[%s4985_s4 + $0x120] ss:$12 sps:$4 sm:$0xff]  }
  0xfb   : > { %3427 = vmatprep.subr.bf16.mxu1 %v4992_v18 }
  0xfe   : > { %3392 = vmatmul.mubr.bf16.vlgmr.msra.gmra.mxu0 %v715_v35  ;;  %v833_v35 = vrot.slane %v3943_v28, %v4991_v34  ;;  %3428 = vmatpush3.bf16.msra.mxu1 %v3615_v6 }
  0xff   : > { %3397 = vmatprep.mubr.msk.bf16.mxu0 %vm3797_vm0, %v4992_v18  ;;  %3396 = vmatpush3.bf16.msra.mxu0 %v784_v7  ;;  %v3618_v7 = vld [vmem:[%s4985_s4 + $0xe0] ss:$12 sps:$4 sm:$0xff]  }
 0x100   : > { %3401 = vmatprep.subr.bf16.mxu0 %v4992_v18  ;;  %3429 = vmatprep.subr.bf16.mxu1 %v4992_v18 }
 0x1be   : > { %v751_v44 = vpop.f32.mrf.mxu0 }
 0x1bf   : > { %v758_v45 = vmul.f32 0.088388346, %v751_v44 }
 0x1c0   : > { %v3393_v46 = vpop.f32.mrf.mxu0 }
 0x1c1   : > { %v761_v47 = vsel %vm760_vm1, %v758_v45, -inf  ;;  %v3594_v46 = vld [vmem:[%s4985_s4 + $0x16c] ss:$12 sps:$4 sm:$0xff]  }
 0x1c2   : > { %762 = vmax.xlane.f32.xlu0 %v761_v47  ;;  %v754_v48 = vpop.f32.mrf.mxu0  ;;  %v3596_v47 = vld [vmem:[%s4985_s4 + $0x170] ss:$12 sps:$4 sm:$0xff]  }
 0x1c3   : > { %v759_v49 = vmul.f32 0.088388346, %v754_v48  ;;  %v3599_v48 = vld [vmem:[%s4985_s4 + $0x158] ss:$12 sps:$4 sm:$0xff]  }
 0x1c4   : > { %v3394_v50 = vpop.f32.mrf.mxu0 }
 0x1c5   : > { %v764_v51 = vsel %vm760_vm1, %v759_v49, -inf  ;;  %v3602_v50 = vld [vmem:[%s4985_s4 + $0x140] ss:$12 sps:$4 sm:$0xff]  }
 0x1c6   : > { %765 = vmax.xlane.f32.xlu0 %v764_v51  ;;  %v3600_v51 = vld [vmem:[%s4985_s4 + $0x13c] ss:$12 sps:$4 sm:$0xff]  }
 0x24b   : > { %v763_v52 = vpop.xlane.xlu0 %762 }
 0x24c   : > { %v767_v53 = vsub.f32 %v758_v45, %v763_v52 }
 0x24e   : > { %v769_v54 = vmul.f32 1.442695, %v767_v53 }
 0x24f   : > { %v766_v55 = vpop.xlane.xlu0 %765 }
 0x250   : > { %3736 = vpow2.f32 %v769_v54  ;;  %v768_v56 = vsub.f32 %v759_v49, %v766_v55  ;;  %v3597_v49 = vld [vmem:[%s4985_s4 + $0x154] ss:$12 sps:$4 sm:$0xff]  }
 0x252   : > { %v771_v57 = vmul.f32 1.442695, %v768_v56 }
 0x254   : > { %3738 = vpow2.f32 %v771_v57 }
 0x25d   : > { %v3737_v58 = vpop.eup %3736 }
 0x25e   : > { %v773_v59 = vsel %vm760_vm1, %v3737_v58, 0.0 }
 0x25f   : > { %774 = vadd.xlane.f32.xlu1 %v773_v59 }
 0x261   : > { %v3739_v60 = vpop.eup %3738 }
 0x262   : > { %v776_v61 = vsel %vm760_vm1, %v3739_v60, 0.0 }
 0x263   : > { %777 = vadd.xlane.f32.xlu1 %v776_v61  ;;  %v3604_v61 = vld [vmem:[%s4985_s4 + $0x124] ss:$12 sps:$4 sm:$0xff]  }
 0x2e8   : > { %v775_v8 = vpop.xlane.xlu1 %774 }
 0x2e9   : > { %3740 = vrcp.f32 %v775_v8  ;;  %v3616_v8 = vld [vmem:[%s4985_s4 + $0xdc] ss:$12 sps:$4 sm:$0xff]  }
 0x2ec   : > { %v778_v9 = vpop.xlane.xlu1 %777 }
 0x2ed   : > { %3742 = vrcp.f32 %v778_v9  ;;  %v3619_v9 = vld [vmem:[%s4985_s4 + $0x108] ss:$12 sps:$4 sm:$0xff]  }
 0x2ee   : > { %3430 = vmatpush3.bf16.msra.mxu1 %v3619_v9 }
 0x2ef   : > { %3431 = vmatprep.subr.bf16.mxu1 %v4992_v18 }
 0x2f6   : > { %v3741_v10 = vpop.eup %3740 }
 0x2f7   : > { %v781_v12 = vmul.f32 %v3741_v10, %v3737_v58  ;;  %v3622_v10 = vld [vmem:[%s4985_s4 + $0xc8] ss:$12 sps:$4 sm:$0xff]  }
 0x2fa   : > { %v3743_v11 = vpop.eup %3742 }
 0x2fb   : > { %v782_v13 = vmul.f32 %v3743_v11, %v3739_v60  ;;  %v3606_v60 = vld [vmem:[%s4985_s4 + $0x128] ss:$12 sps:$4 sm:$0xff]   ;;  %v3620_v11 = vld [vmem:[%s4985_s4 + $0xc4] ss:$12 sps:$4 sm:$0xff]  }
 0x2fd   : > { %v783_v15 = vpack.c.bf16 %v782_v13, %v781_v12  ;;  %v3623_v12 = vld [vmem:[%s4985_s4 + $0xf0] ss:$12 sps:$4 sm:$0xff]   ;;  %v435_v13 = vld [vmem:[%s375_s14] sm:$0x7] }
 0x2fe   : > { %3432 = vmatpush3.bf16.msra.mxu1 %v3623_v12 }
 0x2ff   : > { %3398 = vmatmul.mubr.msk.bf16.vlgmr.msra.gmra.mxu0 %vm760_vm1, %v783_v15  ;;  %3433 = vmatprep.subr.bf16.mxu1 %v4992_v18  ;;  %v3625_v15 = vld [vmem:[%s4985_s4 + $0xc0] ss:$12 sps:$4 sm:$0xff]  }
 0x300   : > { %3402 = vmatpush3.bf16.msra.mxu0 %v3586_v14  ;;  %3417 = vmatprep.mubr.msk.bf16.mxu0 %vm3797_vm0, %v4992_v18  ;;  %v3624_v14 = vld [vmem:[%s4985_s4 + $0xd8] ss:$12 sps:$4 sm:$0xff]  }
 0x301   : > { %3403 = vmatprep.subr.bf16.mxu0 %v4992_v18 }
 0x302   : > { %3434 = vmatpush3.bf16.msra.mxu1 %v3624_v14 }
 0x303   : > { %3435 = vmatprep.subr.bf16.mxu1 %v4992_v18 }
 0x304   : > { %3404 = vmatpush3.bf16.msra.mxu0 %v3587_v16 }
 0x305   : > { %3405 = vmatprep.subr.bf16.mxu0 %v4992_v18 }
 0x306   : > { %3436 = vmatpush3.bf16.msra.mxu1 %v3625_v15 }
 0x307   : > { %3447 = vmatprep.subr.bf16.mxu1 %v4992_v18 }
 0x308   : > { %3406 = vmatpush3.bf16.msra.mxu0 %v3588_v19 }
 0x309   : > { %3407 = vmatprep.subr.bf16.mxu0 %v4992_v18 }
 0x30c   : > { %3408 = vmatpush3.bf16.msra.mxu0 %v3589_v21 }
 0x30d   : > { %3409 = vmatprep.subr.bf16.mxu0 %v4992_v18 }
 0x310   : > { %3410 = vmatpush3.bf16.msra.mxu0 %v3590_v24 }
 0x311   : > { %3411 = vmatprep.subr.bf16.mxu0 %v4992_v18 }
 0x314   : > { %3412 = vmatpush3.bf16.msra.mxu0 %v3591_v25 }
 0x315   : > { %3413 = vmatprep.subr.bf16.mxu0 %v4992_v18 }
 0x318   : > { %3414 = vmatpush3.bf16.msra.mxu0 %v3592_v26 }
 0x319   : > { %3415 = vmatprep.subr.bf16.mxu0 %v4992_v18 }
 0x31c   : > { %3416 = vmatpush3.bf16.msra.mxu0 %v3593_v27  ;;  %v4136_v27 = vld [vmem:[%s4989_s8 + $0x18] sm:$0xff] }
 0x31d   : > { %1192 = vmatprep.subr.bf16.mxu0 %v3596_v47 }
 0x3bf   : > { %v822_v29 = vpop.f32.mrf.mxu0 }
 0x3c1   : > { %v3399_v30 = vpop.f32.mrf.mxu0 }
 0x3c3   : > { %v825_v31 = vpop.f32.mrf.mxu0 }
 0x3c4   : > { %v829_v32 = vpack.c.bf16 %v825_v31, %v822_v29  ;;  %v951_v31 = vrot.slane %v4136_v27, %v3936_v23 }
 0x3c5   : > { %v3400_v33 = vpop.f32.mrf.mxu0 }
 0x3c6   : > { %3418 = vmatmul.mubr.bf16.vlgmr.msra.gmra.mxu0 %v829_v32  ;;  %v956_v32 = vsub.s32 4, %v3928_v20 }
 0x3c7   : > { %1224 = vmatprep.mubr.bf16.mxu0 %v4994_v2  ;;  %1193 = vmatpush1.bf16.msra.mxu0 %v3594_v46 }
 0x3c8   : > { %1194 = vmatprep.subr.bf16.mxu0 %v3599_v48 }
 0x3cb   : > { %1195 = vmatpush1.bf16.msra.mxu0 %v3597_v49 }
 0x3cc   : > { %1196 = vmatprep.subr.bf16.mxu0 %v3602_v50 }
 0x3cf   : > { %1197 = vmatpush1.bf16.msra.mxu0 %v3600_v51 }
 0x3d0   : > { %1198 = vmatprep.subr.bf16.mxu0 %v3606_v60 }
 0x3d3   : > { %1199 = vmatpush1.bf16.msra.mxu0 %v3604_v61  ;;  %v436_v61 = vld [vmem:[%s378_s23] sm:$0x1] }
 0x3d4   : > { %1200 = vmatprep.subr.bf16.mxu0 %v3610_v0  ;;  %vm1278_vm3 = vcmp.gt.f32.partialorder %v436_v61, 0.5 }
 0x3d5   : > { %v1279_v63 = vsel %vm1278_vm3, 1, %v4994_v2 }
 0x3d6   : > { %v1283_v0 = vrot.slane %v1279_v63, %v3936_v23  ;;  %v3640_v63 = vld [vmem:[%s4985_s4 + $0x1fc] ss:$12 sps:$4 sm:$0xff]  }
 0x3d7   : > { %1201 = vmatpush1.bf16.msra.mxu0 %v3608_v1 }
 0x3d8   : > { %1202 = vmatprep.subr.bf16.mxu0 %v3614_v4  ;;  %vm1284_vm4 = vcmp.eq.s32.totalorder %v1283_v0, 1  ;;  %v3645_v0 = vld [vmem:[%s4985_s4 + $0x1e8] ss:$12 sps:$4 sm:$0xff]  }
 0x3db   : > { %1203 = vmatpush1.bf16.msra.mxu0 %v3612_v5 }
 0x3dc   : > { %1204 = vmatprep.subr.bf16.mxu0 %v3618_v7 }
 0x3df   : > { %1205 = vmatpush1.bf16.msra.mxu0 %v3616_v8 }
 0x3e0   : > { %1206 = vmatprep.subr.bf16.mxu0 %v3622_v10 }
 0x3e3   : > { %1207 = vmatpush1.bf16.msra.mxu0 %v3620_v11 }
 0x3e4   : > { %3441 = vmatprep.subr.bf16.mxu0 %v4992_v18 }
 0x3e6   : > { %1225 = vmatmul.mubr.bf16.vlgmr.msra.gmra.mxu0 %v435_v13 }
 0x3e7   : > { %3443 = vmatprep.mubr.msk.bf16.mxu0 %vm3797_vm0, %v4992_v18 }
 0x486   : > { %v916_v37 = vpop.f32.mrf.mxu0 }
 0x487   : > { %v917_v38 = vadd.f32 %v916_v37, %v833_v35  ;;  %v957_v37 = vrot.slane %v4136_v27, %v956_v32 }
 0x488   : > { %v3419_v39 = vpop.f32.mrf.mxu0 }
 0x489   : > { %v923_v40 = vadd.f32 %v917_v38, %v391_v36 }
 0x48a   : > { %v919_v42 = vpop.f32.mrf.mxu0 }
 0x48b   : > { %v920_v43 = vadd.f32 %v919_v42, %v833_v35  ;;  %925 = vadd.xlane.f32.xlu0 %v923_v40  ;;  %v4155_v42 = vsub.s32 1, %v3928_v20 }
 0x48c   : > { %v3420_v44 = vpop.f32.mrf.mxu0 }
 0x48d   : > { %v924_v45 = vadd.f32 %v920_v43, %v392_v41  ;;  %v1107_v43 = vrot.slane %v3933_v22, %v4155_v42  ;;  %v1111_v44 = vrot.slane %v3992_v62, %v4155_v42 }
 0x48f   : > { %927 = vadd.xlane.f32.xlu1 %v924_v45 }
 0x514   : > { %v926_v52 = vpop.xlane.xlu0 %925 }
 0x515   : > { %v930_v53 = vmul.f32 0.0078125, %v926_v52 }
 0x517   : > { %v4060_v54 = vsub.f32 %v923_v40, %v930_v53 }
 0x518   : > { %v928_v55 = vpop.xlane.xlu1 %927 }
 0x519   : > { %v931_v56 = vmul.f32 0.0078125, %v928_v55  ;;  %v934_v57 = vmul.f32 %v4060_v54, %v4060_v54 }
 0x51b   : > { %v4064_v58 = vsub.f32 %v924_v45, %v931_v56  ;;  %936 = vadd.xlane.f32.xlu0 %v934_v57  ;;  %v1226_v45 = vpop.f32.mrf.mxu0 }
 0x51c   : > { %v1227_v46 = vadd.f32 %v1226_v45, %v1107_v43 }
 0x51d   : > { %v935_v59 = vmul.f32 %v4064_v58, %v4064_v58  ;;  %v1228_v47 = vpop.f32.mrf.mxu0 }
 0x51e   : > { %v1234_v48 = vpack.c.bf16 %v1227_v46, %v1227_v46  ;;  %v1229_v17 = vadd.f32 %v1228_v47, %v1111_v44  ;;  %v3626_v44 = vld [vmem:[%s4986_s5 + $0x78] sm:$0xff]   ;;  %v3627_v46 = vld [vmem:[%s4986_s5 + $0x70] sm:$0xff]   ;;  %v3628_v47 = vld [vmem:[%s4986_s5 + $0x68] sm:$0xff]  }
 0x51f   : > { %938 = vadd.xlane.f32.xlu1 %v935_v59  ;;  %v1230_v49 = vpop.f32.mrf.mxu0 }
 0x520   : > { %v1321_v50 = vpack.c.bf16 %v1229_v17, %v1229_v17  ;;  %3442 = vmatpush3.bf16.xpose.msra.mxu0 %v1234_v48  ;;  %v3629_v48 = vld [vmem:[%s4986_s5 + $0x60] sm:$0xff]   ;;  %v3630_v17 = vld [vmem:[%s4986_s5 + $0x58] sm:$0xff]   ;;  %v3631_v49 = vld [vmem:[%s4986_s5 + $0x50] sm:$0xff]  }
 0x521   : > { %v1231_v51 = vpop.f32.mrf.mxu0  ;;  %3473 = vmatprep.subr.bf16.mxu0 %v4992_v18 }
 0x522   : > { %v1327_v52 = vsel %vm1325_vm2, %v1321_v50, 0  ;;  %v3632_v50 = vld [vmem:[%s4986_s5 + $0x48] sm:$0xff]   ;;  %v3633_v51 = vld [vmem:[%s4986_s5 + $0x40] sm:$0xff]  }
 0x5a4   : > { %v937_v16 = vpop.xlane.xlu0 %936 }
 0x5a5   : > { %v940_v19 = vmul.f32 0.0078125, %v937_v16 }
 0x5a7   : > { %v942_v21 = vadd.f32 1e-05, %v940_v19 }
 0x5a8   : > { %v939_v24 = vpop.xlane.xlu1 %938 }
 0x5a9   : > { %3744 = vrsqrt.f32 %v942_v21  ;;  %v941_v25 = vmul.f32 0.0078125, %v939_v24  ;;  %v1304_v21 = vrot.slane %v436_v61, %v3936_v23  ;;  %v3642_v61 = vld [vmem:[%s4985_s4 + $0x200] ss:$12 sps:$4 sm:$0xff]  }
 0x5ab   : > { %v943_v26 = vadd.f32 1e-05, %v941_v25 }
 0x5ad   : > { %3746 = vrsqrt.f32 %v943_v26 }
 0x5b6   : > { %v3745_v29 = vpop.eup %3744 }
 0x5b7   : > { %v946_v30 = vmul.f32 %v3745_v29, %v4060_v54  ;;  %v1014_v54 = vrot.slane %v3943_v28, %v4155_v42 }
 0x5b9   : > { %v952_v36 = vmul.f32 %v951_v31, %v946_v30 }
 0x5ba   : > { %v3747_v33 = vpop.eup %3746 }
 0x5bb   : > { %v947_v35 = vmul.f32 %v3747_v33, %v4064_v58  ;;  %v4146_v39 = vadd.f32 %v957_v37, %v952_v36 }
 0x5bd   : > { %v953_v38 = vmul.f32 %v951_v31, %v947_v35 }
 0x5bf   : > { %v4148_v40 = vadd.f32 %v957_v37, %v953_v38 }
 0x5c1   : > { %v1010_v41 = vpack.c.bf16 %v4148_v40, %v4146_v39 }
 0x5c3   : > { %3438 = vmatmul.mubr.bf16.vlgmr.msra.gmra.mxu1 %v1010_v41 }
 0x5c4   : > { %3449 = vmatprep.mubr.msk.bf16.mxu1 %vm3797_vm0, %v4992_v18  ;;  %3448 = vmatpush3.bf16.msra.mxu1 %v1327_v52  ;;  %v3636_v52 = vld [vmem:[%s4985_s4 + $0x230] ss:$12 sps:$4 sm:$0xff]  }
 0x5c5   : > { %3453 = vmatprep.subr.bf16.mxu1 %v4992_v18 }
 0x683   : > { %v1097_v53 = vpop.f32.mrf.mxu1 }
 0x684   : > { %v1098_v57 = vadd.f32 %v1097_v53, %v1014_v54 }
 0x685   : > { %v3439_v55 = vpop.f32.mrf.mxu1 }
 0x687   : > { %v1100_v56 = vpop.f32.mrf.mxu1 }
 0x688   : > { %v1101_v58 = vadd.f32 %v1100_v56, %v1014_v54  ;;  %v3634_v56 = vld [vmem:[%s4985_s4 + $0x22c] ss:$12 sps:$4 sm:$0xff]  }
 0x689   : > { %v3440_v59 = vpop.f32.mrf.mxu1 }
 0x68a   : > { %v1233_v60 = vpack.c.bf16 %v1101_v58, %v1098_v57  ;;  %v3639_v58 = vld [vmem:[%s4985_s4 + $0x218] ss:$12 sps:$4 sm:$0xff]  }
 0x68c   : > { %3444 = vmatmul.mubr.bf16.vlgmr.msra.gmra.mxu0 %v1233_v60  ;;  %v3637_v60 = vld [vmem:[%s4985_s4 + $0x214] ss:$12 sps:$4 sm:$0xff]  }
 0x68d   : > { %3489 = vmatprep.mubr.msk.bf16.mxu0 %vm3797_vm0, %v4992_v18 }
 0x74c   : > { %v1269_v1 = vpop.f32.mrf.mxu0 }
 0x74d   : > { %v1276_v3 = vmul.f32 0.088388346, %v1269_v1  ;;  %v3643_v1 = vld [vmem:[%s4985_s4 + $0x1e4] ss:$12 sps:$4 sm:$0xff]  }
 0x74e   : > { %v3445_v4 = vpop.f32.mrf.mxu0 }
 0x74f   : > { %v1285_v5 = vsel %vm1284_vm4, %v1276_v3, -1e+09  ;;  %v3648_v3 = vld [vmem:[%s4985_s4 + $0x1d0] ss:$12 sps:$4 sm:$0xff]   ;;  %v3646_v4 = vld [vmem:[%s4985_s4 + $0x1cc] ss:$12 sps:$4 sm:$0xff]  }
 0x750   : > { %v1272_v6 = vpop.f32.mrf.mxu0  ;;  %v1288_v7 = vsel %vm1287_vm5, %v1285_v5, -inf }
 0x751   : > { %v1277_v8 = vmul.f32 0.088388346, %v1272_v6  ;;  %1289 = vmax.xlane.f32.xlu0 %v1288_v7  ;;  %v3649_v6 = vld [vmem:[%s4985_s4 + $0x1b4] ss:$12 sps:$4 sm:$0xff]  }
 0x752   : > { %v3446_v9 = vpop.f32.mrf.mxu0  ;;  %v3654_v7 = vld [vmem:[%s4985_s4 + $0x1a0] ss:$12 sps:$4 sm:$0xff]  }
 0x753   : > { %v1286_v10 = vsel %vm1284_vm4, %v1277_v8, -1e+09  ;;  %v3652_v8 = vld [vmem:[%s4985_s4 + $0x19c] ss:$12 sps:$4 sm:$0xff]  }
 0x754   : > { %v1291_v11 = vsel %vm1287_vm5, %v1286_v10, -inf  ;;  %v3657_v9 = vld [vmem:[%s4985_s4 + $0x188] ss:$12 sps:$4 sm:$0xff]  }
 0x755   : > { %1292 = vmax.xlane.f32.xlu1 %v1291_v11  ;;  %v3658_v11 = vld [vmem:[%s3920_s13] sm:$0xff]  }
 0x7da   : > { %v1290_v12 = vpop.xlane.xlu0 %1289 }
 0x7db   : > { %v1294_v13 = vsub.f32 %v1285_v5, %v1290_v12  ;;  %v3651_v5 = vld [vmem:[%s4985_s4 + $0x1b8] ss:$12 sps:$4 sm:$0xff]   ;;  %v3659_v12 = vld [vmem:[%s3920_s13 + $0x8] sm:$0xff]  }
 0x7dd   : > { %v1296_v14 = vmul.f32 1.442695, %v1294_v13  ;;  %v3660_v13 = vld [vmem:[%s3920_s13 + $0x10] sm:$0xff]  }
 0x7de   : > { %v1293_v15 = vpop.xlane.xlu1 %1292 }
 0x7df   : > { %3748 = vpow2.f32 %v1296_v14  ;;  %v1295_v16 = vsub.f32 %v1286_v10, %v1293_v15  ;;  %v3655_v10 = vld [vmem:[%s4985_s4 + $0x184] ss:$12 sps:$4 sm:$0xff]   ;;  %v3661_v14 = vld [vmem:[%s3920_s13 + $0x18] sm:$0xff]  }
 0x7e0   : > { %v3662_v15 = vld [vmem:[%s3920_s13 + $0x20] sm:$0xff]  }
 0x7e1   : > { %v1298_v19 = vmul.f32 1.442695, %v1295_v16  ;;  %v3663_v16 = vld [vmem:[%s3920_s13 + $0x28] sm:$0xff]  }
 0x7e3   : > { %3750 = vpow2.f32 %v1298_v19  ;;  %v3664_v19 = vld [vmem:[%s3920_s13 + $0x30] sm:$0xff]  }
 0x7ec   : > { %v3749_v24 = vpop.eup %3748 }
 0x7ed   : > { %v1306_v25 = vmul.f32 %v3749_v24, %v1304_v21  ;;  %v3666_v24 = vld [vmem:[%s3920_s13 + $0x40] sm:$0xff]  }
 0x7ef   : > { %v1308_v26 = vsel %vm1287_vm5, %v1306_v25, 0.0 }
 0x7f0   : > { %v3751_v29 = vpop.eup %3750  ;;  %1309 = vadd.xlane.f32.xlu0 %v1308_v26  ;;  %v3668_v26 = vld [vmem:[%s3920_s13 + $0x50] sm:$0xff]  }
 0x7f1   : > { %v1307_v30 = vmul.f32 %v3751_v29, %v1304_v21  ;;  %v3665_v21 = vld [vmem:[%s3920_s13 + $0x38] sm:$0xff]  }
 0x7f2   : > { %v3669_v29 = vld [vmem:[%s3920_s13 + $0x58] sm:$0xff]  }
 0x7f3   : > { %v1311_v31 = vsel %vm1287_vm5, %v1307_v30, 0.0 }
 0x7f4   : > { %1312 = vadd.xlane.f32.xlu1 %v1311_v31  ;;  %v3671_v31 = vld [vmem:[%s3920_s13 + $0x68] sm:$0xff]  }
 0x879   : > { %v1310_v33 = vpop.xlane.xlu0 %1309 }
 0x87a   : > { %v1314_v35 = vadd.f32 1e-06, %v1310_v33  ;;  %v3672_v33 = vld [vmem:[%s3920_s13 + $0x70] sm:$0xff]  }
 0x87c   : > { %3752 = vrcp.f32 %v1314_v35  ;;  %v3673_v35 = vld [vmem:[%s3920_s13 + $0x78] sm:$0xff]  }
 0x87d   : > { %v1313_v36 = vpop.xlane.xlu1 %1312 }
 0x87e   : > { %v1315_v37 = vadd.f32 1e-06, %v1313_v36  ;;  %v1374_v36 = vrot.slane %v3943_v28, %v956_v32  ;;  %v3675_v28 = vld [vmem:[%s4985_s4 + $0x228] ss:$12 sps:$4 sm:$0xff]   ;;  %v4310_v32 = vsub.s32 2, %v3928_v20 }
 0x87f   : > { %3474 = vmatpush3.bf16.msra.mxu0 %v3675_v28 }
 0x880   : > { %3754 = vrcp.f32 %v1315_v37  ;;  %3475 = vmatprep.subr.bf16.mxu0 %v4992_v18 }
 0x889   : > { %v3753_v38 = vpop.eup %3752 }
 0x88a   : > { %v1318_v43 = vmul.f32 %v3753_v38, %v1306_v25  ;;  %v3667_v25 = vld [vmem:[%s3920_s13 + $0x48] sm:$0xff]  }
 0x88d   : > { %v3755_v41 = vpop.eup %3754 }
 0x88e   : > { %v1319_v23 = vmul.f32 %v3755_v41, %v1307_v30  ;;  %v3670_v30 = vld [vmem:[%s3920_s13 + $0x60] sm:$0xff]  }
 0x890   : > { %v1320_v45 = vpack.c.bf16 %v1319_v23, %v1318_v43 }
 0x892   : > { %3450 = vmatmul.mubr.msk.bf16.vlgmr.msra.gmra.mxu1 %vm1287_vm5, %v1320_v45 }
 0x893   : > { %3454 = vmatpush3.bf16.msra.mxu1 %v3626_v44  ;;  %3469 = vmatprep.mubr.msk.bf16.mxu1 %vm3797_vm0, %v4992_v18 }
 0x894   : > { %3455 = vmatprep.subr.bf16.mxu1 %v4992_v18 }
 0x897   : > { %3456 = vmatpush3.bf16.msra.mxu1 %v3627_v46 }
 0x898   : > { %3457 = vmatprep.subr.bf16.mxu1 %v4992_v18 }
 0x89b   : > { %3458 = vmatpush3.bf16.msra.mxu1 %v3628_v47  ;;  %v3674_v47 = vld [vmem:[%s3920_s13 + $0x80] sm:$0xff]  }
 0x89c   : > { %3459 = vmatprep.subr.bf16.mxu1 %v4992_v18 }
 0x89f   : > { %3460 = vmatpush3.bf16.msra.mxu1 %v3629_v48  ;;  %v4320_v48 = vrot.slane %v3992_v62, %v4310_v32 }
 0x8a0   : > { %3461 = vmatprep.subr.bf16.mxu1 %v4992_v18 }
 0x8a3   : > { %3462 = vmatpush3.bf16.msra.mxu1 %v3630_v17 }
 0x8a4   : > { %3463 = vmatprep.subr.bf16.mxu1 %v4992_v18 }
 0x8a7   : > { %3464 = vmatpush3.bf16.msra.mxu1 %v3631_v49 }
 0x8a8   : > { %3465 = vmatprep.subr.bf16.mxu1 %v4992_v18 }
 0x8ab   : > { %3466 = vmatpush3.bf16.msra.mxu1 %v3632_v50 }
 0x8ac   : > { %3467 = vmatprep.subr.bf16.mxu1 %v4992_v18 }
 0x8af   : > { %3468 = vmatpush3.bf16.msra.mxu1 %v3633_v51 }
 0x8b0   : > { %1858 = vmatprep.subr.bf16.mxu1 %v3636_v52 }
 0x952   : > { %v1363_v53 = vpop.f32.mrf.mxu1 }
 0x954   : > { %v3451_v54 = vpop.f32.mrf.mxu1 }
 0x956   : > { %v1366_v55 = vpop.f32.mrf.mxu1 }
 0x957   : > { %v1370_v57 = vpack.c.bf16 %v1366_v55, %v1363_v53 }
 0x958   : > { %v3452_v59 = vpop.f32.mrf.mxu1 }
 0x959   : > { %3470 = vmatmul.mubr.bf16.vlgmr.msra.gmra.mxu1 %v1370_v57 }
 0x95a   : > { %1859 = vmatpush1.bf16.msra.mxu1 %v3634_v56  ;;  %1890 = vmatprep.mubr.bf16.mxu1 %v4994_v2 }
 0x95b   : > { %1860 = vmatprep.subr.bf16.mxu1 %v3639_v58 }
 0x95e   : > { %1861 = vmatpush1.bf16.msra.mxu1 %v3637_v60 }
 0x95f   : > { %1862 = vmatprep.subr.bf16.mxu1 %v3642_v61 }
 0x962   : > { %1863 = vmatpush1.bf16.msra.mxu1 %v3640_v63 }
 0x963   : > { %1864 = vmatprep.subr.bf16.mxu1 %v3645_v0 }
 0x966   : > { %1865 = vmatpush1.bf16.msra.mxu1 %v3643_v1 }
 0x967   : > { %1866 = vmatprep.subr.bf16.mxu1 %v3648_v3 }
 0x96a   : > { %1867 = vmatpush1.bf16.msra.mxu1 %v3646_v4 }
 0x96b   : > { %1868 = vmatprep.subr.bf16.mxu1 %v3651_v5 }
 0x96e   : > { %1869 = vmatpush1.bf16.msra.mxu1 %v3649_v6 }
 0x96f   : > { %1870 = vmatprep.subr.bf16.mxu1 %v3654_v7 }
 0x972   : > { %1871 = vmatpush1.bf16.msra.mxu1 %v3652_v8 }
 0x973   : > { %1872 = vmatprep.subr.bf16.mxu1 %v3657_v9 }
 0x976   : > { %1873 = vmatpush1.bf16.msra.mxu1 %v3655_v10 }
 0x977   : > { %3521 = vmatprep.subr.bf16.mxu1 %v4992_v18 }
 0x979   : > { %1891 = vmatmul.mubr.bf16.vlgmr.msra.gmra.mxu1 %v3658_v11 }
 0x97a   : > { %1900 = vmatprep.mubr.bf16.mxu1 %v4994_v2 }
 0x981   : > { %1901 = vmatmul.mubr.bf16.gmra.mxu1 %v3659_v12 }
 0x982   : > { %1910 = vmatprep.mubr.bf16.mxu1 %v4994_v2 }
 0x989   : > { %1911 = vmatmul.mubr.bf16.gmra.mxu1 %v3660_v13 }
 0x98a   : > { %1920 = vmatprep.mubr.bf16.mxu1 %v4994_v2 }
 0x991   : > { %1921 = vmatmul.mubr.bf16.gmra.mxu1 %v3661_v14 }
 0x992   : > { %1930 = vmatprep.mubr.bf16.mxu1 %v4994_v2 }
 0x999   : > { %1931 = vmatmul.mubr.bf16.gmra.mxu1 %v3662_v15 }
 0x99a   : > { %1940 = vmatprep.mubr.bf16.mxu1 %v4994_v2 }
 0x9a1   : > { %1941 = vmatmul.mubr.bf16.gmra.mxu1 %v3663_v16 }
 0x9a2   : > { %1950 = vmatprep.mubr.bf16.mxu1 %v4994_v2 }
 0x9a9   : > { %1951 = vmatmul.mubr.bf16.gmra.mxu1 %v3664_v19 }
 0x9aa   : > { %1960 = vmatprep.mubr.bf16.mxu1 %v4994_v2 }
 0x9b1   : > { %1961 = vmatmul.mubr.bf16.gmra.mxu1 %v3665_v21 }
 0x9b2   : > { %1970 = vmatprep.mubr.bf16.mxu1 %v4994_v2 }
 0x9b9   : > { %1971 = vmatmul.mubr.bf16.gmra.mxu1 %v3666_v24 }
 0x9ba   : > { %1980 = vmatprep.mubr.bf16.mxu1 %v4994_v2 }
 0x9c1   : > { %1981 = vmatmul.mubr.bf16.gmra.mxu1 %v3667_v25 }
 0x9c2   : > { %1990 = vmatprep.mubr.bf16.mxu1 %v4994_v2 }
 0x9c9   : > { %1991 = vmatmul.mubr.bf16.gmra.mxu1 %v3668_v26 }
 0x9ca   : > { %2000 = vmatprep.mubr.bf16.mxu1 %v4994_v2 }
 0x9d1   : > { %2001 = vmatmul.mubr.bf16.gmra.mxu1 %v3669_v29 }
 0x9d2   : > { %2010 = vmatprep.mubr.bf16.mxu1 %v4994_v2 }
 0x9d9   : > { %2011 = vmatmul.mubr.bf16.gmra.mxu1 %v3670_v30 }
 0x9da   : > { %2020 = vmatprep.mubr.bf16.mxu1 %v4994_v2 }
 0x9e1   : > { %2021 = vmatmul.mubr.bf16.gmra.mxu1 %v3671_v31 }
 0x9e2   : > { %2030 = vmatprep.mubr.bf16.mxu1 %v4994_v2 }
 0x9e9   : > { %2031 = vmatmul.mubr.bf16.gmra.mxu1 %v3672_v33 }
 0x9ea   : > { %2040 = vmatprep.mubr.bf16.mxu1 %v4994_v2 }
 0x9f1   : > { %2041 = vmatmul.mubr.bf16.gmra.mxu1 %v3673_v35 }
 0x9f2   : > { %2050 = vmatprep.mubr.bf16.mxu1 %v4994_v2 }
 0x9f9   : > { %2051 = vmatmul.mubr.bf16.gmra.mxu1 %v3674_v47 }
 0x9fa   : > { %2060 = vmatprep.mubr.bf16.mxu1 %v4994_v2 }
 0xa19   : > { %v1457_v37 = vpop.f32.mrf.mxu1 }
 0xa1a   : > { %v1458_v38 = vadd.f32 %v1457_v37, %v1374_v36 }
 0xa1b   : > { %v3471_v41 = vpop.f32.mrf.mxu1 }
 0xa1c   : > { %v4298_v43 = vadd.f32 %v1458_v38, %v4146_v39 }
 0xa1d   : > { %v1460_v23 = vpop.f32.mrf.mxu1 }
 0xa1e   : > { %v1461_v44 = vadd.f32 %v1460_v23, %v1374_v36  ;;  %1466 = vadd.xlane.f32.xlu0 %v4298_v43 }
 0xa1f   : > { %v3472_v45 = vpop.f32.mrf.mxu1 }
 0xa20   : > { %v4302_v46 = vadd.f32 %v1461_v44, %v4148_v40  ;;  %v4316_v40 = vrot.slane %v3933_v22, %v4310_v32 }
 0xa22   : > { %1468 = vadd.xlane.f32.xlu1 %v4302_v46 }
 0xa39   : > { %v1892_v39 = vpop.f32.mrf.mxu1 }
 0xa3a   : > { %v4323_v49 = vadd.f32 %v1892_v39, %v4316_v40 }
 0xa3b   : > { %v1894_v17 = vpop.f32.mrf.mxu1 }
 0xa3c   : > { %v4326_v51 = vadd.f32 %v1894_v17, %v4320_v48 }
 0xa3d   : > { %v1896_v50 = vpop.f32.mrf.mxu1 }
 0xa3e   : > { %5018 = vst [vmem:[#allocation2_spill] sm:$0xff] %v4326_v51  ;;  %v4329_v52 = vadd.f32 %v1896_v50, %v4316_v40  ;;  %v3677_v51 = vld [vmem:[%s3920_s13 + $0x88] sm:$0xff]  }
 0xa3f   : > { %v1898_v53 = vpop.f32.mrf.mxu1  ;;  %2061 = vmatmul.mubr.bf16.gmra.mxu1 %v3677_v51 }
 0xa40   : > { %v4334_v54 = vadd.f32 %v1898_v53, %v4320_v48 }
 0xa41   : > { %v1902_v55 = vpop.f32.mrf.mxu1 }
 0xa42   : > { %5019 = vst [vmem:[#allocation3_spill] sm:$0xff] %v4334_v54  ;;  %v4339_v57 = vadd.f32 %v1902_v55, %v4316_v40 }
 0xa43   : > { %v1904_v56 = vpop.f32.mrf.mxu1 }
 0xa44   : > { %v4342_v59 = vadd.f32 %v1904_v56, %v4320_v48 }
 0xa45   : > { %v1906_v58 = vpop.f32.mrf.mxu1 }
 0xa46   : > { %5020 = vst [vmem:[#allocation4_spill] sm:$0xff] %v4342_v59  ;;  %v4345_v60 = vadd.f32 %v1906_v58, %v4316_v40 }
 0xa47   : > { %v1908_v61 = vpop.f32.mrf.mxu1 }
 0xa48   : > { %v4350_v0 = vadd.f32 %v1908_v61, %v4320_v48 }
 0xa49   : > { %v1912_v1 = vpop.f32.mrf.mxu1 }
 0xa4a   : > { %5021 = vst [vmem:[#allocation5_spill] sm:$0xff] %v4350_v0  ;;  %v4355_v5 = vadd.f32 %v1912_v1, %v4316_v40 }
 0xa4b   : > { %v1914_v4 = vpop.f32.mrf.mxu1 }
 0xa4c   : > { %v4358_v7 = vadd.f32 %v1914_v4, %v4320_v48 }
 0xa4d   : > { %v1916_v6 = vpop.f32.mrf.mxu1 }
 0xa4e   : > { %5022 = vst [vmem:[#allocation6_spill] sm:$0xff] %v4358_v7  ;;  %v4361_v8 = vadd.f32 %v1916_v6, %v4316_v40 }
 0xa4f   : > { %v1918_v9 = vpop.f32.mrf.mxu1 }
 0xa50   : > { %v4366_v11 = vadd.f32 %v1918_v9, %v4320_v48 }
 0xa51   : > { %v1922_v12 = vpop.f32.mrf.mxu1 }
 0xa52   : > { %5023 = vst [vmem:[#allocation7_spill] sm:$0xff] %v4366_v11  ;;  %v4371_v15 = vadd.f32 %v1922_v12, %v4316_v40  ;;  %v3682_v11 = vld [vmem:[%s4985_s4 + $0x1b0] ss:$12 sps:$4 sm:$0xff]  }
 0xa53   : > { %v1924_v14 = vpop.f32.mrf.mxu1 }
 0xa54   : > { %v4374_v19 = vadd.f32 %v1924_v14, %v4320_v48 }
 0xa55   : > { %v1926_v16 = vpop.f32.mrf.mxu1 }
 0xa56   : > { %5024 = vst [vmem:[#allocation8_spill] sm:$0xff] %v4374_v19  ;;  %v4377_v21 = vadd.f32 %v1926_v16, %v4316_v40 }
 0xa57   : > { %v1928_v24 = vpop.f32.mrf.mxu1 }
 0xa58   : > { %v4382_v26 = vadd.f32 %v1928_v24, %v4320_v48 }
 0xa59   : > { %v1932_v29 = vpop.f32.mrf.mxu1 }
 0xa5a   : > { %5025 = vst [vmem:[#allocation9_spill] sm:$0xff] %v4382_v26  ;;  %v4387_v33 = vadd.f32 %v1932_v29, %v4316_v40 }
 0xa5b   : > { %v1934_v31 = vpop.f32.mrf.mxu1 }
 0xa5c   : > { %v4390_v36 = vadd.f32 %v1934_v31, %v4320_v48 }
 0xa5d   : > { %v1936_v35 = vpop.f32.mrf.mxu1 }
 0xa5e   : > { %5026 = vst [vmem:[#allocation10_spill] sm:$0xff] %v4390_v36  ;;  %v4393_v37 = vadd.f32 %v1936_v35, %v4316_v40 }
 0xa5f   : > { %v1938_v38 = vpop.f32.mrf.mxu1 }
 0xa60   : > { %v4398_v23 = vadd.f32 %v1938_v38, %v4320_v48 }
 0xa61   : > { %v1942_v44 = vpop.f32.mrf.mxu1 }
 0xa62   : > { %5027 = vst [vmem:[#allocation11_spill] sm:$0xff] %v4398_v23  ;;  %v4403_v28 = vadd.f32 %v1942_v44, %v4316_v40 }
 0xa63   : > { %v1944_v47 = vpop.f32.mrf.mxu1 }
 0xa64   : > { %v4406_v17 = vadd.f32 %v1944_v47, %v4320_v48 }
 0xa65   : > { %v1946_v39 = vpop.f32.mrf.mxu1 }
 0xa66   : > { %5028 = vst [vmem:[#allocation12_spill] sm:$0xff] %v4406_v17  ;;  %v4409_v50 = vadd.f32 %v1946_v39, %v4316_v40 }
 0xa67   : > { %v1948_v53 = vpop.f32.mrf.mxu1 }
 0xa68   : > { %v4414_v56 = vadd.f32 %v1948_v53, %v4320_v48 }
 0xa69   : > { %v1952_v58 = vpop.f32.mrf.mxu1 }
 0xa6a   : > { %v4419_v4 = vadd.f32 %v1952_v58, %v4316_v40 }
 0xa6b   : > { %v1954_v1 = vpop.f32.mrf.mxu1 }
 0xa6c   : > { %v4422_v9 = vadd.f32 %v1954_v1, %v4320_v48 }
 0xa6d   : > { %v1956_v6 = vpop.f32.mrf.mxu1 }
 0xa6e   : > { %v4425_v12 = vadd.f32 %v1956_v6, %v4316_v40 }
 0xa6f   : > { %v1958_v14 = vpop.f32.mrf.mxu1 }
 0xa70   : > { %v4430_v24 = vadd.f32 %v1958_v14, %v4320_v48 }
 0xa71   : > { %v1962_v29 = vpop.f32.mrf.mxu1 }
 0xa72   : > { %v4435_v38 = vadd.f32 %v1962_v29, %v4316_v40 }
 0xa73   : > { %v1964_v35 = vpop.f32.mrf.mxu1 }
 0xa74   : > { %v4438_v47 = vadd.f32 %v1964_v35, %v4320_v48 }
 0xa75   : > { %v1966_v44 = vpop.f32.mrf.mxu1 }
 0xa76   : > { %v4441_v39 = vadd.f32 %v1966_v44, %v4316_v40 }
 0xa77   : > { %v1968_v53 = vpop.f32.mrf.mxu1 }
 0xa78   : > { %v4446_v1 = vadd.f32 %v1968_v53, %v4320_v48 }
 0xa79   : > { %v1972_v6 = vpop.f32.mrf.mxu1 }
 0xa7a   : > { %v4451_v34 = vadd.f32 %v1972_v6, %v4316_v40 }
 0xa7b   : > { %v1974_v29 = vpop.f32.mrf.mxu1 }
 0xa7c   : > { %v4454_v62 = vadd.f32 %v1974_v29, %v4320_v48 }
 0xa7d   : > { %v1976_v35 = vpop.f32.mrf.mxu1 }
 0xa7e   : > { %5029 = vst [vmem:[#allocation13_spill] sm:$0xff] %v4454_v62  ;;  %v4457_v44 = vadd.f32 %v1976_v35, %v4316_v40 }
 0xa7f   : > { %v1978_v3 = vpop.f32.mrf.mxu1 }
 0xa80   : > { %v4462_v13 = vadd.f32 %v1978_v3, %v4320_v48 }
 0xa81   : > { %v1982_v30 = vpop.f32.mrf.mxu1 }
 0xa82   : > { %5030 = vst [vmem:[#allocation14_spill] sm:$0xff] %v4462_v13  ;;  %v4467_v61 = vadd.f32 %v1982_v30, %v4316_v40 }
 0xa83   : > { %v1984_v6 = vpop.f32.mrf.mxu1 }
 0xa84   : > { %v4470_v31 = vadd.f32 %v1984_v6, %v4320_v48 }
 0xa85   : > { %v1986_v29 = vpop.f32.mrf.mxu1 }
 0xa86   : > { %5031 = vst [vmem:[#allocation15_spill] sm:$0xff] %v4470_v31  ;;  %v4473_v35 = vadd.f32 %v1986_v29, %v4316_v40  ;;  %v3679_v31 = vld [vmem:[%s4985_s4 + $0x1e0] ss:$12 sps:$4 sm:$0xff]  }
 0xa87   : > { %v1988_v14 = vpop.f32.mrf.mxu1 }
 0xa88   : > { %v4478_v22 = vadd.f32 %v1988_v14, %v4320_v48 }
 0xa89   : > { %v1992_v53 = vpop.f32.mrf.mxu1 }
 0xa8a   : > { %5032 = vst [vmem:[#allocation16_spill] sm:$0xff] %v4478_v22  ;;  %v4483_v10 = vadd.f32 %v1992_v53, %v4316_v40 }
 0xa8b   : > { %v1994_v30 = vpop.f32.mrf.mxu1 }
 0xa8c   : > { %v4486_v29 = vadd.f32 %v1994_v30, %v4320_v48 }
 0xa8d   : > { %v1996_v25 = vpop.f32.mrf.mxu1 }
 0xa8e   : > { %5033 = vst [vmem:[#allocation17_spill] sm:$0xff] %v4486_v29  ;;  %v4489_v41 = vadd.f32 %v1996_v25, %v4316_v40 }
 0xa8f   : > { %v1998_v3 = vpop.f32.mrf.mxu1 }
 0xa90   : > { %v4497_v16 = vadd.f32 %v1998_v3, %v4320_v48 }
 0xa91   : > { %v2002_v30 = vpop.f32.mrf.mxu1 }
 0xa92   : > { %5034 = vst [vmem:[#allocation18_spill] sm:$0xff] %v4497_v16  ;;  %v4507_v58 = vadd.f32 %v2002_v30, %v4316_v40  ;;  %v5039_v30 = vmov 0.0  }
 0xaa7   : > { %v1467_v63 = vpop.xlane.xlu0 %1466 }
 0xaa8   : > { %v1470_v6 = vmul.f32 0.0078125, %v1467_v63 }
 0xaaa   : > { %v4492_v14 = vsub.f32 %v4298_v43, %v1470_v6  ;;  %v2004_v6 = vpop.f32.mrf.mxu1 }
 0xaab   : > { %v1469_v55 = vpop.xlane.xlu1 %1468  ;;  %v4512_v45 = vadd.f32 %v2004_v6, %v4320_v48  ;;  %v3676_v6 = vld [vmem:[%s4985_s4 + $0x210] ss:$12 sps:$4 sm:$0xff]  }
 0xaac   : > { %v1471_v53 = vmul.f32 0.0078125, %v1469_v55  ;;  %v1474_v63 = vmul.f32 %v4492_v14, %v4492_v14  ;;  %v2006_v55 = vpop.f32.mrf.mxu1  ;;  %3476 = vmatpush3.bf16.msra.mxu0 %v3676_v6  ;;  %v3681_v6 = vld [vmem:[%s4985_s4 + $0x1c8] ss:$12 sps:$4 sm:$0xff]  }
 0xaad   : > { %5035 = vst [vmem:[#allocation19_spill] sm:$0xff] %v4512_v45  ;;  %v4515_v18 = vadd.f32 %v2006_v55, %v4316_v40  ;;  %3477 = vmatprep.subr.bf16.mxu0 %v5039_v30 }
 0xaae   : > { %v4504_v43 = vsub.f32 %v4302_v46, %v1471_v53  ;;  %1476 = vadd.xlane.f32.xlu0 %v1474_v63  ;;  %v2008_v25 = vpop.f32.mrf.mxu1  ;;  %v5038_v46 = vmov 0  }
 0xaaf   : > { %v4520_v53 = vadd.f32 %v2008_v25, %v4320_v48  ;;  %2070 = vmatprep.mubr.bf16.mxu1 %v5038_v46 }
 0xab0   : > { %v1475_v3 = vmul.f32 %v4504_v43, %v4504_v43  ;;  %v2012_v63 = vpop.f32.mrf.mxu1 }
 0xab1   : > { %5036 = vst [vmem:[#allocation20_spill] sm:$0xff] %v4520_v53 }
 0xab2   : > { %1478 = vadd.xlane.f32.xlu1 %v1475_v3  ;;  %v2014_v2 = vpop.f32.mrf.mxu1  ;;  %v4529_v3 = vadd.f32 %v2012_v63, %v4316_v40  ;;  %v3678_v63 = vld [vmem:[%s4985_s4 + $0x1f8] ss:$12 sps:$4 sm:$0xff]  }
 0xab3   : > { %v4532_v55 = vadd.f32 %v2014_v2, %v4320_v48  ;;  %3478 = vmatpush3.bf16.msra.mxu0 %v3678_v63 }
 0xab4   : > { %v2016_v54 = vpop.f32.mrf.mxu1  ;;  %3479 = vmatprep.subr.bf16.mxu0 %v5039_v30 }
 0xab5   : > { %5037 = vst [vmem:[#allocation21_spill] sm:$0xff] %v4532_v55  ;;  %v4537_v62 = vadd.f32 %v2016_v54, %v4316_v40  ;;  %v3680_v54 = vld [vmem:[%s3920_s13 + $0x90] sm:$0xff]  }
 0xab6   : > { %v2018_v25 = vpop.f32.mrf.mxu1  ;;  %2071 = vmatmul.mubr.bf16.gmra.mxu1 %v3680_v54 }
 0xab7   : > { %v4540_v13 = vadd.f32 %v2018_v25, %v4320_v48  ;;  %3480 = vmatpush3.bf16.msra.mxu0 %v3679_v31  ;;  %2080 = vmatprep.mubr.bf16.mxu1 %v5038_v46  ;;  %v3683_v31 = vld [vmem:[%s3920_s13 + $0x98] sm:$0xff]  }
 0xab8   : > { %v2022_v51 = vpop.f32.mrf.mxu1  ;;  %3481 = vmatprep.subr.bf16.mxu0 %v5039_v30 }
 0xab9   : > { %5040 = vst [vmem:[#allocation22_spill] sm:$0xff] %v4540_v13  ;;  %v4552_v25 = vadd.f32 %v2022_v51, %v4316_v40 }
 0xaba   : > { %v2024_v59 = vpop.f32.mrf.mxu1 }
 0xabb   : > { %v4558_v22 = vadd.f32 %v2024_v59, %v4320_v48  ;;  %3482 = vmatpush3.bf16.msra.mxu0 %v3681_v6  ;;  %v3684_v6 = vld [vmem:[%s4985_s4 + $0x198] ss:$12 sps:$4 sm:$0xff]  }
 0xabc   : > { %v2026_v0 = vpop.f32.mrf.mxu1  ;;  %3483 = vmatprep.subr.bf16.mxu0 %v5039_v30 }
 0xabd   : > { %v4561_v2 = vadd.f32 %v2026_v0, %v4316_v40 }
 0xabe   : > { %v2028_v63 = vpop.f32.mrf.mxu1  ;;  %2081 = vmatmul.mubr.bf16.gmra.mxu1 %v3683_v31  ;;  %v3685_v31 = vld [vmem:[%s4985_s4 + $0x180] ss:$12 sps:$4 sm:$0xff]  }
 0xabf   : > { %v4570_v7 = vadd.f32 %v2028_v63, %v4320_v48  ;;  %3484 = vmatpush3.bf16.msra.mxu0 %v3682_v11  ;;  %2090 = vmatprep.mubr.bf16.mxu1 %v5038_v46 }
 0xac0   : > { %v2032_v59 = vpop.f32.mrf.mxu1  ;;  %3485 = vmatprep.subr.bf16.mxu0 %v5039_v30 }
 0xac1   : > { %v2033_v29 = vadd.f32 %v2032_v59, %v4316_v40 }
 0xac2   : > { %v2034_v54 = vpop.f32.mrf.mxu1 }
 0xac3   : > { %v4582_v51 = vadd.f32 %v2034_v54, %v4320_v48  ;;  %3486 = vmatpush3.bf16.msra.mxu0 %v3684_v6 }
 0xac4   : > { %v2036_v63 = vpop.f32.mrf.mxu1  ;;  %3487 = vmatprep.subr.bf16.mxu0 %v5039_v30 }
 0xac5   : > { %v2037_v16 = vadd.f32 %v2036_v63, %v4316_v40  ;;  %v3686_v63 = vld [vmem:[%s3920_s13 + $0xa0] sm:$0xff]  }
 0xac6   : > { %v2038_v0 = vpop.f32.mrf.mxu1  ;;  %2091 = vmatmul.mubr.bf16.gmra.mxu1 %v3686_v63 }
 0xac7   : > { %v2116_v19 = vpack.c.bf16 %v2037_v16, %v2033_v29  ;;  %v4590_v59 = vadd.f32 %v2038_v0, %v4320_v48  ;;  %3488 = vmatpush3.bf16.msra.mxu0 %v3685_v31  ;;  %3537 = vmatprep.mubr.msk.bf16.mxu1 %vm3797_vm0, %v5039_v30 }
 0xac8   : > { %v2042_v26 = vpop.f32.mrf.mxu1 }
 0xac9   : > { %v2043_v45 = vadd.f32 %v2042_v26, %v4316_v40 }
 0xaca   : > { %v2044_v11 = vpop.f32.mrf.mxu1 }
 0xacb   : > { %v4605_v6 = vadd.f32 %v2044_v11, %v4320_v48 }
 0xacc   : > { %v2046_v16 = vpop.f32.mrf.mxu1 }
 0xacd   : > { %v2047_v29 = vadd.f32 %v2046_v16, %v4316_v40 }
 0xace   : > { %v2048_v54 = vpop.f32.mrf.mxu1 }
 0xacf   : > { %v2117_v0 = vpack.c.bf16 %v2047_v29, %v2043_v45  ;;  %v4608_v46 = vadd.f32 %v2048_v54, %v4320_v48 }
 0xad0   : > { %v2052_v26 = vpop.f32.mrf.mxu1 }
 0xad1   : > { %3286 = vmatprep.subr.bf16.mxu0 %v2117_v0  ;;  %v4615_v63 = vadd.f32 %v2052_v26, %v4316_v40  ;;  %v1491_v26 = vrot.slane %v4136_v27, %v4155_v42  ;;  %v5042_v42 = vpack.c.bf16 %v4441_v39, %v4435_v38  ;;  %v5047_v38 = vpack.c.bf16 %v4393_v37, %v4387_v33 }
 0xad2   : > { %v4612_v36 = vpop.f32.mrf.mxu1 }
 0xad3   : > { %5041 = vst [vmem:[#allocation23_spill] sm:$0xff] %v4612_v36 }
 0xad4   : > { %v2056_v31 = vpop.f32.mrf.mxu1 }
 0xad5   : > { %v4618_v45 = vadd.f32 %v2056_v31, %v4316_v40  ;;  %v1496_v31 = vsub.s32 5, %v3928_v20 }
 0xb37   : > { %v1477_v16 = vpop.xlane.xlu0 %1476 }
 0xb38   : > { %v1480_v29 = vmul.f32 0.0078125, %v1477_v16  ;;  %v1497_v16 = vrot.slane %v4136_v27, %v1496_v31  ;;  %v5044_v27 = vpack.c.bf16 %v4561_v2, %v4552_v25 }
 0xb3a   : > { %v1482_v54 = vadd.f32 1e-05, %v1480_v29 }
 0xb3b   : > { %v1479_v0 = vpop.xlane.xlu1 %1478 }
 0xb3c   : > { %3756 = vrsqrt.f32 %v1482_v54  ;;  %v1481_v23 = vmul.f32 0.0078125, %v1479_v0 }
 0xb3e   : > { %v1483_v55 = vadd.f32 1e-05, %v1481_v23 }
 0xb40   : > { %3758 = vrsqrt.f32 %v1483_v55 }
 0xb49   : > { %v3757_v53 = vpop.eup %3756 }
 0xb4a   : > { %v1486_v36 = vmul.f32 %v3757_v53, %v4492_v14 }
 0xb4c   : > { %v1492_v11 = vmul.f32 %v1491_v26, %v1486_v36  ;;  %v5045_v36 = vpack.c.bf16 %v4409_v50, %v4403_v28  ;;  %v5050_v28 = vpack.c.bf16 %v4489_v41, %v4483_v10 }
 0xb4d   : > { %v3759_v13 = vpop.eup %3758 }
 0xb4e   : > { %v1487_v17 = vmul.f32 %v3759_v13, %v4504_v43  ;;  %v4630_v54 = vadd.f32 %v1497_v16, %v1492_v11  ;;  %v5043_v13 = vpack.c.bf16 %v4425_v12, %v4419_v4  ;;  %v4657_v4 = vpop.f32.mrf.mxu1  ;;  %v5049_v12 = vpack.c.bf16 %v4377_v21, %v4371_v15 }
 0xb50   : > { %v1493_v29 = vmul.f32 %v1491_v26, %v1487_v17  ;;  %v5046_v17 = vpack.c.bf16 %v4537_v62, %v4529_v3  ;;  %v2062_v62 = vpop.f32.mrf.mxu1 }
 0xb52   : > { %v4632_v23 = vadd.f32 %v1497_v16, %v1493_v29  ;;  %v2064_v50 = vpop.f32.mrf.mxu1  ;;  %v4710_v29 = vld [vmem:[%s4989_s8] sm:$0xff] }
 0xb53   : > { %v4666_v33 = vadd.f32 %v2064_v50, %v4320_v48 }
 0xb54   : > { %v1550_v14 = vpack.c.bf16 %v4632_v23, %v4630_v54  ;;  %v2066_v39 = vpop.f32.mrf.mxu1 }
 0xb56   : > { %3490 = vmatmul.mubr.bf16.vlgmr.msra.gmra.mxu0 %v1550_v14  ;;  %v2068_v37 = vpop.f32.mrf.mxu1 }
 0xb57   : > { %3287 = vmatpush3.bf16.xpose.msra.mxu0 %v5042_v42  ;;  %v4675_v15 = vadd.f32 %v2068_v37, %v4320_v48 }
 0xb58   : > { %3288 = vmatprep.subr.bf16.mxu0 %v2116_v19  ;;  %v5048_v19 = vpack.c.bf16 %v4515_v18, %v4507_v58  ;;  %v5051_v18 = vpack.c.bf16 %v4361_v8, %v4355_v5  ;;  %v5052_v58 = vpack.c.bf16 %v4473_v35, %v4467_v61  ;;  %v5053_v5 = vpack.c.bf16 %v4345_v60, %v4339_v57 }
 0xb59   : > { %v2280_v21 = vpack.c.bf16 %v4675_v15, %v4666_v33  ;;  %v5054_v61 = vpack.c.bf16 %v4457_v44, %v4451_v34  ;;  %v5055_v57 = vpack.c.bf16 %v4329_v52, %v4323_v49  ;;  %v1554_v49 = vrot.slane %v4710_v29, %v4310_v32 }
 0xb5f   : > { %3289 = vmatpush3.bf16.xpose.msra.mxu0 %v5043_v13 }
 0xb60   : > { %3290 = vmatprep.subr.bf16.mxu0 %v5044_v27 }
 0xb67   : > { %3291 = vmatpush3.bf16.xpose.msra.mxu0 %v5045_v36 }
 0xb68   : > { %3292 = vmatprep.subr.bf16.mxu0 %v5046_v17 }
 0xb6f   : > { %3293 = vmatpush3.bf16.xpose.msra.mxu0 %v5047_v38 }
 0xb70   : > { %3294 = vmatprep.subr.bf16.mxu0 %v5048_v19 }
 0xb76   : > { %v2072_v10 = vpop.f32.mrf.mxu1 }
 0xb77   : > { %3295 = vmatpush3.bf16.xpose.msra.mxu0 %v5049_v12  ;;  %v2073_v37 = vadd.f32 %v2072_v10, %v4316_v40  ;;  %v5057_v10 = vpack.c.bf16 %v4608_v46, %v4605_v6  ;;  %v5062_v46 = vld [vmem:[#allocation12_spill] sm:$0xff] }
 0xb78   : > { %3296 = vmatprep.subr.bf16.mxu0 %v5050_v28  ;;  %v2074_v41 = vpop.f32.mrf.mxu1  ;;  %v5063_v6 = vpack.c.bf16 %v4414_v56, %v5062_v46 }
 0xb79   : > { %v4680_v53 = vadd.f32 %v2074_v41, %v4320_v48 }
 0xb7a   : > { %v2076_v43 = vpop.f32.mrf.mxu1 }
 0xb7c   : > { %v2078_v8 = vpop.f32.mrf.mxu1 }
 0xb7d   : > { %v4689_v35 = vadd.f32 %v2078_v8, %v4320_v48  ;;  %v2067_v8 = vadd.f32 %v2066_v39, %v4316_v40  ;;  %v5065_v39 = vld [vmem:[#allocation21_spill] sm:$0xff] }
 0xb7e   : > { %v2082_v3 = vpop.f32.mrf.mxu1 }
 0xb7f   : > { %3297 = vmatpush3.bf16.xpose.msra.mxu0 %v5051_v18  ;;  %v2281_v55 = vpack.c.bf16 %v4689_v35, %v4680_v53  ;;  %v2083_v28 = vadd.f32 %v2082_v3, %v4316_v40  ;;  %v5056_v3 = vpack.c.bf16 %v4618_v45, %v4615_v63  ;;  %v5061_v63 = vpack.c.bf16 %v4570_v7, %v4558_v22  ;;  %v5064_v45 = vld [vmem:[#allocation22_spill] sm:$0xff] }
 0xb80   : > { %3298 = vmatprep.subr.bf16.mxu0 %v5052_v58  ;;  %v2084_v2 = vpop.f32.mrf.mxu1  ;;  %v2077_v58 = vadd.f32 %v2076_v43, %v4316_v40  ;;  %v5058_v43 = vpack.c.bf16 %v4446_v1, %v4438_v47  ;;  %v5066_v47 = vpack.c.bf16 %v5064_v45, %v5065_v39  ;;  %v5067_v1 = vld [vmem:[#allocation11_spill] sm:$0xff]  ;;  %v5076_v7 = vld [vmem:[#allocation18_spill] sm:$0xff]  ;;  %v5095_v35 = vmov 0  }
 0xb81   : > { %v4694_v11 = vadd.f32 %v2084_v2, %v4320_v48  ;;  %v5068_v2 = vld [vmem:[#allocation10_spill] sm:$0xff] }
 0xb82   : > { %v2086_v25 = vpop.f32.mrf.mxu1  ;;  %v2120_v41 = vpack.c.bf16 %v2077_v58, %v2073_v37 }
 0xb83   : > { %v2087_v50 = vadd.f32 %v2086_v25, %v4316_v40  ;;  %v5071_v25 = vld [vmem:[#allocation19_spill] sm:$0xff] }
 0xb84   : > { %v2088_v60 = vpop.f32.mrf.mxu1 }
 0xb85   : > { %v4700_v34 = vadd.f32 %v2088_v60, %v4320_v48  ;;  %v2121_v18 = vpack.c.bf16 %v2087_v50, %v2083_v28  ;;  %v5077_v60 = vld [vmem:[#allocation17_spill] sm:$0xff]  ;;  %v5092_v28 = vld [vmem:[#allocation2_spill] sm:$0xff] }
 0xb86   : > { %v2092_v0 = vpop.f32.mrf.mxu1  ;;  %v5078_v56 = vpack.c.bf16 %v5076_v7, %v5077_v60 }
 0xb87   : > { %3299 = vmatpush3.bf16.xpose.msra.mxu0 %v5053_v5  ;;  %v2282_v44 = vpack.c.bf16 %v4700_v34, %v4694_v11  ;;  %v2093_v13 = vadd.f32 %v2092_v0, %v4316_v40  ;;  %v2063_v5 = vadd.f32 %v2062_v62, %v4316_v40  ;;  %v5060_v62 = vpack.c.bf16 %v4430_v24, %v4422_v9  ;;  %v5073_v24 = vld [vmem:[#allocation9_spill] sm:$0xff]  ;;  %v5079_v0 = vld [vmem:[#allocation7_spill] sm:$0xff] }
 0xb88   : > { %3300 = vmatprep.subr.bf16.mxu0 %v5054_v61  ;;  %v4705_v26 = vpop.f32.mrf.mxu1 }
 0xb89   : > { %v2119_v61 = vpack.c.bf16 %v2067_v8, %v2063_v5 }
 0xb8a   : > { %v2096_v14 = vpop.f32.mrf.mxu1 }
 0xb8b   : > { %v2097_v36 = vadd.f32 %v2096_v14, %v4316_v40  ;;  %v5059_v40 = vpack.c.bf16 %v4590_v59, %v4582_v51  ;;  %v5069_v51 = vpack.c.bf16 %v5067_v1, %v5068_v2  ;;  %v5070_v59 = vld [vmem:[#allocation20_spill] sm:$0xff]  ;;  %v5083_v14 = vld [vmem:[#allocation15_spill] sm:$0xff] }
 0xb8c   : > { %v5072_v9 = vpack.c.bf16 %v5070_v59, %v5071_v25 }
 0xb8d   : > { %v2122_v12 = vpack.c.bf16 %v2097_v36, %v2093_v13  ;;  %v5085_v13 = vld [vmem:[#allocation5_spill] sm:$0xff] }
 0xb8f   : > { %3301 = vmatpush3.bf16.xpose.msra.mxu0 %v5055_v57  ;;  %v5074_v57 = vld [vmem:[#allocation8_spill] sm:$0xff] }
 0xb90   : > { %3493 = vmatprep.subr.bf16.mxu0 %v5039_v30  ;;  %v5075_v22 = vpack.c.bf16 %v5073_v24, %v5074_v57 }
 0xc16   : > { %v1637_v16 = vpop.f32.mrf.mxu0 }
 0xc17   : > { %v1638_v27 = vadd.f32 %v1637_v16, %v1554_v49  ;;  %v5080_v16 = vld [vmem:[#allocation6_spill] sm:$0xff] }
 0xc18   : > { %v3491_v52 = vpop.f32.mrf.mxu0 }
 0xc19   : > { %v5082_v52 = vld [vmem:[#allocation16_spill] sm:$0xff] }
 0xc1a   : > { %v1640_v42 = vpop.f32.mrf.mxu0 }
 0xc1b   : > { %v1641_v17 = vadd.f32 %v1640_v42, %v1554_v49  ;;  %v5081_v49 = vpack.c.bf16 %v5079_v0, %v5080_v16  ;;  %v5084_v42 = vpack.c.bf16 %v5082_v52, %v5083_v14 }
 0xc1c   : > { %v3492_v38 = vpop.f32.mrf.mxu0 }
 0xc1d   : > { %v2101_v19 = vpack.c.bf16 %v1641_v17, %v1638_v27  ;;  %v5086_v27 = vld [vmem:[#allocation4_spill] sm:$0xff]  ;;  %v5088_v17 = vld [vmem:[#allocation14_spill] sm:$0xff]  ;;  %v5089_v38 = vld [vmem:[#allocation13_spill] sm:$0xff] }
 0xc1e   : > { %v5087_v36 = vpack.c.bf16 %v5085_v13, %v5086_v27 }
 0xc1f   : > { %3302 = vmatprep.mubr.bf16.mxu0 %v2101_v19 }
 0xc20   : > { %3303 = vmatmul.mubr.bf16.vlgmr.msra.gmra.mxu0 %v2101_v19 }
 0xc21   : > { %3494 = vmatpush3.bf16.xpose.msra.mxu0 %v2122_v12  ;;  %3503 = vmatprep.mubr.msk.bf16.mxu0 %vm3797_vm0, %v5039_v30  ;;  %v5091_v12 = vld [vmem:[#allocation3_spill] sm:$0xff] }
 0xc22   : > { %3495 = vmatprep.subr.bf16.mxu0 %v5039_v30  ;;  %v5093_v50 = vpack.c.bf16 %v5091_v12, %v5092_v28 }
 0xc29   : > { %3496 = vmatpush3.bf16.xpose.msra.mxu0 %v2121_v18 }
 0xc2a   : > { %3497 = vmatprep.subr.bf16.mxu0 %v5039_v30 }
 0xc31   : > { %3498 = vmatpush3.bf16.xpose.msra.mxu0 %v2120_v41 }
 0xc32   : > { %3499 = vmatprep.subr.bf16.mxu0 %v5039_v30 }
 0xc39   : > { %3500 = vmatpush3.bf16.xpose.msra.mxu0 %v2119_v61 }
 0xc3a   : > { %3501 = vmatprep.subr.bf16.mxu0 %v5039_v30 }
 0xc41   : > { %3502 = vmatpush3.bf16.xpose.msra.mxu0 %v5056_v3 }
 0xc42   : > { %3310 = vmatprep.subr.bf16.mxu0 %v5057_v10 }
 0xc48   : > { %3504 = vmatmul.mubr.bf16.vlgmr.msra.gmra.mxu0 %v2101_v19  ;;  %v5090_v19 = vpack.c.bf16 %v5088_v17, %v5089_v38 }
 0xc49   : > { %3311 = vmatpush3.bf16.msra.mxu0 %v5058_v43 }
 0xc4a   : > { %3312 = vmatprep.subr.bf16.mxu0 %v5059_v40 }
 0xc4d   : > { %3313 = vmatpush3.bf16.msra.mxu0 %v5060_v62 }
 0xc4e   : > { %3314 = vmatprep.subr.bf16.mxu0 %v5061_v63 }
 0xc51   : > { %3315 = vmatpush3.bf16.msra.mxu0 %v5063_v6 }
 0xc52   : > { %3316 = vmatprep.subr.bf16.mxu0 %v5066_v47 }
 0xc55   : > { %3317 = vmatpush3.bf16.msra.mxu0 %v5069_v51 }
 0xc56   : > { %3318 = vmatprep.subr.bf16.mxu0 %v5072_v9 }
 0xc59   : > { %3319 = vmatpush3.bf16.msra.mxu0 %v5075_v22 }
 0xc5a   : > { %3320 = vmatprep.subr.bf16.mxu0 %v5078_v56 }
 0xc5d   : > { %3321 = vmatpush3.bf16.msra.mxu0 %v5081_v49 }
 0xc5e   : > { %3322 = vmatprep.subr.bf16.mxu0 %v5084_v42 }
 0xc61   : > { %3323 = vmatpush3.bf16.msra.mxu0 %v5087_v36 }
 0xc62   : > { %3324 = vmatprep.subr.bf16.mxu0 %v5090_v19 }
 0xc65   : > { %3325 = vmatpush3.bf16.msra.mxu0 %v5093_v50 }
 0xc66   : > { %3507 = vmatprep.subr.bf16.mxu0 %v5039_v30 }
 0xce0   : > { %v2157_v18 = vpop.f32.mrf.mxu0 }
 0xce1   : > { %v2207_v61 = vmul.f32 0.088388346, %v2157_v18 }
 0xce2   : > { %v2159_v37 = vpop.f32.mrf.mxu0 }
 0xce3   : > { %v2208_v43 = vmul.f32 0.088388346, %v2159_v37  ;;  %v3687_v37 = vld [vmem:[%s4986_s5 + $0xb8] sm:$0xff]  }
 0xce4   : > { %v2161_v58 = vpop.f32.mrf.mxu0  ;;  %3522 = vmatpush3.bf16.msra.mxu1 %v3687_v37 }
 0xce5   : > { %v2210_v46 = vmul.f32 0.088388346, %v2161_v58  ;;  %v3688_v58 = vld [vmem:[%s4986_s5 + $0xb0] sm:$0xff]   ;;  %3523 = vmatprep.subr.bf16.mxu1 %v5039_v30 }
 0xce6   : > { %v2163_v41 = vpop.f32.mrf.mxu0 }
 0xce7   : > { %v2211_v47 = vmul.f32 0.088388346, %v2163_v41  ;;  %v3689_v41 = vld [vmem:[%s4986_s5 + $0xa8] sm:$0xff]  }
 0xce8   : > { %3524 = vmatpush3.bf16.msra.mxu1 %v3688_v58  ;;  %v3700_v58 = vld [vmem:[%s4987_s6 + $0x64] ss:$8 sps:$4 sm:$0xff]  }
 0xce9   : > { %3525 = vmatprep.subr.bf16.mxu1 %v5039_v30 }
 0xcec   : > { %3526 = vmatpush3.bf16.msra.mxu1 %v3689_v41  ;;  %v3698_v41 = vld [vmem:[%s4987_s6 + $0x60] ss:$8 sps:$4 sm:$0xff]  }
 0xced   : > { %3527 = vmatprep.subr.bf16.mxu1 %v5039_v30 }
 0xd08   : > { %v2200_v5 = vpop.f32.mrf.mxu0 }
 0xd09   : > { %v2209_v8 = vmul.f32 0.088388346, %v2200_v5  ;;  %v3690_v5 = vld [vmem:[%s4986_s5 + $0xa0] sm:$0xff]  }
 0xd0a   : > { %v3505_v3 = vpop.f32.mrf.mxu0  ;;  %3528 = vmatpush3.bf16.msra.mxu1 %v3690_v5  ;;  %v3703_v5 = vld [vmem:[%s4987_s6 + $0x54] ss:$8 sps:$4 sm:$0xff]  }
 0xd0b   : > { %v2214_v10 = vsel %vm2213_vm6, %v2209_v8, -inf  ;;  %3529 = vmatprep.subr.bf16.mxu1 %v5039_v30  ;;  %v3693_v3 = vld [vmem:[%s4986_s5 + $0x88] sm:$0xff]  }
 0xd0c   : > { %v2203_v40 = vpop.f32.mrf.mxu0  ;;  %v2215_v62 = vmax.f32 %v2207_v61, %v2214_v10 }
 0xd0d   : > { %v2212_v63 = vmul.f32 0.088388346, %v2203_v40  ;;  %v2098_v40 = vpop.f32.mrf.mxu1 }
 0xd0e   : > { %v3506_v6 = vpop.f32.mrf.mxu0  ;;  %v2216_v45 = vmax.f32 %v2215_v62, %v2208_v43 }
 0xd0f   : > { %v2219_v39 = vsel %vm2213_vm6, %v2212_v63, -inf  ;;  %v2099_v6 = vadd.f32 %v2098_v40, %v4320_v48  ;;  %v3712_v40 = vld [vmem:[%s4987_s6 + $0x24] ss:$8 sps:$4 sm:$0xff]  }
 0xd10   : > { %2217 = vmax.xlane.f32.xlu0 %v2216_v45  ;;  %v2220_v1 = vmax.f32 %v2210_v46, %v2219_v39 }
 0xd12   : > { %v2221_v2 = vmax.f32 %v2220_v1, %v2211_v47 }
 0xd14   : > { %2222 = vmax.xlane.f32.xlu1 %v2221_v2 }
 0xd99   : > { %v2218_v51 = vpop.xlane.xlu0 %2217 }
 0xd9a   : > { %v2224_v59 = vsub.f32 %v2207_v61, %v2218_v51  ;;  %v2225_v25 = vsub.f32 %v2208_v43, %v2218_v51  ;;  %v2226_v9 = vsub.f32 %v2209_v8, %v2218_v51  ;;  %v3691_v8 = vld [vmem:[%s4986_s5 + $0x98] sm:$0xff]   ;;  %v3692_v61 = vld [vmem:[%s4986_s5 + $0x90] sm:$0xff]  }
 0xd9b   : > { %3530 = vmatpush3.bf16.msra.mxu1 %v3691_v8  ;;  %v3701_v8 = vld [vmem:[%s4987_s6 + $0x50] ss:$8 sps:$4 sm:$0xff]  }
 0xd9c   : > { %v2230_v24 = vmul.f32 1.442695, %v2224_v59  ;;  %v2232_v57 = vmul.f32 1.442695, %v2225_v25  ;;  %v2234_v22 = vmul.f32 1.442695, %v2226_v9  ;;  %3531 = vmatprep.subr.bf16.mxu1 %v5039_v30  ;;  %v2059_v9 = vadd.f32 %v4657_v4, %v4320_v48 }
 0xd9d   : > { %v2223_v7 = vpop.xlane.xlu1 %2222 }
 0xd9e   : > { %3760 = vpow2.f32 %v2230_v24  ;;  %v2227_v60 = vsub.f32 %v2210_v46, %v2223_v7  ;;  %v2228_v56 = vsub.f32 %v2211_v47, %v2223_v7  ;;  %v2229_v0 = vsub.f32 %v2212_v63, %v2223_v7 }
 0xd9f   : > { %3762 = vpow2.f32 %v2232_v57  ;;  %3532 = vmatpush3.bf16.msra.mxu1 %v3692_v61  ;;  %v2095_v46 = vadd.f32 %v4705_v26, %v4320_v48  ;;  %v5094_v26 = vld [vmem:[#allocation23_spill] sm:$0xff] }
 0xda0   : > { %3764 = vpow2.f32 %v2234_v22  ;;  %v2236_v16 = vmul.f32 1.442695, %v2227_v60  ;;  %v2238_v49 = vmul.f32 1.442695, %v2228_v56  ;;  %v2240_v52 = vmul.f32 1.442695, %v2229_v0  ;;  %3533 = vmatprep.subr.bf16.mxu1 %v5039_v30 }
 0xda1   : > { %v2283_v59 = vpack.c.bf16 %v2099_v6, %v2095_v46  ;;  %v2055_v25 = vadd.f32 %v5094_v26, %v4320_v48  ;;  %v3694_v48 = vld [vmem:[%s4986_s5 + $0x80] sm:$0xff]   ;;  %v3713_v46 = vld [vmem:[%s4987_s6 + $0x10] ss:$8 sps:$4 sm:$0xff]  }
 0xda2   : > { %3766 = vpow2.f32 %v2236_v16  ;;  %v2373_v16 = vrot.slane %v4710_v29, %v1496_v31  ;;  %v3697_v31 = vld [vmem:[%s4987_s6 + $0x74] ss:$8 sps:$4 sm:$0xff]   ;;  %v3704_v61 = vld [vmem:[%s4987_s6 + $0x40] ss:$8 sps:$4 sm:$0xff]   ;;  %v3718_v6 = vld [vmem:[%s4987_s6 + $0x4] ss:$8 sps:$4 sm:$0xff]  }
 0xda3   : > { %3768 = vpow2.f32 %v2238_v49  ;;  %3534 = vmatpush3.bf16.msra.mxu1 %v3693_v3  ;;  %v2279_v34 = vpack.c.bf16 %v2059_v9, %v2055_v25  ;;  %v3706_v3 = vld [vmem:[%s4987_s6 + $0x44] ss:$8 sps:$4 sm:$0xff]   ;;  %v3727_v9 = vld [vmem:[%s4988_s7 + $0x58] sm:$0xff]  }
 0xda4   : > { %3770 = vpow2.f32 %v2240_v52  ;;  %3535 = vmatprep.subr.bf16.mxu1 %v5039_v30  ;;  %v3725_v26 = vld [vmem:[%s4988_s7 + $0x60] sm:$0xff]  }
 0xda5   : > { %v3726_v25 = vld [vmem:[%s4988_s7 + $0x20] sm:$0xff]  }
 0xda7   : > { %3536 = vmatpush3.bf16.msra.mxu1 %v3694_v48 }
 0xdab   : > { %v3761_v14 = vpop.eup %3760 }
 0xdac   : > { %v3763_v42 = vpop.eup %3762 }
 0xdad   : > { %v4782_v13 = vpop.eup %3764  ;;  %v2242_v27 = vadd.f32 %v3763_v42, %v3761_v14 }
 0xdae   : > { %v2243_v36 = vsel %vm2213_vm6, %v4782_v13, 0.0 }
 0xdaf   : > { %v3767_v17 = vpop.eup %3766  ;;  %v2244_v38 = vadd.f32 %v2243_v36, %v2242_v27 }
 0xdb0   : > { %v3769_v19 = vpop.eup %3768 }
 0xdb1   : > { %v3771_v12 = vpop.eup %3770  ;;  %2245 = vadd.xlane.f32.xlu0 %v2244_v38  ;;  %v2247_v28 = vadd.f32 %v3769_v19, %v3767_v17  ;;  %v3695_v38 = vld [vmem:[%s4987_s6 + $0x70] ss:$8 sps:$4 sm:$0xff]  }
 0xdb2   : > { %v2248_v50 = vsel %vm2213_vm6, %v3771_v12, 0.0 }
 0xdb3   : > { %v2249_v18 = vadd.f32 %v2248_v50, %v2247_v28 }
 0xdb5   : > { %2250 = vadd.xlane.f32.xlu1 %v2249_v18 }
 0xe3a   : > { %v2246_v10 = vpop.xlane.xlu0 %2245 }
 0xe3b   : > { %3772 = vrcp.f32 %v2246_v10  ;;  %v3709_v10 = vld [vmem:[%s4987_s6 + $0x34] ss:$8 sps:$4 sm:$0xff]  }
 0xe3e   : > { %v2251_v43 = vpop.xlane.xlu1 %2250 }
 0xe3f   : > { %3774 = vrcp.f32 %v2251_v43  ;;  %v3707_v43 = vld [vmem:[%s4987_s6 + $0x30] ss:$8 sps:$4 sm:$0xff]  }
 0xe48   : > { %v3773_v62 = vpop.eup %3772 }
 0xe49   : > { %v2255_v45 = vmul.f32 %v3773_v62, %v3763_v42  ;;  %v2254_v47 = vmul.f32 %v3773_v62, %v3761_v14 }
 0xe4c   : > { %v3775_v63 = vpop.eup %3774 }
 0xe4d   : > { %v2258_v39 = vmul.f32 %v3775_v63, %v3769_v19  ;;  %v2257_v1 = vmul.f32 %v3775_v63, %v3767_v17  ;;  %v2259_v11 = vmul.f32 %v3775_v63, %v3771_v12  ;;  %v3715_v63 = vld [vmem:[%s4987_s6 + $0x14] ss:$8 sps:$4 sm:$0xff]  }
 0xe4f   : > { %v2261_v2 = vpack.c.bf16 %v2258_v39, %v2255_v45  ;;  %v2260_v51 = vpack.c.bf16 %v2257_v1, %v2254_v47  ;;  %v3716_v45 = vld [vmem:[%s4987_s6] ss:$8 sps:$4 sm:$0xff]   ;;  %v3719_v39 = vld [vmem:[%s4988_s7 + $0x78] sm:$0xff]   ;;  %v3721_v1 = vld [vmem:[%s4988_s7 + $0x70] sm:$0xff]  }
 0xe50   : > { %v3720_v47 = vld [vmem:[%s4988_s7 + $0x38] sm:$0xff]   ;;  %3347 = vmatprep.subr.bf16.mxu1 %v3719_v39 }
 0xe51   : > { %2319 = vmatprep.mubr.bf16.mxu0 %v2261_v2  ;;  %v3722_v2 = vld [vmem:[%s4988_s7 + $0x30] sm:$0xff]  }
 0xe52   : > { %2320 = vmatmul.mubr.bf16.vlgmr.msra.gmra.mxu0 %v2260_v51  ;;  %v3723_v51 = vld [vmem:[%s4988_s7 + $0x68] sm:$0xff]  }
 0xe53   : > { %3508 = vmatpush3.bf16.msra.mxu0 %v2283_v59  ;;  %3517 = vmatprep.mubr.msk.bf16.mxu0 %vm3797_vm0, %v5039_v30  ;;  %v3724_v59 = vld [vmem:[%s4988_s7 + $0x28] sm:$0xff]  }
 0xe54   : > { %3509 = vmatprep.subr.bf16.mxu0 %v5039_v30 }
 0xe57   : > { %3510 = vmatpush3.bf16.msra.mxu0 %v2282_v44  ;;  %v2256_v44 = vmul.f32 %v3773_v62, %v4782_v13  ;;  %v3710_v62 = vld [vmem:[%s4987_s6 + $0x20] ss:$8 sps:$4 sm:$0xff]  }
 0xe58   : > { %3511 = vmatprep.subr.bf16.mxu0 %v5039_v30 }
 0xe59   : > { %v2262_v53 = vpack.c.bf16 %v2259_v11, %v2256_v44  ;;  %v3728_v11 = vld [vmem:[%s4988_s7 + $0x18] sm:$0xff]  }
 0xe5b   : > { %3512 = vmatpush3.bf16.msra.mxu0 %v2281_v55 }
 0xe5c   : > { %3513 = vmatprep.subr.bf16.mxu0 %v5039_v30 }
 0xe5f   : > { %3514 = vmatpush3.bf16.msra.mxu0 %v2280_v21 }
 0xe60   : > { %3515 = vmatprep.subr.bf16.mxu0 %v5039_v30 }
 0xe63   : > { %3516 = vmatpush3.bf16.msra.mxu0 %v2279_v34 }
 0xe64   : > { %2604 = vmatprep.subr.bf16.mxu0 %v3697_v31 }
 0xe66   : > { %3518 = vmatmul.mubr.msk.bf16.vlgmr.msra.gmra.mxu0 %vm2213_vm6, %v2262_v53 }
 0xe67   : > { %2636 = vmatprep.mubr.bf16.mxu0 %v5095_v35  ;;  %2605 = vmatpush1.bf16.msra.mxu0 %v3695_v38 }
 0xe68   : > { %2606 = vmatprep.subr.bf16.mxu0 %v3700_v58 }
 0xe6b   : > { %2607 = vmatpush1.bf16.msra.mxu0 %v3698_v41 }
 0xe6c   : > { %2608 = vmatprep.subr.bf16.mxu0 %v3703_v5 }
 0xe6f   : > { %2609 = vmatpush1.bf16.msra.mxu0 %v3701_v8 }
 0xe70   : > { %2610 = vmatprep.subr.bf16.mxu0 %v3706_v3 }
 0xe73   : > { %2611 = vmatpush1.bf16.msra.mxu0 %v3704_v61  ;;  %v2687_v61 = vsub.s32 7, %v3928_v20 }
 0xe74   : > { %2612 = vmatprep.subr.bf16.mxu0 %v3709_v10 }
 0xe75   : > { %v2688_v10 = vrot.slane %v4710_v29, %v2687_v61 }
 0xe77   : > { %2613 = vmatpush1.bf16.msra.mxu0 %v3707_v43 }
 0xe78   : > { %2614 = vmatprep.subr.bf16.mxu0 %v3712_v40 }
 0xe7b   : > { %2615 = vmatpush1.bf16.msra.mxu0 %v3710_v62 }
 0xe7c   : > { %2616 = vmatprep.subr.bf16.mxu0 %v3715_v63 }
 0xe7f   : > { %2617 = vmatpush1.bf16.msra.mxu0 %v3713_v46 }
 0xe80   : > { %2618 = vmatprep.subr.bf16.mxu0 %v3718_v6 }
 0xe83   : > { %2619 = vmatpush1.bf16.msra.mxu0 %v3716_v45 }
 0xf12   : > { %v3326_v4 = vpop.f32.mrf.mxu0 }
 0xf14   : > { %v3327_v33 = vpop.f32.mrf.mxu0 }
 0xf15   : > { %v3328_v24 = vadd.f32 %v3327_v33, %v3326_v4 }
 0xf16   : > { %v3329_v15 = vpop.f32.mrf.mxu0 }
 0xf18   : > { %v3330_v21 = vpop.f32.mrf.mxu0 }
 0xf19   : > { %v3331_v57 = vadd.f32 %v3330_v21, %v3329_v15  ;;  %v4938_v21 = vld [vmem:[%s4989_s8 + $0x18] sm:$0xff] }
 0xf26   : > { %v2362_v30 = vpop.f32.mrf.mxu0 }
 0xf27   : > { %v2363_v7 = vadd.f32 %v3328_v24, %v2362_v30  ;;  %v2490_v30 = vrot.slane %v4938_v21, %v4310_v32  ;;  %v3730_v32 = vld [vmem:[%s4988_s7 + $0x10] sm:$0xff]  }
 0xf28   : > { %v3519_v55 = vpop.f32.mrf.mxu0 }
 0xf29   : > { %v2495_v55 = vsub.s32 6, %v3928_v20 }
 0xf2a   : > { %v2365_v22 = vpop.f32.mrf.mxu0 }
 0xf2b   : > { %v2366_v60 = vadd.f32 %v3331_v57, %v2365_v22  ;;  %v2519_v38 = vrot.slane %v4710_v29, %v2495_v55 }
 0xf2c   : > { %v3520_v56 = vpop.f32.mrf.mxu0 }
 0xf2d   : > { %v2369_v0 = vpack.c.bf16 %v2366_v60, %v2363_v7  ;;  %v2496_v7 = vrot.slane %v4938_v21, %v2495_v55 }
 0xf2f   : > { %3538 = vmatmul.mubr.bf16.vlgmr.msra.gmra.mxu1 %v2369_v0 }
 0xf30   : > { %3348 = vmatpush3.bf16.msra.mxu1 %v3720_v47 }
 0xf31   : > { %3349 = vmatprep.subr.bf16.mxu1 %v3721_v1 }
 0xf34   : > { %3350 = vmatpush3.bf16.msra.mxu1 %v3722_v2 }
 0xf35   : > { %3351 = vmatprep.subr.bf16.mxu1 %v3723_v51 }
 0xf38   : > { %3352 = vmatpush3.bf16.msra.mxu1 %v3724_v59 }
 0xf39   : > { %3353 = vmatprep.subr.bf16.mxu1 %v3725_v26 }
 0xf3c   : > { %3354 = vmatpush3.bf16.msra.mxu1 %v3726_v25 }
 0xf3d   : > { %3355 = vmatprep.subr.bf16.mxu1 %v3727_v9 }
 0xf40   : > { %3356 = vmatpush3.bf16.msra.mxu1 %v3728_v11 }
 0xfef   : > { %v2456_v49 = vpop.f32.mrf.mxu1 }
 0xff0   : > { %v2457_v52 = vadd.f32 %v2456_v49, %v2373_v16  ;;  %v3729_v49 = vld [vmem:[%s4988_s7 + $0x50] sm:$0xff]  }
 0xff1   : > { %v3539_v14 = vpop.f32.mrf.mxu1  ;;  %3357 = vmatprep.subr.bf16.mxu1 %v3729_v49 }
 0xff2   : > { %v2463_v42 = vadd.f32 %v2457_v52, %v4630_v54  ;;  %3358 = vmatpush3.bf16.msra.mxu1 %v3730_v32  ;;  %v3731_v52 = vld [vmem:[%s4988_s7 + $0x48] sm:$0xff]  }
 0xff3   : > { %v2459_v13 = vpop.f32.mrf.mxu1  ;;  %v3732_v14 = vld [vmem:[%s4988_s7 + $0x8] sm:$0xff]   ;;  %3359 = vmatprep.subr.bf16.mxu1 %v3731_v52 }
 0xff4   : > { %v2460_v27 = vadd.f32 %v2459_v13, %v2373_v16  ;;  %2465 = vadd.xlane.f32.xlu0 %v2463_v42  ;;  %v3734_v13 = vld [vmem:[%s4988_s7] sm:$0xff]  }
 0xff5   : > { %v3540_v36 = vpop.f32.mrf.mxu1 }
 0xff6   : > { %v2464_v17 = vadd.f32 %v2460_v27, %v4632_v23  ;;  %3360 = vmatpush3.bf16.msra.mxu1 %v3732_v14  ;;  %v3786_v36 = vld [vmem:[%s4989_s8 + $0x8] sm:$0xff] }
 0xff8   : > { %2467 = vadd.xlane.f32.xlu1 %v2464_v17 }
0x107d   : > { %v2466_v19 = vpop.xlane.xlu0 %2465 }
0x107e   : > { %v2469_v12 = vmul.f32 0.0078125, %v2466_v19 }
0x1080   : > { %v4854_v54 = vsub.f32 %v2463_v42, %v2469_v12  ;;  %v3733_v42 = vld [vmem:[%s4988_s7 + $0x40] sm:$0xff]  }
0x1081   : > { %v2468_v28 = vpop.xlane.xlu1 %2467  ;;  %3361 = vmatprep.subr.bf16.mxu1 %v3733_v42 }
0x1082   : > { %v2470_v50 = vmul.f32 0.0078125, %v2468_v28  ;;  %v2473_v23 = vmul.f32 %v4854_v54, %v4854_v54  ;;  %3362 = vmatpush3.bf16.msra.mxu1 %v3734_v13 }
0x1084   : > { %v4858_v18 = vsub.f32 %v2464_v17, %v2470_v50  ;;  %2475 = vadd.xlane.f32.xlu0 %v2473_v23  ;;  %v2523_v17 = vrot.slane %v3786_v36, %v2495_v55 }
0x1086   : > { %v2474_v37 = vmul.f32 %v4858_v18, %v4858_v18 }
0x1088   : > { %2477 = vadd.xlane.f32.xlu1 %v2474_v37 }
0x110d   : > { %v2476_v34 = vpop.xlane.xlu0 %2475 }
0x110e   : > { %v2479_v44 = vmul.f32 0.0078125, %v2476_v34 }
0x1110   : > { %v2481_v53 = vadd.f32 1e-05, %v2479_v44 }
0x1111   : > { %v2478_v35 = vpop.xlane.xlu1 %2477 }
0x1112   : > { %3776 = vrsqrt.f32 %v2481_v53  ;;  %v2480_v48 = vmul.f32 0.0078125, %v2478_v35 }
0x1114   : > { %v2482_v4 = vadd.f32 1e-05, %v2480_v48 }
0x1116   : > { %3778 = vrsqrt.f32 %v2482_v4 }
0x111f   : > { %v3777_v33 = vpop.eup %3776 }
0x1120   : > { %v2485_v15 = vmul.f32 %v3777_v33, %v4854_v54  ;;  %v5096_v33 = vsub.s32 3, %v3928_v20 }
0x1122   : > { %v2491_v22 = vmul.f32 %v2490_v30, %v2485_v15  ;;  %v2853_v15 = vrot.slane %v4938_v21, %v5096_v33 }
0x1123   : > { %v3779_v24 = vpop.eup %3778 }
0x1124   : > { %v2486_v57 = vmul.f32 %v3779_v24, %v4858_v18  ;;  %v2497_v56 = vadd.f32 %v2496_v7, %v2491_v22  ;;  %v2859_v24 = vrot.slane %v4938_v21, %v2687_v61 }
0x1126   : > { %v2492_v60 = vmul.f32 %v2490_v30, %v2486_v57 }
0x1128   : > { %v2498_v0 = vadd.f32 %v2496_v7, %v2492_v60 }
0x112a   : > { %v2499_v16 = vpack.c.bf16 %v2498_v0, %v2497_v56 }
0x112c   : > { %2637 = vmatmul.mubr.bf16.vlgmr.msra.gmra.mxu0 %v2499_v16 }
0x11ec   : > { %v2638_v27 = vpop.f32.mrf.mxu0 }
0x11ed   : > { %v2639_v28 = vadd.f32 %v2638_v27, %v2519_v38 }
0x11ee   : > { %v2640_v31 = vpop.f32.mrf.mxu0 }
0x11ef   : > { %v2641_v12 = vadd.f32 %v2640_v31, %v2523_v17  ;;  %v2647_v41 = vmax.f32 %v2639_v28, 0.0 }
0x11f0   : > { %v2642_v19 = vpop.f32.mrf.mxu0 }
0x11f1   : > { %v2643_v54 = vadd.f32 %v2642_v19, %v2519_v38  ;;  %v2648_v37 = vmax.f32 %v2641_v12, 0.0 }
0x11f2   : > { %v2644_v50 = vpop.f32.mrf.mxu0 }
0x11f3   : > { %v2645_v23 = vadd.f32 %v2644_v50, %v2523_v17  ;;  %v2649_v18 = vmax.f32 %v2643_v54, 0.0 }
0x11f5   : > { %v2650_v58 = vmax.f32 %v2645_v23, 0.0  ;;  %v2651_v8 = vpack.c.bf16 %v2649_v18, %v2647_v41 }
0x11f7   : > { %v2652_v5 = vpack.c.bf16 %v2650_v58, %v2648_v37 }
0x11f9   : > { %2817 = vmatprep.mubr.bf16.mxu1 %v2652_v5 }
0x11fa   : > { %2818 = vmatmul.mubr.bf16.vlgmr.msra.gmra.mxu1 %v2651_v8 }
0x12ba   : > { %v3363_v3 = vpop.f32.mrf.mxu1 }
0x12bc   : > { %v3364_v43 = vpop.f32.mrf.mxu1 }
0x12bd   : > { %v3365_v40 = vadd.f32 %v3364_v43, %v3363_v3 }
0x12be   : > { %v3366_v62 = vpop.f32.mrf.mxu1 }
0x12bf   : > { %v2820_v63 = vadd.f32 %v3365_v40, %v2688_v10 }
0x12c0   : > { %v3367_v46 = vpop.f32.mrf.mxu1 }
0x12c1   : > { %v3368_v6 = vadd.f32 %v3367_v46, %v3366_v62  ;;  %v2826_v45 = vadd.f32 %v2820_v63, %v2497_v56 }
0x12c3   : > { %v2823_v39 = vadd.f32 %v3368_v6, %v2688_v10  ;;  %2828 = vadd.xlane.f32.xlu0 %v2826_v45 }
0x12c5   : > { %v2827_v47 = vadd.f32 %v2823_v39, %v2498_v0 }
0x12c7   : > { %2830 = vadd.xlane.f32.xlu1 %v2827_v47 }
0x134c   : > { %v2829_v1 = vpop.xlane.xlu0 %2828 }
0x134d   : > { %v2832_v2 = vmul.f32 0.0078125, %v2829_v1 }
0x134f   : > { %v2834_v51 = vsub.f32 %v2826_v45, %v2832_v2 }
0x1350   : > { %v2831_v59 = vpop.xlane.xlu1 %2830 }
0x1351   : > { %v2833_v26 = vmul.f32 0.0078125, %v2831_v59  ;;  %v2836_v25 = vmul.f32 %v2834_v51, %v2834_v51 }
0x1353   : > { %v2835_v9 = vsub.f32 %v2827_v47, %v2833_v26  ;;  %2838 = vadd.xlane.f32.xlu0 %v2836_v25 }
0x1355   : > { %v2837_v29 = vmul.f32 %v2835_v9, %v2835_v9 }
0x1357   : > { %2840 = vadd.xlane.f32.xlu1 %v2837_v29 }
0x13dc   : > { %v2839_v11 = vpop.xlane.xlu0 %2838 }
0x13dd   : > { %v2842_v34 = vmul.f32 0.0078125, %v2839_v11 }
0x13df   : > { %v2844_v44 = vadd.f32 1e-05, %v2842_v34 }
0x13e0   : > { %v2841_v53 = vpop.xlane.xlu1 %2840 }
0x13e1   : > { %3780 = vrsqrt.f32 %v2844_v44  ;;  %v2843_v35 = vmul.f32 0.0078125, %v2841_v53 }
0x13e3   : > { %v2845_v48 = vadd.f32 1e-05, %v2843_v35 }
0x13e5   : > { %3782 = vrsqrt.f32 %v2845_v48 }
0x13ee   : > { %v3781_v4 = vpop.eup %3780 }
0x13ef   : > { %v2848_v30 = vmul.f32 %v3781_v4, %v2834_v51 }
0x13f1   : > { %v2854_v57 = vmul.f32 %v2853_v15, %v2848_v30 }
0x13f2   : > { %v3783_v55 = vpop.eup %3782 }
0x13f3   : > { %v2849_v22 = vmul.f32 %v3783_v55, %v2835_v9  ;;  %v2860_v60 = vadd.f32 %v2859_v24, %v2854_v57 }
0x13f5   : > { %v2855_v7 = vmul.f32 %v2853_v15, %v2849_v22 }
0x13f7   : > { %v2861_v56 = vadd.f32 %v2859_v24, %v2855_v7 }
0x13f9   : > { %v3231_v0 = vpack.c.bf16 %v2861_v56, %v2860_v60 }
0x13fb   : > { %3232 = vst [vmem:[%s383_s18] sm:$0xff] %v3231_v0  }
0x13fc PF: > { %s19_s30 = sadd.s32 1, %s3793_s30  }
0x13fd   : > { %p16_p4 = scmp.ge.s32.totalorder %s19_s30, 4  }
0x13ff   :  { %18 = sbr.rel (!%p16_p4) target bundleno = 1 (0x1), region = 99 }

</bundles_post_ra>
